<compile_context>
chip_gen: v6e
topology: v6e:2x2x1
jax: 0.10.0
libtpu: 0.0.40
codegen_flags: <defaults>
</compile_context>

<pallas_src>
import functools

import jax
import jax.numpy as jnp
from jax import lax
from jax.experimental import pallas as pl
from jax.experimental.pallas import tpu as pltpu


# ----------------------------------------------------------------------------
# Pallas kernel: B_TILE images per grid step, everything fused, no scratch.
# ----------------------------------------------------------------------------
def _se_resblock_kernel(
    x_ref,      # (M, W*Ci)        f32, M = B_TILE*H lane-dense input rows
    w1b_ref,    # (3*W*Ci, W*nh)   bf16, banded 3x3 conv1 weights
    w2b_ref,    # (3*W*nh, W*nf)   bf16, banded 3x3 conv2 weights (BN2 scale folded)
    widb_ref,   # (W*Ci,  W*nf)    bf16, block-diag 1x1 idconv weights (BN scale folded)
    v1_ref,     # (2, W*nh)        f32, rows: [BN1 scale, BN1 shift] tiled over W
    v2_ref,     # (2, W*nf)        f32, rows: [BN2 shift, id-BN shift] tiled over W
    sep_ref,    # (2*nse+2, W*nf)  f32, rows: fc2 w (nse), fc2 b, fc1 w (nse, pool
                #                  folded), fc1 b (first nse lanes)
    msk_ref,    # (M, 2)           f32, per-row 0/1 masks: [row h-1 valid, row h+1 valid]
    o_ref,      # (M, W*nf)        f32 output rows
    *, img_h,
):
    M, Wci = x_ref.shape
    Wnh = v1_ref.shape[1]
    Wnf = o_ref.shape[1]
    nse = (sep_ref.shape[0] - 2) // 2
    H = img_h
    B = M // H
    f32, bf16 = jnp.float32, jnp.bfloat16

    x = x_ref[...]                                   # (M, Wci) f32
    upm = msk_ref[:, 0:1]                            # (M, 1) mask: row h-1 exists in image
    dnm = msk_ref[:, 1:2]                            # (M, 1) mask: row h+1 exists in image

    def taps(a):
        # dy = -1 / +1 taps via XLU roll; masks zero rows that would bleed
        # across an image boundary (or past the first/last row of the tile).
        up = pltpu.roll(a, 1, 0) * upm
        dn = pltpu.roll(a, M - 1, 0) * dnm
        return up, dn

    # ---- conv1 (3x3): three accumulated dots against static banded-weight slices,
    #      then ReLU, then BN1 (scale/shift; ReLU sits before BN so no folding).
    xb = x.astype(bf16)
    xu, xd = taps(x)
    a1 = jnp.dot(xu.astype(bf16), w1b_ref[0:Wci, :], preferred_element_type=f32)
    a1 = a1 + jnp.dot(xb, w1b_ref[Wci:2 * Wci, :], preferred_element_type=f32)
    a1 = a1 + jnp.dot(xd.astype(bf16), w1b_ref[2 * Wci:3 * Wci, :], preferred_element_type=f32)
    a1 = jnp.maximum(a1, 0.0) * v1_ref[0:1, :] + v1_ref[1:2, :]          # (M, Wnh)

    # ---- conv2 (3x3, BN2 scale folded into weights), then BN2 shift.
    a1u, a1d = taps(a1)
    a2 = jnp.dot(a1u.astype(bf16), w2b_ref[0:Wnh, :], preferred_element_type=f32)
    a2 = a2 + jnp.dot(a1.astype(bf16), w2b_ref[Wnh:2 * Wnh, :], preferred_element_type=f32)
    a2 = a2 + jnp.dot(a1d.astype(bf16), w2b_ref[2 * Wnh:3 * Wnh, :], preferred_element_type=f32)
    a2 = a2 + v2_ref[0:1, :]                                             # (M, Wnf)

    # ---- SE on VPU/XLU only: per-image pool -> fc1 -> ReLU -> fc2 -> sigmoid.
    f2w = sep_ref[0:nse, :]                      # (nse, Wnf) fc2 weight rows (W-tiled)
    f2b = sep_ref[nse:nse + 1, :]                # (1,  Wnf) fc2 bias (W-tiled)
    f1w = sep_ref[nse + 1:2 * nse + 1, :]        # (nse, Wnf) fc1 weight rows (pool folded)
    f1b = sep_ref[2 * nse + 1:2 * nse + 2, 0:nse]  # (1, nse) fc1 bias

    a2_img = a2.reshape(B, H, Wnf)
    pooled = jnp.sum(a2_img, axis=1)             # (B, Wnf)  per-image sum over rows
    glogit = jnp.broadcast_to(f2b, (B, Wnf))
    for j in range(nse):                         # nse is tiny (= nf // 16)
        hj = jnp.sum(pooled * f1w[j:j + 1, :], axis=-1, keepdims=True)   # (B, 1)
        hj = jnp.maximum(hj + f1b[:, j:j + 1], 0.0)
        glogit = glogit + hj * f2w[j:j + 1, :]
    gate = jax.nn.sigmoid(glogit)                # (B, Wnf), lane-dense
    se = (a2_img * gate[:, None, :]).reshape(M, Wnf)

    # ---- identity path: 1x1 conv as block-diagonal matmul + folded BN shift.
    idp = jnp.dot(xb, widb_ref[...], preferred_element_type=f32) + v2_ref[1:2, :]

    # ---- residual add + final ReLU; (M, Wnf) = (128, 512) unmasked store.
    o_ref[...] = jnp.maximum(se + idp, 0.0).astype(o_ref.dtype)


# ----------------------------------------------------------------------------
# One-time weight preparation: BN folding + banded / block-diag / tiled packing.
# ----------------------------------------------------------------------------
def _fold_bn(gamma, beta, mean, var, eps=1e-5):
    scale = gamma / jnp.sqrt(var + eps)
    shift = beta - mean * scale
    return scale, shift


def _banded_conv_weight(w_hwio, W):
    """(KH, KW, Cin, Cout) 3x3 conv weights -> (KH*W*Cin, W*Cout) banded matrix.

    Row (ky*W + wp)*Cin + c, column w*Cout + o hold w[ky, kx, c, o] when
    wp == w + (kx-1); missing horizontal taps implement zero padding along W.
    Vertical taps are supplied by the rolled/masked LHS rows in the kernel.
    """
    KH, KW, Cin, Cout = w_hwio.shape
    blocks = []
    for ky in range(KH):
        blk = jnp.zeros((W * Cin, W * Cout), jnp.float32)
        for kx in range(KW):
            dx = kx - (KW // 2)
            shift = jnp.eye(W, k=-dx, dtype=jnp.float32)   # [wp, w] = 1 iff wp == w + dx
            blk = blk + jnp.kron(shift, w_hwio[ky, kx].astype(jnp.float32))
        blocks.append(blk)
    return jnp.concatenate(blocks, axis=0)


def prepare_se_resblock(p, H, W, matmul_dtype=jnp.bfloat16):
    nf = p["w2"].shape[3]
    nse = p["fc1w"].shape[1]
    Wnf = W * nf

    s1, b1 = _fold_bn(p["g1"], p["b1"], p["m1"], p["v1"])
    s2, b2 = _fold_bn(p["g2"], p["b2"], p["m2"], p["v2"])
    sid, bid = _fold_bn(p["gid"], p["bid"], p["mid"], p["vid"])

    # Banded / block-diagonal weight matrices (BN2 & id-BN scales folded in;
    # BN1 scale must NOT be folded: the ReLU sits between conv1 and BN1).
    w1b = _banded_conv_weight(p["w1"], W).astype(matmul_dtype)                          # (3*Wci, Wnh)
    w2b = _banded_conv_weight(p["w2"] * s2[None, None, None, :], W).astype(matmul_dtype)  # (3*Wnh, Wnf)
    widb = jnp.kron(jnp.eye(W, dtype=jnp.float32),
                    p["wid"] * sid[None, :]).astype(matmul_dtype)                        # (Wci, Wnf)

    # Per-channel vectors, W-tiled and packed.
    v1 = jnp.stack([jnp.tile(s1, W), jnp.tile(b1, W)], axis=0)        # (2, Wnh)
    v2 = jnp.stack([jnp.tile(b2, W), jnp.tile(bid, W)], axis=0)       # (2, Wnf)

    # SE params, all lane-dense in one small operand:
    #   rows [0:nse]            fc2 weight rows, W-tiled
    #   row  nse                fc2 bias, W-tiled
    #   rows [nse+1:2*nse+1]    fc1 weight rows, W-tiled, /(H*W)  (global-avg-pool folded)
    #   row  2*nse+1            fc1 bias in the first nse lanes
    f2w = jnp.tile(p["fc2w"].astype(jnp.float32), (1, W))                       # (nse, Wnf)
    f2b = jnp.tile(p["fc2b"].astype(jnp.float32), W)[None, :]                   # (1, Wnf)
    f1w = jnp.tile(p["fc1w"].T.astype(jnp.float32), (1, W)) / float(H * W)      # (nse, Wnf)
    f1b = jnp.zeros((1, Wnf), jnp.float32).at[0, :nse].set(p["fc1b"])           # (1, Wnf)
    sep = jnp.concatenate([f2w, f2b, f1w, f1b], axis=0)                         # (2*nse+2, Wnf)

    return dict(w1b=w1b, w2b=w2b, widb=widb, v1=v1, v2=v2, sep=sep)


# ----------------------------------------------------------------------------
# Forward wrapper: layout plumbing + pallas_call.
# ----------------------------------------------------------------------------
def se_resblock(x_nchw, ops, *, b_tile=8):
    N, Ci, H, W = x_nchw.shape
    Wci = W * Ci
    Wnf = ops["v2"].shape[1]
    nf = Wnf // W

    # Batch tile: largest divisor of N that is <= b_tile (M = bt*H rows / step).
    # b_tile=8 -> M=128 rows per matmul; use 16 on v6e/v7x when N allows, but
    # keep >= 2 grid steps so v7x's two TensorCores both get work.
    bt = min(b_tile, N)
    while N % bt:
        bt -= 1
    M = bt * H
    grid_n = N // bt

    # NCHW -> NHWC -> lane-dense (N*H, W*Ci) rows.
    x2d = jnp.transpose(x_nchw, (0, 2, 3, 1)).astype(jnp.float32).reshape(N * H, Wci)

    # Per-row 0/1 masks for the dy=-1/+1 taps (also block cross-image bleed).
    hh = jnp.arange(M) % H
    msk = jnp.stack([(hh > 0), (hh < H - 1)], axis=1).astype(jnp.float32)   # (M, 2)

    kernel = functools.partial(_se_resblock_kernel, img_h=H)
    rep = lambda a: pl.BlockSpec(a.shape, lambda n: (0,) * a.ndim)  # constant index map
    #   -> weights/vectors are DMA'd once and stay VMEM-resident across steps.

    out2d = pl.pallas_call(
        kernel,
        out_shape=jax.ShapeDtypeStruct((N * H, Wnf), jnp.float32),
        grid_spec=pltpu.PrefetchScalarGridSpec(
            num_scalar_prefetch=0,
            grid=(grid_n,),
            in_specs=[
                pl.BlockSpec((M, Wci), lambda n: (n, 0)),        # x rows (lane-dense)
                rep(ops["w1b"]),                                 # banded conv1 w
                rep(ops["w2b"]),                                 # banded conv2 w
                rep(ops["widb"]),                                # block-diag idconv w
                rep(ops["v1"]),                                  # BN1 scale/shift
                rep(ops["v2"]),                                  # BN2 / id-BN shifts
                rep(ops["sep"]),                                 # SE fc1/fc2 pack
                rep(msk),                                        # row-validity masks
            ],
            out_specs=pl.BlockSpec((M, Wnf), lambda n: (n, 0)),
        ),
        compiler_params=pltpu.CompilerParams(dimension_semantics=("parallel",)),
    )(x2d, ops["w1b"], ops["w2b"], ops["widb"], ops["v1"], ops["v2"], ops["sep"], msk)

    out = out2d.reshape(N, H, W, nf)
    return jnp.transpose(out, (0, 3, 1, 2))          # NHWC -> NCHW


# ----------------------------------------------------------------------------
# Pure-JAX reference (same eval-mode semantics) for a correctness check.
# ----------------------------------------------------------------------------
def se_resblock_ref(x_nchw, p):
    x = jnp.transpose(x_nchw, (0, 2, 3, 1)).astype(jnp.float32)

    def conv(v, w, pad):
        return lax.conv_general_dilated(
            v, w, (1, 1), [(pad, pad), (pad, pad)],
            dimension_numbers=("NHWC", "HWIO", "NHWC"),
            precision=lax.Precision.HIGHEST)

    def bn(v, g, b, m, var):
        return g * (v - m) / jnp.sqrt(var + 1e-5) + b

    a1 = bn(jnp.maximum(conv(x, p["w1"], 1), 0.0), p["g1"], p["b1"], p["m1"], p["v1"])
    a2 = bn(conv(a1, p["w2"], 1), p["g2"], p["b2"], p["m2"], p["v2"])
    pooled = jnp.mean(a2, axis=(1, 2), keepdims=True)
    h = jnp.maximum(jnp.einsum("nxyc,cd->nxyd", pooled, p["fc1w"]) + p["fc1b"], 0.0)
    gate = jax.nn.sigmoid(jnp.einsum("nxyd,dc->nxyc", h, p["fc2w"]) + p["fc2b"])
    se = a2 * gate
    idp = bn(jnp.einsum("nhwc,cf->nhwf", x, p["wid"]),
             p["gid"], p["bid"], p["mid"], p["vid"])
    out = jnp.maximum(se + idp, 0.0)
    return jnp.transpose(out, (0, 3, 1, 2))


# ----------------------------------------------------------------------------
# Deterministic parameter init (shapes from SE_ResBlock.__init__; values random).
# ----------------------------------------------------------------------------
def init_params(key, ni, nh, nf, nse):
    ks = jax.random.split(key, 16)
    kaiming = lambda k, shape, fan_in: (
        jax.random.normal(k, shape, jnp.float32) * jnp.sqrt(2.0 / fan_in))
    p = {
        "w1": kaiming(ks[0], (3, 3, ni, nh), 9 * ni),
        "g1": 1.0 + 0.1 * jax.random.normal(ks[1], (nh,), jnp.float32),
        "b1": 0.1 * jax.random.normal(ks[2], (nh,), jnp.float32),
        "m1": 0.1 * jax.random.normal(ks[3], (nh,), jnp.float32),
        "v1": 0.5 + jax.random.uniform(ks[4], (nh,), jnp.float32),

        "w2": kaiming(ks[5], (3, 3, nh, nf), 9 * nh),
        # NOTE: real module uses BatchZero init (gamma=0); random gamma used so
        # the conv2 path is actually exercised numerically.
        "g2": 1.0 + 0.1 * jax.random.normal(ks[6], (nf,), jnp.float32),
        "b2": 0.1 * jax.random.normal(ks[7], (nf,), jnp.float32),
        "m2": 0.1 * jax.random.normal(ks[8], (nf,), jnp.float32),
        "v2": 0.5 + jax.random.uniform(ks[9], (nf,), jnp.float32),

        "fc1w": kaiming(ks[10], (nf, nse), nf),
        "fc1b": 0.1 * jax.random.normal(ks[11], (nse,), jnp.float32),
        "fc2w": kaiming(ks[12], (nse, nf), nse),
        "fc2b": 0.1 * jax.random.normal(ks[13], (nf,), jnp.float32),

        "wid": kaiming(ks[14], (ni, nf), ni),
        "gid": jnp.ones((nf,), jnp.float32),
        "bid": jnp.full((nf,), 0.001, jnp.float32),
        "mid": jnp.zeros((nf,), jnp.float32),
        "vid": jnp.ones((nf,), jnp.float32),
    }
    return p


if __name__ == "__main__":
    # SE_ResBlock(expansion=1, ni=8, nh=32, stride=1): nf=32, SE hidden = 32//16 = 2.
    # N=16 with b_tile=8 -> grid=(2,) parallel steps, M=128 rows per matmul.
    N, Ci, H, W = 16, 8, 16, 16
    nh, nf, nse = 32, 32, 32 // 16

    key = jax.random.PRNGKey(0)
    kx, kp = jax.random.split(key)
    x = jax.random.normal(kx, (N, Ci, H, W), jnp.float32)   # PyTorch NCHW input
    params = init_params(kp, Ci, nh, nf, nse)

    ops = prepare_se_resblock(params, H, W)                 # hoisted, once per weight set
    out = se_resblock(x, ops, b_tile=8)
    out = jax.block_until_ready(out)

    ref = se_resblock_ref(x, params)
    assert out.shape == (N, nf, H, W), out.shape
    # bf16 MXU operands (f32 accumulation) vs. f32-HIGHEST reference -> loose tol.
    err = float(jnp.max(jnp.abs(out - ref)))
    assert jnp.allclose(out, ref, atol=1e-1, rtol=1e-1), err

    print("KERNEL_OK")
</pallas_src>

<mosaic_0001>
module attributes {stable_mosaic.version = 11 : i64} {
  func.func @_se_resblock_kernel(%arg0: i32, %arg1: memref<128x128xf32, #tpu.memory_space<vmem>>, %arg2: memref<384x512xbf16, #tpu.memory_space<vmem>>, %arg3: memref<1536x512xbf16, #tpu.memory_space<vmem>>, %arg4: memref<128x512xbf16, #tpu.memory_space<vmem>>, %arg5: memref<2x512xf32, #tpu.memory_space<vmem>>, %arg6: memref<2x512xf32, #tpu.memory_space<vmem>>, %arg7: memref<6x512xf32, #tpu.memory_space<vmem>>, %arg8: memref<128x2xf32, #tpu.memory_space<vmem>>, %arg9: memref<128x512xf32, #tpu.memory_space<vmem>>) attributes {dimension_semantics = [#tpu.dimension_semantics<parallel>], iteration_bounds = array<i64: 2>, scalar_prefetch = 0 : i64, scratch_operands = 0 : i64, tpu.core_type = #tpu.core_type<tc>, window_params = [{transform_indices = @transform_0, window_bounds = array<i64: 128, 128>}, {pipeline_mode = #tpu.pipeline_mode<synchronous>, transform_indices = @transform_1, window_bounds = array<i64: 384, 512>}, {pipeline_mode = #tpu.pipeline_mode<synchronous>, transform_indices = @transform_2, window_bounds = array<i64: 1536, 512>}, {pipeline_mode = #tpu.pipeline_mode<synchronous>, transform_indices = @transform_3, window_bounds = array<i64: 128, 512>}, {pipeline_mode = #tpu.pipeline_mode<synchronous>, transform_indices = @transform_4, window_bounds = array<i64: 2, 512>}, {pipeline_mode = #tpu.pipeline_mode<synchronous>, transform_indices = @transform_5, window_bounds = array<i64: 2, 512>}, {pipeline_mode = #tpu.pipeline_mode<synchronous>, transform_indices = @transform_6, window_bounds = array<i64: 6, 512>}, {pipeline_mode = #tpu.pipeline_mode<synchronous>, transform_indices = @transform_7, window_bounds = array<i64: 128, 2>}, {transform_indices = @transform_8, window_bounds = array<i64: 128, 512>}]} {
    %c0 = arith.constant 0 : index
    %c0_0 = arith.constant 0 : index
    %0 = vector.load %arg1[%c0, %c0_0] : memref<128x128xf32, #tpu.memory_space<vmem>>, vector<128x128xf32>
    %c0_1 = arith.constant 0 : index
    %c0_2 = arith.constant 0 : index
    %1 = vector.load %arg8[%c0_1, %c0_2] : memref<128x2xf32, #tpu.memory_space<vmem>>, vector<128x1xf32>
    %c0_3 = arith.constant 0 : index
    %c1 = arith.constant 1 : index
    %2 = vector.load %arg8[%c0_3, %c1] : memref<128x2xf32, #tpu.memory_space<vmem>>, vector<128x1xf32>
    %3 = arith.truncf %0 : vector<128x128xf32> to vector<128x128xbf16>
    %c1_i32 = arith.constant 1 : i32
    %4 = tpu.dynamic_rotate %0 by %c1_i32 dim 0 : vector<128x128xf32>, i32 -> vector<128x128xf32>
    %5 = vector.broadcast %1 : vector<128x1xf32> to vector<128x128xf32>
    %6 = arith.mulf %4, %5 : vector<128x128xf32>
    %c127_i32 = arith.constant 127 : i32
    %7 = tpu.dynamic_rotate %0 by %c127_i32 dim 0 : vector<128x128xf32>, i32 -> vector<128x128xf32>
    %8 = vector.broadcast %2 : vector<128x1xf32> to vector<128x128xf32>
    %9 = arith.mulf %7, %8 : vector<128x128xf32>
    %10 = arith.truncf %6 : vector<128x128xf32> to vector<128x128xbf16>
    %c0_4 = arith.constant 0 : index
    %c0_5 = arith.constant 0 : index
    %11 = vector.load %arg2[%c0_4, %c0_5] : memref<384x512xbf16, #tpu.memory_space<vmem>>, vector<128x512xbf16>
    %cst = arith.constant dense<0.000000e+00> : vector<128x512xf32>
    %12 = tpu.matmul %10, %11, %cst {dimension_numbers = #tpu.dot_dimension_numbers<[1], [0], [0], [1], [0, 0, 1, 1], [], []>} : vector<128x128xbf16>, vector<128x512xbf16>, vector<128x512xf32> -> vector<128x512xf32>
    %c128 = arith.constant 128 : index
    %c0_6 = arith.constant 0 : index
    %13 = vector.load %arg2[%c128, %c0_6] : memref<384x512xbf16, #tpu.memory_space<vmem>>, vector<128x512xbf16>
    %cst_7 = arith.constant dense<0.000000e+00> : vector<128x512xf32>
    %14 = tpu.matmul %3, %13, %cst_7 {dimension_numbers = #tpu.dot_dimension_numbers<[1], [0], [0], [1], [0, 0, 1, 1], [], []>} : vector<128x128xbf16>, vector<128x512xbf16>, vector<128x512xf32> -> vector<128x512xf32>
    %15 = arith.addf %12, %14 : vector<128x512xf32>
    %16 = arith.truncf %9 : vector<128x128xf32> to vector<128x128xbf16>
    %c256 = arith.constant 256 : index
    %c0_8 = arith.constant 0 : index
    %17 = vector.load %arg2[%c256, %c0_8] : memref<384x512xbf16, #tpu.memory_space<vmem>>, vector<128x512xbf16>
    %cst_9 = arith.constant dense<0.000000e+00> : vector<128x512xf32>
    %18 = tpu.matmul %16, %17, %cst_9 {dimension_numbers = #tpu.dot_dimension_numbers<[1], [0], [0], [1], [0, 0, 1, 1], [], []>} : vector<128x128xbf16>, vector<128x512xbf16>, vector<128x512xf32> -> vector<128x512xf32>
    %19 = arith.addf %15, %18 : vector<128x512xf32>
    %cst_10 = arith.constant 0.000000e+00 : f32
    %20 = vector.broadcast %cst_10 : f32 to vector<128x512xf32>
    %21 = arith.maximumf %19, %20 : vector<128x512xf32>
    %c0_11 = arith.constant 0 : index
    %c0_12 = arith.constant 0 : index
    %22 = vector.load %arg5[%c0_11, %c0_12] : memref<2x512xf32, #tpu.memory_space<vmem>>, vector<1x512xf32>
    %23 = vector.broadcast %22 : vector<1x512xf32> to vector<128x512xf32>
    %24 = arith.mulf %21, %23 : vector<128x512xf32>
    %c1_13 = arith.constant 1 : index
    %c0_14 = arith.constant 0 : index
    %25 = vector.load %arg5[%c1_13, %c0_14] : memref<2x512xf32, #tpu.memory_space<vmem>>, vector<1x512xf32>
    %26 = vector.broadcast %25 : vector<1x512xf32> to vector<128x512xf32>
    %27 = arith.addf %24, %26 : vector<128x512xf32>
    %c1_i32_15 = arith.constant 1 : i32
    %28 = tpu.dynamic_rotate %27 by %c1_i32_15 dim 0 : vector<128x512xf32>, i32 -> vector<128x512xf32>
    %29 = vector.broadcast %1 : vector<128x1xf32> to vector<128x512xf32>
    %30 = arith.mulf %28, %29 : vector<128x512xf32>
    %c127_i32_16 = arith.constant 127 : i32
    %31 = tpu.dynamic_rotate %27 by %c127_i32_16 dim 0 : vector<128x512xf32>, i32 -> vector<128x512xf32>
    %32 = vector.broadcast %2 : vector<128x1xf32> to vector<128x512xf32>
    %33 = arith.mulf %31, %32 : vector<128x512xf32>
    %34 = arith.truncf %30 : vector<128x512xf32> to vector<128x512xbf16>
    %c0_17 = arith.constant 0 : index
    %c0_18 = arith.constant 0 : index
    %35 = vector.load %arg3[%c0_17, %c0_18] : memref<1536x512xbf16, #tpu.memory_space<vmem>>, vector<512x512xbf16>
    %cst_19 = arith.constant dense<0.000000e+00> : vector<128x512xf32>
    %36 = tpu.matmul %34, %35, %cst_19 {dimension_numbers = #tpu.dot_dimension_numbers<[1], [0], [0], [1], [0, 0, 1, 1], [], []>} : vector<128x512xbf16>, vector<512x512xbf16>, vector<128x512xf32> -> vector<128x512xf32>
    %37 = arith.truncf %27 : vector<128x512xf32> to vector<128x512xbf16>
    %c512 = arith.constant 512 : index
    %c0_20 = arith.constant 0 : index
    %38 = vector.load %arg3[%c512, %c0_20] : memref<1536x512xbf16, #tpu.memory_space<vmem>>, vector<512x512xbf16>
    %cst_21 = arith.constant dense<0.000000e+00> : vector<128x512xf32>
    %39 = tpu.matmul %37, %38, %cst_21 {dimension_numbers = #tpu.dot_dimension_numbers<[1], [0], [0], [1], [0, 0, 1, 1], [], []>} : vector<128x512xbf16>, vector<512x512xbf16>, vector<128x512xf32> -> vector<128x512xf32>
    %40 = arith.addf %36, %39 : vector<128x512xf32>
    %41 = arith.truncf %33 : vector<128x512xf32> to vector<128x512xbf16>
    %c1024 = arith.constant 1024 : index
    %c0_22 = arith.constant 0 : index
    %42 = vector.load %arg3[%c1024, %c0_22] : memref<1536x512xbf16, #tpu.memory_space<vmem>>, vector<512x512xbf16>
    %cst_23 = arith.constant dense<0.000000e+00> : vector<128x512xf32>
    %43 = tpu.matmul %41, %42, %cst_23 {dimension_numbers = #tpu.dot_dimension_numbers<[1], [0], [0], [1], [0, 0, 1, 1], [], []>} : vector<128x512xbf16>, vector<512x512xbf16>, vector<128x512xf32> -> vector<128x512xf32>
    %44 = arith.addf %40, %43 : vector<128x512xf32>
    %c0_24 = arith.constant 0 : index
    %c0_25 = arith.constant 0 : index
    %45 = vector.load %arg6[%c0_24, %c0_25] : memref<2x512xf32, #tpu.memory_space<vmem>>, vector<1x512xf32>
    %46 = vector.broadcast %45 : vector<1x512xf32> to vector<128x512xf32>
    %47 = arith.addf %44, %46 : vector<128x512xf32>
    %c0_26 = arith.constant 0 : index
    %c0_27 = arith.constant 0 : index
    %48 = vector.load %arg7[%c0_26, %c0_27] : memref<6x512xf32, #tpu.memory_space<vmem>>, vector<2x512xf32>
    %c2 = arith.constant 2 : index
    %c0_28 = arith.constant 0 : index
    %49 = vector.load %arg7[%c2, %c0_28] : memref<6x512xf32, #tpu.memory_space<vmem>>, vector<1x512xf32>
    %c3 = arith.constant 3 : index
    %c0_29 = arith.constant 0 : index
    %50 = vector.load %arg7[%c3, %c0_29] : memref<6x512xf32, #tpu.memory_space<vmem>>, vector<2x512xf32>
    %c5 = arith.constant 5 : index
    %c0_30 = arith.constant 0 : index
    %51 = vector.load %arg7[%c5, %c0_30] : memref<6x512xf32, #tpu.memory_space<vmem>>, vector<1x2xf32>
    %52 = vector.shape_cast %47 : vector<128x512xf32> to vector<8x16x512xf32>
    %cst_31 = arith.constant dense<0.000000e+00> : vector<8x512xf32>
    %53 = vector.multi_reduction <add>, %52, %cst_31 [1] : vector<8x16x512xf32> to vector<8x512xf32>
    %54 = vector.shape_cast %49 : vector<1x512xf32> to vector<1x512xf32>
    %55 = vector.broadcast %54 : vector<1x512xf32> to vector<8x512xf32>
    %56 = vector.extract_strided_slice %50 {offsets = [0, 0], sizes = [1, 512], strides = [1, 1]} : vector<2x512xf32> to vector<1x512xf32>
    %57 = vector.broadcast %56 : vector<1x512xf32> to vector<8x512xf32>
    %58 = arith.mulf %53, %57 : vector<8x512xf32>
    %cst_32 = arith.constant dense<0.000000e+00> : vector<8xf32>
    %59 = vector.multi_reduction <add>, %58, %cst_32 [1] : vector<8x512xf32> to vector<8xf32>
    %60 = vector.shape_cast %59 : vector<8xf32> to vector<8x1xf32>
    %61 = vector.extract_strided_slice %51 {offsets = [0, 0], sizes = [1, 1], strides = [1, 1]} : vector<1x2xf32> to vector<1x1xf32>
    %62 = vector.broadcast %61 : vector<1x1xf32> to vector<8x1xf32>
    %63 = arith.addf %60, %62 : vector<8x1xf32>
    %cst_33 = arith.constant 0.000000e+00 : f32
    %64 = vector.broadcast %cst_33 : f32 to vector<8x1xf32>
    %65 = arith.maximumf %63, %64 : vector<8x1xf32>
    %66 = vector.extract_strided_slice %48 {offsets = [0, 0], sizes = [1, 512], strides = [1, 1]} : vector<2x512xf32> to vector<1x512xf32>
    %67 = vector.broadcast %65 : vector<8x1xf32> to vector<8x512xf32>
    %68 = vector.broadcast %66 : vector<1x512xf32> to vector<8x512xf32>
    %69 = arith.mulf %67, %68 : vector<8x512xf32>
    %70 = arith.addf %55, %69 : vector<8x512xf32>
    %71 = vector.extract_strided_slice %50 {offsets = [1, 0], sizes = [1, 512], strides = [1, 1]} : vector<2x512xf32> to vector<1x512xf32>
    %72 = vector.broadcast %71 : vector<1x512xf32> to vector<8x512xf32>
    %73 = arith.mulf %53, %72 : vector<8x512xf32>
    %cst_34 = arith.constant dense<0.000000e+00> : vector<8xf32>
    %74 = vector.multi_reduction <add>, %73, %cst_34 [1] : vector<8x512xf32> to vector<8xf32>
    %75 = vector.shape_cast %74 : vector<8xf32> to vector<8x1xf32>
    %76 = vector.extract_strided_slice %51 {offsets = [0, 1], sizes = [1, 1], strides = [1, 1]} : vector<1x2xf32> to vector<1x1xf32>
    %77 = vector.broadcast %76 : vector<1x1xf32> to vector<8x1xf32>
    %78 = arith.addf %75, %77 : vector<8x1xf32>
    %cst_35 = arith.constant 0.000000e+00 : f32
    %79 = vector.broadcast %cst_35 : f32 to vector<8x1xf32>
    %80 = arith.maximumf %78, %79 : vector<8x1xf32>
    %81 = vector.extract_strided_slice %48 {offsets = [1, 0], sizes = [1, 512], strides = [1, 1]} : vector<2x512xf32> to vector<1x512xf32>
    %82 = vector.broadcast %80 : vector<8x1xf32> to vector<8x512xf32>
    %83 = vector.broadcast %81 : vector<1x512xf32> to vector<8x512xf32>
    %84 = arith.mulf %82, %83 : vector<8x512xf32>
    %85 = arith.addf %70, %84 : vector<8x512xf32>
    %86 = arith.negf %85 : vector<8x512xf32>
    %87 = math.exp %86 : vector<8x512xf32>
    %cst_36 = arith.constant 1.000000e+00 : f32
    %88 = vector.broadcast %cst_36 : f32 to vector<8x512xf32>
    %89 = arith.addf %88, %87 : vector<8x512xf32>
    %90 = arith.divf %88, %89 : vector<8x512xf32>
    %91 = vector.shape_cast %90 : vector<8x512xf32> to vector<8x1x512xf32>
    %92 = vector.broadcast %91 : vector<8x1x512xf32> to vector<8x16x512xf32>
    %93 = arith.mulf %52, %92 : vector<8x16x512xf32>
    %94 = vector.shape_cast %93 : vector<8x16x512xf32> to vector<128x512xf32>
    %c0_37 = arith.constant 0 : index
    %c0_38 = arith.constant 0 : index
    %95 = vector.load %arg4[%c0_37, %c0_38] : memref<128x512xbf16, #tpu.memory_space<vmem>>, vector<128x512xbf16>
    %cst_39 = arith.constant dense<0.000000e+00> : vector<128x512xf32>
    %96 = tpu.matmul %3, %95, %cst_39 {dimension_numbers = #tpu.dot_dimension_numbers<[1], [0], [0], [1], [0, 0, 1, 1], [], []>} : vector<128x128xbf16>, vector<128x512xbf16>, vector<128x512xf32> -> vector<128x512xf32>
    %c1_40 = arith.constant 1 : index
    %c0_41 = arith.constant 0 : index
    %97 = vector.load %arg6[%c1_40, %c0_41] : memref<2x512xf32, #tpu.memory_space<vmem>>, vector<1x512xf32>
    %98 = vector.broadcast %97 : vector<1x512xf32> to vector<128x512xf32>
    %99 = arith.addf %96, %98 : vector<128x512xf32>
    %100 = arith.addf %94, %99 : vector<128x512xf32>
    %cst_42 = arith.constant 0.000000e+00 : f32
    %101 = vector.broadcast %cst_42 : f32 to vector<128x512xf32>
    %102 = arith.maximumf %100, %101 : vector<128x512xf32>
    %c0_43 = arith.constant 0 : index
    %c0_44 = arith.constant 0 : index
    %103 = vector.load %arg9[%c0_43, %c0_44] : memref<128x512xf32, #tpu.memory_space<vmem>>, vector<128x512xf32>
    tpu.vector_store %arg9[%c0_43, %c0_44], %102 {strides = array<i32>} : memref<128x512xf32, #tpu.memory_space<vmem>>, vector<128x512xf32>,
    return
  }
  func.func @transform_0(%arg0: i32) -> (i32, i32) {
    %c0_i32 = arith.constant 0 : i32
    %c0_i32_0 = arith.constant 0 : i32
    return %arg0, %c0_i32 : i32, i32
  }
  func.func @transform_1(%arg0: i32) -> (i32, i32) {
    %c0_i32 = arith.constant 0 : i32
    %c0_i32_0 = arith.constant 0 : i32
    %c0_i32_1 = arith.constant 0 : i32
    return %c0_i32, %c0_i32_0 : i32, i32
  }
  func.func @transform_2(%arg0: i32) -> (i32, i32) {
    %c0_i32 = arith.constant 0 : i32
    %c0_i32_0 = arith.constant 0 : i32
    %c0_i32_1 = arith.constant 0 : i32
    return %c0_i32, %c0_i32_0 : i32, i32
  }
  func.func @transform_3(%arg0: i32) -> (i32, i32) {
    %c0_i32 = arith.constant 0 : i32
    %c0_i32_0 = arith.constant 0 : i32
    %c0_i32_1 = arith.constant 0 : i32
    return %c0_i32, %c0_i32_0 : i32, i32
  }
  func.func @transform_4(%arg0: i32) -> (i32, i32) {
    %c0_i32 = arith.constant 0 : i32
    %c0_i32_0 = arith.constant 0 : i32
    %c0_i32_1 = arith.constant 0 : i32
    return %c0_i32, %c0_i32_0 : i32, i32
  }
  func.func @transform_5(%arg0: i32) -> (i32, i32) {
    %c0_i32 = arith.constant 0 : i32
    %c0_i32_0 = arith.constant 0 : i32
    %c0_i32_1 = arith.constant 0 : i32
    return %c0_i32, %c0_i32_0 : i32, i32
  }
  func.func @transform_6(%arg0: i32) -> (i32, i32) {
    %c0_i32 = arith.constant 0 : i32
    %c0_i32_0 = arith.constant 0 : i32
    %c0_i32_1 = arith.constant 0 : i32
    return %c0_i32, %c0_i32_0 : i32, i32
  }
  func.func @transform_7(%arg0: i32) -> (i32, i32) {
    %c0_i32 = arith.constant 0 : i32
    %c0_i32_0 = arith.constant 0 : i32
    %c0_i32_1 = arith.constant 0 : i32
    return %c0_i32, %c0_i32_0 : i32, i32
  }
  func.func @transform_8(%arg0: i32) -> (i32, i32) {
    %c0_i32 = arith.constant 0 : i32
    %c0_i32_0 = arith.constant 0 : i32
    return %arg0, %c0_i32 : i32, i32
  }
}

</mosaic_0001>

<bundles_post_ra>
// kernel: tpu_custom_call.1
= control target key start
LH: loop header
LB: loop body
LE: loop exit
PB: predicated region body
PF: predicated region fallthrough
CT: control target
= control target key end

     0   :  { %s15045_s0 = inlined_call_operand.hbm [shape: f32[256,128], index: 0, kind: input, shape index: {}]   ;;  %s15046_s1 = inlined_call_operand.hbm [shape: bf16[384,512], index: 1, kind: input, shape index: {}]   ;;  %s15047_s2 = inlined_call_operand.hbm [shape: bf16[1536,512], index: 2, kind: input, shape index: {}]   ;;  %s15048_s3 = inlined_call_operand.hbm [shape: bf16[128,512], index: 3, kind: input, shape index: {}]   ;;  %s15049_s4 = inlined_call_operand.hbm [shape: f32[2,512], index: 4, kind: input, shape index: {}]   ;;  %s15050_s5 = inlined_call_operand.hbm [shape: f32[2,512], index: 5, kind: input, shape index: {}]   ;;  %s15051_s6 = inlined_call_operand.hbm [shape: f32[6,512], index: 6, kind: input, shape index: {}]   ;;  %s15052_s7 = inlined_call_operand.vmem [shape: f32[128,2], index: 7, kind: input, shape index: {}]   ;;  %s15053_s8 = inlined_call_operand.hbm [shape: f32[256,512], index: 8, kind: output, shape index: {}]  }
   0x1   :  { %15416 = sst [smem:[#allocation151_spill]] %s15046_s1 }
   0x2   :  { %15417 = sst [smem:[#allocation152_spill]] %s15047_s2 }
   0x3   :  { %13 = vsyncpa [#allocation3], 0 }
   0x4   :  { %15 = vsyncpa [#allocation3 + $0x1], 0 }
   0x5   :  { %16 = vsyncpa [#allocation6], 0 }
   0x6   :  { %17 = vsyncpa [#allocation9], 0 }
   0x7   :  { %18 = vsyncpa [#allocation12], 0 }
   0x8   :  { %19 = vsyncpa [#allocation4], 0 }
   0x9   :  { %21 = vsyncpa [#allocation4 + $0x1], 0  ;;  %s10042_s27 = smov 0   ;;  %s10044_s28 = smov 0  }
   0xa   :  { %s10046_s29 = smov 0   ;;  %s10048_s30 = smov 0  }
   0xb LB: > { %s9980_s9 = smov [#allocation5]   ;;  %s10063_s11 = sadd.s32 4294967295, %s9978_s30   ;;  %s9978_s30 = sphi %s10048_s30, %s16673_s30   ;;  %s9974_s29 = sphi %s10046_s29, %s16672_s29   ;;  %s9970_s28 = sphi %s10044_s28, %s16671_s28   ;;  %s9966_s27 = sphi %s10042_s27, %s16670_s27  }
   0xc   : > { %s243_s10 = sshll.u32 %s9980_s9, 4  ;;  %p8267_p0 = scmp.ge.s32.totalorder %s9978_s30, 1  ;;  %s244_s10 = int_to_ptr.vmem [resolvable:$true] %s243_s10 }
   0xd   : > { %p15054_p1 = scmp.eq.s32.totalorder %s10063_s11, 0  ;;  %p231_p2 = scmp.lt.s32.totalorder %s9978_s30, 3 }
   0xe   : > { %s9981_s13 = smov [#allocation8]   ;;  %s9982_s16 = smov [#allocation11]  }
   0xf   : > { %p10068_p3 = pnand %p8267_p0, %p231_p2  ;;  %s269_s14 = sshll.u32 %s9981_s13, 4  ;;  %s10081_s14 = int_to_ptr.vmem [resolvable:$true] %s269_s14 }
  0x10   : > { %s294_s17 = sshll.u32 %s9982_s16, 4  ;;  %s9729_s19 = scalar_lea.vmem %s244_s10, 12288  ;;  %s10083_s17 = int_to_ptr.vmem [resolvable:$true] %s294_s17 }
  0x11   : > { %s15418_s12 = scalar_select %p10068_p3, 1, 0 }
  0x12   : > { %p8840_p5 = pneg %p10068_p3  ;;  %p9730_p8 = scmp.ne.s32.totalorder %s244_s10, %s9729_s19 }
  0x13   : > { %p9737_p11 = scmp.lt.s32.totalorder %s244_s10, %s244_s10  ;;  %p9738_p12 = scmp.lt.s32.totalorder %s9729_s19, %s9729_s19 }
  0x14   : > { %p10077_p6 = pnand %p8840_p5, %p15054_p1 }
  0x15   : > { %p9739_p13 = por %p9738_p12, %p9737_p11 }
  0x16   : > { %p10087_p7 = pneg %p10077_p6 }
  0x18   : > { %p9732_p9 = pnand %p9730_p8, %p10087_p7 }
  0x1a   : > { %p9733_p10 = pneg %p9732_p9 }
  0x1c   : > { %p9740_p0 = pnand %p9739_p13, %p9733_p10 }
  0x1e   : > { %9743 = shalt.err (!%p9740_p0)
}
  0x1f   : > { %s9983_s20 = smov 256   ;;  %s9984_s21 = smov 16  }
  0x20   : > { %s15421_s1 = sld [smem:[#allocation151_spill]]  ;;  %s9755_s24 = scalar_lea.vmem %s10081_s14, 4096 }
  0x21   : > { %p9756_p2 = scmp.ne.s32.totalorder %s10081_s14, %s9755_s24  ;;  %p9763_p9 = scmp.lt.s32.totalorder %s10081_s14, %s10081_s14 }
  0x22   : > { %p9764_p10 = scmp.lt.s32.totalorder %s9755_s24, %s9755_s24 }
  0x23   : > { %p9758_p5 = pnand %p9756_p2, %p10087_p7 }
  0x24   : > { %p9765_p11 = por %p9764_p10, %p9763_p9 }
  0x25   : > { %p9759_p8 = pneg %p9758_p5 }
  0x26   : > { %8843 = dma.hbm_to_vmem [thread:$0]  (!%p10077_p6), %s15421_s1, 12288, %s244_s10, [#allocation6], %s9983_s20, %s9983_s20, %s9984_s21  }
  0x27   : > { %p9766_p12 = pnand %p9765_p11, %p9759_p8 }
  0x29   : > { %9769 = shalt.err (!%p9766_p12)
}
  0x2a   : > { %8849 = dma.hbm_to_vmem [thread:$0]  (!%p10077_p6), %s15048_s3, 4096, %s10081_s14, [#allocation9], %s9983_s20, %s9983_s20, %s9984_s21  }
  0x2b   : > { %s9781_s9 = scalar_lea.vmem %s10083_s17, 128  ;;  %p9789_p5 = scmp.lt.s32.totalorder %s10083_s17, %s10083_s17 }
  0x2c   : > { %p9782_p13 = scmp.ne.s32.totalorder %s10083_s17, %s9781_s9  ;;  %p9790_p8 = scmp.lt.s32.totalorder %s9781_s9, %s9781_s9 }
  0x2e   : > { %p9784_p0 = pnand %p9782_p13, %p10087_p7  ;;  %p9791_p9 = por %p9790_p8, %p9789_p5 }
  0x30   : > { %p9785_p2 = pneg %p9784_p0 }
  0x32   : > { %p9792_p10 = pnand %p9791_p9, %p9785_p2 }
  0x34   : > { %9795 = shalt.err (!%p9792_p10)
}
  0x35   : > { %8855 = dma.hbm_to_vmem [thread:$0]  (!%p10077_p6), %s15050_s5, 128, %s10083_s17, [#allocation12]  }
  0x36   : > { %s9985_s14 = smov [#allocation7]   ;;  %s9986_s19 = smov [#allocation10]  }
  0x37   : > { %s256_s16 = sshll.u32 %s9985_s14, 4  ;;  %s283_s22 = sshll.u32 %s9986_s19, 4  ;;  %s257_s16 = int_to_ptr.vmem [resolvable:$true] %s256_s16  ;;  %s284_s22 = int_to_ptr.vmem [resolvable:$true] %s283_s22 }
  0x38   : > { %s9807_s23 = scalar_lea.vmem %s257_s16, 49152  ;;  %p9815_p0 = scmp.lt.s32.totalorder %s257_s16, %s257_s16 }
  0x39   : > { %p9808_p11 = scmp.ne.s32.totalorder %s257_s16, %s9807_s23  ;;  %p9816_p2 = scmp.lt.s32.totalorder %s9807_s23, %s9807_s23 }
  0x3b   : > { %p9810_p12 = pnand %p9808_p11, %p10087_p7  ;;  %p9817_p5 = por %p9816_p2, %p9815_p0 }
  0x3d   : > { %p9811_p13 = pneg %p9810_p12 }
  0x3f   : > { %p9818_p8 = pnand %p9817_p5, %p9811_p13 }
  0x41   : > { %9821 = shalt.err (!%p9818_p8)
}
  0x42   : > { %s15422_s2 = sld [smem:[#allocation152_spill]]  ;;  %s9833_s25 = scalar_lea.vmem %s284_s22, 128 }
  0x43   : > { %p9834_p9 = scmp.ne.s32.totalorder %s284_s22, %s9833_s25  ;;  %p9841_p12 = scmp.lt.s32.totalorder %s284_s22, %s284_s22 }
  0x44   : > { %p9842_p0 = scmp.lt.s32.totalorder %s9833_s25, %s9833_s25 }
  0x45   : > { %p9836_p10 = pnand %p9834_p9, %p10087_p7 }
  0x46   : > { %p9843_p13 = por %p9842_p0, %p9841_p12 }
  0x47   : > { %p9837_p11 = pneg %p9836_p10 }
  0x48   : > { %8846 = dma.hbm_to_vmem [thread:$0]  (!%p10077_p6), %s15422_s2, 49152, %s257_s16, [#allocation6], %s9983_s20, %s9983_s20, %s9984_s21  }
  0x49   : > { %p9844_p2 = pnand %p9843_p13, %p9837_p11 }
  0x4b   : > { %9847 = shalt.err (!%p9844_p2)
}
  0x4c   : > { %8852 = dma.hbm_to_vmem [thread:$0]  (!%p10077_p6), %s15049_s4, 128, %s284_s22, [#allocation9]  }
  0x4d   : > { %s9987_s10 = smov [#allocation13]  }
  0x4e   : > { %s305_s20 = sshll.u32 %s9987_s10, 4  ;;  %s306_s20 = int_to_ptr.vmem [resolvable:$true] %s305_s20 }
  0x4f   : > { %s9859_s21 = scalar_lea.vmem %s306_s20, 512  ;;  %p9867_p10 = scmp.lt.s32.totalorder %s306_s20, %s306_s20 }
  0x50   : > { %p9860_p5 = scmp.ne.s32.totalorder %s306_s20, %s9859_s21  ;;  %p9868_p4 = scmp.lt.s32.totalorder %s9859_s21, %s9859_s21 }
  0x52   : > { %p9862_p8 = pnand %p9860_p5, %p10087_p7  ;;  %p9869_p12 = por %p9868_p4, %p9867_p10 }
  0x54   : > { %p9863_p9 = pneg %p9862_p8 }
  0x56   : > { %p9870_p11 = pnand %p9869_p12, %p9863_p9 }
  0x58   : > { %9873 = shalt.err (!%p9870_p11)
}
  0x59   : > { %8858 = dma.hbm_to_vmem [thread:$0]  (!%p10077_p6), %s15051_s6, 512, %s306_s20, [#allocation12]  }
  0x5a   : > { %s8266_s18 = sadd.s32 4294967294, %s9978_s30   ;;  %s10154_s15 = sadd.s32 1, %s9978_s30  }
  0x5b   : > { %s31_s16 = ssub.s32 %s9978_s30, %s10154_s15  ;;  %s34_s19 = sadd.s32 1, %s9974_s29 }
  0x5c   : > { %p32_p4 = scmp.eq.s32.totalorder %s31_s16, 0  ;;  %p41_p7 = scmp.ne.s32.totalorder %s9974_s29, %s9970_s28 }
  0x5d   : > { %p42_p0 = scmp.eq.s32.totalorder %s9978_s30, 0  ;;  %p47_p13 = scmp.ne.s32.totalorder %s9970_s28, %s9966_s27 }
  0x5e   : > { %s10165_s22 = scalar_select %p32_p4, %s9974_s29, %s34_s19  }
  0x5f   : > { %p10167_p2 = por %p42_p0, %p41_p7  ;;  %p10173_p6 = por %p15054_p1, %p47_p13 }
  0x60   : > { %p218_p5 = scmp.eq.s32.totalorder %s10063_s11, 1  ;;  %p224_p8 = scmp.eq.s32.totalorder %s8266_s18, 1 }
  0x61   : > { %s15424_s17 = scalar_select %p10173_p6, 1, 0 }
  0x62   : > { %p8873_p9 = scmp.lt.s32.totalorder %s9978_s30, 2  ;;  %s319_s24 = sand.u32 1, %s9974_s29  }
  0x63   : > { %p10180_p10 = por %p218_p5, %p41_p7  ;;  %p10184_p12 = por %p224_p8, %p47_p13 }
  0x64   : > { %s8275_s9 = sshll.u32 %s319_s24, 7  ;;  %s8809_s10 = sshll.u32 %s9978_s30, 11 }
  0x65   : > { %s15425_s25 = scalar_select %p10180_p10, 1, 0 }
  0x66   : > { %s15426_s26 = scalar_select %p10184_p12, 1, 0 }
  0x67   : > { %s10192_s13 = scalar_lea.hbm %s15045_s0, %s8809_s10  ;;  %s323_s14 = scalar_lea.vmem [#allocation2], %s8275_s9 }
  0x68   : > { %s330_s18 = sshll.u32 %s323_s14, 4  ;;  %p10198_p11 = pnand %p8873_p9, %p10167_p2  ;;  %s10194_s18 = int_to_ptr.vmem [resolvable:$true] %s330_s18 }
  0x69   : > { %s10202_s19 = scalar_lea.sflag [#allocation3], %s319_s24  ;;  %s9874_s1 = scalar_lea.hbm %s10192_s13, 2048 }
  0x6a   : > { %p9875_p4 = scmp.ne.s32.totalorder %s10192_s13, %s9874_s1  ;;  %p9876_p7 = pneg %p10198_p11 }
  0x6b   : > { %s9879_s9 = scalar_lea.hbm %s15045_s0, 4096  ;;  %p9880_p2 = scmp.lt.s32.totalorder %s10192_s13, %s15045_s0 }
  0x6c   : > { %p9877_p0 = pnand %p9876_p7, %p9875_p4  ;;  %p9881_p5 = scmp.lt.s32.totalorder %s9879_s9, %s9874_s1 }
  0x6e   : > { %p9878_p13 = pneg %p9877_p0  ;;  %p9882_p8 = por %p9881_p5, %p9880_p2 }
  0x70   : > { %p9883_p9 = pnand %p9882_p8, %p9878_p13 }
  0x72   : > { %9886 = shalt.err (!%p9883_p9)
}
  0x73   : > { %s9887_s23 = scalar_lea.vmem %s10194_s18, 2048  ;;  %s9988_s24 = smov [#allocation2]  }
  0x74   : > { %p9888_p1 = scmp.ne.s32.totalorder %s10194_s18, %s9887_s23  ;;  %s9892_s2 = sshll.u32 %s9988_s24, 4  ;;  %s9893_s2 = int_to_ptr.vmem [resolvable:$false] %s9892_s2 }
  0x75   : > { %s9894_s10 = scalar_lea.vmem %s9893_s2, 4096  ;;  %p9895_p0 = scmp.lt.s32.totalorder %s10194_s18, %s9893_s2 }
  0x76   : > { %p9890_p12 = pnand %p9888_p1, %p9876_p7  ;;  %p9896_p10 = scmp.lt.s32.totalorder %s9894_s10, %s9887_s23 }
  0x78   : > { %p9891_p4 = pneg %p9890_p12  ;;  %p9897_p6 = por %p9896_p10, %p9895_p0 }
  0x7a   : > { %p9898_p3 = pnand %p9897_p6, %p9891_p4 }
  0x7c   : > { %9901 = shalt.err (!%p9898_p3)
}
  0x7d   : > { %s9989_s1 = smov 128   ;;  %s9990_s20 = smov 8  }
  0x7e   : > { %8862 = dma.hbm_to_vmem [thread:$0]  (!%p10198_p11), %s10192_s13, 2048, %s10194_s18, %s10202_s19, %s9989_s1, %s9989_s1, %s9990_s20  }
  0x7f   : > { %p15428_p1 = scmp.ne.s32.totalorder %s15418_s12, 0 }
  0x81   : > { %342 = sbr.rel (%p15428_p1) target bundleno = 1665 (0x681), region = 52 }
  0x86   : > { %s10226_s9 = sand.u32 1, %s9970_s28   ;;  %p15429_p3 = scmp.ne.s32.totalorder %s15424_s17, 0 }
  0x87   : > { %s8279_s2 = sshll.u32 %s10226_s9, 7  ;;  %s345_s21 = scalar_lea.sflag [#allocation3], %s10226_s9 }
  0x88   : > { %s10230_s14 = scalar_lea.vmem [#allocation2], %s8279_s2 }
  0x89   : > { %9945 = dma.done.wait (%p15429_p3), %s345_s21, 2048  }
  0x8a   : > { %9947 = vsyncadd (%p15429_p3), %s345_s21, 4294965248  ;;  %p15430_p6 = scmp.eq.s32.totalorder %s10063_s11, 0 }
  0x8c   : > { %9949 = dma.done.wait (%p15430_p6), [#allocation6], 61440   ;;  %p15431_p10 = pmov %p15430_p6 }
  0x8d   : > { %p15432_p12 = pmov %p15430_p6 }
  0x8e   : > { %9951 = vsyncadd (%p15431_p10), [#allocation6], 4294905856 }
  0x8f   : > { %9953 = dma.done.wait (%p15432_p12), [#allocation9], 4224   ;;  %p15433_p11 = pmov %p15430_p6 }
  0x90   : > { %p15434_p7 = pmov %p15430_p6 }
  0x91   : > { %9955 = vsyncadd (%p15433_p11), [#allocation9], 4294963072 }
  0x92   : > { %9957 = dma.done.wait (%p15434_p7), [#allocation12], 640   ;;  %p15435_p13 = pmov %p15430_p6 }
  0x93   : > { %v15061_v0 = vmov 0   ;;  %v10255_v1 = vld [vmem:[%s15052_s7 + $0x10] sm:$0xff]  ;;  %v10260_v2 = vld [vmem:[%s15052_s7] sm:$0xff]  ;;  %v10267_v3 = vld [vmem:[%s15052_s7 + $0x18] sm:$0xff]  ;;  %v464_v33 = vlaneseq  ;;  %v15058_v62 = vmov 1   ;;  %vm6890_vm2 = vcmask 1041409  }
  0x94   : > { %9959 = vsyncadd (%p15435_p13), [#allocation12], 4294966656  ;;  %8929 = vset.pattern.permute.xlu1 %v15061_v0  ;;  %8928 = vset.pattern.permute.xlu0 %v15061_v0  ;;  %v10272_v4 = vld [vmem:[%s15052_s7 + $0x8] sm:$0xff]  ;;  %v10284_v6 = vld [vmem:[%s15052_s7 + $0x20] sm:$0xff]  ;;  %vm6893_vm3 = vcmask 1042434   ;;  %vm6896_vm4 = vcmask 1043459  }
  0x95   : > { %956 = vmatprep.mubr.bf16.mxu0 %v15061_v0  ;;  %1069 = vmatprep.mubr.bf16.mxu1 %v15061_v0  ;;  %v10277_v5 = vld [vmem:[%s15052_s7 + $0x28] sm:$0xff]  ;;  %v8934_v7 = vld [vmem:[#allocation5 + $0x1e4] ss:$16 sps:$4 sm:$0xff]   ;;  %v8938_v9 = vld [vmem:[#allocation5 + $0x1e0] ss:$16 sps:$4 sm:$0xff]   ;;  %v10346_v41 = vshrl.u32 %v464_v33, 7 }
  0x96   : > { %495 = vperm.xlu1 %8929, %v10255_v1   ;;  %485 = vperm.xlu0 %8928, %v10260_v2   ;;  %v8936_v8 = vld [vmem:[#allocation5 + $0x1ec] ss:$16 sps:$4 sm:$0xff]   ;;  %v8939_v10 = vld [vmem:[#allocation5 + $0x1e8] ss:$16 sps:$4 sm:$0xff]   ;;  %v10294_v12 = vld [vmem:[%s15052_s7 + $0x30] sm:$0xff]  ;;  %vm6899_vm5 = vcmask 1044484  }
  0x97   : > { %v10289_v11 = vld [vmem:[%s15052_s7 + $0x38] sm:$0xff]  ;;  %924 = vmatprep.subr.bf16.mxu0 %v8934_v7  ;;  %v8940_v13 = vld [vmem:[#allocation5 + $0x1c4] ss:$16 sps:$4 sm:$0xff]   ;;  %1037 = vmatprep.subr.bf16.mxu1 %v8936_v8  ;;  %v8944_v15 = vld [vmem:[#allocation5 + $0x1c0] ss:$16 sps:$4 sm:$0xff]   ;;  %15436 = vst [vmem:[#allocation20_spill] sm:$0xff] %v10346_v41 }
  0x98   : > { %v8942_v14 = vld [vmem:[#allocation5 + $0x1cc] ss:$16 sps:$4 sm:$0xff]   ;;  %925 = vmatpush1.bf16.msra.mxu0 %v8938_v9  ;;  %v8945_v16 = vld [vmem:[#allocation5 + $0x1c8] ss:$16 sps:$4 sm:$0xff]   ;;  %1038 = vmatpush1.bf16.msra.mxu1 %v8939_v10  ;;  %v8946_v17 = vld [vmem:[#allocation5 + $0x1a4] ss:$16 sps:$4 sm:$0xff]  }
  0x99   : > { %926 = vmatprep.subr.bf16.mxu0 %v8940_v13  ;;  %v10301_v18 = vld [vmem:[%s15052_s7 + $0x48] sm:$0xff]  ;;  %1039 = vmatprep.subr.bf16.mxu1 %v8942_v14  ;;  %v10308_v20 = vld [vmem:[%s15052_s7 + $0x40] sm:$0xff]  ;;  %v10313_v24 = vld [vmem:[%s15052_s7 + $0x58] sm:$0xff]  ;;  %vm466_vm0 = vcmp.lt.s32.totalorder %v10346_v41, 1  ;;  %vm595_vm1 = vcmp.lt.s32.totalorder %v10346_v41, 7  ;;  %vm6902_vm6 = vcmask 1045509  }
  0x9a   : > { %500 = vperm.xlu1 %8929, %v10267_v3   ;;  %490 = vperm.xlu0 %8928, %v10272_v4   ;;  %v8948_v19 = vld [vmem:[#allocation5 + $0x1ac] ss:$16 sps:$4 sm:$0xff]   ;;  %v8950_v21 = vld [vmem:[#allocation5 + $0x1a0] ss:$16 sps:$4 sm:$0xff]   ;;  %v8951_v22 = vld [vmem:[#allocation5 + $0x1a8] ss:$16 sps:$4 sm:$0xff]  }
  0x9b   : > { %v8952_v23 = vld [vmem:[#allocation5 + $0x184] ss:$16 sps:$4 sm:$0xff]   ;;  %v8954_v25 = vld [vmem:[#allocation5 + $0x18c] ss:$16 sps:$4 sm:$0xff]   ;;  %v8956_v27 = vld [vmem:[#allocation5 + $0x180] ss:$16 sps:$4 sm:$0xff]  }
  0x9c   : > { %927 = vmatpush1.bf16.msra.mxu0 %v8944_v15  ;;  %1040 = vmatpush1.bf16.msra.mxu1 %v8945_v16  ;;  %v10320_v26 = vld [vmem:[%s15052_s7 + $0x50] sm:$0xff]  ;;  %v8957_v28 = vld [vmem:[#allocation5 + $0x188] ss:$16 sps:$4 sm:$0xff]   ;;  %v8960_v31 = vld [vmem:[#allocation5 + $0x16c] ss:$16 sps:$4 sm:$0xff]   ;;  %vm6905_vm7 = vcmask 1046534  }
  0x9d   : > { %928 = vmatprep.subr.bf16.mxu0 %v8946_v17  ;;  %1041 = vmatprep.subr.bf16.mxu1 %v8948_v19  ;;  %v8958_v29 = vld [vmem:[#allocation5 + $0x164] ss:$16 sps:$4 sm:$0xff]   ;;  %v10325_v30 = vld [vmem:[%s15052_s7 + $0x68] sm:$0xff]  ;;  %v8962_v34 = vld [vmem:[#allocation5 + $0x160] ss:$16 sps:$4 sm:$0xff]   ;;  %vm6908_vm8 = vcmask 1047559  }
  0x9e   : > { %510 = vperm.xlu1 %8929, %v10277_v5   ;;  %505 = vperm.xlu0 %8928, %v10284_v6   ;;  %v10332_v32 = vld [vmem:[%s15052_s7 + $0x60] sm:$0xff]  ;;  %v8963_v35 = vld [vmem:[#allocation5 + $0x168] ss:$16 sps:$4 sm:$0xff]   ;;  %v10342_v38 = vld [vmem:[%s15052_s7 + $0x70] sm:$0xff]  ;;  %s8811_s24 = sshll.u32 %s10063_s11, 13  ;;  %s8122_s2 = scalar_lea.sflag [#allocation4], %s10226_s9 }
  0x9f   : > { %v8964_v36 = vld [vmem:[#allocation5 + $0x144] ss:$16 sps:$4 sm:$0xff]   ;;  %v10337_v37 = vld [vmem:[%s15052_s7 + $0x78] sm:$0xff]  ;;  %v8968_v40 = vld [vmem:[#allocation5 + $0x140] ss:$16 sps:$4 sm:$0xff]   ;;  %s14992_s20 = scalar_lea.hbm %s15053_s8, %s8811_s24  ;;  %p16667_p5 = scmp.ne.s32.totalorder %s15425_s25, 0 }
  0xa0   : > { %929 = vmatpush1.bf16.msra.mxu0 %v8950_v21  ;;  %1042 = vmatpush1.bf16.msra.mxu1 %v8951_v22  ;;  %v8966_v39 = vld [vmem:[#allocation5 + $0x14c] ss:$16 sps:$4 sm:$0xff]   ;;  %v8969_v42 = vld [vmem:[#allocation5 + $0x148] ss:$16 sps:$4 sm:$0xff]   ;;  %v8970_v43 = vld [vmem:[#allocation5 + $0x124] ss:$16 sps:$4 sm:$0xff]  }
  0xa1   : > { %930 = vmatprep.subr.bf16.mxu0 %v8952_v23  ;;  %1043 = vmatprep.subr.bf16.mxu1 %v8954_v25  ;;  %v10349_v44 = vld [vmem:[%s10230_s14] sm:$0xff]  ;;  %v409_v45 = vld [vmem:[%s10230_s14 + $0x8] sm:$0xff]  ;;  %v10359_v54 = vld [vmem:[%s10230_s14 + $0x10] sm:$0xff]  ;;  %s9994_s12 = smov [#allocation14]  }
  0xa2   : > { %520 = vperm.xlu1 %8929, %v10289_v11   ;;  %515 = vperm.xlu0 %8928, %v10294_v12   ;;  %v579_v46 = vrot.slane %v10349_v44, 1  ;;  %v8972_v47 = vld [vmem:[#allocation5 + $0x12c] ss:$16 sps:$4 sm:$0xff]   ;;  %v448_v48 = vrot.slane %v10349_v44, 7  ;;  %v449_v49 = vrot.slane %v409_v45, 7  ;;  %v580_v50 = vrot.slane %v409_v45, 1 }
  0xa3   : > { %v8974_v51 = vld [vmem:[#allocation5 + $0x120] ss:$16 sps:$4 sm:$0xff]   ;;  %v8975_v52 = vld [vmem:[#allocation5 + $0x128] ss:$16 sps:$4 sm:$0xff]   ;;  %v8976_v53 = vld [vmem:[#allocation5 + $0x104] ss:$16 sps:$4 sm:$0xff]   ;;  %v10423_v25 = vpack.c.bf16 %v409_v45, %v10349_v44 }
  0xa4   : > { %931 = vmatpush1.bf16.msra.mxu0 %v8956_v27  ;;  %1044 = vmatpush1.bf16.msra.mxu1 %v8957_v28  ;;  %v10365_v55 = vsel %vm466_vm0, %v448_v48, %v449_v49  ;;  %v10371_v56 = vsel %vm595_vm1, %v579_v46, %v580_v50  ;;  %v10374_v57 = vld [vmem:[%s10230_s14 + $0x18] sm:$0xff]  ;;  %v581_v58 = vrot.slane %v10359_v54, 1  ;;  %v450_v59 = vrot.slane %v10359_v54, 7  ;;  %v10382_v63 = vld [vmem:[%s10230_s14 + $0x20] sm:$0xff]  ;;  %v10397_v9 = vld [vmem:[%s10230_s14 + $0x28] sm:$0xff]  ;;  %s9906_s17 = sshll.u32 %s9994_s12, 4  ;;  %s9907_s17 = int_to_ptr.vmem [resolvable:$false] %s9906_s17 }
  0xa5   : > { %932 = vmatprep.subr.bf16.mxu0 %v8958_v29  ;;  %1045 = vmatprep.subr.bf16.mxu1 %v8960_v31  ;;  %v8978_v60 = vld [vmem:[#allocation5 + $0x10c] ss:$16 sps:$4 sm:$0xff]   ;;  %v451_v61 = vrot.slane %v10374_v57, 7  ;;  %v452_v13 = vrot.slane %v10382_v63, 7  ;;  %v8980_v14 = vld [vmem:[#allocation5 + $0x100] ss:$16 sps:$4 sm:$0xff]  }
  0xa6   : > { %530 = vperm.xlu1 %8929, %v10301_v18   ;;  %525 = vperm.xlu0 %8928, %v10308_v20   ;;  %v10386_v7 = vsel %vm466_vm0, %v449_v49, %v450_v59  ;;  %v10392_v8 = vsel %vm595_vm1, %v580_v50, %v581_v58  ;;  %v8981_v15 = vld [vmem:[#allocation5 + $0x108] ss:$16 sps:$4 sm:$0xff]   ;;  %v453_v16 = vrot.slane %v10397_v9, 7  ;;  %v8987_v17 = vld [vmem:[#allocation5 + $0xec] ss:$16 sps:$4 sm:$0xff]   ;;  %v10410_v19 = vld [vmem:[%s10230_s14 + $0x30] sm:$0xff] }
  0xa7   : > { %v10401_v10 = vsel %vm466_vm0, %v450_v59, %v451_v61  ;;  %v10419_v22 = vld [vmem:[%s10230_s14 + $0x38] sm:$0xff]  ;;  %v454_v23 = vrot.slane %v10410_v19, 7  ;;  %15437 = vst [vmem:[#allocation21_spill] sm:$0xff] %v10423_v25  ;;  %v8982_v27 = vld [vmem:[#allocation5 + $0xe0] ss:$16 sps:$4 sm:$0xff]   ;;  %s9908_s13 = scalar_lea.vmem %s9907_s17, 16384 }
  0xa8   : > { %933 = vmatpush1.bf16.msra.mxu0 %v8962_v34  ;;  %1046 = vmatpush1.bf16.msra.mxu1 %v8963_v35  ;;  %v10414_v21 = vsel %vm466_vm0, %v452_v13, %v453_v16  ;;  %v455_v28 = vrot.slane %v10419_v22, 7  ;;  %v8985_v29 = vld [vmem:[#allocation5 + $0xe8] ss:$16 sps:$4 sm:$0xff]   ;;  %v10427_v31 = vld [vmem:[%s10230_s14 + $0x40] sm:$0xff]  ;;  %v8999_v50 = vld [vmem:[#allocation5 + $0xac] ss:$16 sps:$4 sm:$0xff]  }
  0xa9   : > { %934 = vmatprep.subr.bf16.mxu0 %v8964_v36  ;;  %1047 = vmatprep.subr.bf16.mxu1 %v8966_v39  ;;  %v456_v34 = vrot.slane %v10427_v31, 7  ;;  %v8988_v36 = vld [vmem:[#allocation5 + $0xc0] ss:$16 sps:$4 sm:$0xff]   ;;  %v8990_v39 = vld [vmem:[#allocation5 + $0xc4] ss:$16 sps:$4 sm:$0xff]  }
  0xaa   : > { %540 = vperm.xlu1 %8929, %v10313_v24   ;;  %535 = vperm.xlu0 %8928, %v10320_v26   ;;  %v10438_v33 = vsel %vm466_vm0, %v454_v23, %v455_v28  ;;  %v8996_v49 = vld [vmem:[#allocation5 + $0xa4] ss:$16 sps:$4 sm:$0xff]  }
  0xab   : > { %v10475_v59 = vld [vmem:[%s10230_s14 + $0x60] sm:$0xff] }
  0xac   : > { %935 = vmatpush1.bf16.msra.mxu0 %v8968_v40  ;;  %1048 = vmatpush1.bf16.msra.mxu1 %v8969_v42  ;;  %v8991_v40 = vld [vmem:[#allocation5 + $0xc8] ss:$16 sps:$4 sm:$0xff]   ;;  %v8993_v42 = vld [vmem:[#allocation5 + $0xcc] ss:$16 sps:$4 sm:$0xff]  }
  0xad   : > { %936 = vmatprep.subr.bf16.mxu0 %v8970_v43  ;;  %1049 = vmatprep.subr.bf16.mxu1 %v8972_v47  ;;  %v10447_v43 = vld [vmem:[%s10230_s14 + $0x50] sm:$0xff]  ;;  %v10455_v47 = vsel %vm466_vm0, %v455_v28, %v456_v34 }
  0xae   : > { %550 = vperm.xlu1 %8929, %v10325_v30   ;;  %545 = vperm.xlu0 %8928, %v10332_v32  }
  0xb0   : > { %937 = vmatpush1.bf16.msra.mxu0 %v8974_v51  ;;  %1050 = vmatpush1.bf16.msra.mxu1 %v8975_v52 }
  0xb1   : > { %938 = vmatprep.subr.bf16.mxu0 %v8976_v53  ;;  %1051 = vmatprep.subr.bf16.mxu1 %v8978_v60  ;;  %v10472_v53 = vpack.c.bf16 %v10374_v57, %v10359_v54  ;;  %v587_v54 = vrot.slane %v10427_v31, 1 }
  0xb2   : > { %560 = vperm.xlu1 %8929, %v10337_v37   ;;  %555 = vperm.xlu0 %8928, %v10342_v38  }
  0xb3   : > { %15438 = vst [vmem:[#allocation22_spill] sm:$0xff] %v10472_v53 }
  0xb4   : > { %939 = vmatpush1.bf16.msra.mxu0 %v8980_v14  ;;  %1052 = vmatpush1.bf16.msra.mxu1 %v8981_v15  ;;  %v9002_v15 = vld [vmem:[#allocation5 + $0x84] ss:$16 sps:$4 sm:$0xff]  }
  0xb5   : > { %1423 = vmatprep.subr.bf16.mxu1 %v8987_v17  ;;  %v9005_v17 = vld [vmem:[#allocation5 + $0x8c] ss:$16 sps:$4 sm:$0xff]  }
  0xb6   : > { %8931 = vset.pattern.permute.xlu1 %v15058_v62  ;;  %8930 = vset.pattern.permute.xlu0 %v15058_v62 }
  0xb7   : > { %617 = vperm.xlu1 %8931, %v10272_v4   ;;  %613 = vperm.xlu0 %8930, %v10260_v2   ;;  %v8984_v4 = vld [vmem:[#allocation5 + $0xe4] ss:$16 sps:$4 sm:$0xff]   ;;  %v10407_v2 = vsel %vm466_vm0, %v451_v61, %v452_v13  ;;  %v460_v61 = vrot.slane %v10475_v59, 7  ;;  %v8997_v13 = vld [vmem:[#allocation5 + $0xa8] ss:$16 sps:$4 sm:$0xff]  }
  0xb8   : > { %1310 = vmatprep.subr.bf16.mxu0 %v8984_v4  ;;  %957 = vmatmul.mubr.bf16.vlgmr.msra.gmra.mxu0 %v10423_v25 }
  0xb9   : > { %1070 = vmatmul.mubr.bf16.vlgmr.msra.gmra.mxu1 %v10423_v25  ;;  %1311 = vmatpush1.bf16.msra.mxu0 %v8982_v27  ;;  %v9003_v27 = vld [vmem:[#allocation5 + $0x88] ss:$16 sps:$4 sm:$0xff]  }
  0xba   : > { %1424 = vmatpush1.bf16.msra.mxu1 %v8985_v29  ;;  %966 = vmatprep.mubr.bf16.mxu0 %v15061_v0  ;;  %v10514_v29 = vpack.c.bf16 %v10397_v9, %v10382_v63 }
  0xbb   : > { %621 = vperm.xlu1 %8931, %v10255_v1   ;;  %625 = vperm.xlu0 %8930, %v10267_v3   ;;  %v10430_v1 = vld [vmem:[%s10230_s14 + $0x48] sm:$0xff]  ;;  %v10434_v3 = vsel %vm466_vm0, %v453_v16, %v454_v23  ;;  %v10489_v16 = vld [vmem:[%s10230_s14 + $0x70] sm:$0xff] }
  0xbc   : > { %v457_v35 = vrot.slane %v10430_v1, 7  ;;  %1079 = vmatprep.mubr.bf16.mxu1 %v15061_v0  ;;  %1312 = vmatprep.subr.bf16.mxu0 %v8990_v39  ;;  %15439 = vst [vmem:[#allocation23_spill] sm:$0xff] %v10514_v29  ;;  %v9009_v39 = vld [vmem:[#allocation5 + $0x68] ss:$16 sps:$4 sm:$0xff]  }
  0xbd   : > { %1425 = vmatprep.subr.bf16.mxu1 %v8993_v42  ;;  %1313 = vmatpush1.bf16.msra.mxu0 %v8988_v36  ;;  %v9006_v36 = vld [vmem:[#allocation5 + $0x60] ss:$16 sps:$4 sm:$0xff]   ;;  %v584_v42 = vrot.slane %v10397_v9, 1  ;;  %v9020_v9 = vld [vmem:[#allocation5 + $0x24] ss:$16 sps:$4 sm:$0xff]  }
  0xbe   : > { %v10451_v45 = vsel %vm466_vm0, %v456_v34, %v457_v35  ;;  %1426 = vmatpush1.bf16.msra.mxu1 %v8991_v40  ;;  %1314 = vmatprep.subr.bf16.mxu0 %v8996_v49  ;;  %v9008_v34 = vld [vmem:[#allocation5 + $0x64] ss:$16 sps:$4 sm:$0xff]   ;;  %v583_v40 = vrot.slane %v10382_v63, 1  ;;  %v9015_v49 = vld [vmem:[#allocation5 + $0x48] ss:$16 sps:$4 sm:$0xff]  }
  0xbf   : > { %629 = vperm.xlu1 %8931, %v10284_v6   ;;  %633 = vperm.xlu0 %8930, %v10277_v5   ;;  %v10458_v5 = vld [vmem:[%s10230_s14 + $0x58] sm:$0xff]  ;;  %v458_v6 = vrot.slane %v10447_v43, 7 }
  0xc0   : > { %v459_v51 = vrot.slane %v10458_v5, 7  ;;  %1427 = vmatprep.subr.bf16.mxu1 %v8999_v50  ;;  %967 = vmatmul.mubr.bf16.gmra.mxu0 %v10472_v53  ;;  %v10545_v63 = vsel %vm595_vm1, %v583_v40, %v584_v42 }
  0xc1   : > { %v10468_v52 = vsel %vm466_vm0, %v457_v35, %v458_v6  ;;  %1080 = vmatmul.mubr.bf16.gmra.mxu1 %v10472_v53  ;;  %976 = vmatprep.mubr.bf16.mxu0 %v15061_v0  ;;  %v9011_v35 = vld [vmem:[#allocation5 + $0x6c] ss:$16 sps:$4 sm:$0xff]   ;;  %v9141_v53 = vld [vmem:[#allocation7 + $0x7a0] ss:$16 sps:$4 sm:$0xff]  }
  0xc2   : > { %v10479_v60 = vsel %vm466_vm0, %v458_v6, %v459_v51  ;;  %v10493_v4 = vsel %vm466_vm0, %v459_v51, %v460_v61  ;;  %1089 = vmatprep.mubr.bf16.mxu1 %v15061_v0  ;;  %1428 = vmatpush1.bf16.msra.mxu1 %v8997_v13  ;;  %v9012_v6 = vld [vmem:[#allocation5 + $0x40] ss:$16 sps:$4 sm:$0xff]   ;;  %v9023_v51 = vld [vmem:[#allocation5 + $0x2c] ss:$16 sps:$4 sm:$0xff]   ;;  %v590_v13 = vrot.slane %v10458_v5, 1 }
  0xc3   : > { %637 = vperm.xlu1 %8931, %v10294_v12   ;;  %641 = vperm.xlu0 %8930, %v10289_v11   ;;  %v8994_v11 = vld [vmem:[#allocation5 + $0xa0] ss:$16 sps:$4 sm:$0xff]   ;;  %v10482_v12 = vld [vmem:[%s10230_s14 + $0x68] sm:$0xff] }
  0xc4   : > { %v461_v14 = vrot.slane %v10482_v12, 7  ;;  %1315 = vmatpush1.bf16.msra.mxu0 %v8994_v11  ;;  %1429 = vmatprep.subr.bf16.mxu1 %v9005_v17  ;;  %v591_v17 = vrot.slane %v10475_v59, 1 }
  0xc5   : > { %1316 = vmatprep.subr.bf16.mxu0 %v9002_v15 }
  0xc6   : > { %v10499_v23 = vsel %vm466_vm0, %v460_v61, %v461_v14  ;;  %1430 = vmatpush1.bf16.msra.mxu1 %v9003_v27  ;;  %v589_v61 = vrot.slane %v10447_v43, 1  ;;  %v9021_v27 = vld [vmem:[#allocation5 + $0x28] ss:$16 sps:$4 sm:$0xff]  }
  0xc7   : > { %645 = vperm.xlu1 %8931, %v10308_v20   ;;  %649 = vperm.xlu0 %8930, %v10301_v18   ;;  %v15059_v20 = vrot.slane %v10489_v16, 7  ;;  %v9000_v18 = vld [vmem:[#allocation5 + $0x80] ss:$16 sps:$4 sm:$0xff]  }
  0xc8   : > { %1317 = vmatpush1.bf16.msra.mxu0 %v9000_v18  ;;  %1431 = vmatprep.subr.bf16.mxu1 %v9011_v35  ;;  %v592_v18 = vrot.slane %v10482_v12, 1 }
  0xc9   : > { %v10508_v28 = vsel %vm466_vm0, %v461_v14, %v15059_v20  ;;  %977 = vmatmul.mubr.bf16.gmra.mxu0 %v10514_v29  ;;  %1090 = vmatmul.mubr.bf16.gmra.mxu1 %v10514_v29  ;;  %v9018_v14 = vld [vmem:[#allocation5 + $0x20] ss:$16 sps:$4 sm:$0xff]   ;;  %v9062_v20 = vld [vmem:[#allocation5 + $0x244] ss:$16 sps:$4 sm:$0xff]  }
  0xca   : > { %986 = vmatprep.mubr.bf16.mxu0 %v15061_v0  ;;  %1099 = vmatprep.mubr.bf16.mxu1 %v15061_v0  ;;  %v9138_v29 = vld [vmem:[#allocation7 + $0x5a0] ss:$16 sps:$4 sm:$0xff]  }
  0xcb   : > { %653 = vperm.xlu1 %8931, %v10320_v26   ;;  %657 = vperm.xlu0 %8930, %v10313_v24   ;;  %v9014_v24 = vld [vmem:[#allocation5 + $0x44] ss:$16 sps:$4 sm:$0xff]   ;;  %v9017_v26 = vld [vmem:[#allocation5 + $0x4c] ss:$16 sps:$4 sm:$0xff]  }
  0xcc   : > { %1318 = vmatprep.subr.bf16.mxu0 %v9008_v34  ;;  %1432 = vmatpush1.bf16.msra.mxu1 %v9009_v39  ;;  %v10575_v34 = vld [vmem:[%s10230_s14 + $0x78] sm:$0xff]  ;;  %v593_v39 = vrot.slane %v10489_v16, 1  ;;  %s8286_s14 = sshll.u32 %s10226_s9, 9 }
  0xcd   : > { %1319 = vmatpush1.bf16.msra.mxu0 %v9006_v36  ;;  %1433 = vmatprep.subr.bf16.mxu1 %v9017_v26  ;;  %v10583_v36 = vsel %vm595_vm1, %v589_v61, %v590_v13  ;;  %v9029_v26 = vld [vmem:[#allocation5 + $0xc] ss:$16 sps:$4 sm:$0xff]   ;;  %s14776_s23 = scalar_lea.vmem [#allocation14], %s8286_s14 }
  0xce   : > { %1320 = vmatprep.subr.bf16.mxu0 %v9014_v24  ;;  %v9026_v24 = vld [vmem:[#allocation5 + $0x4] ss:$16 sps:$4 sm:$0xff]   ;;  %s8136_s10 = sshll.u32 %s14776_s23, 4  ;;  %s14994_s10 = int_to_ptr.vmem [resolvable:$true] %s8136_s10 }
  0xcf   : > { %661 = vperm.xlu1 %8931, %v10332_v32   ;;  %665 = vperm.xlu0 %8930, %v10325_v30   ;;  %v582_v30 = vrot.slane %v10374_v57, 1  ;;  %v10527_v32 = vpack.c.bf16 %v10419_v22, %v10410_v19  ;;  %v586_v57 = vrot.slane %v10419_v22, 1  ;;  %v588_v22 = vrot.slane %v10430_v1, 1  ;;  %s9902_s21 = scalar_lea.vmem %s14994_s10, 8192  ;;  %p9909_p4 = scmp.lt.s32.totalorder %s14994_s10, %s9907_s17 }
  0xd0   : > { %1434 = vmatpush1.bf16.msra.mxu1 %v9015_v49  ;;  %p9903_p2 = scmp.ne.s32.totalorder %s14994_s10, %s9902_s21  ;;  %p9910_p0 = scmp.lt.s32.totalorder %s9908_s13, %s9902_s21 }
  0xd1   : > { %15440 = vst [vmem:[#allocation24_spill] sm:$0xff] %v10527_v32  ;;  %v10541_v50 = vsel %vm595_vm1, %v582_v30, %v583_v40  ;;  %987 = vmatmul.mubr.bf16.gmra.mxu0 %v10527_v32  ;;  %1100 = vmatmul.mubr.bf16.gmra.mxu1 %v10527_v32  ;;  %v10562_v11 = vsel %vm595_vm1, %v586_v57, %v587_v54 }
  0xd2   : > { %996 = vmatprep.mubr.bf16.mxu0 %v15061_v0  ;;  %1109 = vmatprep.mubr.bf16.mxu1 %v15061_v0  ;;  %v10570_v15 = vsel %vm595_vm1, %v587_v54, %v588_v22  ;;  %v10579_v35 = vsel %vm595_vm1, %v588_v22, %v589_v61  ;;  %v10592_v40 = vsel %vm595_vm1, %v591_v17, %v592_v18  ;;  %v9024_v54 = vld [vmem:[#allocation5] ss:$16 sps:$4 sm:$0xff]   ;;  %p9904_p8 = pnand %p9903_p2, %p16667_p5  ;;  %p9911_p1 = por %p9910_p0, %p9909_p4 }
  0xd3   : > { %669 = vperm.xlu1 %8931, %v10342_v38   ;;  %673 = vperm.xlu0 %8930, %v10337_v37   ;;  %v10535_v38 = vsel %vm595_vm1, %v581_v58, %v582_v30  ;;  %v585_v37 = vrot.slane %v10410_v19, 1  ;;  %v10588_v30 = vsel %vm595_vm1, %v590_v13, %v591_v17  ;;  %v9030_v17 = vld [vmem:[#allocation5 + $0x2e0] ss:$16 sps:$4 sm:$0xff]  }
  0xd4   : > { %1321 = vmatpush1.bf16.msra.mxu0 %v9012_v6  ;;  %1435 = vmatprep.subr.bf16.mxu1 %v9023_v51  ;;  %v10627_v51 = vpack.c.bf16 %v10482_v12, %v10475_v59  ;;  %p9905_p9 = pneg %p9904_p8 }
  0xd5   : > { %v10550_v58 = vsel %vm595_vm1, %v584_v42, %v585_v37  ;;  %v10554_v19 = vsel %vm595_vm1, %v585_v37, %v586_v57  ;;  %1322 = vmatprep.subr.bf16.mxu0 %v9020_v9  ;;  %v594_v42 = vrot.slane %v10575_v34, 1  ;;  %v10597_v37 = vpack.c.bf16 %v10430_v1, %v10427_v31  ;;  %1436 = vmatpush1.bf16.msra.mxu1 %v9021_v27  ;;  %v9027_v9 = vld [vmem:[#allocation5 + $0x8] ss:$16 sps:$4 sm:$0xff]   ;;  %v9032_v31 = vld [vmem:[#allocation5 + $0x2e4] ss:$16 sps:$4 sm:$0xff]  }
  0xd6   : > { %v10601_v57 = vsel %vm595_vm1, %v592_v18, %v593_v39  ;;  %1437 = vmatprep.subr.bf16.mxu1 %v9029_v26  ;;  %v9035_v1 = vld [vmem:[#allocation5 + $0x2ec] ss:$16 sps:$4 sm:$0xff]   ;;  %15443 = vst [vmem:[#allocation27_spill] sm:$0xff] %v10627_v51  ;;  %v9033_v18 = vld [vmem:[#allocation5 + $0x2e8] ss:$16 sps:$4 sm:$0xff]   ;;  %p9912_p3 = pnand %p9911_p1, %p9905_p9 }
  0xd7   : > { %8932 = vset.pattern.permute.xlu0 %v15061_v0  ;;  %15441 = vst [vmem:[#allocation25_spill] sm:$0xff] %v10597_v37  ;;  %v10605_v6 = vsel %vm595_vm1, %v593_v39, %v594_v42  ;;  %v10611_v49 = vsel %vm595_vm1, %v594_v42, %v579_v46  ;;  %v10619_v46 = vpack.c.bf16 %v10458_v5, %v10447_v43  ;;  %v15060_v5 = vrot.slane %v10575_v34, 7  ;;  %v9041_v26 = vld [vmem:[#allocation5 + $0x2cc] ss:$16 sps:$4 sm:$0xff]  }
  0xd8   : > { %1323 = vmatpush1.bf16.msra.mxu0 %v9018_v14  ;;  %v10635_v43 = vpack.c.bf16 %v10575_v34, %v10489_v16 }
  0xd9   : > { %1324 = vmatprep.subr.bf16.mxu0 %v9026_v24  ;;  %997 = vmatmul.mubr.bf16.gmra.mxu0 %v10597_v37  ;;  %15442 = vst [vmem:[#allocation26_spill] sm:$0xff] %v10619_v46  ;;  %v482_v22 = vsel %vm466_vm0, %v15060_v5, %v448_v48  ;;  %v9038_v24 = vld [vmem:[#allocation5 + $0x2c4] ss:$16 sps:$4 sm:$0xff]   ;;  %v9065_v5 = vld [vmem:[#allocation5 + $0x24c] ss:$16 sps:$4 sm:$0xff]  }
  0xda   : > { %1110 = vmatmul.mubr.bf16.gmra.mxu1 %v10597_v37  ;;  %1006 = vmatprep.mubr.bf16.mxu0 %v15061_v0  ;;  %15444 = vst [vmem:[#allocation28_spill] sm:$0xff] %v10635_v43 }
  0xdb   : > { %1119 = vmatprep.mubr.bf16.mxu1 %v15061_v0  ;;  %1438 = vmatpush1.bf16.msra.mxu1 %v9027_v9  ;;  %v9036_v9 = vld [vmem:[#allocation5 + $0x2c0] ss:$16 sps:$4 sm:$0xff]  }
  0xdc   : > { %1325 = vmatpush1.bf16.msra.mxu0 %v9024_v54  ;;  %1849 = vmatprep.subr.bf16.mxu1 %v9035_v1  ;;  %v9044_v1 = vld [vmem:[#allocation5 + $0x2a4] ss:$16 sps:$4 sm:$0xff]  }
  0xdd   : > { %1736 = vmatprep.subr.bf16.mxu0 %v9032_v31  ;;  %v9039_v31 = vld [vmem:[#allocation5 + $0x2c8] ss:$16 sps:$4 sm:$0xff]  }
  0xe1   : > { %1007 = vmatmul.mubr.bf16.gmra.mxu0 %v10619_v46 }
  0xe2   : > { %1120 = vmatmul.mubr.bf16.gmra.mxu1 %v10619_v46  ;;  %1016 = vmatprep.mubr.bf16.mxu0 %v15061_v0  ;;  %v9135_v46 = vld [vmem:[#allocation7 + $0x7c0] ss:$16 sps:$4 sm:$0xff]  }
  0xe3   : > { %1129 = vmatprep.mubr.bf16.mxu1 %v15061_v0 }
  0xe9   : > { %1017 = vmatmul.mubr.bf16.gmra.mxu0 %v10627_v51 }
  0xea   : > { %1130 = vmatmul.mubr.bf16.gmra.mxu1 %v10627_v51  ;;  %1026 = vmatprep.mubr.bf16.mxu0 %v15061_v0  ;;  %v9132_v51 = vld [vmem:[#allocation7 + $0x5c0] ss:$16 sps:$4 sm:$0xff]  }
  0xeb   : > { %1139 = vmatprep.mubr.bf16.mxu1 %v15061_v0 }
  0xf1   : > { %1027 = vmatmul.mubr.bf16.gmra.mxu0 %v10635_v43 }
  0xf2   : > { %1140 = vmatmul.mubr.bf16.gmra.mxu1 %v10635_v43  ;;  %1342 = vmatprep.mubr.bf16.mxu0 %v15061_v0  ;;  %v9077_v43 = vld [vmem:[#allocation5 + $0x20c] ss:$16 sps:$4 sm:$0xff]  }
  0xf3   : > { %1455 = vmatprep.mubr.bf16.mxu1 %v15061_v0 }
 0x111   : > { %v10642_v59 = vpop.permute.xlu1 %495  ;;  %v10644_v12 = vpop.permute.xlu0 %485 }
 0x112   : > { %15445 = vst [vmem:[#allocation29_spill] sm:$0xff] %v10642_v59  ;;  %15446 = vst [vmem:[#allocation30_spill] sm:$0xff] %v10644_v12  ;;  %v565_v61 = vmul.f32 %v10642_v59, %v10386_v7  ;;  %v563_v27 = vmul.f32 %v10644_v12, %v482_v22  ;;  %v9047_v22 = vld [vmem:[#allocation5 + $0x2ac] ss:$16 sps:$4 sm:$0xff]  }
 0x115   : > { %v10654_v13 = vpop.permute.xlu1 %500  ;;  %v10656_v14 = vpop.permute.xlu0 %490 }
 0x116   : > { %15447 = vst [vmem:[#allocation31_spill] sm:$0xff] %v10654_v13  ;;  %15448 = vst [vmem:[#allocation32_spill] sm:$0xff] %v10656_v14  ;;  %v564_v39 = vmul.f32 %v10656_v14, %v10365_v55  ;;  %v566_v44 = vmul.f32 %v10654_v13, %v10401_v10 }
 0x118   : > { %v692_v48 = vpack.c.bf16 %v564_v39, %v563_v27  ;;  %v693_v42 = vpack.c.bf16 %v566_v44, %v565_v61  ;;  %v9042_v44 = vld [vmem:[#allocation5 + $0x2a0] ss:$16 sps:$4 sm:$0xff]  }
 0x119   : > { %v10663_v54 = vpop.permute.xlu1 %510  ;;  %v10665_v7 = vpop.permute.xlu0 %505 }
 0x11a   : > { %15449 = vst [vmem:[#allocation33_spill] sm:$0xff] %v10663_v54  ;;  %15450 = vst [vmem:[#allocation34_spill] sm:$0xff] %v10665_v7  ;;  %1343 = vmatmul.mubr.bf16.vlgmr.msra.gmra.mxu0 %v692_v48  ;;  %1456 = vmatmul.mubr.bf16.vlgmr.msra.gmra.mxu1 %v692_v48  ;;  %v567_v55 = vmul.f32 %v10665_v7, %v10407_v2  ;;  %v568_v10 = vmul.f32 %v10663_v54, %v10414_v21  ;;  %v9045_v48 = vld [vmem:[#allocation5 + $0x2a8] ss:$16 sps:$4 sm:$0xff]  }
 0x11b   : > { %1737 = vmatpush1.bf16.msra.mxu0 %v9030_v17  ;;  %1850 = vmatpush1.bf16.msra.mxu1 %v9033_v18  ;;  %v9050_v17 = vld [vmem:[#allocation5 + $0x284] ss:$16 sps:$4 sm:$0xff]   ;;  %v9053_v18 = vld [vmem:[#allocation5 + $0x28c] ss:$16 sps:$4 sm:$0xff]  }
 0x11c   : > { %1352 = vmatprep.mubr.bf16.mxu0 %v15061_v0  ;;  %1465 = vmatprep.mubr.bf16.mxu1 %v15061_v0  ;;  %v694_v61 = vpack.c.bf16 %v568_v10, %v567_v55 }
 0x11d   : > { %v10673_v27 = vpop.permute.xlu1 %520  ;;  %v10675_v39 = vpop.permute.xlu0 %515  ;;  %1738 = vmatprep.subr.bf16.mxu0 %v9038_v24  ;;  %1851 = vmatprep.subr.bf16.mxu1 %v9041_v26  ;;  %v9048_v24 = vld [vmem:[#allocation5 + $0x280] ss:$16 sps:$4 sm:$0xff]   ;;  %v9051_v26 = vld [vmem:[#allocation5 + $0x288] ss:$16 sps:$4 sm:$0xff]  }
 0x11e   : > { %15451 = vst [vmem:[#allocation35_spill] sm:$0xff] %v10673_v27  ;;  %15452 = vst [vmem:[#allocation36_spill] sm:$0xff] %v10675_v39  ;;  %v569_v2 = vmul.f32 %v10675_v39, %v10434_v3  ;;  %v570_v21 = vmul.f32 %v10673_v27, %v10438_v33  ;;  %v9179_v27 = vld [vmem:[#allocation7 + $0x6ec] ss:$16 sps:$4 sm:$0xff]  }
 0x11f   : > { %1739 = vmatpush1.bf16.msra.mxu0 %v9036_v9  ;;  %1852 = vmatpush1.bf16.msra.mxu1 %v9039_v31  ;;  %v9056_v9 = vld [vmem:[#allocation5 + $0x264] ss:$16 sps:$4 sm:$0xff]   ;;  %v9059_v31 = vld [vmem:[#allocation5 + $0x26c] ss:$16 sps:$4 sm:$0xff]  }
 0x120   : > { %1740 = vmatprep.subr.bf16.mxu0 %v9044_v1  ;;  %1853 = vmatprep.subr.bf16.mxu1 %v9047_v22  ;;  %v695_v55 = vpack.c.bf16 %v570_v21, %v569_v2  ;;  %v9057_v2 = vld [vmem:[#allocation5 + $0x268] ss:$16 sps:$4 sm:$0xff]  }
 0x121   : > { %v10681_v10 = vpop.permute.xlu1 %530  ;;  %v10683_v62 = vpop.permute.xlu0 %525 }
 0x122   : > { %15453 = vst [vmem:[#allocation37_spill] sm:$0xff] %v10681_v10  ;;  %15454 = vst [vmem:[#allocation38_spill] sm:$0xff] %v10683_v62  ;;  %1353 = vmatmul.mubr.bf16.gmra.mxu0 %v693_v42  ;;  %1466 = vmatmul.mubr.bf16.gmra.mxu1 %v693_v42  ;;  %v571_v3 = vmul.f32 %v10683_v62, %v10455_v47  ;;  %v572_v33 = vmul.f32 %v10681_v10, %v10451_v45  ;;  %v9054_v47 = vld [vmem:[#allocation5 + $0x260] ss:$16 sps:$4 sm:$0xff]  }
 0x123   : > { %1362 = vmatprep.mubr.bf16.mxu0 %v15061_v0  ;;  %1475 = vmatprep.mubr.bf16.mxu1 %v15061_v0  ;;  %v9171_v10 = vld [vmem:[#allocation7 + $0x700] ss:$16 sps:$4 sm:$0xff]  }
 0x124   : > { %1741 = vmatpush1.bf16.msra.mxu0 %v9042_v44  ;;  %1854 = vmatpush1.bf16.msra.mxu1 %v9045_v48  ;;  %v10691_v1 = vpack.c.bf16 %v572_v33, %v571_v3  ;;  %v15459_v33 = vrot.slane %v10575_v34, 7 }
 0x125   : > { %v10693_v22 = vpop.permute.xlu1 %540  ;;  %v10695_v42 = vpop.permute.xlu0 %535  ;;  %1742 = vmatprep.subr.bf16.mxu0 %v9050_v17  ;;  %1855 = vmatprep.subr.bf16.mxu1 %v9053_v18  ;;  %v9060_v17 = vld [vmem:[#allocation5 + $0x240] ss:$16 sps:$4 sm:$0xff]   ;;  %v9063_v18 = vld [vmem:[#allocation5 + $0x248] ss:$16 sps:$4 sm:$0xff]  }
 0x126   : > { %15455 = vst [vmem:[#allocation39_spill] sm:$0xff] %v10693_v22  ;;  %15456 = vst [vmem:[#allocation40_spill] sm:$0xff] %v10695_v42  ;;  %v573_v45 = vmul.f32 %v10695_v42, %v10468_v52  ;;  %v574_v21 = vmul.f32 %v10693_v22, %v10479_v60  ;;  %v9173_v22 = vld [vmem:[#allocation7 + $0x704] ss:$16 sps:$4 sm:$0xff]   ;;  %v9168_v42 = vld [vmem:[#allocation7 + $0x500] ss:$16 sps:$4 sm:$0xff]  }
 0x128   : > { %1743 = vmatpush1.bf16.msra.mxu0 %v9048_v24  ;;  %1856 = vmatpush1.bf16.msra.mxu1 %v9051_v26  ;;  %v10701_v44 = vpack.c.bf16 %v574_v21, %v573_v45  ;;  %v9068_v24 = vld [vmem:[#allocation5 + $0x224] ss:$16 sps:$4 sm:$0xff]   ;;  %v9071_v26 = vld [vmem:[#allocation5 + $0x22c] ss:$16 sps:$4 sm:$0xff]   ;;  %v9066_v45 = vld [vmem:[#allocation5 + $0x220] ss:$16 sps:$4 sm:$0xff]  }
 0x129   : > { %v10703_v48 = vpop.permute.xlu1 %550  ;;  %v10705_v3 = vpop.permute.xlu0 %545  ;;  %1744 = vmatprep.subr.bf16.mxu0 %v9056_v9  ;;  %1857 = vmatprep.subr.bf16.mxu1 %v9059_v31  ;;  %v15460_v9 = vrot.slane %v10489_v16, 7  ;;  %v9069_v21 = vld [vmem:[#allocation5 + $0x228] ss:$16 sps:$4 sm:$0xff]  }
 0x12a   : > { %15457 = vst [vmem:[#allocation41_spill] sm:$0xff] %v10703_v48  ;;  %15458 = vst [vmem:[#allocation42_spill] sm:$0xff] %v10705_v3  ;;  %1363 = vmatmul.mubr.bf16.gmra.mxu0 %v694_v61  ;;  %1476 = vmatmul.mubr.bf16.gmra.mxu1 %v694_v61  ;;  %v575_v52 = vmul.f32 %v10705_v3, %v10493_v4  ;;  %v576_v60 = vmul.f32 %v10703_v48, %v10499_v23  ;;  %v9165_v3 = vld [vmem:[#allocation7 + $0x720] ss:$16 sps:$4 sm:$0xff]  }
 0x12b   : > { %1372 = vmatprep.mubr.bf16.mxu0 %v15061_v0  ;;  %1485 = vmatprep.mubr.bf16.mxu1 %v15061_v0  ;;  %v467_v61 = vsel %vm466_vm0, %v15460_v9, %v15459_v33  ;;  %v9074_v0 = vld [vmem:[#allocation5 + $0x204] ss:$16 sps:$4 sm:$0xff]  }
 0x12c   : > { %1745 = vmatpush1.bf16.msra.mxu0 %v9054_v47  ;;  %1858 = vmatpush1.bf16.msra.mxu1 %v9057_v2  ;;  %v10719_v31 = vpack.c.bf16 %v576_v60, %v575_v52  ;;  %v9075_v52 = vld [vmem:[#allocation5 + $0x208] ss:$16 sps:$4 sm:$0xff]  }
 0x12d   : > { %v10721_v4 = vpop.permute.xlu1 %560  ;;  %v10723_v23 = vpop.permute.xlu0 %555  ;;  %1746 = vmatprep.subr.bf16.mxu0 %v9062_v20  ;;  %1859 = vmatprep.subr.bf16.mxu1 %v9065_v5  ;;  %v9072_v5 = vld [vmem:[#allocation5 + $0x200] ss:$16 sps:$4 sm:$0xff]  }
 0x12e   : > { %15461 = vst [vmem:[#allocation43_spill] sm:$0xff] %v10721_v4  ;;  %15462 = vst [vmem:[#allocation44_spill] sm:$0xff] %v10723_v23  ;;  %v577_v34 = vmul.f32 %v10723_v23, %v10508_v28  ;;  %v578_v16 = vmul.f32 %v10721_v4, %v467_v61  ;;  %v9167_v23 = vld [vmem:[#allocation7 + $0x724] ss:$16 sps:$4 sm:$0xff]   ;;  %v9162_v4 = vld [vmem:[#allocation7 + $0x520] ss:$16 sps:$4 sm:$0xff]  }
 0x130   : > { %1747 = vmatpush1.bf16.msra.mxu0 %v9060_v17  ;;  %1860 = vmatpush1.bf16.msra.mxu1 %v9063_v18  ;;  %v10728_v47 = vpack.c.bf16 %v578_v16, %v577_v34  ;;  %v15465_v17 = vmov 0  }
 0x131   : > { %1748 = vmatprep.subr.bf16.mxu0 %v9068_v24  ;;  %1861 = vmatprep.subr.bf16.mxu1 %v9071_v26 }
 0x132   : > { %1373 = vmatmul.mubr.bf16.gmra.mxu0 %v695_v55  ;;  %1486 = vmatmul.mubr.bf16.gmra.mxu1 %v695_v55  ;;  %v10730_v2 = vpop.permute.xlu1 %617  ;;  %v10732_v20 = vpop.permute.xlu0 %613 }
 0x133   : > { %15463 = vst [vmem:[#allocation45_spill] sm:$0xff] %v10730_v2  ;;  %15464 = vst [vmem:[#allocation46_spill] sm:$0xff] %v10732_v20  ;;  %v677_v28 = vmul.f32 %v10730_v2, %v10392_v8  ;;  %v676_v60 = vmul.f32 %v10732_v20, %v10371_v56  ;;  %1382 = vmatprep.mubr.bf16.mxu0 %v15465_v17  ;;  %1495 = vmatprep.mubr.bf16.mxu1 %v15465_v17 }
 0x134   : > { %1749 = vmatpush1.bf16.msra.mxu0 %v9066_v45  ;;  %1862 = vmatpush1.bf16.msra.mxu1 %v9069_v21 }
 0x135   : > { %v1536_v18 = vpack.c.bf16 %v677_v28, %v676_v60  ;;  %1750 = vmatprep.subr.bf16.mxu0 %v9074_v0  ;;  %1863 = vmatprep.subr.bf16.mxu1 %v9077_v43 }
 0x136   : > { %v10740_v55 = vpop.permute.xlu1 %621  ;;  %v10742_v24 = vpop.permute.xlu0 %625 }
 0x137   : > { %15466 = vst [vmem:[#allocation47_spill] sm:$0xff] %v10740_v55  ;;  %15467 = vst [vmem:[#allocation48_spill] sm:$0xff] %v10742_v24  ;;  %v678_v26 = vmul.f32 %v10740_v55, %v10535_v38  ;;  %v679_v8 = vmul.f32 %v10742_v24, %v10541_v50  ;;  %v9159_v24 = vld [vmem:[#allocation7 + $0x740] ss:$16 sps:$4 sm:$0xff]   ;;  %v9164_v55 = vld [vmem:[#allocation7 + $0x524] ss:$16 sps:$4 sm:$0xff]  }
 0x138   : > { %1751 = vmatpush1.bf16.msra.mxu0 %v9072_v5  ;;  %1864 = vmatpush1.bf16.msra.mxu1 %v9075_v52 }
 0x139   : > { %v1537_v56 = vpack.c.bf16 %v679_v8, %v678_v26 }
 0x13a   : > { %1383 = vmatmul.mubr.bf16.gmra.mxu0 %v10691_v1  ;;  %1496 = vmatmul.mubr.bf16.gmra.mxu1 %v10691_v1  ;;  %v10750_v33 = vpop.permute.xlu1 %629  ;;  %v10752_v0 = vpop.permute.xlu0 %633 }
 0x13b   : > { %15468 = vst [vmem:[#allocation49_spill] sm:$0xff] %v10750_v33  ;;  %15469 = vst [vmem:[#allocation50_spill] sm:$0xff] %v10752_v0  ;;  %1392 = vmatprep.mubr.bf16.mxu0 %v15465_v17  ;;  %1505 = vmatprep.mubr.bf16.mxu1 %v15465_v17  ;;  %v680_v38 = vmul.f32 %v10750_v33, %v10545_v63  ;;  %v681_v50 = vmul.f32 %v10752_v0, %v10550_v58  ;;  %v9156_v33 = vld [vmem:[#allocation7 + $0x540] ss:$16 sps:$4 sm:$0xff]  }
 0x13d   : > { %v1538_v43 = vpack.c.bf16 %v681_v50, %v680_v38 }
 0x13e   : > { %v10760_v9 = vpop.permute.xlu1 %637  ;;  %v10762_v61 = vpop.permute.xlu0 %641 }
 0x13f   : > { %15470 = vst [vmem:[#allocation51_spill] sm:$0xff] %v10760_v9  ;;  %15471 = vst [vmem:[#allocation52_spill] sm:$0xff] %v10762_v61  ;;  %v682_v1 = vmul.f32 %v10760_v9, %v10554_v19  ;;  %v683_v45 = vmul.f32 %v10762_v61, %v10562_v11  ;;  %v9161_v61 = vld [vmem:[#allocation7 + $0x744] ss:$16 sps:$4 sm:$0xff]  }
 0x141   : > { %v1539_v21 = vpack.c.bf16 %v683_v45, %v682_v1  ;;  %v9087_v1 = vld [vmem:[#allocation7 + $0x6c0] ss:$16 sps:$4 sm:$0xff]   ;;  %v9095_v45 = vld [vmem:[#allocation7 + $0x6a4] ss:$16 sps:$4 sm:$0xff]  }
 0x142   : > { %1393 = vmatmul.mubr.bf16.gmra.mxu0 %v10701_v44  ;;  %1506 = vmatmul.mubr.bf16.gmra.mxu1 %v10701_v44  ;;  %v10770_v63 = vpop.permute.xlu1 %645  ;;  %v10772_v34 = vpop.permute.xlu0 %649 }
 0x143   : > { %15472 = vst [vmem:[#allocation53_spill] sm:$0xff] %v10770_v63  ;;  %15473 = vst [vmem:[#allocation54_spill] sm:$0xff] %v10772_v34  ;;  %1402 = vmatprep.mubr.bf16.mxu0 %v15465_v17  ;;  %1515 = vmatprep.mubr.bf16.mxu1 %v15465_v17  ;;  %v684_v58 = vmul.f32 %v10770_v63, %v10570_v15  ;;  %v685_v19 = vmul.f32 %v10772_v34, %v10579_v35  ;;  %v9158_v63 = vld [vmem:[#allocation7 + $0x544] ss:$16 sps:$4 sm:$0xff]  }
 0x145   : > { %v10780_v11 = vpack.c.bf16 %v685_v19, %v684_v58  ;;  %v9090_v58 = vld [vmem:[#allocation7 + $0x4a0] ss:$16 sps:$4 sm:$0xff]  }
 0x146   : > { %v10782_v16 = vpop.permute.xlu1 %653  ;;  %v10784_v5 = vpop.permute.xlu0 %657  ;;  %v9093_v19 = vld [vmem:[#allocation7 + $0x6a0] ss:$16 sps:$4 sm:$0xff]  }
 0x147   : > { %15474 = vst [vmem:[#allocation55_spill] sm:$0xff] %v10782_v16  ;;  %15475 = vst [vmem:[#allocation56_spill] sm:$0xff] %v10784_v5  ;;  %v686_v44 = vmul.f32 %v10782_v16, %v10583_v36  ;;  %v687_v52 = vmul.f32 %v10784_v5, %v10588_v30  ;;  %v9153_v16 = vld [vmem:[#allocation7 + $0x760] ss:$16 sps:$4 sm:$0xff]  }
 0x149   : > { %v10790_v28 = vpack.c.bf16 %v687_v52, %v686_v44  ;;  %v9098_v44 = vld [vmem:[#allocation7 + $0x484] ss:$16 sps:$4 sm:$0xff]  }
 0x14a   : > { %1403 = vmatmul.mubr.bf16.gmra.mxu0 %v10719_v31  ;;  %1516 = vmatmul.mubr.bf16.gmra.mxu1 %v10719_v31  ;;  %v10794_v15 = vpop.permute.xlu1 %661  ;;  %v10796_v35 = vpop.permute.xlu0 %665  ;;  %v9101_v52 = vld [vmem:[#allocation7 + $0x684] ss:$16 sps:$4 sm:$0xff]  }
 0x14b   : > { %15476 = vst [vmem:[#allocation57_spill] sm:$0xff] %v10794_v15  ;;  %15477 = vst [vmem:[#allocation58_spill] sm:$0xff] %v10796_v35  ;;  %1412 = vmatprep.mubr.bf16.mxu0 %v15465_v17  ;;  %1525 = vmatprep.mubr.bf16.mxu1 %v15465_v17  ;;  %v688_v36 = vmul.f32 %v10794_v15, %v10592_v40  ;;  %v689_v30 = vmul.f32 %v10796_v35, %v10601_v57  ;;  %v9080_v40 = vld [vmem:[#allocation7 + $0x4e4] ss:$16 sps:$4 sm:$0xff]   ;;  %v9150_v35 = vld [vmem:[#allocation7 + $0x560] ss:$16 sps:$4 sm:$0xff]  }
 0x14c   : > { %v9083_v57 = vld [vmem:[#allocation7 + $0x6e4] ss:$16 sps:$4 sm:$0xff]   ;;  %3607 = vmatprep.subr.bf16.mxu0 %v9080_v40  ;;  %v9105_v40 = vld [vmem:[#allocation7 + $0x660] ss:$16 sps:$4 sm:$0xff]  }
 0x14d   : > { %v10804_v60 = vpack.c.bf16 %v689_v30, %v688_v36  ;;  %3720 = vmatprep.subr.bf16.mxu1 %v9083_v57  ;;  %v9096_v36 = vld [vmem:[#allocation7 + $0x480] ss:$16 sps:$4 sm:$0xff]   ;;  %v9110_v57 = vld [vmem:[#allocation7 + $0x444] ss:$16 sps:$4 sm:$0xff]  }
 0x14e   : > { %v10806_v26 = vpop.permute.xlu1 %669  ;;  %v10808_v8 = vpop.permute.xlu0 %673  ;;  %v9099_v30 = vld [vmem:[#allocation7 + $0x680] ss:$16 sps:$4 sm:$0xff]  }
 0x14f   : > { %15478 = vst [vmem:[#allocation59_spill] sm:$0xff] %v10806_v26  ;;  %15479 = vst [vmem:[#allocation60_spill] sm:$0xff] %v10808_v8  ;;  %v690_v31 = vmul.f32 %v10806_v26, %v10605_v6  ;;  %v691_v38 = vmul.f32 %v10808_v8, %v10611_v49  ;;  %v9078_v6 = vld [vmem:[#allocation7 + $0x4e0] ss:$16 sps:$4 sm:$0xff]  }
 0x150   : > { %v9081_v49 = vld [vmem:[#allocation7 + $0x6e0] ss:$16 sps:$4 sm:$0xff]  }
 0x151   : > { %v10814_v50 = vpack.c.bf16 %v691_v38, %v690_v31  ;;  %v9107_v31 = vld [vmem:[#allocation7 + $0x664] ss:$16 sps:$4 sm:$0xff]   ;;  %v9102_v38 = vld [vmem:[#allocation7 + $0x460] ss:$16 sps:$4 sm:$0xff]  }
 0x152   : > { %1413 = vmatmul.mubr.bf16.gmra.mxu0 %v10728_v47  ;;  %1526 = vmatmul.mubr.bf16.gmra.mxu1 %v10728_v47  ;;  %v9086_v47 = vld [vmem:[#allocation7 + $0x4c4] ss:$16 sps:$4 sm:$0xff]   ;;  %v9147_v8 = vld [vmem:[#allocation7 + $0x780] ss:$16 sps:$4 sm:$0xff]  }
 0x153   : > { %1768 = vmatprep.mubr.bf16.mxu0 %v15465_v17  ;;  %1881 = vmatprep.mubr.bf16.mxu1 %v15465_v17 }
 0x15a   : > { %1769 = vmatmul.mubr.bf16.vlgmr.msra.gmra.mxu0 %v1536_v18  ;;  %1882 = vmatmul.mubr.bf16.vlgmr.msra.gmra.mxu1 %v1536_v18  ;;  %v9089_v18 = vld [vmem:[#allocation7 + $0x6c4] ss:$16 sps:$4 sm:$0xff]  }
 0x15b   : > { %1778 = vmatprep.mubr.bf16.mxu0 %v15465_v17  ;;  %1891 = vmatprep.mubr.bf16.mxu1 %v15465_v17 }
 0x15c   : > { %3608 = vmatpush1.bf16.msra.mxu0 %v9078_v6  ;;  %3721 = vmatpush1.bf16.msra.mxu1 %v9081_v49  ;;  %v9113_v6 = vld [vmem:[#allocation7 + $0x644] ss:$16 sps:$4 sm:$0xff]   ;;  %v9108_v49 = vld [vmem:[#allocation7 + $0x440] ss:$16 sps:$4 sm:$0xff]  }
 0x15d   : > { %3609 = vmatprep.subr.bf16.mxu0 %v9086_v47  ;;  %3722 = vmatprep.subr.bf16.mxu1 %v9089_v18  ;;  %v9111_v47 = vld [vmem:[#allocation7 + $0x640] ss:$16 sps:$4 sm:$0xff]  }
 0x160   : > { %3723 = vmatpush1.bf16.msra.mxu1 %v9087_v1 }
 0x161   : > { %3724 = vmatprep.subr.bf16.mxu1 %v9095_v45  ;;  %v9119_v45 = vld [vmem:[#allocation7 + $0x624] ss:$16 sps:$4 sm:$0xff]  }
 0x162   : > { %1779 = vmatmul.mubr.bf16.gmra.mxu0 %v1537_v56  ;;  %1892 = vmatmul.mubr.bf16.gmra.mxu1 %v1537_v56  ;;  %v9084_v56 = vld [vmem:[#allocation7 + $0x4c0] ss:$16 sps:$4 sm:$0xff]  }
 0x163   : > { %1788 = vmatprep.mubr.bf16.mxu0 %v15465_v17  ;;  %1901 = vmatprep.mubr.bf16.mxu1 %v15465_v17 }
 0x164   : > { %3610 = vmatpush1.bf16.msra.mxu0 %v9084_v56  ;;  %3725 = vmatpush1.bf16.msra.mxu1 %v9093_v19  ;;  %v9117_v19 = vld [vmem:[#allocation7 + $0x620] ss:$16 sps:$4 sm:$0xff]  }
 0x165   : > { %3726 = vmatprep.subr.bf16.mxu1 %v9101_v52 }
 0x168   : > { %3727 = vmatpush1.bf16.msra.mxu1 %v9099_v30  ;;  %v9122_v30 = vld [vmem:[#allocation7 + $0x404] ss:$16 sps:$4 sm:$0xff]  }
 0x169   : > { %3728 = vmatprep.subr.bf16.mxu1 %v9107_v31  ;;  %v9120_v31 = vld [vmem:[#allocation7 + $0x400] ss:$16 sps:$4 sm:$0xff]  }
 0x16a   : > { %1789 = vmatmul.mubr.bf16.gmra.mxu0 %v1538_v43  ;;  %1902 = vmatmul.mubr.bf16.gmra.mxu1 %v1538_v43  ;;  %v9092_v43 = vld [vmem:[#allocation7 + $0x4a4] ss:$16 sps:$4 sm:$0xff]  }
 0x16b   : > { %1798 = vmatprep.mubr.bf16.mxu0 %v15465_v17  ;;  %1911 = vmatprep.mubr.bf16.mxu1 %v15465_v17 }
 0x16c   : > { %3611 = vmatprep.subr.bf16.mxu0 %v9092_v43  ;;  %3729 = vmatpush1.bf16.msra.mxu1 %v9105_v40  ;;  %v9116_v43 = vld [vmem:[#allocation7 + $0x424] ss:$16 sps:$4 sm:$0xff]  }
 0x16d   : > { %3612 = vmatpush1.bf16.msra.mxu0 %v9090_v58  ;;  %3730 = vmatprep.subr.bf16.mxu1 %v9113_v6  ;;  %v9114_v58 = vld [vmem:[#allocation7 + $0x420] ss:$16 sps:$4 sm:$0xff]  }
 0x16e   : > { %3613 = vmatprep.subr.bf16.mxu0 %v9098_v44 }
 0x170   : > { %3731 = vmatpush1.bf16.msra.mxu1 %v9111_v47  ;;  %v9128_v47 = vld [vmem:[#allocation7 + $0x5e4] ss:$16 sps:$4 sm:$0xff]  }
 0x171   : > { %3614 = vmatpush1.bf16.msra.mxu0 %v9096_v36  ;;  %3732 = vmatprep.subr.bf16.mxu1 %v9119_v45  ;;  %v9126_v45 = vld [vmem:[#allocation7 + $0x5e0] ss:$16 sps:$4 sm:$0xff]  }
 0x172   : > { %1799 = vmatmul.mubr.bf16.gmra.mxu0 %v1539_v21  ;;  %1912 = vmatmul.mubr.bf16.gmra.mxu1 %v1539_v21  ;;  %v9104_v21 = vld [vmem:[#allocation7 + $0x464] ss:$16 sps:$4 sm:$0xff]  }
 0x173   : > { %1808 = vmatprep.mubr.bf16.mxu0 %v15465_v17  ;;  %1921 = vmatprep.mubr.bf16.mxu1 %v15465_v17 }
 0x174   : > { %3615 = vmatprep.subr.bf16.mxu0 %v9104_v21  ;;  %3733 = vmatpush1.bf16.msra.mxu1 %v9117_v19  ;;  %v9125_v21 = vld [vmem:[#allocation7 + $0x604] ss:$16 sps:$4 sm:$0xff]  }
 0x175   : > { %3616 = vmatpush1.bf16.msra.mxu0 %v9102_v38  ;;  %v9123_v38 = vld [vmem:[#allocation7 + $0x600] ss:$16 sps:$4 sm:$0xff]   ;;  %3734 = vmatprep.subr.bf16.mxu1 %v9125_v21 }
 0x176   : > { %3617 = vmatprep.subr.bf16.mxu0 %v9110_v57 }
 0x178   : > { %v10832_v18 = vpop.f32.mrf.mxu0  ;;  %3735 = vmatpush1.bf16.msra.mxu1 %v9123_v38  ;;  %v9137_v38 = vld [vmem:[#allocation7 + $0x7c4] ss:$16 sps:$4 sm:$0xff]  }
 0x179   : > { %v10834_v56 = vpop.f32.mrf.mxu1  ;;  %3618 = vmatpush1.bf16.msra.mxu0 %v9108_v49 }
 0x17a   : > { %1809 = vmatmul.mubr.bf16.gmra.mxu0 %v10780_v11  ;;  %1922 = vmatmul.mubr.bf16.gmra.mxu1 %v10780_v11  ;;  %v10838_v11 = vpop.f32.mrf.mxu0 }
 0x17b   : > { %1818 = vmatprep.mubr.bf16.mxu0 %v15465_v17  ;;  %1931 = vmatprep.mubr.bf16.mxu1 %v15465_v17  ;;  %v10840_v1 = vpop.f32.mrf.mxu1 }
 0x17c   : > { %v10844_v44 = vpop.f32.mrf.mxu0  ;;  %3619 = vmatprep.subr.bf16.mxu0 %v9116_v43  ;;  %v9131_v43 = vld [vmem:[#allocation7 + $0x7e4] ss:$16 sps:$4 sm:$0xff]  }
 0x17d   : > { %v10846_v52 = vpop.f32.mrf.mxu1  ;;  %3620 = vmatpush1.bf16.msra.mxu0 %v9114_v58  ;;  %v9129_v58 = vld [vmem:[#allocation7 + $0x7e0] ss:$16 sps:$4 sm:$0xff]   ;;  %3736 = vmatprep.subr.bf16.mxu1 %v9131_v43 }
 0x17e   : > { %3621 = vmatprep.subr.bf16.mxu0 %v9122_v30  ;;  %3737 = vmatpush2.bf16.msra.mxu1 %v9129_v58  ;;  %v9143_v58 = vld [vmem:[#allocation7 + $0x7a4] ss:$16 sps:$4 sm:$0xff]  }
 0x17f   : > { %v10850_v36 = vpop.f32.mrf.mxu1  ;;  %3738 = vmatprep.subr.bf16.mxu1 %v9137_v38  ;;  %v9144_v38 = vld [vmem:[#allocation7 + $0x580] ss:$16 sps:$4 sm:$0xff]  }
 0x181   : > { %v10854_v57 = vpop.f32.mrf.mxu1  ;;  %3622 = vmatpush1.bf16.msra.mxu0 %v9120_v31  ;;  %v9134_v31 = vld [vmem:[#allocation7 + $0x5c4] ss:$16 sps:$4 sm:$0xff]  }
 0x182   : > { %1819 = vmatmul.mubr.bf16.gmra.mxu0 %v10790_v28  ;;  %1932 = vmatmul.mubr.bf16.gmra.mxu1 %v10790_v28  ;;  %v10848_v28 = vpop.f32.mrf.mxu0 }
 0x183   : > { %1828 = vmatprep.mubr.bf16.mxu0 %v15465_v17  ;;  %1941 = vmatprep.mubr.bf16.mxu1 %v15465_v17  ;;  %v10860_v49 = vpop.f32.mrf.mxu1 }
 0x184   : > { %v10852_v40 = vpop.f32.mrf.mxu0  ;;  %3623 = vmatprep.subr.bf16.mxu0 %v9128_v47  ;;  %3739 = vmatpush2.bf16.msra.mxu1 %v9135_v46 }
 0x185   : > { %v10866_v30 = vpop.f32.mrf.mxu1  ;;  %3624 = vmatpush2.bf16.msra.mxu0 %v9126_v45  ;;  %v9140_v45 = vld [vmem:[#allocation7 + $0x5a4] ss:$16 sps:$4 sm:$0xff]   ;;  %3740 = vmatprep.subr.bf16.mxu1 %v9143_v58 }
 0x186   : > { %v10858_v6 = vpop.f32.mrf.mxu0  ;;  %3625 = vmatprep.subr.bf16.mxu0 %v9134_v31  ;;  %v9149_v31 = vld [vmem:[#allocation7 + $0x784] ss:$16 sps:$4 sm:$0xff]  }
 0x187   : > { %v10870_v21 = vpop.f32.mrf.mxu1  ;;  %v9155_v58 = vld [vmem:[#allocation7 + $0x764] ss:$16 sps:$4 sm:$0xff]  }
 0x188   : > { %v10864_v19 = vpop.f32.mrf.mxu0  ;;  %3741 = vmatpush2.bf16.msra.mxu1 %v9141_v53  ;;  %v9152_v53 = vld [vmem:[#allocation7 + $0x564] ss:$16 sps:$4 sm:$0xff]  }
 0x189   : > { %v10874_v32 = vpop.f32.mrf.mxu1  ;;  %3626 = vmatpush2.bf16.msra.mxu0 %v9132_v51  ;;  %3742 = vmatprep.subr.bf16.mxu1 %v9149_v31 }
 0x18a   : > { %1829 = vmatmul.mubr.bf16.gmra.mxu0 %v10804_v60  ;;  %1942 = vmatmul.mubr.bf16.gmra.mxu1 %v10804_v60  ;;  %v10868_v60 = vpop.f32.mrf.mxu0 }
 0x18b   : > { %1838 = vmatprep.mubr.bf16.mxu0 %v15465_v17  ;;  %1951 = vmatprep.mubr.bf16.mxu1 %v15465_v17  ;;  %v10880_v43 = vpop.f32.mrf.mxu1 }
 0x18c   : > { %v10872_v37 = vpop.f32.mrf.mxu0  ;;  %3627 = vmatprep.subr.bf16.mxu0 %v9140_v45  ;;  %3743 = vmatpush2.bf16.msra.mxu1 %v9147_v8 }
 0x18d   : > { %v10884_v17 = vpop.f32.mrf.mxu1  ;;  %3628 = vmatpush2.bf16.msra.mxu0 %v9138_v29  ;;  %3744 = vmatprep.subr.bf16.mxu1 %v9155_v58 }
 0x18e   : > { %v10878_v47 = vpop.f32.mrf.mxu0 }
 0x18f   : > { %v10888_v51 = vpop.f32.mrf.mxu1 }
 0x190   : > { %v10882_v25 = vpop.f32.mrf.mxu0  ;;  %3745 = vmatpush2.bf16.msra.mxu1 %v9153_v16 }
 0x191   : > { %v10892_v15 = vpop.f32.mrf.mxu1  ;;  %3746 = vmatprep.subr.bf16.mxu1 %v9161_v61  ;;  %v9170_v61 = vld [vmem:[#allocation7 + $0x504] ss:$16 sps:$4 sm:$0xff]  }
 0x192   : > { %1839 = vmatmul.mubr.bf16.gmra.mxu0 %v10814_v50  ;;  %1952 = vmatmul.mubr.bf16.gmra.mxu1 %v10814_v50  ;;  %v10886_v46 = vpop.f32.mrf.mxu0  ;;  %v9146_v50 = vld [vmem:[#allocation7 + $0x584] ss:$16 sps:$4 sm:$0xff]   ;;  %15481 = vst [vmem:[#allocation62_spill] sm:$0xff] %v10892_v15 }
 0x193   : > { %3629 = vmatprep.subr.bf16.mxu0 %v9146_v50  ;;  %v10896_v29 = vpop.f32.mrf.mxu1 }
 0x194   : > { %v10890_v26 = vpop.f32.mrf.mxu0  ;;  %3630 = vmatpush2.bf16.msra.mxu0 %v9144_v38  ;;  %15483 = vst [vmem:[#allocation64_spill] sm:$0xff] %v10896_v29  ;;  %3747 = vmatpush2.bf16.msra.mxu1 %v9159_v24 }
 0x195   : > { %15480 = vst [vmem:[#allocation61_spill] sm:$0xff] %v10890_v26  ;;  %v10900_v34 = vpop.f32.mrf.mxu1  ;;  %3631 = vmatprep.subr.bf16.mxu0 %v9152_v53  ;;  %3748 = vmatprep.subr.bf16.mxu1 %v9167_v23 }
 0x196   : > { %v10894_v45 = vpop.f32.mrf.mxu0  ;;  %15485 = vst [vmem:[#allocation66_spill] sm:$0xff] %v10900_v34 }
 0x197   : > { %15482 = vst [vmem:[#allocation63_spill] sm:$0xff] %v10894_v45  ;;  %v10904_v31 = vpop.f32.mrf.mxu1 }
 0x198   : > { %v10898_v5 = vpop.f32.mrf.mxu0  ;;  %3632 = vmatpush2.bf16.msra.mxu0 %v9150_v35  ;;  %15487 = vst [vmem:[#allocation68_spill] sm:$0xff] %v10904_v31  ;;  %3749 = vmatpush2.bf16.msra.mxu1 %v9165_v3  ;;  %v9176_v3 = vld [vmem:[#allocation7 + $0x4ec] ss:$16 sps:$4 sm:$0xff]  }
 0x199   : > { %15484 = vst [vmem:[#allocation65_spill] sm:$0xff] %v10898_v5  ;;  %3633 = vmatprep.subr.bf16.mxu0 %v9158_v63  ;;  %3750 = vmatprep.subr.bf16.mxu1 %v9173_v22 }
 0x19a   : > { %v10902_v50 = vpop.f32.mrf.mxu0  ;;  %v10908_v38 = vpop.f32.mrf.mxu1 }
 0x19b   : > { %15486 = vst [vmem:[#allocation67_spill] sm:$0xff] %v10902_v50  ;;  %15489 = vst [vmem:[#allocation70_spill] sm:$0xff] %v10908_v38 }
 0x19c   : > { %v10906_v8 = vpop.f32.mrf.mxu0  ;;  %v10912_v0 = vpop.f32.mrf.mxu1  ;;  %3634 = vmatpush2.bf16.msra.mxu0 %v9156_v33  ;;  %3751 = vmatpush2.bf16.msra.mxu1 %v9171_v10 }
 0x19d   : > { %15488 = vst [vmem:[#allocation69_spill] sm:$0xff] %v10906_v8  ;;  %15491 = vst [vmem:[#allocation72_spill] sm:$0xff] %v10912_v0  ;;  %3635 = vmatprep.subr.bf16.mxu0 %v9164_v55  ;;  %3946 = vmatprep.subr.bf16.mxu1 %v9179_v27 }
 0x19e   : > { %v10910_v9 = vpop.f32.mrf.mxu0  ;;  %v10916_v16 = vpop.f32.mrf.mxu1 }
 0x19f   : > { %15490 = vst [vmem:[#allocation71_spill] sm:$0xff] %v10910_v9  ;;  %15493 = vst [vmem:[#allocation74_spill] sm:$0xff] %v10916_v16 }
 0x1a0   : > { %v10914_v35 = vpop.f32.mrf.mxu0  ;;  %v10920_v58 = vpop.f32.mrf.mxu1  ;;  %3636 = vmatpush2.bf16.msra.mxu0 %v9162_v4 }
 0x1a1   : > { %15492 = vst [vmem:[#allocation73_spill] sm:$0xff] %v10914_v35  ;;  %15495 = vst [vmem:[#allocation76_spill] sm:$0xff] %v10920_v58  ;;  %3637 = vmatprep.subr.bf16.mxu0 %v9170_v61 }
 0x1a2   : > { %v10918_v53 = vpop.f32.mrf.mxu0  ;;  %v10924_v63 = vpop.f32.mrf.mxu1 }
 0x1a3   : > { %15494 = vst [vmem:[#allocation75_spill] sm:$0xff] %v10918_v53  ;;  %15497 = vst [vmem:[#allocation78_spill] sm:$0xff] %v10924_v63 }
 0x1a4   : > { %v10922_v48 = vpop.f32.mrf.mxu0  ;;  %v10928_v24 = vpop.f32.mrf.mxu1  ;;  %3638 = vmatpush2.bf16.msra.mxu0 %v9168_v42 }
 0x1a5   : > { %15496 = vst [vmem:[#allocation77_spill] sm:$0xff] %v10922_v48  ;;  %15499 = vst [vmem:[#allocation80_spill] sm:$0xff] %v10928_v24  ;;  %3833 = vmatprep.subr.bf16.mxu0 %v9176_v3 }
 0x1a6   : > { %v10926_v33 = vpop.f32.mrf.mxu0  ;;  %v10932_v23 = vpop.f32.mrf.mxu1 }
 0x1a7   : > { %15498 = vst [vmem:[#allocation79_spill] sm:$0xff] %v10926_v33  ;;  %15501 = vst [vmem:[#allocation82_spill] sm:$0xff] %v10932_v23 }
 0x1a8   : > { %v10930_v55 = vpop.f32.mrf.mxu0  ;;  %v10936_v4 = vpop.f32.mrf.mxu1 }
 0x1a9   : > { %15500 = vst [vmem:[#allocation81_spill] sm:$0xff] %v10930_v55  ;;  %15503 = vst [vmem:[#allocation84_spill] sm:$0xff] %v10936_v4 }
 0x1aa   : > { %v10934_v62 = vpop.f32.mrf.mxu0  ;;  %v10940_v7 = vpop.f32.mrf.mxu1 }
 0x1ab   : > { %15502 = vst [vmem:[#allocation83_spill] sm:$0xff] %v10934_v62  ;;  %15505 = vst [vmem:[#allocation86_spill] sm:$0xff] %v10940_v7 }
 0x1ac   : > { %v10938_v39 = vpop.f32.mrf.mxu0  ;;  %v10944_v22 = vpop.f32.mrf.mxu1 }
 0x1ad   : > { %15504 = vst [vmem:[#allocation85_spill] sm:$0xff] %v10938_v39  ;;  %15507 = vst [vmem:[#allocation88_spill] sm:$0xff] %v10944_v22 }
 0x1ae   : > { %v10942_v61 = vpop.f32.mrf.mxu0  ;;  %v10948_v42 = vpop.f32.mrf.mxu1 }
 0x1af   : > { %15506 = vst [vmem:[#allocation87_spill] sm:$0xff] %v10942_v61  ;;  %15509 = vst [vmem:[#allocation90_spill] sm:$0xff] %v10948_v42 }
 0x1b0   : > { %v10946_v10 = vpop.f32.mrf.mxu0  ;;  %v10952_v13 = vpop.f32.mrf.mxu1 }
 0x1b1   : > { %15508 = vst [vmem:[#allocation89_spill] sm:$0xff] %v10946_v10  ;;  %15511 = vst [vmem:[#allocation92_spill] sm:$0xff] %v10952_v13 }
 0x1b2   : > { %v10950_v54 = vpop.f32.mrf.mxu0  ;;  %v10956_v12 = vpop.f32.mrf.mxu1 }
 0x1b3   : > { %15510 = vst [vmem:[#allocation91_spill] sm:$0xff] %v10950_v54  ;;  %15513 = vst [vmem:[#allocation94_spill] sm:$0xff] %v10956_v12 }
 0x1b4   : > { %v10954_v59 = vpop.f32.mrf.mxu0  ;;  %v10960_v3 = vpop.f32.mrf.mxu1 }
 0x1b5   : > { %15512 = vst [vmem:[#allocation93_spill] sm:$0xff] %v10954_v59  ;;  %15515 = vst [vmem:[#allocation96_spill] sm:$0xff] %v10960_v3 }
 0x1b6   : > { %v10958_v14 = vpop.f32.mrf.mxu0  ;;  %v10964_v61 = vpop.f32.mrf.mxu1 }
 0x1b7   : > { %15514 = vst [vmem:[#allocation95_spill] sm:$0xff] %v10958_v14  ;;  %15517 = vst [vmem:[#allocation98_spill] sm:$0xff] %v10964_v61 }
 0x1b8   : > { %v10962_v27 = vpop.f32.mrf.mxu0  ;;  %v10968_v10 = vpop.f32.mrf.mxu1 }
 0x1b9   : > { %15516 = vst [vmem:[#allocation97_spill] sm:$0xff] %v10962_v27  ;;  %15519 = vst [vmem:[#allocation100_spill] sm:$0xff] %v10968_v10 }
 0x1ba   : > { %v10966_v22 = vpop.f32.mrf.mxu0 }
 0x1bb   : > { %15518 = vst [vmem:[#allocation99_spill] sm:$0xff] %v10966_v22 }
 0x1da   : > { %v10970_v42 = vpop.f32.mrf.mxu0  ;;  %v10972_v54 = vpop.f32.mrf.mxu1 }
 0x1dc   : > { %v10974_v13 = vpop.f32.mrf.mxu0  ;;  %v10976_v59 = vpop.f32.mrf.mxu1 }
 0x1de   : > { %v10978_v12 = vpop.f32.mrf.mxu0  ;;  %v10980_v14 = vpop.f32.mrf.mxu1 }
 0x1e0   : > { %v10982_v3 = vpop.f32.mrf.mxu0  ;;  %v10984_v27 = vpop.f32.mrf.mxu1 }
 0x1e2   : > { %v10986_v61 = vpop.f32.mrf.mxu0  ;;  %v10988_v22 = vpop.f32.mrf.mxu1 }
 0x1e4   : > { %v10990_v10 = vpop.f32.mrf.mxu0  ;;  %v10992_v7 = vpop.f32.mrf.mxu1 }
 0x1e6   : > { %v10994_v39 = vpop.f32.mrf.mxu0  ;;  %v10996_v4 = vpop.f32.mrf.mxu1 }
 0x1e8   : > { %v10998_v62 = vpop.f32.mrf.mxu0  ;;  %v11000_v23 = vpop.f32.mrf.mxu1 }
 0x1ea   : > { %v11002_v55 = vpop.f32.mrf.mxu0  ;;  %v11004_v24 = vpop.f32.mrf.mxu1 }
 0x1ec   : > { %v11006_v33 = vpop.f32.mrf.mxu0  ;;  %v11008_v63 = vpop.f32.mrf.mxu1 }
 0x1ee   : > { %v11010_v2 = vpop.f32.mrf.mxu0  ;;  %v11012_v20 = vpop.f32.mrf.mxu1 }
 0x1f0   : > { %v11014_v48 = vpop.f32.mrf.mxu0  ;;  %v11016_v58 = vpop.f32.mrf.mxu1 }
 0x1f1   : > { %15520 = vst [vmem:[#allocation101_spill] sm:$0xff] %v11016_v58 }
 0x1f2   : > { %v11018_v53 = vpop.f32.mrf.mxu0  ;;  %v11020_v16 = vpop.f32.mrf.mxu1 }
 0x1f3   : > { %15521 = vst [vmem:[#allocation102_spill] sm:$0xff] %v11018_v53  ;;  %15522 = vst [vmem:[#allocation103_spill] sm:$0xff] %v11020_v16 }
 0x1f4   : > { %v11022_v35 = vpop.f32.mrf.mxu0  ;;  %v11024_v0 = vpop.f32.mrf.mxu1 }
 0x1f5   : > { %15523 = vst [vmem:[#allocation104_spill] sm:$0xff] %v11022_v35  ;;  %15524 = vst [vmem:[#allocation105_spill] sm:$0xff] %v11024_v0 }
 0x1f6   : > { %v11026_v9 = vpop.f32.mrf.mxu0  ;;  %v11028_v38 = vpop.f32.mrf.mxu1 }
 0x1f7   : > { %15525 = vst [vmem:[#allocation106_spill] sm:$0xff] %v11026_v9  ;;  %15526 = vst [vmem:[#allocation107_spill] sm:$0xff] %v11028_v38 }
 0x1f8   : > { %v11030_v8 = vpop.f32.mrf.mxu0  ;;  %v11032_v31 = vpop.f32.mrf.mxu1 }
 0x1f9   : > { %15527 = vst [vmem:[#allocation108_spill] sm:$0xff] %v11030_v8  ;;  %15528 = vst [vmem:[#allocation109_spill] sm:$0xff] %v11032_v31 }
 0x1fa   : > { %v11034_v50 = vpop.f32.mrf.mxu0  ;;  %v11036_v34 = vpop.f32.mrf.mxu1 }
 0x1fb   : > { %15529 = vst [vmem:[#allocation110_spill] sm:$0xff] %v11034_v50  ;;  %15530 = vst [vmem:[#allocation111_spill] sm:$0xff] %v11036_v34 }
 0x1fc   : > { %v11038_v5 = vpop.f32.mrf.mxu0  ;;  %v11040_v29 = vpop.f32.mrf.mxu1 }
 0x1fd   : > { %15531 = vst [vmem:[#allocation112_spill] sm:$0xff] %v11038_v5  ;;  %15532 = vst [vmem:[#allocation113_spill] sm:$0xff] %v11040_v29 }
 0x1fe   : > { %v11042_v45 = vpop.f32.mrf.mxu0  ;;  %v11044_v35 = vpop.f32.mrf.mxu1 }
 0x1ff   : > { %15533 = vst [vmem:[#allocation114_spill] sm:$0xff] %v11042_v45  ;;  %15534 = vst [vmem:[#allocation115_spill] sm:$0xff] %v11044_v35 }
 0x200   : > { %v11046_v0 = vpop.f32.mrf.mxu0  ;;  %v11048_v9 = vpop.f32.mrf.mxu1 }
 0x201   : > { %15535 = vst [vmem:[#allocation116_spill] sm:$0xff] %v11046_v0  ;;  %15536 = vst [vmem:[#allocation117_spill] sm:$0xff] %v11048_v9 }
 0x202   : > { %v11050_v38 = vpop.f32.mrf.mxu0  ;;  %v11052_v8 = vpop.f32.mrf.mxu1 }
 0x203   : > { %15537 = vst [vmem:[#allocation118_spill] sm:$0xff] %v11050_v38  ;;  %15538 = vst [vmem:[#allocation119_spill] sm:$0xff] %v11052_v8 }
 0x204   : > { %v11054_v31 = vpop.f32.mrf.mxu0  ;;  %v11056_v50 = vpop.f32.mrf.mxu1 }
 0x205   : > { %15539 = vst [vmem:[#allocation120_spill] sm:$0xff] %v11054_v31  ;;  %15540 = vst [vmem:[#allocation121_spill] sm:$0xff] %v11056_v50 }
 0x206   : > { %v11058_v34 = vpop.f32.mrf.mxu0  ;;  %v11060_v5 = vpop.f32.mrf.mxu1 }
 0x207   : > { %15541 = vst [vmem:[#allocation122_spill] sm:$0xff] %v11058_v34  ;;  %15542 = vst [vmem:[#allocation123_spill] sm:$0xff] %v11060_v5 }
 0x208   : > { %v11062_v29 = vpop.f32.mrf.mxu0  ;;  %v11064_v45 = vpop.f32.mrf.mxu1 }
 0x209   : > { %15543 = vst [vmem:[#allocation124_spill] sm:$0xff] %v11062_v29  ;;  %15544 = vst [vmem:[#allocation125_spill] sm:$0xff] %v11064_v45 }
 0x20a   : > { %v11066_v35 = vpop.f32.mrf.mxu0  ;;  %v11068_v0 = vpop.f32.mrf.mxu1 }
 0x20b   : > { %15545 = vst [vmem:[#allocation126_spill] sm:$0xff] %v11066_v35  ;;  %15546 = vst [vmem:[#allocation127_spill] sm:$0xff] %v11068_v0 }
 0x20c   : > { %v11070_v9 = vpop.f32.mrf.mxu0  ;;  %v11072_v38 = vpop.f32.mrf.mxu1 }
 0x20d   : > { %15547 = vst [vmem:[#allocation128_spill] sm:$0xff] %v11070_v9  ;;  %15548 = vst [vmem:[#allocation129_spill] sm:$0xff] %v11072_v38 }
 0x20e   : > { %v11074_v8 = vpop.f32.mrf.mxu0  ;;  %v11076_v31 = vpop.f32.mrf.mxu1 }
 0x20f   : > { %15549 = vst [vmem:[#allocation130_spill] sm:$0xff] %v11074_v8  ;;  %15550 = vst [vmem:[#allocation131_spill] sm:$0xff] %v11076_v31  ;;  %v11095_v8 = vsub.s32 0, %v10346_v41  ;;  %v11098_v31 = vsub.s32 2, %v10346_v41 }
 0x210   : > { %v11078_v50 = vpop.f32.mrf.mxu0  ;;  %v11080_v34 = vpop.f32.mrf.mxu1 }
 0x211   : > { %15551 = vst [vmem:[#allocation132_spill] sm:$0xff] %v11078_v50  ;;  %15552 = vst [vmem:[#allocation133_spill] sm:$0xff] %v11080_v34  ;;  %v2090_v50 = vld [vmem:[#allocation10] ss:$2 sm:$0xf] }
 0x212   : > { %v11082_v5 = vpop.f32.mrf.mxu0  ;;  %v11084_v29 = vpop.f32.mrf.mxu1  ;;  %15559 = vst [vmem:[#allocation140_spill] sm:$0xff] %v11095_v8  ;;  %15560 = vst [vmem:[#allocation141_spill] sm:$0xff] %v11098_v31  ;;  %v11115_v16 = vrot.slane %v2090_v50, %v11095_v8 }
 0x213   : > { %15553 = vst [vmem:[#allocation134_spill] sm:$0xff] %v11082_v5  ;;  %15554 = vst [vmem:[#allocation135_spill] sm:$0xff] %v11084_v29  ;;  %v2177_v29 = vld [vmem:[#allocation10 + $0x1] ss:$2 sm:$0xf] }
 0x214   : > { %v11086_v45 = vpop.f32.mrf.mxu0  ;;  %v11088_v35 = vpop.f32.mrf.mxu1  ;;  %v11121_v53 = vrot.slane %v2177_v29, %v11095_v8  ;;  %v11124_v26 = vrot.slane %v2177_v29, %v11098_v31  ;;  %v1462_v8 = vadd.f32 %v10980_v14, %v10846_v52 }
 0x215   : > { %15555 = vst [vmem:[#allocation136_spill] sm:$0xff] %v11086_v45  ;;  %15556 = vst [vmem:[#allocation137_spill] sm:$0xff] %v11088_v35  ;;  %v11105_v45 = vsub.s32 1, %v10346_v41  ;;  %v11108_v35 = vsub.s32 3, %v10346_v41 }
 0x216   : > { %v11090_v0 = vpop.f32.mrf.mxu0  ;;  %v11092_v9 = vpop.f32.mrf.mxu1 }
 0x217   : > { %15557 = vst [vmem:[#allocation138_spill] sm:$0xff] %v11090_v0  ;;  %15558 = vst [vmem:[#allocation139_spill] sm:$0xff] %v11092_v9  ;;  %v1345_v9 = vadd.f32 %v10970_v42, %v10832_v18  ;;  %v1458_v0 = vadd.f32 %v10972_v54, %v10834_v56  ;;  %v11127_v42 = vrot.slane %v2090_v50, %v11105_v45 }
 0x218   : > { %v11100_v34 = vpop.f32.mrf.mxu0  ;;  %v11102_v5 = vpop.f32.mrf.mxu1  ;;  %15563 = vst [vmem:[#allocation144_spill] sm:$0xff] %v11105_v45  ;;  %15564 = vst [vmem:[#allocation145_spill] sm:$0xff] %v11108_v35  ;;  %v11130_v54 = vrot.slane %v2177_v29, %v11105_v45  ;;  %v11135_v58 = vrot.slane %v2090_v50, %v11108_v35  ;;  %v1349_v45 = vadd.f32 %v10978_v12, %v10844_v44 }
 0x219   : > { %15561 = vst [vmem:[#allocation142_spill] sm:$0xff] %v11100_v34  ;;  %15562 = vst [vmem:[#allocation143_spill] sm:$0xff] %v11102_v5  ;;  %v11118_v5 = vrot.slane %v2090_v50, %v11098_v31  ;;  %v1351_v50 = vadd.f32 %v10982_v3, %v10848_v28  ;;  %v11160_v12 = vadd.f32 %v10990_v10, %v10858_v6 }
 0x21a   : > { %v1770_v38 = vpop.f32.mrf.mxu0  ;;  %v1883_v34 = vpop.f32.mrf.mxu1  ;;  %v11186_v6 = vadd.f32 %v11002_v55, %v10872_v37  ;;  %v11202_v37 = vadd.f32 %v11010_v2, %v10882_v25  ;;  %v11222_v25 = vadd.f32 %v11014_v48, %v10886_v46  ;;  %v15567_v2 = vld [vmem:[#allocation101_spill] sm:$0xff]  ;;  %v15571_v55 = vld [vmem:[#allocation62_spill] sm:$0xff] }
 0x21b   : > { %v1962_v15 = vadd.f32 %v1770_v38, %v1345_v9  ;;  %v1964_v41 = vadd.f32 %v1883_v34, %v1458_v0  ;;  %v11138_v9 = vrot.slane %v2177_v29, %v11108_v35  ;;  %v1347_v0 = vadd.f32 %v10974_v13, %v10838_v11 }
 0x21c   : > { %v1772_v18 = vpop.f32.mrf.mxu0  ;;  %v11132_v56 = vpop.f32.mrf.mxu1  ;;  %v11144_v34 = vadd.f32 %v10976_v59, %v10840_v1  ;;  %v1464_v29 = vadd.f32 %v10984_v27, %v10850_v36  ;;  %v1355_v59 = vadd.f32 %v10986_v61, %v10852_v40  ;;  %v11170_v36 = vadd.f32 %v10994_v39, %v10864_v19 }
 0x21d   : > { %v2026_v38 = vmax.f32 %v1962_v15, 0.0  ;;  %v2028_v31 = vmax.f32 %v1964_v41, 0.0  ;;  %v1468_v41 = vadd.f32 %v10988_v22, %v10854_v57  ;;  %v11165_v15 = vadd.f32 %v10992_v7, %v10860_v49 }
 0x21e   : > { %v1774_v35 = vpop.f32.mrf.mxu0  ;;  %v1887_v13 = vpop.f32.mrf.mxu1  ;;  %v11174_v40 = vadd.f32 %v10996_v4, %v10866_v30  ;;  %v11178_v57 = vadd.f32 %v10998_v62, %v10868_v60  ;;  %v11182_v7 = vadd.f32 %v11000_v23, %v10870_v21  ;;  %v11190_v39 = vadd.f32 %v11004_v24, %v10874_v32  ;;  %v15572_v23 = vld [vmem:[#allocation103_spill] sm:$0xff] }
 0x21f   : > { %v2112_v14 = vmul.f32 %v11115_v16, %v2026_v38  ;;  %v2114_v11 = vmul.f32 %v11118_v5, %v2028_v31  ;;  %v1966_v1 = vadd.f32 %v1774_v35, %v1349_v45  ;;  %v1968_v44 = vadd.f32 %v1887_v13, %v1462_v8 }
 0x220   : > { %v1776_v52 = vpop.f32.mrf.mxu0  ;;  %v1889_v28 = vpop.f32.mrf.mxu1  ;;  %v11194_v62 = vadd.f32 %v11006_v33, %v10878_v47  ;;  %v11198_v60 = vadd.f32 %v11008_v63, %v10880_v43  ;;  %v11209_v32 = vadd.f32 %v11012_v20, %v10884_v17  ;;  %v11226_v63 = vadd.f32 %v15567_v2, %v10888_v51  ;;  %v15568_v20 = vld [vmem:[#allocation61_spill] sm:$0xff]  ;;  %v15569_v17 = vld [vmem:[#allocation102_spill] sm:$0xff] }
 0x221   : > { %v2030_v49 = vmax.f32 %v1966_v1, 0.0  ;;  %v2032_v19 = vmax.f32 %v1968_v44, 0.0  ;;  %v11205_v21 = vadd.f32 %v11121_v53, %v2112_v14  ;;  %v11212_v31 = vadd.f32 %v11124_v26, %v2114_v11 }
 0x222   : > { %v1780_v30 = vpop.f32.mrf.mxu0  ;;  %v1893_v45 = vpop.f32.mrf.mxu1  ;;  %v11230_v33 = vadd.f32 %v15569_v17, %v15568_v20  ;;  %v11234_v4 = vadd.f32 %v15572_v23, %v15571_v55  ;;  %v1963_v61 = vadd.f32 %v1772_v18, %v1347_v0  ;;  %v1967_v22 = vadd.f32 %v1776_v52, %v1351_v50  ;;  %v15581_v17 = vld [vmem:[#allocation63_spill] sm:$0xff] }
 0x223   : > { %15565 = vst [vmem:[#allocation146_spill] sm:$0xff] %v11205_v21  ;;  %15566 = vst [vmem:[#allocation147_spill] sm:$0xff] %v11212_v31  ;;  %v2116_v47 = vmul.f32 %v11115_v16, %v2030_v49  ;;  %v2118_v8 = vmul.f32 %v11118_v5, %v2032_v19  ;;  %v1970_v24 = vadd.f32 %v1780_v30, %v1355_v59  ;;  %v15158_v46 = vrot.slane %v11205_v21, 7 }
 0x224   : > { %v11216_v43 = vpop.f32.mrf.mxu0  ;;  %v11218_v35 = vpop.f32.mrf.mxu1  ;;  %15570 = vst [vmem:[#allocation101_spill] sm:$0xff] %v11230_v33  ;;  %15573 = vst [vmem:[#allocation61_spill] sm:$0xff] %v11234_v4  ;;  %v1972_v10 = vadd.f32 %v1893_v45, %v1468_v41  ;;  %v1969_v38 = vadd.f32 %v1889_v28, %v1464_v29  ;;  %v15154_v13 = vrot.slane %v11205_v21, 1  ;;  %v15157_v59 = vrot.slane %v11212_v31, 7  ;;  %v15620_v33 = vld [vmem:[#allocation75_spill] sm:$0xff] }
 0x225   : > { %v11242_v51 = vadd.f32 %v11121_v53, %v2116_v47  ;;  %v11245_v27 = vadd.f32 %v11124_v26, %v2118_v8  ;;  %v15163_v18 = vrot.slane %v11212_v31, 1  ;;  %v2034_v0 = vmax.f32 %v1970_v24, 0.0  ;;  %v15582_v24 = vld [vmem:[#allocation104_spill] sm:$0xff] }
 0x226   : > { %v11236_v3 = vpop.f32.mrf.mxu0  ;;  %v11238_v48 = vpop.f32.mrf.mxu1  ;;  %v2031_v28 = vmax.f32 %v1967_v22, 0.0  ;;  %v2036_v49 = vmax.f32 %v1972_v10, 0.0  ;;  %v11291_v55 = vadd.f32 %v15582_v24, %v15581_v17  ;;  %v2027_v23 = vmax.f32 %v1963_v61, 0.0  ;;  %v15588_v17 = vld [vmem:[#allocation106_spill] sm:$0xff] }
 0x227   : > { %15574 = vst [vmem:[#allocation102_spill] sm:$0xff] %v11242_v51  ;;  %15575 = vst [vmem:[#allocation62_spill] sm:$0xff] %v11245_v27  ;;  %v15155_v14 = vrot.slane %v11242_v51, 7  ;;  %v2459_v11 = vrot.slane %v11242_v51, 1  ;;  %v11256_v1 = vpack.c.bf16 %v11242_v51, %v11205_v21  ;;  %v15156_v29 = vrot.slane %v11245_v27, 7  ;;  %v15590_v61 = vld [vmem:[#allocation66_spill] sm:$0xff] }
 0x228   : > { %v1786_v50 = vpop.f32.mrf.mxu0  ;;  %v11250_v41 = vpop.f32.mrf.mxu1  ;;  %v2461_v44 = vrot.slane %v11245_v27, 1  ;;  %v11262_v52 = vpack.c.bf16 %v11245_v27, %v11212_v31  ;;  %v2120_v20 = vmul.f32 %v11115_v16, %v2034_v0  ;;  %15583 = vst [vmem:[#allocation63_spill] sm:$0xff] %v11291_v55  ;;  %v1965_v22 = vadd.f32 %v11132_v56, %v11144_v34  ;;  %v15591_v27 = vld [vmem:[#allocation107_spill] sm:$0xff]  ;;  %v15594_v51 = vld [vmem:[#allocation108_spill] sm:$0xff]  ;;  %v15597_v21 = vld [vmem:[#allocation109_spill] sm:$0xff] }
 0x229   : > { %15576 = vst [vmem:[#allocation103_spill] sm:$0xff] %v11256_v1  ;;  %v11274_v47 = vsel %vm466_vm0, %v15158_v46, %v15155_v14  ;;  %v2575_v8 = vsel %vm595_vm1, %v15154_v13, %v2459_v11  ;;  %v11286_v2 = vsel %vm466_vm0, %v15157_v59, %v15156_v29  ;;  %v15584_v29 = vld [vmem:[#allocation64_spill] sm:$0xff]  ;;  %v15585_v59 = vld [vmem:[#allocation105_spill] sm:$0xff]  ;;  %v11313_v56 = vadd.f32 %v15591_v27, %v15590_v61  ;;  %v15593_v34 = vld [vmem:[#allocation67_spill] sm:$0xff] }
 0x22a   : > { %15577 = vst [vmem:[#allocation148_spill] sm:$0xff] %v11262_v52  ;;  %v11264_v19 = vpop.f32.mrf.mxu0  ;;  %v11266_v30 = vpop.f32.mrf.mxu1  ;;  %15579 = vst [vmem:[#allocation149_spill] sm:$0xff] %v11274_v47  ;;  %v2577_v10 = vsel %vm595_vm1, %v15163_v18, %v2461_v44  ;;  %v11305_v0 = vadd.f32 %v15585_v59, %v15584_v29  ;;  %v15587_v46 = vld [vmem:[#allocation65_spill] sm:$0xff]  ;;  %v11317_v31 = vadd.f32 %v15594_v51, %v15593_v34  ;;  %v15596_v18 = vld [vmem:[#allocation68_spill] sm:$0xff]  ;;  %v2033_v55 = vmax.f32 %v1969_v38, 0.0 }
 0x22b   : > { %15580 = vst [vmem:[#allocation150_spill] sm:$0xff] %v11286_v2  ;;  %v11309_v24 = vadd.f32 %v15588_v17, %v15587_v46  ;;  %15592 = vst [vmem:[#allocation105_spill] sm:$0xff] %v11313_v56  ;;  %v11321_v4 = vadd.f32 %v15597_v21, %v15596_v18  ;;  %v11324_v59 = vadd.f32 %v11121_v53, %v2120_v20  ;;  %v15601_v27 = vld [vmem:[#allocation69_spill] sm:$0xff]  ;;  %v15602_v61 = vld [vmem:[#allocation110_spill] sm:$0xff] }
 0x22c   : > { %v11299_v13 = vpop.f32.mrf.mxu0  ;;  %v11301_v14 = vpop.f32.mrf.mxu1  ;;  %15586 = vst [vmem:[#allocation104_spill] sm:$0xff] %v11305_v0  ;;  %15595 = vst [vmem:[#allocation65_spill] sm:$0xff] %v11317_v31  ;;  %v2122_v29 = vmul.f32 %v11118_v5, %v2036_v49  ;;  %v11333_v56 = vadd.f32 %v15602_v61, %v15601_v27  ;;  %v15604_v51 = vld [vmem:[#allocation70_spill] sm:$0xff]  ;;  %v15605_v34 = vld [vmem:[#allocation111_spill] sm:$0xff]  ;;  %v2117_v20 = vmul.f32 %v11127_v42, %v2031_v28  ;;  %v2029_v0 = vmax.f32 %v1965_v22, 0.0 }
 0x22d   : > { %15589 = vst [vmem:[#allocation64_spill] sm:$0xff] %v11309_v24  ;;  %15598 = vst [vmem:[#allocation106_spill] sm:$0xff] %v11321_v4  ;;  %v11337_v24 = vadd.f32 %v15605_v34, %v15604_v51  ;;  %v15607_v21 = vld [vmem:[#allocation71_spill] sm:$0xff]  ;;  %v15608_v18 = vld [vmem:[#allocation112_spill] sm:$0xff]  ;;  %v2113_v49 = vmul.f32 %v11127_v42, %v2027_v23 }
 0x22e   : > { %15599 = vst [vmem:[#allocation66_spill] sm:$0xff] %v11324_v59  ;;  %v11327_v46 = vpop.f32.mrf.mxu0  ;;  %v11329_v17 = vpop.f32.mrf.mxu1  ;;  %15603 = vst [vmem:[#allocation67_spill] sm:$0xff] %v11333_v56  ;;  %v11341_v38 = vadd.f32 %v15608_v18, %v15607_v21  ;;  %v11347_v4 = vadd.f32 %v11124_v26, %v2122_v29  ;;  %v15611_v51 = vld [vmem:[#allocation72_spill] sm:$0xff]  ;;  %v15612_v34 = vld [vmem:[#allocation113_spill] sm:$0xff] }
 0x22f   : > { %15600 = vst [vmem:[#allocation107_spill] sm:$0xff] %v11329_v17  ;;  %15606 = vst [vmem:[#allocation108_spill] sm:$0xff] %v11337_v24  ;;  %v11355_v24 = vadd.f32 %v15612_v34, %v15611_v51  ;;  %v15614_v21 = vld [vmem:[#allocation73_spill] sm:$0xff]  ;;  %v15615_v18 = vld [vmem:[#allocation114_spill] sm:$0xff]  ;;  %v2119_v17 = vmul.f32 %v11135_v58, %v2033_v55  ;;  %v15625_v51 = vrot.slane %v11324_v59, 1 }
 0x230   : > { %15609 = vst [vmem:[#allocation68_spill] sm:$0xff] %v11341_v38  ;;  %15610 = vst [vmem:[#allocation109_spill] sm:$0xff] %v11347_v4  ;;  %v11349_v27 = vpop.f32.mrf.mxu0  ;;  %v11351_v61 = vpop.f32.mrf.mxu1  ;;  %v11359_v56 = vadd.f32 %v15615_v18, %v15614_v21  ;;  %v15617_v28 = vld [vmem:[#allocation74_spill] sm:$0xff]  ;;  %v15618_v23 = vld [vmem:[#allocation115_spill] sm:$0xff]  ;;  %v15166_v21 = vrot.slane %v11347_v4, 1 }
 0x231   : > { %15613 = vst [vmem:[#allocation69_spill] sm:$0xff] %v11355_v24  ;;  %v11363_v22 = vadd.f32 %v15618_v23, %v15617_v28  ;;  %v15621_v38 = vld [vmem:[#allocation116_spill] sm:$0xff]  ;;  %v15623_v2 = vld [vmem:[#allocation117_spill] sm:$0xff]  ;;  %v2571_v34 = vsel %vm595_vm1, %v2459_v11, %v15625_v51  ;;  %v11393_v24 = vadd.f32 %v11130_v54, %v2113_v49  ;;  %v2115_v11 = vmul.f32 %v11135_v58, %v2029_v0 }
 0x232   : > { %15616 = vst [vmem:[#allocation110_spill] sm:$0xff] %v11359_v56  ;;  %v11367_v29 = vadd.f32 %v15621_v38, %v15620_v33  ;;  %v15622_v31 = vld [vmem:[#allocation76_spill] sm:$0xff]  ;;  %v11379_v18 = vpop.f32.mrf.mxu0  ;;  %v11381_v28 = vpop.f32.mrf.mxu1  ;;  %v15626_v23 = vld [vmem:[#allocation77_spill] sm:$0xff]  ;;  %v15627_v33 = vld [vmem:[#allocation118_spill] sm:$0xff]  ;;  %v2573_v51 = vsel %vm595_vm1, %v2461_v44, %v15166_v21  ;;  %v1971_v0 = vadd.f32 %v11216_v43, %v11160_v12  ;;  %v1973_v44 = vadd.f32 %v11218_v35, %v11165_v15 }
 0x233   : > { %15619 = vst [vmem:[#allocation70_spill] sm:$0xff] %v11363_v22  ;;  %v11371_v47 = vadd.f32 %v15623_v2, %v15622_v31  ;;  %v11385_v38 = vadd.f32 %v15627_v33, %v15626_v23  ;;  %v15629_v22 = vld [vmem:[#allocation46_spill] sm:$0xff]  ;;  %v11389_v2 = vadd.f32 %v11130_v54, %v2117_v20  ;;  %v15630_v55 = vld [vmem:[#allocation45_spill] sm:$0xff]  ;;  %15631 = vst [vmem:[#allocation112_spill] sm:$0xff] %v11393_v24 }
 0x234   : > { %v2583_v31 = vmul.f32 %v2575_v8, %v15629_v22  ;;  %v2587_v56 = vmul.f32 %v2571_v34, %v15630_v55  ;;  %v1975_v23 = vadd.f32 %v1786_v50, %v11178_v57  ;;  %v11401_v33 = vpop.f32.mrf.mxu0  ;;  %v11403_v8 = vpop.f32.mrf.mxu1  ;;  %v2585_v20 = vmul.f32 %v2577_v10, %v15629_v22  ;;  %v15634_v10 = vld [vmem:[#allocation78_spill] sm:$0xff]  ;;  %v15638_v21 = vld [vmem:[#allocation120_spill] sm:$0xff]  ;;  %v9174_v15 = vld [vmem:[#allocation7 + $0x4e8] ss:$16 sps:$4 sm:$0xff]  }
 0x235   : > { %15624 = vst [vmem:[#allocation111_spill] sm:$0xff] %v11371_v47  ;;  %15628 = vst [vmem:[#allocation71_spill] sm:$0xff] %v11385_v38  ;;  %v2589_v49 = vmul.f32 %v2573_v51, %v15630_v55  ;;  %v11412_v34 = vadd.f32 %v11138_v9, %v2119_v17  ;;  %v1974_v57 = vadd.f32 %v11236_v3, %v11170_v36  ;;  %v15637_v51 = vld [vmem:[#allocation79_spill] sm:$0xff]  ;;  %v15642_v35 = vld [vmem:[#allocation80_spill] sm:$0xff] }
 0x236   : > { %v11406_v38 = vpack.c.bf16 %v2587_v56, %v2583_v31  ;;  %v1977_v50 = vadd.f32 %v11250_v41, %v11182_v7  ;;  %v15635_v56 = vld [vmem:[#allocation119_spill] sm:$0xff]  ;;  %v11432_v43 = vpack.c.bf16 %v11389_v2, %v11393_v24  ;;  %v15643_v36 = vld [vmem:[#allocation121_spill] sm:$0xff]  ;;  %v11439_v7 = vadd.f32 %v11138_v9, %v2115_v11  ;;  %v15653_v11 = vld [vmem:[#allocation124_spill] sm:$0xff] }
 0x237   : > { %15633 = vst [vmem:[#allocation113_spill] sm:$0xff] %v11412_v34  ;;  %v11422_v31 = vadd.f32 %v15635_v56, %v15634_v10  ;;  %v11428_v12 = vpack.c.bf16 %v2589_v49, %v2585_v20  ;;  %v11436_v3 = vadd.f32 %v15643_v36, %v15642_v35  ;;  %v1976_v41 = vadd.f32 %v11238_v48, %v11174_v40  ;;  %v11443_v10 = vpop.f32.mrf.mxu0  ;;  %v11445_v20 = vpop.f32.mrf.mxu1  ;;  %v15646_v49 = vld [vmem:[#allocation81_spill] sm:$0xff]  ;;  %v15647_v56 = vld [vmem:[#allocation122_spill] sm:$0xff]  ;;  %v15650_v55 = vld [vmem:[#allocation123_spill] sm:$0xff] }
 0x238   : > { %15632 = vst [vmem:[#allocation72_spill] sm:$0xff] %v11406_v38  ;;  %v11426_v38 = vadd.f32 %v15638_v21, %v15637_v51  ;;  %15641 = vst [vmem:[#allocation115_spill] sm:$0xff] %v11432_v43  ;;  %v2039_v17 = vmax.f32 %v1975_v23, 0.0  ;;  %v9182_v21 = vld [vmem:[#allocation7 + $0x4cc] ss:$16 sps:$4 sm:$0xff]   ;;  %v11449_v51 = vadd.f32 %v15647_v56, %v15646_v49  ;;  %v2041_v45 = vmax.f32 %v1977_v50, 0.0  ;;  %3639 = vmatprep.mubr.bf16.mxu0 %v11432_v43 }
 0x239   : > { %15636 = vst [vmem:[#allocation73_spill] sm:$0xff] %v11422_v31  ;;  %15640 = vst [vmem:[#allocation74_spill] sm:$0xff] %v11428_v12  ;;  %v15649_v12 = vld [vmem:[#allocation82_spill] sm:$0xff]  ;;  %v15652_v36 = vld [vmem:[#allocation83_spill] sm:$0xff]  ;;  %v2035_v40 = vmax.f32 %v1971_v0, 0.0  ;;  %v2037_v48 = vmax.f32 %v1973_v44, 0.0  ;;  %v11462_v31 = vpack.c.bf16 %v11412_v34, %v11439_v7  ;;  %3640 = vmatmul.mubr.bf16.vlgmr.msra.gmra.mxu0 %v11256_v1 }
 0x23a   : > { %15639 = vst [vmem:[#allocation114_spill] sm:$0xff] %v11426_v38  ;;  %15644 = vst [vmem:[#allocation75_spill] sm:$0xff] %v11436_v3  ;;  %v11453_v35 = vadd.f32 %v15650_v55, %v15649_v12  ;;  %v11457_v22 = vadd.f32 %v15653_v11, %v15652_v36  ;;  %v2038_v23 = vmax.f32 %v1974_v57, 0.0  ;;  %v9177_v49 = vld [vmem:[#allocation7 + $0x6e8] ss:$16 sps:$4 sm:$0xff]   ;;  %v15656_v56 = vld [vmem:[#allocation84_spill] sm:$0xff]  ;;  %3834 = vmatpush1.bf16.msra.mxu0 %v9174_v15 }
 0x23b   : > { %15645 = vst [vmem:[#allocation116_spill] sm:$0xff] %v11439_v7  ;;  %15648 = vst [vmem:[#allocation76_spill] sm:$0xff] %v11449_v51  ;;  %v15657_v55 = vld [vmem:[#allocation125_spill] sm:$0xff]  ;;  %v15660_v36 = vld [vmem:[#allocation126_spill] sm:$0xff]  ;;  %3752 = vmatprep.mubr.bf16.mxu1 %v11462_v31  ;;  %3835 = vmatprep.subr.bf16.mxu0 %v9182_v21 }
 0x23c   : > { %15651 = vst [vmem:[#allocation117_spill] sm:$0xff] %v11453_v35  ;;  %15654 = vst [vmem:[#allocation77_spill] sm:$0xff] %v11457_v22  ;;  %v11467_v12 = vadd.f32 %v15657_v55, %v15656_v56  ;;  %v15659_v35 = vld [vmem:[#allocation85_spill] sm:$0xff]  ;;  %v15662_v50 = vld [vmem:[#allocation86_spill] sm:$0xff]  ;;  %v2040_v56 = vmax.f32 %v1976_v41, 0.0  ;;  %v2125_v55 = vmul.f32 %v11127_v42, %v2039_v17  ;;  %3753 = vmatmul.mubr.bf16.vlgmr.msra.gmra.mxu1 %v11262_v52 }
 0x23d   : > { %15655 = vst [vmem:[#allocation118_spill] sm:$0xff] %v11462_v31  ;;  %v11471_v11 = vadd.f32 %v15660_v36, %v15659_v35  ;;  %v15663_v43 = vld [vmem:[#allocation127_spill] sm:$0xff]  ;;  %v15666_v57 = vld [vmem:[#allocation128_spill] sm:$0xff]  ;;  %v15669_v38 = vld [vmem:[#allocation129_spill] sm:$0xff]  ;;  %v2127_v35 = vmul.f32 %v11135_v58, %v2041_v45  ;;  %v11488_v36 = vpop.f32.mrf.mxu0  ;;  %3947 = vmatpush1.bf16.msra.mxu1 %v9177_v49 }
 0x23e   : > { %15658 = vst [vmem:[#allocation78_spill] sm:$0xff] %v11467_v12  ;;  %v11475_v0 = vadd.f32 %v15663_v43, %v15662_v50  ;;  %v15665_v44 = vld [vmem:[#allocation87_spill] sm:$0xff]  ;;  %v15668_v1 = vld [vmem:[#allocation88_spill] sm:$0xff]  ;;  %v11490_v50 = vpop.f32.mrf.mxu1  ;;  %v15671_v15 = vld [vmem:[#allocation89_spill] sm:$0xff] }
 0x23f   : > { %15661 = vst [vmem:[#allocation119_spill] sm:$0xff] %v11471_v11  ;;  %v11479_v51 = vadd.f32 %v15666_v57, %v15665_v44  ;;  %v9180_v22 = vld [vmem:[#allocation7 + $0x4c8] ss:$16 sps:$4 sm:$0xff]   ;;  %v9185_v3 = vld [vmem:[#allocation7 + $0x6cc] ss:$16 sps:$4 sm:$0xff]   ;;  %v11483_v47 = vadd.f32 %v15669_v38, %v15668_v1  ;;  %v15672_v44 = vld [vmem:[#allocation130_spill] sm:$0xff] }
 0x240   : > { %15664 = vst [vmem:[#allocation79_spill] sm:$0xff] %v11475_v0  ;;  %v9188_v43 = vld [vmem:[#allocation7 + $0x4ac] ss:$16 sps:$4 sm:$0xff]   ;;  %v11494_v57 = vadd.f32 %v15672_v44, %v15671_v15  ;;  %v15677_v17 = vld [vmem:[#allocation132_spill] sm:$0xff]  ;;  %v15683_v11 = vld [vmem:[#allocation134_spill] sm:$0xff]  ;;  %v2121_v15 = vmul.f32 %v11127_v42, %v2035_v40  ;;  %v2123_v44 = vmul.f32 %v11135_v58, %v2037_v48  ;;  %3948 = vmatprep.subr.bf16.mxu1 %v9185_v3  ;;  %v11541_v3 = vpop.f32.mrf.mxu1 }
 0x241   : > { %15667 = vst [vmem:[#allocation120_spill] sm:$0xff] %v11479_v51  ;;  %15670 = vst [vmem:[#allocation80_spill] sm:$0xff] %v11483_v47  ;;  %v15673_v51 = vld [vmem:[#allocation90_spill] sm:$0xff]  ;;  %v15674_v1 = vld [vmem:[#allocation131_spill] sm:$0xff]  ;;  %3836 = vmatpush1.bf16.msra.mxu0 %v9180_v22 }
 0x242   : > { %v11498_v38 = vadd.f32 %v15674_v1, %v15673_v51  ;;  %v15676_v41 = vld [vmem:[#allocation91_spill] sm:$0xff]  ;;  %v15679_v45 = vld [vmem:[#allocation92_spill] sm:$0xff]  ;;  %v15680_v31 = vld [vmem:[#allocation133_spill] sm:$0xff]  ;;  %v2124_v51 = vmul.f32 %v11115_v16, %v2038_v23  ;;  %3837 = vmatprep.subr.bf16.mxu0 %v9188_v43  ;;  %v11559_v43 = vadd.f32 %v11138_v9, %v2123_v44 }
 0x243   : > { %v11502_v47 = vadd.f32 %v15677_v17, %v15676_v41  ;;  %v11506_v21 = vadd.f32 %v15680_v31, %v15679_v45  ;;  %v15682_v0 = vld [vmem:[#allocation93_spill] sm:$0xff]  ;;  %v15685_v41 = vld [vmem:[#allocation94_spill] sm:$0xff]  ;;  %v15686_v17 = vld [vmem:[#allocation135_spill] sm:$0xff] }
 0x244   : > { %15675 = vst [vmem:[#allocation121_spill] sm:$0xff] %v11498_v38  ;;  %v11511_v12 = vadd.f32 %v15683_v11, %v15682_v0  ;;  %v9183_v1 = vld [vmem:[#allocation7 + $0x6c8] ss:$16 sps:$4 sm:$0xff]   ;;  %v15688_v45 = vld [vmem:[#allocation136_spill] sm:$0xff]  ;;  %v9191_v48 = vld [vmem:[#allocation7 + $0x6ac] ss:$16 sps:$4 sm:$0xff]  }
 0x245   : > { %15678 = vst [vmem:[#allocation81_spill] sm:$0xff] %v11502_v47  ;;  %15681 = vst [vmem:[#allocation122_spill] sm:$0xff] %v11506_v21  ;;  %v11518_v47 = vadd.f32 %v15686_v17, %v15685_v41  ;;  %v15687_v31 = vld [vmem:[#allocation95_spill] sm:$0xff]  ;;  %v15689_v52 = vld [vmem:[#allocation96_spill] sm:$0xff]  ;;  %v11534_v41 = vadd.f32 %v11130_v54, %v2125_v55  ;;  %v11537_v17 = vadd.f32 %v11138_v9, %v2127_v35  ;;  %3949 = vmatpush1.bf16.msra.mxu1 %v9183_v1 }
 0x246   : > { %15684 = vst [vmem:[#allocation82_spill] sm:$0xff] %v11511_v12  ;;  %v11522_v21 = vadd.f32 %v15688_v45, %v15687_v31  ;;  %v15690_v38 = vld [vmem:[#allocation137_spill] sm:$0xff]  ;;  %v15693_v23 = vld [vmem:[#allocation138_spill] sm:$0xff]  ;;  %v2126_v12 = vmul.f32 %v11118_v5, %v2040_v56  ;;  %v1978_v56 = vadd.f32 %v11264_v19, %v11186_v6  ;;  %v1983_v55 = vadd.f32 %v11349_v27, %v11222_v25  ;;  %v15704_v44 = vld [vmem:[#allocation143_spill] sm:$0xff] }
 0x247   : > { %v11526_v11 = vadd.f32 %v15690_v38, %v15689_v52  ;;  %v9186_v40 = vld [vmem:[#allocation7 + $0x4a8] ss:$16 sps:$4 sm:$0xff]   ;;  %15695 = vst [vmem:[#allocation124_spill] sm:$0xff] %v11534_v41  ;;  %15696 = vst [vmem:[#allocation84_spill] sm:$0xff] %v11537_v17  ;;  %v9194_v31 = vld [vmem:[#allocation7 + $0x48c] ss:$16 sps:$4 sm:$0xff]   ;;  %v11539_v52 = vpop.f32.mrf.mxu0  ;;  %v11556_v35 = vadd.f32 %v11130_v54, %v2121_v15  ;;  %v1981_v6 = vadd.f32 %v11301_v14, %v11198_v60  ;;  %3950 = vmatprep.subr.bf16.mxu1 %v9191_v48  ;;  %v11589_v14 = vpop.f32.mrf.mxu1 }
 0x248   : > { %v15692_v0 = vld [vmem:[#allocation97_spill] sm:$0xff]  ;;  %v15697_v22 = vld [vmem:[#allocation98_spill] sm:$0xff]  ;;  %v15698_v38 = vld [vmem:[#allocation139_spill] sm:$0xff]  ;;  %15701 = vst [vmem:[#allocation125_spill] sm:$0xff] %v11559_v43  ;;  %v1982_v25 = vadd.f32 %v11327_v46, %v11202_v37  ;;  %3838 = vmatpush1.bf16.msra.mxu0 %v9186_v40  ;;  %v11585_v60 = vpack.c.bf16 %v11537_v17, %v11559_v43  ;;  %v2047_v1 = vmax.f32 %v1983_v55, 0.0 }
 0x249   : > { %15691 = vst [vmem:[#allocation123_spill] sm:$0xff] %v11526_v11  ;;  %v11530_v49 = vadd.f32 %v15693_v23, %v15692_v0  ;;  %v11545_v45 = vadd.f32 %v15698_v38, %v15697_v22  ;;  %v15699_v0 = vld [vmem:[#allocation99_spill] sm:$0xff]  ;;  %v15700_v23 = vld [vmem:[#allocation142_spill] sm:$0xff]  ;;  %v11562_v11 = vadd.f32 %v11121_v53, %v2124_v51  ;;  %v1985_v22 = vadd.f32 %v11351_v61, %v11226_v63  ;;  %v15703_v15 = vld [vmem:[#allocation100_spill] sm:$0xff] }
 0x24a   : > { %v1979_v38 = vadd.f32 %v11299_v13, %v11194_v62  ;;  %v9189_v19 = vld [vmem:[#allocation7 + $0x6a8] ss:$16 sps:$4 sm:$0xff]   ;;  %v11574_v51 = vadd.f32 %v15704_v44, %v15703_v15  ;;  %v11577_v63 = vadd.f32 %v11124_v26, %v2126_v12  ;;  %v11581_v62 = vpack.c.bf16 %v11534_v41, %v11556_v35  ;;  %15708 = vst [vmem:[#allocation87_spill] sm:$0xff] %v11585_v60  ;;  %v9197_v37 = vld [vmem:[#allocation7 + $0x68c] ss:$16 sps:$4 sm:$0xff]   ;;  %v11587_v13 = vpop.f32.mrf.mxu0  ;;  %v15711_v48 = vld [vmem:[#allocation32_spill] sm:$0xff] }
 0x24b   : > { %15694 = vst [vmem:[#allocation83_spill] sm:$0xff] %v11530_v49  ;;  %v11549_v49 = vadd.f32 %v15700_v23, %v15699_v0  ;;  %15702 = vst [vmem:[#allocation85_spill] sm:$0xff] %v11562_v11  ;;  %v9192_v27 = vld [vmem:[#allocation7 + $0x488] ss:$16 sps:$4 sm:$0xff]   ;;  %3839 = vmatprep.subr.bf16.mxu0 %v9194_v31  ;;  %v2042_v61 = vmax.f32 %v1978_v56, 0.0  ;;  %v1980_v12 = vadd.f32 %v11266_v30, %v11190_v39  ;;  %v2049_v15 = vmax.f32 %v1985_v22, 0.0 }
 0x24c   : > { %15705 = vst [vmem:[#allocation126_spill] sm:$0xff] %v11574_v51  ;;  %15706 = vst [vmem:[#allocation86_spill] sm:$0xff] %v11577_v63  ;;  %v9200_v40 = vld [vmem:[#allocation7 + $0x46c] ss:$16 sps:$4 sm:$0xff]   ;;  %3649 = vmatprep.mubr.bf16.mxu0 %v11581_v62  ;;  %3762 = vmatprep.mubr.bf16.mxu1 %v11585_v60  ;;  %v9195_v44 = vld [vmem:[#allocation7 + $0x688] ss:$16 sps:$4 sm:$0xff]   ;;  %v11602_v39 = vpack.c.bf16 %v11562_v11, %v11324_v59 }
 0x24d   : > { %15707 = vst [vmem:[#allocation127_spill] sm:$0xff] %v11581_v62  ;;  %v15709_v23 = vld [vmem:[#allocation107_spill] sm:$0xff]  ;;  %v2043_v46 = vmax.f32 %v1979_v38, 0.0  ;;  %v2045_v56 = vmax.f32 %v1981_v6, 0.0  ;;  %v2046_v51 = vmax.f32 %v1982_v25, 0.0  ;;  %3951 = vmatpush1.bf16.msra.mxu1 %v9189_v19  ;;  %3840 = vmatpush1.bf16.msra.mxu0 %v9192_v27  ;;  %v11615_v38 = vpack.c.bf16 %v11577_v63, %v11347_v4  ;;  %v11617_v25 = vpop.f32.mrf.mxu0  ;;  %v11619_v19 = vpop.f32.mrf.mxu1  ;;  %v15729_v4 = vld [vmem:[#allocation64_spill] sm:$0xff] }
 0x24e   : > { %v1984_v31 = vadd.f32 %v15709_v23, %v11209_v32  ;;  %15710 = vst [vmem:[#allocation128_spill] sm:$0xff] %v11602_v39  ;;  %v9198_v30 = vld [vmem:[#allocation7 + $0x468] ss:$16 sps:$4 sm:$0xff]   ;;  %v15714_v23 = vld [vmem:[#allocation150_spill] sm:$0xff]  ;;  %3952 = vmatprep.subr.bf16.mxu1 %v9197_v37  ;;  %v9203_v6 = vld [vmem:[#allocation7 + $0x66c] ss:$16 sps:$4 sm:$0xff]   ;;  %v2133_v62 = vmul.f32 %v11127_v42, %v2047_v1  ;;  %3650 = vmatmul.mubr.bf16.gmra.mxu0 %v11602_v39 }
 0x24f   : > { %v15712_v32 = vld [vmem:[#allocation149_spill] sm:$0xff]  ;;  %v11611_v0 = vmul.f32 %v15714_v23, %v15711_v48  ;;  %15716 = vst [vmem:[#allocation89_spill] sm:$0xff] %v11615_v38  ;;  %v2044_v60 = vmax.f32 %v1980_v12, 0.0  ;;  %3841 = vmatprep.subr.bf16.mxu0 %v9200_v40  ;;  %3763 = vmatmul.mubr.bf16.gmra.mxu1 %v11615_v38  ;;  %v2131_v12 = vmul.f32 %v11135_v58, %v2045_v56  ;;  %v11637_v55 = vpop.f32.mrf.mxu0 }
 0x250   : > { %v11607_v22 = vmul.f32 %v15712_v32, %v15711_v48  ;;  %v9206_v27 = vld [vmem:[#allocation7 + $0x44c] ss:$16 sps:$4 sm:$0xff]   ;;  %v2128_v32 = vmul.f32 %v11115_v16, %v2042_v61  ;;  %v9201_v7 = vld [vmem:[#allocation7 + $0x668] ss:$16 sps:$4 sm:$0xff]   ;;  %v2129_v61 = vmul.f32 %v11127_v42, %v2043_v46  ;;  %v2132_v1 = vmul.f32 %v11115_v16, %v2046_v51  ;;  %v11639_v46 = vpop.f32.mrf.mxu1 }
 0x251   : > { %15715 = vst [vmem:[#allocation129_spill] sm:$0xff] %v11611_v0  ;;  %v2048_v0 = vmax.f32 %v1984_v31, 0.0  ;;  %3953 = vmatpush1.bf16.msra.mxu1 %v9195_v44  ;;  %3842 = vmatpush1.bf16.msra.mxu0 %v9198_v30  ;;  %v9204_v40 = vld [vmem:[#allocation7 + $0x448] ss:$16 sps:$4 sm:$0xff]   ;;  %v9209_v23 = vld [vmem:[#allocation7 + $0x64c] ss:$16 sps:$4 sm:$0xff]   ;;  %v2130_v30 = vmul.f32 %v11118_v5, %v2044_v60  ;;  %v11647_v31 = vadd.f32 %v11130_v54, %v2133_v62 }
 0x252   : > { %15713 = vst [vmem:[#allocation88_spill] sm:$0xff] %v11607_v22  ;;  %v2135_v22 = vmul.f32 %v11135_v58, %v2049_v15  ;;  %3954 = vmatprep.subr.bf16.mxu1 %v9203_v6  ;;  %3843 = vmatprep.subr.bf16.mxu0 %v9206_v27  ;;  %v9212_v56 = vld [vmem:[#allocation7 + $0x42c] ss:$16 sps:$4 sm:$0xff]   ;;  %v11643_v44 = vadd.f32 %v11121_v53, %v2128_v32  ;;  %v15721_v15 = vld [vmem:[#allocation106_spill] sm:$0xff] }
 0x253   : > { %15718 = vst [vmem:[#allocation90_spill] sm:$0xff] %v11647_v31  ;;  %v2134_v37 = vmul.f32 %v11118_v5, %v2048_v0  ;;  %v15720_v27 = vld [vmem:[#allocation65_spill] sm:$0xff]  ;;  %v1993_v39 = vadd.f32 %v11490_v50, %v15721_v15  ;;  %v11659_v32 = vadd.f32 %v11130_v54, %v2129_v61  ;;  %v11662_v60 = vadd.f32 %v11138_v9, %v2131_v12  ;;  %v15726_v50 = vld [vmem:[#allocation63_spill] sm:$0xff]  ;;  %v15727_v61 = vld [vmem:[#allocation104_spill] sm:$0xff]  ;;  %v11676_v12 = vpop.f32.mrf.mxu0 }
 0x254   : > { %15717 = vst [vmem:[#allocation130_spill] sm:$0xff] %v11643_v44  ;;  %v11651_v6 = vadd.f32 %v11138_v9, %v2135_v22  ;;  %v1991_v38 = vadd.f32 %v11488_v36, %v15720_v27  ;;  %v11665_v62 = vadd.f32 %v11121_v53, %v2132_v1  ;;  %v9207_v0 = vld [vmem:[#allocation7 + $0x648] ss:$16 sps:$4 sm:$0xff]   ;;  %v1987_v15 = vadd.f32 %v11401_v33, %v15726_v50  ;;  %v11678_v1 = vpop.f32.mrf.mxu1  ;;  %v9224_v43 = vld [vmem:[#allocation7 + $0x5ec] ss:$16 sps:$4 sm:$0xff]  }
 0x255   : > { %15722 = vst [vmem:[#allocation91_spill] sm:$0xff] %v11659_v32  ;;  %15723 = vst [vmem:[#allocation132_spill] sm:$0xff] %v11662_v60  ;;  %3955 = vmatpush1.bf16.msra.mxu1 %v9201_v7  ;;  %3844 = vmatpush1.bf16.msra.mxu0 %v9204_v40  ;;  %v15725_v36 = vld [vmem:[#allocation101_spill] sm:$0xff]  ;;  %v1989_v51 = vadd.f32 %v11403_v8, %v15727_v61  ;;  %v11688_v33 = vpack.c.bf16 %v11647_v31, %v11659_v32 }
 0x256   : > { %15719 = vst [vmem:[#allocation131_spill] sm:$0xff] %v11651_v6  ;;  %15724 = vst [vmem:[#allocation92_spill] sm:$0xff] %v11665_v62  ;;  %v11670_v27 = vadd.f32 %v11379_v18, %v15725_v36  ;;  %3956 = vmatprep.subr.bf16.mxu1 %v9209_v23  ;;  %3845 = vmatprep.subr.bf16.mxu0 %v9212_v56  ;;  %v9215_v7 = vld [vmem:[#allocation7 + $0x62c] ss:$16 sps:$4 sm:$0xff]   ;;  %v1990_v18 = vadd.f32 %v11443_v10, %v15729_v4  ;;  %v9210_v8 = vld [vmem:[#allocation7 + $0x428] ss:$16 sps:$4 sm:$0xff]   ;;  %v11710_v10 = vpop.f32.mrf.mxu0 }
 0x257   : > { %v15728_v40 = vld [vmem:[#allocation61_spill] sm:$0xff]  ;;  %15731 = vst [vmem:[#allocation133_spill] sm:$0xff] %v11688_v33  ;;  %v11691_v23 = vadd.f32 %v11124_v26, %v2134_v37  ;;  %v2055_v50 = vmax.f32 %v1991_v38, 0.0  ;;  %v2057_v56 = vmax.f32 %v1993_v39, 0.0  ;;  %v11695_v61 = vpack.c.bf16 %v11651_v6, %v11662_v60  ;;  %3659 = vmatprep.mubr.bf16.mxu0 %v11688_v33  ;;  %v15768_v6 = vld [vmem:[#allocation79_spill] sm:$0xff] }
 0x258   : > { %v1988_v22 = vadd.f32 %v11381_v28, %v15728_v40  ;;  %v15730_v36 = vld [vmem:[#allocation105_spill] sm:$0xff]  ;;  %v11703_v38 = vadd.f32 %v11124_v26, %v2130_v30  ;;  %v2051_v39 = vmax.f32 %v1987_v15, 0.0  ;;  %v11708_v4 = vpack.c.bf16 %v11665_v62, %v11643_v44 }
 0x259   : > { %v1992_v59 = vadd.f32 %v11445_v20, %v15730_v36  ;;  %15732 = vst [vmem:[#allocation93_spill] sm:$0xff] %v11691_v23  ;;  %15733 = vst [vmem:[#allocation134_spill] sm:$0xff] %v11695_v61  ;;  %v9218_v28 = vld [vmem:[#allocation7 + $0x40c] ss:$16 sps:$4 sm:$0xff]   ;;  %3957 = vmatpush1.bf16.msra.mxu1 %v9207_v0  ;;  %v9213_v37 = vld [vmem:[#allocation7 + $0x628] ss:$16 sps:$4 sm:$0xff]   ;;  %3772 = vmatprep.mubr.bf16.mxu1 %v11695_v61  ;;  %v11712_v20 = vpop.f32.mrf.mxu1  ;;  %v2141_v61 = vmul.f32 %v11127_v42, %v2055_v50 }
 0x25a   : > { %15734 = vst [vmem:[#allocation94_spill] sm:$0xff] %v11703_v38  ;;  %v2053_v36 = vmax.f32 %v1989_v51, 0.0  ;;  %15735 = vst [vmem:[#allocation135_spill] sm:$0xff] %v11708_v4  ;;  %3958 = vmatprep.subr.bf16.mxu1 %v9215_v7  ;;  %v9221_v40 = vld [vmem:[#allocation7 + $0x60c] ss:$16 sps:$4 sm:$0xff]   ;;  %v2050_v0 = vmax.f32 %v11670_v27, 0.0  ;;  %3846 = vmatpush1.bf16.msra.mxu0 %v9210_v8  ;;  %v2143_v11 = vmul.f32 %v11135_v58, %v2057_v56 }
 0x25b   : > { %v2052_v33 = vmax.f32 %v1988_v22, 0.0  ;;  %v2054_v63 = vmax.f32 %v1990_v18, 0.0  ;;  %v2056_v30 = vmax.f32 %v1992_v59, 0.0  ;;  %v9216_v15 = vld [vmem:[#allocation7 + $0x408] ss:$16 sps:$4 sm:$0xff]   ;;  %3660 = vmatmul.mubr.bf16.gmra.mxu0 %v11708_v4  ;;  %v11721_v7 = vpack.c.bf16 %v11691_v23, %v11703_v38  ;;  %3847 = vmatprep.subr.bf16.mxu0 %v9218_v28  ;;  %v11732_v28 = vpop.f32.mrf.mxu0  ;;  %v11734_v22 = vpop.f32.mrf.mxu1 }
 0x25c   : > { %v9219_v8 = vld [vmem:[#allocation7 + $0x608] ss:$16 sps:$4 sm:$0xff]   ;;  %v2137_v51 = vmul.f32 %v11127_v42, %v2051_v39  ;;  %v2139_v4 = vmul.f32 %v11135_v58, %v2053_v36  ;;  %v9227_v59 = vld [vmem:[#allocation7 + $0x7ec] ss:$16 sps:$4 sm:$0xff]   ;;  %v2136_v18 = vmul.f32 %v11115_v16, %v2050_v0 }
 0x25d   : > { %15736 = vst [vmem:[#allocation95_spill] sm:$0xff] %v11721_v7  ;;  %3959 = vmatpush1.bf16.msra.mxu1 %v9213_v37  ;;  %v2138_v37 = vmul.f32 %v11118_v5, %v2052_v33  ;;  %v2140_v50 = vmul.f32 %v11115_v16, %v2054_v63  ;;  %v2142_v56 = vmul.f32 %v11118_v5, %v2056_v30  ;;  %v9222_v39 = vld [vmem:[#allocation7 + $0x5e8] ss:$16 sps:$4 sm:$0xff]   ;;  %v9230_v0 = vld [vmem:[#allocation7 + $0x5cc] ss:$16 sps:$4 sm:$0xff]   ;;  %v11762_v38 = vpop.f32.mrf.mxu0  ;;  %v11764_v63 = vpop.f32.mrf.mxu1 }
 0x25e   : > { %3773 = vmatmul.mubr.bf16.gmra.mxu1 %v11721_v7  ;;  %3960 = vmatprep.subr.bf16.mxu1 %v9221_v40  ;;  %v11743_v7 = vadd.f32 %v11130_v54, %v2141_v61  ;;  %v11746_v40 = vadd.f32 %v11138_v9, %v2143_v11  ;;  %v9225_v36 = vld [vmem:[#allocation7 + $0x7e8] ss:$16 sps:$4 sm:$0xff]   ;;  %v11753_v27 = vadd.f32 %v11130_v54, %v2137_v51  ;;  %v9245_v23 = vld [vmem:[#allocation7 + $0x78c] ss:$16 sps:$4 sm:$0xff]  }
 0x25f   : > { %3848 = vmatpush1.bf16.msra.mxu0 %v9216_v15  ;;  %v11756_v61 = vadd.f32 %v11138_v9, %v2139_v4  ;;  %v1999_v11 = vadd.f32 %v11637_v55, %v11367_v29  ;;  %v11770_v51 = vadd.f32 %v11124_v26, %v2138_v37  ;;  %v11773_v4 = vadd.f32 %v11121_v53, %v2140_v50  ;;  %v15746_v29 = vld [vmem:[#allocation68_spill] sm:$0xff]  ;;  %v9233_v50 = vld [vmem:[#allocation7 + $0x7cc] ss:$16 sps:$4 sm:$0xff]   ;;  %v9228_v44 = vld [vmem:[#allocation7 + $0x5c8] ss:$16 sps:$4 sm:$0xff]  }
 0x260   : > { %15737 = vst [vmem:[#allocation136_spill] sm:$0xff] %v11743_v7  ;;  %15738 = vst [vmem:[#allocation96_spill] sm:$0xff] %v11746_v40  ;;  %3849 = vmatprep.subr.bf16.mxu0 %v9224_v43  ;;  %v15741_v43 = vld [vmem:[#allocation111_spill] sm:$0xff]  ;;  %v11776_v15 = vadd.f32 %v11124_v26, %v2142_v56  ;;  %v1995_v55 = vadd.f32 %v11587_v13, %v15746_v29  ;;  %v15752_v13 = vld [vmem:[#allocation110_spill] sm:$0xff] }
 0x261   : > { %3961 = vmatpush1.bf16.msra.mxu1 %v9219_v8  ;;  %15739 = vst [vmem:[#allocation137_spill] sm:$0xff] %v11753_v27  ;;  %15740 = vst [vmem:[#allocation97_spill] sm:$0xff] %v11756_v61  ;;  %v2001_v33 = vadd.f32 %v11639_v46, %v15741_v43  ;;  %v11767_v8 = vadd.f32 %v11121_v53, %v2136_v18  ;;  %v15747_v46 = vld [vmem:[#allocation69_spill] sm:$0xff]  ;;  %v11788_v18 = vpack.c.bf16 %v11746_v40, %v11756_v61  ;;  %v15750_v37 = vld [vmem:[#allocation67_spill] sm:$0xff] }
 0x262   : > { %3962 = vmatprep.subr.bf16.mxu1 %v9227_v59  ;;  %15743 = vst [vmem:[#allocation98_spill] sm:$0xff] %v11770_v51  ;;  %15744 = vst [vmem:[#allocation139_spill] sm:$0xff] %v11773_v4  ;;  %v1997_v43 = vadd.f32 %v11589_v14, %v15747_v46  ;;  %v11784_v59 = vpack.c.bf16 %v11743_v7, %v11753_v27  ;;  %v1994_v56 = vadd.f32 %v11539_v52, %v15750_v37  ;;  %v15753_v14 = vld [vmem:[#allocation70_spill] sm:$0xff]  ;;  %v11801_v52 = vpop.f32.mrf.mxu0  ;;  %v11803_v37 = vpop.f32.mrf.mxu1 }
 0x263   : > { %15742 = vst [vmem:[#allocation138_spill] sm:$0xff] %v11767_v8  ;;  %15745 = vst [vmem:[#allocation99_spill] sm:$0xff] %v11776_v15  ;;  %3850 = vmatpush2.bf16.msra.mxu0 %v9222_v39  ;;  %v15751_v39 = vld [vmem:[#allocation108_spill] sm:$0xff]  ;;  %v1998_v29 = vadd.f32 %v11617_v25, %v15752_v13  ;;  %v2000_v46 = vadd.f32 %v11619_v19, %v15753_v14  ;;  %v2065_v32 = vmax.f32 %v2001_v33, 0.0  ;;  %3782 = vmatprep.mubr.bf16.mxu1 %v11788_v18  ;;  %v9236_v33 = vld [vmem:[#allocation7 + $0x5ac] ss:$16 sps:$4 sm:$0xff]  }
 0x264   : > { %15748 = vst [vmem:[#allocation142_spill] sm:$0xff] %v11784_v59  ;;  %15749 = vst [vmem:[#allocation100_spill] sm:$0xff] %v11788_v18  ;;  %3851 = vmatprep.subr.bf16.mxu0 %v9230_v0  ;;  %v1996_v30 = vadd.f32 %v11541_v3, %v15751_v39  ;;  %v2063_v0 = vmax.f32 %v1999_v11, 0.0  ;;  %3669 = vmatprep.mubr.bf16.mxu0 %v11784_v59  ;;  %v9231_v3 = vld [vmem:[#allocation7 + $0x7c8] ss:$16 sps:$4 sm:$0xff]   ;;  %v11810_v19 = vpack.c.bf16 %v11773_v4, %v11767_v8  ;;  %v11824_v14 = vpop.f32.mrf.mxu0  ;;  %v15760_v8 = vld [vmem:[#allocation78_spill] sm:$0xff] }
 0x265   : > { %3963 = vmatpush2.bf16.msra.mxu1 %v9225_v36  ;;  %v11814_v36 = vpack.c.bf16 %v11776_v15, %v11770_v51  ;;  %v9239_v11 = vld [vmem:[#allocation7 + $0x7ac] ss:$16 sps:$4 sm:$0xff]   ;;  %v2059_v60 = vmax.f32 %v1995_v55, 0.0  ;;  %v2061_v62 = vmax.f32 %v1997_v43, 0.0  ;;  %v2058_v39 = vmax.f32 %v1994_v56, 0.0  ;;  %v11826_v55 = vpop.f32.mrf.mxu1  ;;  %v15765_v51 = vld [vmem:[#allocation76_spill] sm:$0xff] }
 0x266   : > { %15754 = vst [vmem:[#allocation143_spill] sm:$0xff] %v11810_v19  ;;  %3964 = vmatprep.subr.bf16.mxu1 %v9233_v50  ;;  %v2060_v25 = vmax.f32 %v1996_v30, 0.0  ;;  %v2062_v18 = vmax.f32 %v1998_v29, 0.0  ;;  %v2064_v59 = vmax.f32 %v2000_v46, 0.0  ;;  %3670 = vmatmul.mubr.bf16.gmra.mxu0 %v11810_v19  ;;  %v2149_v17 = vmul.f32 %v11127_v42, %v2063_v0  ;;  %v9234_v30 = vld [vmem:[#allocation7 + $0x5a8] ss:$16 sps:$4 sm:$0xff]  }
 0x267   : > { %15755 = vst [vmem:[#allocation107_spill] sm:$0xff] %v11814_v36  ;;  %3783 = vmatmul.mubr.bf16.gmra.mxu1 %v11814_v36  ;;  %v2151_v13 = vmul.f32 %v11135_v58, %v2065_v32  ;;  %3852 = vmatpush2.bf16.msra.mxu0 %v9228_v44  ;;  %v9237_v43 = vld [vmem:[#allocation7 + $0x7a8] ss:$16 sps:$4 sm:$0xff]   ;;  %v9242_v0 = vld [vmem:[#allocation7 + $0x58c] ss:$16 sps:$4 sm:$0xff]   ;;  %v2145_v44 = vmul.f32 %v11127_v42, %v2059_v60  ;;  %v11850_v31 = vpop.f32.mrf.mxu1 }
 0x268   : > { %3853 = vmatprep.subr.bf16.mxu0 %v9236_v33  ;;  %v2144_v50 = vmul.f32 %v11115_v16, %v2058_v39  ;;  %v2146_v56 = vmul.f32 %v11118_v5, %v2060_v25  ;;  %v2148_v29 = vmul.f32 %v11115_v16, %v2062_v18  ;;  %v2150_v46 = vmul.f32 %v11118_v5, %v2064_v59  ;;  %v9240_v25 = vld [vmem:[#allocation7 + $0x588] ss:$16 sps:$4 sm:$0xff]   ;;  %v15757_v39 = vld [vmem:[#allocation114_spill] sm:$0xff]  ;;  %v9248_v19 = vld [vmem:[#allocation7 + $0x56c] ss:$16 sps:$4 sm:$0xff]  }
 0x269   : > { %3965 = vmatpush2.bf16.msra.mxu1 %v9231_v3  ;;  %v2147_v3 = vmul.f32 %v11135_v58, %v2061_v62  ;;  %v11843_v32 = vadd.f32 %v11130_v54, %v2149_v17  ;;  %v11846_v60 = vadd.f32 %v11138_v9, %v2151_v13  ;;  %v11848_v62 = vpop.f32.mrf.mxu0  ;;  %v2003_v59 = vadd.f32 %v11710_v10, %v15757_v39  ;;  %v15758_v33 = vld [vmem:[#allocation75_spill] sm:$0xff]  ;;  %v15759_v36 = vld [vmem:[#allocation77_spill] sm:$0xff] }
 0x26a   : > { %3966 = vmatprep.subr.bf16.mxu1 %v9239_v11  ;;  %v2005_v11 = vadd.f32 %v11712_v20, %v15758_v33  ;;  %v2007_v17 = vadd.f32 %v11762_v38, %v15759_v36  ;;  %v9243_v13 = vld [vmem:[#allocation7 + $0x788] ss:$16 sps:$4 sm:$0xff]   ;;  %v2009_v10 = vadd.f32 %v11764_v63, %v15760_v8  ;;  %v11869_v20 = vadd.f32 %v11121_v53, %v2144_v50  ;;  %v1949_v50 = vpop.f32.mrf.mxu1 }
 0x26b   : > { %15756 = vst [vmem:[#allocation32_spill] sm:$0xff] %v11846_v60  ;;  %3854 = vmatpush2.bf16.msra.mxu0 %v9234_v30  ;;  %v11861_v30 = vadd.f32 %v11130_v54, %v2145_v44  ;;  %v11864_v18 = vadd.f32 %v11138_v9, %v2147_v3  ;;  %v11872_v38 = vadd.f32 %v11124_v26, %v2146_v56  ;;  %v15762_v3 = vld [vmem:[#allocation73_spill] sm:$0xff]  ;;  %v1836_v8 = vpop.f32.mrf.mxu0 }
 0x26c   : > { %3855 = vmatprep.subr.bf16.mxu0 %v9242_v0  ;;  %v11875_v36 = vadd.f32 %v11121_v53, %v2148_v29  ;;  %v15761_v0 = vld [vmem:[#allocation71_spill] sm:$0xff]  ;;  %v2004_v33 = vadd.f32 %v11678_v1, %v15762_v3  ;;  %v2069_v39 = vmax.f32 %v2005_v11, 0.0  ;;  %v15766_v4 = vld [vmem:[#allocation117_spill] sm:$0xff]  ;;  %v2073_v27 = vmax.f32 %v2009_v10, 0.0 }
 0x26d   : > { %3967 = vmatpush2.bf16.msra.mxu1 %v9237_v43  ;;  %v11878_v43 = vadd.f32 %v11124_v26, %v2150_v46  ;;  %v2002_v44 = vadd.f32 %v11676_v12, %v15761_v0  ;;  %v11890_v63 = vpack.c.bf16 %v11846_v60, %v11864_v18  ;;  %v9246_v56 = vld [vmem:[#allocation7 + $0x568] ss:$16 sps:$4 sm:$0xff]   ;;  %v9251_v29 = vld [vmem:[#allocation7 + $0x76c] ss:$16 sps:$4 sm:$0xff]   ;;  %v2067_v46 = vmax.f32 %v2003_v59, 0.0 }
 0x26e   : > { %3968 = vmatprep.subr.bf16.mxu1 %v9245_v23  ;;  %v11886_v23 = vpack.c.bf16 %v11843_v32, %v11861_v30  ;;  %v2006_v12 = vadd.f32 %v11732_v28, %v15765_v51  ;;  %v2071_v0 = vmax.f32 %v2007_v17, 0.0  ;;  %v9249_v1 = vld [vmem:[#allocation7 + $0x768] ss:$16 sps:$4 sm:$0xff]   ;;  %v2008_v61 = vadd.f32 %v11734_v22, %v15766_v4  ;;  %v9257_v22 = vld [vmem:[#allocation7 + $0x74c] ss:$16 sps:$4 sm:$0xff]  }
 0x26f   : > { %15764 = vst [vmem:[#allocation150_spill] sm:$0xff] %v11890_v63  ;;  %3856 = vmatpush2.bf16.msra.mxu0 %v9240_v25  ;;  %v9254_v25 = vld [vmem:[#allocation7 + $0x54c] ss:$16 sps:$4 sm:$0xff]   ;;  %v2012_v28 = vadd.f32 %v11803_v37, %v15768_v6  ;;  %3792 = vmatprep.mubr.bf16.mxu1 %v11890_v63  ;;  %v11906_v51 = vpack.c.bf16 %v11875_v36, %v11869_v20  ;;  %v2066_v4 = vmax.f32 %v2002_v44, 0.0  ;;  %v2068_v17 = vmax.f32 %v2004_v33, 0.0  ;;  %v1840_v6 = vpop.f32.mrf.mxu0  ;;  %v1953_v37 = vpop.f32.mrf.mxu1 }
 0x270   : > { %15763 = vst [vmem:[#allocation149_spill] sm:$0xff] %v11886_v23  ;;  %3857 = vmatprep.subr.bf16.mxu0 %v9248_v19  ;;  %3679 = vmatprep.mubr.bf16.mxu0 %v11886_v23  ;;  %v15767_v59 = vld [vmem:[#allocation119_spill] sm:$0xff]  ;;  %v11910_v19 = vpack.c.bf16 %v11878_v43, %v11872_v38  ;;  %v2153_v3 = vmul.f32 %v11127_v42, %v2067_v46  ;;  %v2070_v23 = vmax.f32 %v2006_v12, 0.0  ;;  %v2072_v44 = vmax.f32 %v2008_v61, 0.0 }
 0x271   : > { %3969 = vmatpush2.bf16.msra.mxu1 %v9243_v13  ;;  %v2010_v11 = vadd.f32 %v11801_v52, %v15767_v59  ;;  %15769 = vst [vmem:[#allocation65_spill] sm:$0xff] %v11906_v51  ;;  %v15771_v13 = vld [vmem:[#allocation120_spill] sm:$0xff]  ;;  %v9252_v15 = vld [vmem:[#allocation7 + $0x548] ss:$16 sps:$4 sm:$0xff]   ;;  %v2155_v63 = vmul.f32 %v11135_v58, %v2069_v39  ;;  %v2157_v40 = vmul.f32 %v11127_v42, %v2071_v0  ;;  %v2076_v12 = vmax.f32 %v2012_v28, 0.0  ;;  %v1955_v60 = vpop.f32.mrf.mxu1 }
 0x272   : > { %15770 = vst [vmem:[#allocation106_spill] sm:$0xff] %v11910_v19  ;;  %v2011_v10 = vadd.f32 %v11824_v14, %v15771_v13  ;;  %v15772_v52 = vld [vmem:[#allocation80_spill] sm:$0xff]  ;;  %3970 = vmatprep.subr.bf16.mxu1 %v9251_v29  ;;  %3680 = vmatmul.mubr.bf16.gmra.mxu0 %v11906_v51  ;;  %v9260_v14 = vld [vmem:[#allocation7 + $0x52c] ss:$16 sps:$4 sm:$0xff]   ;;  %v2014_v33 = vadd.f32 %v11848_v62, %v11494_v57  ;;  %v9255_v46 = vld [vmem:[#allocation7 + $0x748] ss:$16 sps:$4 sm:$0xff]   ;;  %v1842_v62 = vpop.f32.mrf.mxu0 }
 0x273   : > { %v2013_v59 = vadd.f32 %v11826_v55, %v15772_v52  ;;  %3858 = vmatpush2.bf16.msra.mxu0 %v9246_v56  ;;  %3793 = vmatmul.mubr.bf16.gmra.mxu1 %v11910_v19  ;;  %v2159_v55 = vmul.f32 %v11135_v58, %v2073_v27  ;;  %v15773_v56 = vld [vmem:[#allocation121_spill] sm:$0xff]  ;;  %v2074_v39 = vmax.f32 %v2010_v11, 0.0  ;;  %v15775_v52 = vld [vmem:[#allocation122_spill] sm:$0xff]  ;;  %v2152_v61 = vmul.f32 %v11115_v16, %v2066_v4 }
 0x274   : > { %v2016_v29 = vadd.f32 %v11850_v31, %v15773_v56  ;;  %3859 = vmatprep.subr.bf16.mxu0 %v9254_v25  ;;  %v15774_v0 = vld [vmem:[#allocation81_spill] sm:$0xff]  ;;  %v2017_v51 = vadd.f32 %v1949_v50, %v15775_v52  ;;  %v2154_v27 = vmul.f32 %v11118_v5, %v2068_v17  ;;  %v2075_v7 = vmax.f32 %v2011_v10, 0.0 }
 0x275   : > { %3971 = vmatpush2.bf16.msra.mxu1 %v9249_v1  ;;  %v2015_v13 = vadd.f32 %v1836_v8, %v15774_v0  ;;  %v9263_v19 = vld [vmem:[#allocation7 + $0x72c] ss:$16 sps:$4 sm:$0xff]   ;;  %v2077_v57 = vmax.f32 %v2013_v59, 0.0  ;;  %v9258_v31 = vld [vmem:[#allocation7 + $0x528] ss:$16 sps:$4 sm:$0xff]   ;;  %v2078_v1 = vmax.f32 %v2014_v33, 0.0  ;;  %v2156_v50 = vmul.f32 %v11115_v16, %v2070_v23 }
 0x276   : > { %3972 = vmatprep.subr.bf16.mxu1 %v9257_v22  ;;  %v2080_v25 = vmax.f32 %v2016_v29, 0.0  ;;  %v2081_v28 = vmax.f32 %v2017_v51, 0.0  ;;  %v9266_v8 = vld [vmem:[#allocation7 + $0x50c] ss:$16 sps:$4 sm:$0xff]   ;;  %v2158_v22 = vmul.f32 %v11118_v5, %v2072_v44  ;;  %v11933_v4 = vadd.f32 %v11130_v54, %v2157_v40  ;;  %v9261_v10 = vld [vmem:[#allocation7 + $0x728] ss:$16 sps:$4 sm:$0xff]   ;;  %v1957_v29 = vpop.f32.mrf.mxu1 }
 0x277   : > { %3860 = vmatpush2.bf16.msra.mxu0 %v9252_v15  ;;  %v2079_v11 = vmax.f32 %v2015_v13, 0.0  ;;  %v11936_v17 = vadd.f32 %v11138_v9, %v2159_v55  ;;  %v11939_v15 = vadd.f32 %v11130_v54, %v2153_v3  ;;  %v11942_v59 = vadd.f32 %v11138_v9, %v2155_v63  ;;  %v15776_v55 = vld [vmem:[#allocation82_spill] sm:$0xff]  ;;  %v1844_v3 = vpop.f32.mrf.mxu0 }
 0x278   : > { %3861 = vmatprep.subr.bf16.mxu0 %v9260_v14  ;;  %v2160_v51 = vmul.f32 %v11115_v16, %v2074_v39  ;;  %v2162_v23 = vmul.f32 %v11118_v5, %v2076_v12  ;;  %v9269_v14 = vld [vmem:[#allocation7 + $0x70c] ss:$16 sps:$4 sm:$0xff]   ;;  %v2167_v44 = vmul.f32 %v11135_v58, %v2081_v28  ;;  %v11949_v33 = vadd.f32 %v1840_v6, %v15776_v55  ;;  %v9264_v12 = vld [vmem:[#allocation7 + $0x508] ss:$16 sps:$4 sm:$0xff]  }
 0x279   : > { %3973 = vmatpush2.bf16.msra.mxu1 %v9255_v46  ;;  %v2165_v40 = vmul.f32 %v11127_v42, %v2079_v11  ;;  %v11952_v56 = vadd.f32 %v1953_v37, %v11518_v47  ;;  %v2161_v63 = vmul.f32 %v11127_v42, %v2075_v7  ;;  %v2163_v46 = vmul.f32 %v11135_v58, %v2077_v57  ;;  %v9267_v37 = vld [vmem:[#allocation7 + $0x708] ss:$16 sps:$4 sm:$0xff]  }
 0x27a   : > { %3974 = vmatprep.subr.bf16.mxu1 %v9263_v19  ;;  %v2164_v19 = vmul.f32 %v11115_v16, %v2078_v1  ;;  %v2166_v39 = vmul.f32 %v11118_v5, %v2080_v25  ;;  %v11959_v0 = vadd.f32 %v11121_v53, %v2156_v50  ;;  %v11962_v6 = vadd.f32 %v11124_v26, %v2158_v22  ;;  %v9272_v1 = vld [vmem:[#allocation7 + $0xe4] ss:$16 sps:$4 sm:$0xff]  }
 0x27b   : > { %3862 = vmatpush2.bf16.msra.mxu0 %v9258_v31  ;;  %v11966_v47 = vpack.c.bf16 %v11933_v4, %v11939_v15  ;;  %v11970_v7 = vpack.c.bf16 %v11936_v17, %v11942_v59  ;;  %v11973_v13 = vadd.f32 %v11121_v53, %v2152_v61  ;;  %v11976_v52 = vadd.f32 %v11124_v26, %v2154_v27  ;;  %v1846_v27 = vpop.f32.mrf.mxu0 }
 0x27c   : > { %3863 = vmatprep.subr.bf16.mxu0 %v9266_v8  ;;  %v11979_v57 = vadd.f32 %v11121_v53, %v2160_v51  ;;  %v11982_v31 = vadd.f32 %v11124_v26, %v2162_v23  ;;  %v11985_v25 = vadd.f32 %v11130_v54, %v2165_v40  ;;  %v11988_v11 = vadd.f32 %v11138_v9, %v2167_v44  ;;  %v1959_v8 = vpop.f32.mrf.mxu1  ;;  %v9275_v23 = vld [vmem:[#allocation7 + $0x2e4] ss:$16 sps:$4 sm:$0xff]   ;;  %v15781_v40 = vld [vmem:[#allocation123_spill] sm:$0xff] }
 0x27d   : > { %15777 = vst [vmem:[#allocation101_spill] sm:$0xff] %v11966_v47  ;;  %15778 = vst [vmem:[#allocation63_spill] sm:$0xff] %v11970_v7  ;;  %3975 = vmatpush2.bf16.msra.mxu1 %v9261_v10  ;;  %v2082_v61 = vmax.f32 %v11949_v33, 0.0  ;;  %v2084_v28 = vmax.f32 %v11952_v56, 0.0  ;;  %3689 = vmatprep.mubr.bf16.mxu0 %v11966_v47  ;;  %v11995_v50 = vadd.f32 %v11130_v54, %v2161_v63  ;;  %v15784_v56 = vld [vmem:[#allocation83_spill] sm:$0xff] }
 0x27e   : > { %3976 = vmatprep.subr.bf16.mxu1 %v9269_v14  ;;  %3802 = vmatprep.mubr.bf16.mxu1 %v11970_v7  ;;  %v11998_v22 = vadd.f32 %v11138_v9, %v2163_v46  ;;  %v12001_v10 = vadd.f32 %v11121_v53, %v2164_v19  ;;  %v12004_v51 = vadd.f32 %v11124_v26, %v2166_v39  ;;  %v15785_v39 = vld [vmem:[#allocation126_spill] sm:$0xff] }
 0x27f   : > { %15779 = vst [vmem:[#allocation104_spill] sm:$0xff] %v11995_v50  ;;  %3864 = vmatpush2.bf16.msra.mxu0 %v9264_v12  ;;  %v2019_v14 = vadd.f32 %v1842_v62, %v11522_v21  ;;  %v2021_v44 = vadd.f32 %v1955_v60, %v15781_v40  ;;  %v12010_v55 = vpack.c.bf16 %v11959_v0, %v11973_v13 }
 0x280   : > { %15780 = vst [vmem:[#allocation61_spill] sm:$0xff] %v11998_v22  ;;  %v12014_v33 = vpack.c.bf16 %v11962_v6, %v11976_v52  ;;  %v2022_v63 = vadd.f32 %v1844_v3, %v15784_v56  ;;  %v2024_v46 = vadd.f32 %v1957_v29, %v11545_v45  ;;  %v2023_v19 = vadd.f32 %v1846_v27, %v11549_v49 }
 0x281   : > { %15782 = vst [vmem:[#allocation64_spill] sm:$0xff] %v12010_v55  ;;  %3977 = vmatpush2.bf16.msra.mxu1 %v9267_v37  ;;  %v2025_v12 = vadd.f32 %v1959_v8, %v15785_v39  ;;  %4699 = vmatprep.subr.bf16.mxu0 %v9272_v1  ;;  %v2083_v21 = vmax.f32 %v2019_v14, 0.0  ;;  %v2085_v60 = vmax.f32 %v2021_v44, 0.0  ;;  %v12024_v62 = vpack.c.bf16 %v11985_v25, %v11995_v50 }
 0x282   : > { %15783 = vst [vmem:[#allocation105_spill] sm:$0xff] %v12014_v33  ;;  %3690 = vmatmul.mubr.bf16.gmra.mxu0 %v12010_v55  ;;  %3803 = vmatmul.mubr.bf16.gmra.mxu1 %v12014_v33  ;;  %v12028_v3 = vpack.c.bf16 %v11988_v11, %v11998_v22  ;;  %v2086_v45 = vmax.f32 %v2022_v63, 0.0  ;;  %v2088_v29 = vmax.f32 %v2024_v46, 0.0  ;;  %v2087_v49 = vmax.f32 %v2023_v19, 0.0 }
 0x283   : > { %15786 = vst [vmem:[#allocation111_spill] sm:$0xff] %v12024_v62  ;;  %v2089_v37 = vmax.f32 %v2025_v12, 0.0  ;;  %4812 = vmatprep.subr.bf16.mxu1 %v9275_v23  ;;  %v2169_v27 = vmul.f32 %v11127_v42, %v2083_v21  ;;  %v2171_v8 = vmul.f32 %v11135_v58, %v2085_v60  ;;  %3699 = vmatprep.mubr.bf16.mxu0 %v12024_v62  ;;  %v15790_v39 = vrot.slane %v11389_v2, 7 }
 0x284   : > { %15787 = vst [vmem:[#allocation68_spill] sm:$0xff] %v12028_v3  ;;  %3812 = vmatprep.mubr.bf16.mxu1 %v12028_v3  ;;  %v12037_v14 = vpack.c.bf16 %v12001_v10, %v11979_v57  ;;  %v2172_v40 = vmul.f32 %v11115_v16, %v2086_v45  ;;  %v2174_v44 = vmul.f32 %v11118_v5, %v2088_v29  ;;  %v15791_v12 = vrot.slane %v11393_v24, 7 }
 0x285   : > { %v2173_v23 = vmul.f32 %v11127_v42, %v2087_v49  ;;  %v2175_v56 = vmul.f32 %v11135_v58, %v2089_v37  ;;  %v2168_v63 = vmul.f32 %v11115_v16, %v2082_v61  ;;  %v2170_v46 = vmul.f32 %v11118_v5, %v2084_v28  ;;  %v15800_v42 = vld [vmem:[#allocation30_spill] sm:$0xff]  ;;  %v15805_v61 = vld [vmem:[#allocation116_spill] sm:$0xff] }
 0x286   : > { %15788 = vst [vmem:[#allocation69_spill] sm:$0xff] %v12037_v14  ;;  %v12047_v19 = vpack.c.bf16 %v12004_v51, %v11982_v31  ;;  %v2384_v60 = vsel %vm466_vm0, %v15791_v12, %v15790_v39  ;;  %v12056_v45 = vadd.f32 %v11121_v53, %v2172_v40  ;;  %v12059_v58 = vadd.f32 %v11124_v26, %v2174_v44 }
 0x287   : > { %v12062_v16 = vadd.f32 %v11130_v54, %v2173_v23  ;;  %v12065_v5 = vadd.f32 %v11138_v9, %v2175_v56  ;;  %v12072_v49 = vadd.f32 %v11130_v54, %v2169_v27  ;;  %v12075_v37 = vadd.f32 %v11138_v9, %v2171_v8  ;;  %v15794_v54 = vld [vmem:[#allocation146_spill] sm:$0xff] }
 0x288   : > { %15789 = vst [vmem:[#allocation67_spill] sm:$0xff] %v12047_v19  ;;  %15793 = vst [vmem:[#allocation108_spill] sm:$0xff] %v12059_v58  ;;  %v15240_v40 = vrot.slane %v12056_v45, 7  ;;  %v15241_v44 = vrot.slane %v12059_v58, 7  ;;  %v12080_v23 = vadd.f32 %v11121_v53, %v2168_v63  ;;  %v12083_v56 = vadd.f32 %v11124_v26, %v2170_v46  ;;  %v15796_v53 = vld [vmem:[#allocation147_spill] sm:$0xff] }
 0x289   : > { %v15246_v39 = vrot.slane %v12062_v16, 7  ;;  %v15795_v9 = vrot.slane %v15794_v54, 7  ;;  %v15797_v8 = vrot.slane %v15796_v53, 7  ;;  %v12103_v63 = vpack.c.bf16 %v12062_v16, %v12072_v49  ;;  %v15807_v53 = vld [vmem:[#allocation88_spill] sm:$0xff] }
 0x28a   : > { %3700 = vmatmul.mubr.bf16.gmra.mxu0 %v12037_v14  ;;  %3813 = vmatmul.mubr.bf16.gmra.mxu1 %v12047_v19  ;;  %v12107_v46 = vpack.c.bf16 %v12065_v5, %v12075_v37  ;;  %v15804_v28 = vrot.slane %v11412_v34, 7  ;;  %v15826_v33 = vrot.slane %v11412_v34, 7 }
 0x28b   : > { %v2387_v27 = vsel %vm466_vm0, %v15240_v40, %v15795_v9  ;;  %v2389_v26 = vsel %vm466_vm0, %v15241_v44, %v15797_v8  ;;  %15798 = vst [vmem:[#allocation110_spill] sm:$0xff] %v12103_v63  ;;  %v12113_v9 = vpack.c.bf16 %v12056_v45, %v12080_v23  ;;  %v12117_v40 = vpack.c.bf16 %v12059_v58, %v12083_v56 }
 0x28c   : > { %15799 = vst [vmem:[#allocation70_spill] sm:$0xff] %v12107_v46  ;;  %v2391_v1 = vmul.f32 %v2387_v27, %v15800_v42  ;;  %v2393_v29 = vmul.f32 %v2389_v26, %v15800_v42  ;;  %3709 = vmatprep.mubr.bf16.mxu0 %v12103_v63  ;;  %3822 = vmatprep.mubr.bf16.mxu1 %v12107_v46  ;;  %v15803_v44 = vmov %v15791_v12  ;;  %v15806_v12 = vrot.slane %v15805_v61, 7  ;;  %v15809_v46 = vld [vmem:[#allocation129_spill] sm:$0xff] }
 0x28d   : > { %15801 = vst [vmem:[#allocation114_spill] sm:$0xff] %v12113_v9  ;;  %15802 = vst [vmem:[#allocation75_spill] sm:$0xff] %v12117_v40  ;;  %v2388_v27 = vsel %vm466_vm0, %v15246_v39, %v15803_v44  ;;  %v2396_v26 = vmul.f32 %v2384_v60, %v15711_v48  ;;  %v15812_v44 = vrot.slane %v12065_v5, 7 }
 0x28e   : > { %v2386_v8 = vsel %vm466_vm0, %v15806_v12, %v15804_v28  ;;  %v12136_v54 = vpack.c.bf16 %v15807_v53, %v2391_v1  ;;  %v12139_v63 = vpack.c.bf16 %v15809_v46, %v2393_v29  ;;  %v2392_v19 = vmul.f32 %v2388_v27, %v15800_v42 }
 0x28f   : > { %v15811_v14 = vmov %v15806_v12  ;;  %v2398_v3 = vmul.f32 %v2386_v8, %v15711_v48  ;;  %v15813_v28 = vrot.slane %v11534_v41, 7  ;;  %v15814_v1 = vrot.slane %v11556_v35, 7  ;;  %v15820_v8 = vld [vmem:[#allocation84_spill] sm:$0xff] }
 0x290   : > { %15808 = vst [vmem:[#allocation77_spill] sm:$0xff] %v12136_v54  ;;  %15810 = vst [vmem:[#allocation78_spill] sm:$0xff] %v12139_v63  ;;  %v2390_v60 = vsel %vm466_vm0, %v15812_v44, %v15811_v14  ;;  %v15816_v53 = vrot.slane %v11389_v2, 7  ;;  %v12162_v27 = vpack.c.bf16 %v2396_v26, %v2392_v19  ;;  %v15818_v14 = vld [vmem:[#allocation29_spill] sm:$0xff]  ;;  %v15819_v44 = vld [vmem:[#allocation31_spill] sm:$0xff] }
 0x291   : > { %v2394_v39 = vmul.f32 %v2390_v60, %v15800_v42  ;;  %v2376_v29 = vsel %vm466_vm0, %v15814_v1, %v15813_v28  ;;  %v15815_v12 = vmov %v15814_v1  ;;  %v15821_v60 = vrot.slane %v15820_v8, 7  ;;  %v15822_v63 = vld [vmem:[#allocation125_spill] sm:$0xff] }
 0x292   : > { %v2380_v46 = vsel %vm466_vm0, %v15816_v53, %v15815_v12  ;;  %15817 = vst [vmem:[#allocation71_spill] sm:$0xff] %v12162_v27  ;;  %v2404_v48 = vmul.f32 %v2376_v29, %v15819_v44  ;;  %v15823_v54 = vrot.slane %v15822_v63, 7  ;;  %v15827_v12 = vld [vmem:[#allocation85_spill] sm:$0xff]  ;;  %v15829_v53 = vld [vmem:[#allocation66_spill] sm:$0xff]  ;;  %3710 = vmatmul.mubr.bf16.gmra.mxu0 %v12113_v9  ;;  %3823 = vmatmul.mubr.bf16.gmra.mxu1 %v12117_v40 }
 0x293   : > { %v2400_v42 = vmul.f32 %v2380_v46, %v15818_v14  ;;  %v12172_v1 = vpack.c.bf16 %v2398_v3, %v2394_v39  ;;  %v15828_v29 = vrot.slane %v15827_v12, 7  ;;  %v15830_v46 = vrot.slane %v15829_v53, 7  ;;  %v15848_v53 = vld [vmem:[#allocation91_spill] sm:$0xff] }
 0x294   : > { %v2378_v28 = vsel %vm466_vm0, %v15823_v54, %v15821_v60  ;;  %v15825_v62 = vmov %v15823_v54  ;;  %v15849_v7 = vrot.slane %v15848_v53, 7 }
 0x295   : > { %15824 = vst [vmem:[#allocation73_spill] sm:$0xff] %v12172_v1  ;;  %v2382_v19 = vsel %vm466_vm0, %v15826_v33, %v15825_v62  ;;  %v2406_v26 = vmul.f32 %v2378_v28, %v15819_v44  ;;  %v2375_v27 = vsel %vm466_vm0, %v15830_v46, %v15828_v29  ;;  %v12190_v3 = vpack.c.bf16 %v2404_v48, %v2400_v42  ;;  %v15833_v62 = vld [vmem:[#allocation102_spill] sm:$0xff]  ;;  %v15835_v1 = vld [vmem:[#allocation32_spill] sm:$0xff]  ;;  %v15836_v29 = vld [vmem:[#allocation115_spill] sm:$0xff] }
 0x296   : > { %v2402_v39 = vmul.f32 %v2382_v19, %v15818_v14  ;;  %v15832_v33 = vmov %v15830_v46  ;;  %v15834_v60 = vrot.slane %v15833_v62, 7  ;;  %3865 = vmatprep.mubr.bf16.mxu0 %v15836_v29  ;;  %v15837_v46 = vld [vmem:[#allocation118_spill] sm:$0xff]  ;;  %v2403_v42 = vmul.f32 %v2375_v27, %v15819_v44  ;;  %v15840_v19 = vld [vmem:[#allocation109_spill] sm:$0xff] }
 0x297   : > { %15831 = vst [vmem:[#allocation76_spill] sm:$0xff] %v12190_v3  ;;  %3978 = vmatprep.mubr.bf16.mxu1 %v15837_v46  ;;  %v15838_v48 = vld [vmem:[#allocation86_spill] sm:$0xff]  ;;  %v15841_v40 = vrot.slane %v15840_v19, 7  ;;  %v15857_v19 = vld [vmem:[#allocation132_spill] sm:$0xff] }
 0x298   : > { %v2379_v28 = vsel %vm466_vm0, %v15834_v60, %v15832_v33  ;;  %v15839_v3 = vrot.slane %v15838_v48, 7  ;;  %v12210_v9 = vpack.c.bf16 %v2406_v26, %v2402_v39  ;;  %v15844_v60 = vld [vmem:[#allocation62_spill] sm:$0xff]  ;;  %v15851_v26 = vmov %v15849_v7  ;;  %v15853_v39 = vld [vmem:[#allocation33_spill] sm:$0xff] }
 0x299   : > { %v2399_v54 = vmul.f32 %v2379_v28, %v15818_v14  ;;  %v15843_v33 = vmov %v15841_v40  ;;  %v15845_v55 = vrot.slane %v15844_v60, 7  ;;  %v15846_v46 = vld [vmem:[#allocation90_spill] sm:$0xff]  ;;  %v15855_v60 = vld [vmem:[#allocation131_spill] sm:$0xff]  ;;  %v15858_v34 = vrot.slane %v15857_v19, 7 }
 0x29a   : > { %v2377_v62 = vsel %vm466_vm0, %v15841_v40, %v15839_v3  ;;  %15842 = vst [vmem:[#allocation117_spill] sm:$0xff] %v12210_v9  ;;  %v15847_v27 = vrot.slane %v15846_v46, 7  ;;  %v15852_v3 = vrot.slane %v11534_v41, 7  ;;  %v15856_v9 = vrot.slane %v15855_v60, 7 }
 0x29b   : > { %v2381_v29 = vsel %vm466_vm0, %v15845_v55, %v15843_v33  ;;  %v2405_v28 = vmul.f32 %v2377_v62, %v15819_v44  ;;  %v12225_v61 = vpack.c.bf16 %v2403_v42, %v2399_v54  ;;  %v15854_v62 = vld [vmem:[#allocation34_spill] sm:$0xff]  ;;  %v15860_v54 = vrot.slane %v15820_v8, 7 }
 0x29c   : > { %v2368_v47 = vsel %vm466_vm0, %v15849_v7, %v15847_v27  ;;  %v2401_v40 = vmul.f32 %v2381_v29, %v15818_v14  ;;  %v2372_v55 = vsel %vm466_vm0, %v15852_v3, %v15851_v26  ;;  %v2370_v7 = vsel %vm466_vm0, %v15858_v34, %v15856_v9  ;;  %v15861_v29 = vld [vmem:[#allocation92_spill] sm:$0xff]  ;;  %v15863_v26 = vld [vmem:[#allocation130_spill] sm:$0xff] }
 0x29d   : > { %15850 = vst [vmem:[#allocation119_spill] sm:$0xff] %v12225_v61  ;;  %v2412_v44 = vmul.f32 %v2368_v47, %v15853_v39  ;;  %v2408_v33 = vmul.f32 %v2372_v55, %v15854_v62  ;;  %v15859_v14 = vmov %v15858_v34  ;;  %v15862_v27 = vrot.slane %v15861_v29, 7  ;;  %v9270_v55 = vld [vmem:[#allocation7 + $0xe0] ss:$16 sps:$4 sm:$0xff]  }
 0x29e   : > { %v2374_v42 = vsel %vm466_vm0, %v15860_v54, %v15859_v14  ;;  %v15864_v47 = vrot.slane %v15863_v26, 7  ;;  %v9273_v61 = vld [vmem:[#allocation7 + $0x2e0] ss:$16 sps:$4 sm:$0xff]   ;;  %v12254_v41 = vpack.c.bf16 %v2405_v28, %v2401_v40  ;;  %v2414_v9 = vmul.f32 %v2370_v7, %v15853_v39  ;;  %v9281_v26 = vld [vmem:[#allocation7 + $0x2c4] ss:$16 sps:$4 sm:$0xff]  }
 0x29f   : > { %v2410_v34 = vmul.f32 %v2374_v42, %v15854_v62  ;;  %v15867_v19 = vrot.slane %v15827_v12, 7  ;;  %v12264_v54 = vpack.c.bf16 %v2412_v44, %v2408_v33  ;;  %v15871_v40 = vld [vmem:[#allocation94_spill] sm:$0xff]  ;;  %v15876_v33 = vld [vmem:[#allocation136_spill] sm:$0xff] }
 0x2a0   : > { %v2367_v3 = vsel %vm466_vm0, %v15864_v47, %v15862_v27  ;;  %15865 = vst [vmem:[#allocation79_spill] sm:$0xff] %v12254_v41  ;;  %v15866_v8 = vmov %v15864_v47  ;;  %v15869_v47 = vld [vmem:[#allocation93_spill] sm:$0xff]  ;;  %v15872_v41 = vrot.slane %v15871_v40, 7  ;;  %v9278_v42 = vld [vmem:[#allocation7 + $0xc4] ss:$16 sps:$4 sm:$0xff]  }
 0x2a1   : > { %v2371_v14 = vsel %vm466_vm0, %v15867_v19, %v15866_v8  ;;  %15868 = vst [vmem:[#allocation120_spill] sm:$0xff] %v12264_v54  ;;  %v2411_v27 = vmul.f32 %v2367_v3, %v15853_v39  ;;  %v15870_v28 = vrot.slane %v15869_v47, 7  ;;  %v12274_v63 = vpack.c.bf16 %v2414_v9, %v2410_v34  ;;  %v15880_v34 = vld [vmem:[#allocation103_spill] sm:$0xff]  ;;  %v15881_v9 = vld [vmem:[#allocation148_spill] sm:$0xff] }
 0x2a2   : > { %v2407_v53 = vmul.f32 %v2371_v14, %v15854_v62  ;;  %v15874_v12 = vmov %v15872_v41  ;;  %v15875_v8 = vrot.slane %v15838_v48, 7  ;;  %v15877_v3 = vrot.slane %v15876_v33, 7  ;;  %v15878_v14 = vld [vmem:[#allocation137_spill] sm:$0xff]  ;;  %3866 = vmatmul.mubr.bf16.vlgmr.msra.gmra.mxu0 %v15880_v34  ;;  %3979 = vmatmul.mubr.bf16.vlgmr.msra.gmra.mxu1 %v15881_v9  ;;  %v15885_v34 = vld [vmem:[#allocation36_spill] sm:$0xff]  ;;  %v15886_v9 = vld [vmem:[#allocation35_spill] sm:$0xff] }
 0x2a3   : > { %v2369_v7 = vsel %vm466_vm0, %v15872_v41, %v15870_v28  ;;  %15873 = vst [vmem:[#allocation80_spill] sm:$0xff] %v12274_v63  ;;  %v15879_v54 = vrot.slane %v15878_v14, 7  ;;  %4700 = vmatpush1.bf16.msra.mxu0 %v9270_v55  ;;  %4813 = vmatpush1.bf16.msra.mxu1 %v9273_v61  ;;  %v9284_v61 = vld [vmem:[#allocation7 + $0xa4] ss:$16 sps:$4 sm:$0xff]  }
 0x2a4   : > { %v2373_v19 = vsel %vm466_vm0, %v15875_v8, %v15874_v12  ;;  %v2413_v44 = vmul.f32 %v2369_v7, %v15853_v39  ;;  %v12292_v63 = vpack.c.bf16 %v2411_v27, %v2407_v53  ;;  %v15884_v39 = vrot.slane %v15846_v46, 7  ;;  %v15887_v27 = vld [vmem:[#allocation96_spill] sm:$0xff]  ;;  %4701 = vmatprep.subr.bf16.mxu0 %v9278_v42  ;;  %4814 = vmatprep.subr.bf16.mxu1 %v9281_v26  ;;  %v15903_v42 = vld [vmem:[#allocation99_spill] sm:$0xff] }
 0x2a5   : > { %v2360_v41 = vsel %vm466_vm0, %v15879_v54, %v15877_v3  ;;  %v2409_v48 = vmul.f32 %v2373_v19, %v15854_v62  ;;  %v15883_v12 = vmov %v15879_v54  ;;  %v9276_v54 = vld [vmem:[#allocation7 + $0xc0] ss:$16 sps:$4 sm:$0xff]   ;;  %v15889_v62 = vld [vmem:[#allocation97_spill] sm:$0xff]  ;;  %v9287_v55 = vld [vmem:[#allocation7 + $0x2a4] ss:$16 sps:$4 sm:$0xff]  }
 0x2a6   : > { %15882 = vst [vmem:[#allocation121_spill] sm:$0xff] %v12292_v63  ;;  %v2364_v7 = vsel %vm466_vm0, %v15884_v39, %v15883_v12  ;;  %v9279_v3 = vld [vmem:[#allocation7 + $0x2c0] ss:$16 sps:$4 sm:$0xff]   ;;  %v2420_v53 = vmul.f32 %v2360_v41, %v15886_v9  ;;  %v15888_v63 = vrot.slane %v15887_v27, 7  ;;  %v15890_v19 = vrot.slane %v15889_v62, 7  ;;  %v15891_v12 = vld [vmem:[#allocation127_spill] sm:$0xff] }
 0x2a7   : > { %v2416_v28 = vmul.f32 %v2364_v7, %v15885_v34  ;;  %3875 = vmatprep.mubr.bf16.mxu0 %v15891_v12  ;;  %v15892_v39 = vld [vmem:[#allocation87_spill] sm:$0xff]  ;;  %v12313_v8 = vpack.c.bf16 %v2413_v44, %v2409_v48  ;;  %v15895_v41 = vrot.slane %v15855_v60, 7  ;;  %v15899_v44 = vld [vmem:[#allocation138_spill] sm:$0xff]  ;;  %4702 = vmatpush1.bf16.msra.mxu0 %v9276_v54 }
 0x2a8   : > { %v2362_v46 = vsel %vm466_vm0, %v15890_v19, %v15888_v63  ;;  %3988 = vmatprep.mubr.bf16.mxu1 %v15892_v39  ;;  %v15894_v7 = vmov %v15890_v19  ;;  %v15897_v39 = vld [vmem:[#allocation139_spill] sm:$0xff]  ;;  %v15900_v14 = vrot.slane %v15899_v44, 7  ;;  %4815 = vmatpush1.bf16.msra.mxu1 %v9279_v3  ;;  %v15913_v3 = vrot.slane %v15876_v33, 7 }
 0x2a9   : > { %15893 = vst [vmem:[#allocation81_spill] sm:$0xff] %v12313_v8  ;;  %v2366_v40 = vsel %vm466_vm0, %v15895_v41, %v15894_v7  ;;  %v2422_v24 = vmul.f32 %v2362_v46, %v15886_v9  ;;  %v12323_v19 = vpack.c.bf16 %v2420_v53, %v2416_v28  ;;  %v15898_v48 = vrot.slane %v15897_v39, 7  ;;  %v15905_v53 = vld [vmem:[#allocation98_spill] sm:$0xff]  ;;  %4703 = vmatprep.subr.bf16.mxu0 %v9284_v61 }
 0x2aa   : > { %v2418_v12 = vmul.f32 %v2366_v40, %v15885_v34  ;;  %v15901_v60 = vmov %v15900_v14  ;;  %v15902_v7 = vrot.slane %v15861_v29, 7  ;;  %v15904_v28 = vrot.slane %v15903_v42, 7  ;;  %4816 = vmatprep.subr.bf16.mxu1 %v9287_v55  ;;  %v15915_v55 = vld [vmem:[#allocation38_spill] sm:$0xff] }
 0x2ab   : > { %15896 = vst [vmem:[#allocation122_spill] sm:$0xff] %v12323_v19  ;;  %v2359_v8 = vsel %vm466_vm0, %v15900_v14, %v15898_v48  ;;  %v15906_v40 = vrot.slane %v15905_v53, 7  ;;  %v15908_v14 = vrot.slane %v15869_v47, 7  ;;  %v15918_v19 = vrot.slane %v11864_v18, 7 }
 0x2ac   : > { %v2363_v46 = vsel %vm466_vm0, %v15902_v7, %v15901_v60  ;;  %v2419_v26 = vmul.f32 %v2359_v8, %v15886_v9  ;;  %v9282_v60 = vld [vmem:[#allocation7 + $0xa0] ss:$16 sps:$4 sm:$0xff]   ;;  %v12352_v7 = vpack.c.bf16 %v2422_v24, %v2418_v12  ;;  %v9290_v12 = vld [vmem:[#allocation7 + $0x84] ss:$16 sps:$4 sm:$0xff]  }
 0x2ad   : > { %v2361_v41 = vsel %vm466_vm0, %v15906_v40, %v15904_v28  ;;  %v15907_v63 = vmov %v15906_v40  ;;  %v9285_v8 = vld [vmem:[#allocation7 + $0x2a0] ss:$16 sps:$4 sm:$0xff]   ;;  %v2415_v29 = vmul.f32 %v2363_v46, %v15885_v34  ;;  %v9293_v46 = vld [vmem:[#allocation7 + $0x284] ss:$16 sps:$4 sm:$0xff]   ;;  %v15917_v28 = vrot.slane %v15835_v1, 7  ;;  %4704 = vmatpush1.bf16.msra.mxu0 %v9282_v60 }
 0x2ae   : > { %v2365_v48 = vsel %vm466_vm0, %v15908_v14, %v15907_v63  ;;  %15909 = vst [vmem:[#allocation82_spill] sm:$0xff] %v12352_v7  ;;  %v2421_v40 = vmul.f32 %v2361_v41, %v15886_v9  ;;  %v15910_v63 = vrot.slane %v11843_v32, 7  ;;  %v15911_v14 = vrot.slane %v11861_v30, 7  ;;  %v15916_v41 = vld [vmem:[#allocation37_spill] sm:$0xff]  ;;  %v15919_v7 = vld [vmem:[#allocation128_spill] sm:$0xff]  ;;  %4817 = vmatpush1.bf16.msra.mxu1 %v9285_v8  ;;  %4705 = vmatprep.subr.bf16.mxu0 %v9290_v12 }
 0x2af   : > { %v2417_v44 = vmul.f32 %v2365_v48, %v15885_v34  ;;  %v12370_v61 = vpack.c.bf16 %v2419_v26, %v2415_v29  ;;  %3876 = vmatmul.mubr.bf16.gmra.mxu0 %v15919_v7  ;;  %v15922_v29 = vmov %v15918_v19  ;;  %v15923_v26 = vrot.slane %v15887_v27, 7  ;;  %v9296_v60 = vld [vmem:[#allocation7 + $0x64] ss:$16 sps:$4 sm:$0xff]   ;;  %4818 = vmatprep.subr.bf16.mxu1 %v9293_v46 }
 0x2b0   : > { %v2352_v54 = vsel %vm466_vm0, %v15911_v14, %v15910_v63  ;;  %v15912_v24 = vmov %v15911_v14  ;;  %v2354_v63 = vsel %vm466_vm0, %v15918_v19, %v15917_v28  ;;  %v9288_v19 = vld [vmem:[#allocation7 + $0x80] ss:$16 sps:$4 sm:$0xff]   ;;  %v9299_v8 = vld [vmem:[#allocation7 + $0x264] ss:$16 sps:$4 sm:$0xff]   ;;  %v15937_v12 = vrot.slane %v11939_v15, 7 }
 0x2b1   : > { %v2356_v34 = vsel %vm466_vm0, %v15913_v3, %v15912_v24  ;;  %15914 = vst [vmem:[#allocation123_spill] sm:$0xff] %v12370_v61  ;;  %v2428_v48 = vmul.f32 %v2352_v54, %v15916_v41  ;;  %v15920_v24 = vld [vmem:[#allocation89_spill] sm:$0xff]  ;;  %v12383_v3 = vpack.c.bf16 %v2421_v40, %v2417_v44  ;;  %v2358_v54 = vsel %vm466_vm0, %v15923_v26, %v15922_v29  ;;  %v9291_v28 = vld [vmem:[#allocation7 + $0x280] ss:$16 sps:$4 sm:$0xff]  }
 0x2b2   : > { %v2424_v9 = vmul.f32 %v2356_v34, %v15915_v55  ;;  %3989 = vmatmul.mubr.bf16.gmra.mxu1 %v15920_v24  ;;  %v2430_v34 = vmul.f32 %v2354_v63, %v15916_v41  ;;  %v2426_v44 = vmul.f32 %v2358_v54, %v15915_v55  ;;  %v15925_v40 = vrot.slane %v11875_v36, 7  ;;  %v15927_v63 = vld [vmem:[#allocation133_spill] sm:$0xff]  ;;  %v15928_v26 = vld [vmem:[#allocation134_spill] sm:$0xff]  ;;  %4706 = vmatpush1.bf16.msra.mxu0 %v9288_v19 }
 0x2b3   : > { %15921 = vst [vmem:[#allocation83_spill] sm:$0xff] %v12383_v3  ;;  %v15926_v24 = vrot.slane %v11869_v20, 7  ;;  %3885 = vmatprep.mubr.bf16.mxu0 %v15927_v63  ;;  %3998 = vmatprep.mubr.bf16.mxu1 %v15928_v26  ;;  %v2312_v63 = vrot.slane %v11995_v50, 7  ;;  %v15968_v50 = vrot.slane %v11988_v11, 7 }
 0x2b4   : > { %v12393_v7 = vpack.c.bf16 %v2428_v48, %v2424_v9  ;;  %v15930_v48 = vrot.slane %v15897_v39, 7  ;;  %v12419_v26 = vpack.c.bf16 %v2430_v34, %v2426_v44  ;;  %v15938_v34 = vmov %v15937_v12  ;;  %4819 = vmatpush1.bf16.msra.mxu1 %v9291_v28  ;;  %4707 = vmatprep.subr.bf16.mxu0 %v9296_v60 }
 0x2b5   : > { %v2351_v14 = vsel %vm466_vm0, %v15926_v24, %v15925_v40  ;;  %v15929_v9 = vmov %v15926_v24  ;;  %v15932_v40 = vrot.slane %v11872_v38, 7  ;;  %v15939_v44 = vrot.slane %v11843_v32, 7  ;;  %4820 = vmatprep.subr.bf16.mxu1 %v9299_v8 }
 0x2b6   : > { %15924 = vst [vmem:[#allocation126_spill] sm:$0xff] %v12393_v7  ;;  %v2355_v54 = vsel %vm466_vm0, %v15930_v48, %v15929_v9  ;;  %v2427_v61 = vmul.f32 %v2351_v14, %v15916_v41  ;;  %v15931_v7 = vrot.slane %v11878_v43, 7  ;;  %15933 = vst [vmem:[#allocation30_spill] sm:$0xff] %v12419_v26  ;;  %v15935_v9 = vrot.slane %v15903_v42, 7 }
 0x2b7   : > { %v2423_v29 = vmul.f32 %v2355_v54, %v15915_v55  ;;  %v15934_v3 = vmov %v15932_v40  ;;  %v2348_v54 = vsel %vm466_vm0, %v15939_v44, %v15938_v34  ;;  %v15944_v34 = vrot.slane %v11936_v17, 7 }
 0x2b8   : > { %v2353_v24 = vsel %vm466_vm0, %v15932_v40, %v15931_v7  ;;  %v2357_v14 = vsel %vm466_vm0, %v15935_v9, %v15934_v3  ;;  %v15936_v7 = vrot.slane %v11933_v4, 7  ;;  %v2314_v3 = vrot.slane %v11998_v22, 7 }
 0x2b9   : > { %v2425_v48 = vmul.f32 %v2357_v14, %v15915_v55  ;;  %v2429_v39 = vmul.f32 %v2353_v24, %v15916_v41  ;;  %v9294_v55 = vld [vmem:[#allocation7 + $0x60] ss:$16 sps:$4 sm:$0xff]   ;;  %v12443_v40 = vpack.c.bf16 %v2427_v61, %v2423_v29  ;;  %v15942_v14 = vld [vmem:[#allocation39_spill] sm:$0xff]  ;;  %v15945_v44 = vrot.slane %v11942_v59, 7 }
 0x2ba   : > { %v2344_v46 = vsel %vm466_vm0, %v15937_v12, %v15936_v7  ;;  %v9297_v41 = vld [vmem:[#allocation7 + $0x260] ss:$16 sps:$4 sm:$0xff]   ;;  %v15947_v28 = vrot.slane %v15835_v1, 7  ;;  %v15950_v7 = vrot.slane %v11973_v13, 7  ;;  %4708 = vmatpush1.bf16.msra.mxu0 %v9294_v55  ;;  %v2313_v22 = vrot.slane %v11982_v31, 7 }
 0x2bb   : > { %15940 = vst [vmem:[#allocation88_spill] sm:$0xff] %v12443_v40  ;;  %v15941_v24 = vld [vmem:[#allocation40_spill] sm:$0xff]  ;;  %v2436_v26 = vmul.f32 %v2344_v46, %v15942_v14  ;;  %v12448_v12 = vpack.c.bf16 %v2429_v39, %v2425_v48  ;;  %v2346_v19 = vsel %vm466_vm0, %v15945_v44, %v15944_v34  ;;  %v15946_v61 = vmov %v15945_v44 }
 0x2bc   : > { %v2432_v9 = vmul.f32 %v2348_v54, %v15941_v24  ;;  %v2350_v29 = vsel %vm466_vm0, %v15947_v28, %v15946_v61  ;;  %v9302_v46 = vld [vmem:[#allocation7 + $0x44] ss:$16 sps:$4 sm:$0xff]   ;;  %v2438_v8 = vmul.f32 %v2346_v19, %v15942_v14  ;;  %v15949_v48 = vrot.slane %v11959_v0, 7  ;;  %v15952_v61 = vld [vmem:[#allocation95_spill] sm:$0xff]  ;;  %4821 = vmatpush1.bf16.msra.mxu1 %v9297_v41 }
 0x2bd   : > { %15943 = vst [vmem:[#allocation129_spill] sm:$0xff] %v12448_v12  ;;  %v9305_v54 = vld [vmem:[#allocation7 + $0x244] ss:$16 sps:$4 sm:$0xff]   ;;  %v2434_v39 = vmul.f32 %v2350_v29, %v15941_v24  ;;  %v15951_v12 = vld [vmem:[#allocation135_spill] sm:$0xff]  ;;  %3999 = vmatmul.mubr.bf16.gmra.mxu1 %v15952_v61  ;;  %v15955_v29 = vrot.slane %v11962_v6, 7  ;;  %4709 = vmatprep.subr.bf16.mxu0 %v9302_v46  ;;  %v15969_v46 = vrot.slane %v11936_v17, 7 }
 0x2be   : > { %v12462_v60 = vpack.c.bf16 %v2436_v26, %v2432_v9  ;;  %v2343_v34 = vsel %vm466_vm0, %v15950_v7, %v15949_v48  ;;  %3886 = vmatmul.mubr.bf16.gmra.mxu0 %v15951_v12  ;;  %v15953_v26 = vmov %v15950_v7  ;;  %v15954_v9 = vrot.slane %v11875_v36, 7  ;;  %v9300_v48 = vld [vmem:[#allocation7 + $0x40] ss:$16 sps:$4 sm:$0xff]   ;;  %v9308_v55 = vld [vmem:[#allocation7 + $0x24] ss:$16 sps:$4 sm:$0xff]   ;;  %4822 = vmatprep.subr.bf16.mxu1 %v9305_v54 }
 0x2bf   : > { %v2435_v28 = vmul.f32 %v2343_v34, %v15942_v14  ;;  %v9303_v61 = vld [vmem:[#allocation7 + $0x240] ss:$16 sps:$4 sm:$0xff]   ;;  %v12489_v44 = vpack.c.bf16 %v2438_v8, %v2434_v39  ;;  %v15959_v34 = vrot.slane %v11878_v43, 7  ;;  %v9311_v41 = vld [vmem:[#allocation7 + $0x224] ss:$16 sps:$4 sm:$0xff]   ;;  %v2320_v54 = vrot.slane %v12072_v49, 7  ;;  %4710 = vmatpush1.bf16.msra.mxu0 %v9300_v48 }
 0x2c0   : > { %15948 = vst [vmem:[#allocation29_spill] sm:$0xff] %v12462_v60  ;;  %v2347_v19 = vsel %vm466_vm0, %v15954_v9, %v15953_v26  ;;  %v15956_v60 = vrot.slane %v11976_v52, 7  ;;  %4823 = vmatpush1.bf16.msra.mxu1 %v9303_v61  ;;  %4711 = vmatprep.subr.bf16.mxu0 %v9308_v55  ;;  %v15974_v61 = vrot.slane %v11959_v0, 7  ;;  %v15976_v55 = vrot.slane %v12004_v51, 7 }
 0x2c1   : > { %15957 = vst [vmem:[#allocation31_spill] sm:$0xff] %v12489_v44  ;;  %v2431_v40 = vmul.f32 %v2347_v19, %v15941_v24  ;;  %v15962_v19 = vrot.slane %v11985_v25, 7  ;;  %4824 = vmatprep.subr.bf16.mxu1 %v9311_v41  ;;  %v9317_v44 = vld [vmem:[#allocation7 + $0x204] ss:$16 sps:$4 sm:$0xff]  }
 0x2c2   : > { %v2345_v7 = vsel %vm466_vm0, %v15956_v60, %v15955_v29  ;;  %v15958_v26 = vmov %v15956_v60  ;;  %v15960_v60 = vld [vmem:[#allocation142_spill] sm:$0xff]  ;;  %v15961_v29 = vld [vmem:[#allocation100_spill] sm:$0xff]  ;;  %v2337_v41 = vsel %vm466_vm0, %v2313_v22, %v15976_v55  ;;  %v2321_v55 = vrot.slane %v12083_v56, 7 }
 0x2c3   : > { %v2349_v9 = vsel %vm466_vm0, %v15959_v34, %v15958_v26  ;;  %3895 = vmatprep.mubr.bf16.mxu0 %v15960_v60  ;;  %4008 = vmatprep.mubr.bf16.mxu1 %v15961_v29  ;;  %v2437_v8 = vmul.f32 %v2345_v7, %v15942_v14  ;;  %v2336_v12 = vsel %vm466_vm0, %v2312_v63, %v15962_v19  ;;  %v15964_v34 = vrot.slane %v11933_v4, 7  ;;  %v15965_v29 = vld [vmem:[#allocation41_spill] sm:$0xff]  ;;  %v15967_v14 = vld [vmem:[#allocation42_spill] sm:$0xff] }
 0x2c4   : > { %v2433_v39 = vmul.f32 %v2349_v9, %v15941_v24  ;;  %v12508_v26 = vpack.c.bf16 %v2435_v28, %v2431_v40  ;;  %v2444_v24 = vmul.f32 %v2336_v12, %v15965_v29  ;;  %v2338_v19 = vsel %vm466_vm0, %v2314_v3, %v15968_v50  ;;  %v9309_v28 = vld [vmem:[#allocation7 + $0x220] ss:$16 sps:$4 sm:$0xff]  }
 0x2c5   : > { %v2340_v60 = vsel %vm466_vm0, %v15964_v34, %v2312_v63  ;;  %v2342_v40 = vsel %vm466_vm0, %v15969_v46, %v2314_v3  ;;  %v9306_v63 = vld [vmem:[#allocation7 + $0x20] ss:$16 sps:$4 sm:$0xff]   ;;  %v15971_v34 = vrot.slane %v11979_v57, 7  ;;  %4825 = vmatpush1.bf16.msra.mxu1 %v9309_v28 }
 0x2c6   : > { %15963 = vst [vmem:[#allocation102_spill] sm:$0xff] %v12508_v26  ;;  %v12515_v9 = vpack.c.bf16 %v2437_v8, %v2433_v39  ;;  %v2440_v7 = vmul.f32 %v2340_v60, %v15967_v14  ;;  %v2442_v12 = vmul.f32 %v2342_v40, %v15967_v14  ;;  %v2446_v39 = vmul.f32 %v2338_v19, %v15965_v29  ;;  %v9314_v40 = vld [vmem:[#allocation7 + $0x4] ss:$16 sps:$4 sm:$0xff]  }
 0x2c7   : > { %v15970_v8 = vrot.slane %v12001_v10, 7  ;;  %v2322_v60 = vrot.slane %v12075_v37, 7  ;;  %v15973_v48 = vmov %v15971_v34  ;;  %4712 = vmatpush1.bf16.msra.mxu0 %v9306_v63  ;;  %v9323_v63 = vld [vmem:[#allocation7 + $0x3e4] ss:$16 sps:$4 sm:$0xff]   ;;  %4826 = vmatprep.subr.bf16.mxu1 %v9317_v44 }
 0x2c8   : > { %15966 = vst [vmem:[#allocation32_spill] sm:$0xff] %v12515_v9  ;;  %v12536_v3 = vpack.c.bf16 %v2444_v24, %v2440_v7  ;;  %v2339_v19 = vsel %vm466_vm0, %v15974_v61, %v15973_v48  ;;  %v12545_v9 = vpack.c.bf16 %v2446_v39, %v2442_v12  ;;  %v15977_v24 = vrot.slane %v11962_v6, 7  ;;  %v15978_v48 = vld [vmem:[#allocation143_spill] sm:$0xff]  ;;  %v15987_v26 = vld [vmem:[#allocation44_spill] sm:$0xff]  ;;  %4713 = vmatprep.subr.bf16.mxu0 %v9314_v40 }
 0x2c9   : > { %v2335_v50 = vsel %vm466_vm0, %v15971_v34, %v15970_v8  ;;  %v2439_v8 = vmul.f32 %v2339_v19, %v15967_v14  ;;  %v2319_v34 = vrot.slane %v12080_v23, 7  ;;  %3896 = vmatmul.mubr.bf16.gmra.mxu0 %v15978_v48  ;;  %v2445_v39 = vmul.f32 %v2337_v41, %v15965_v29 }
 0x2ca   : > { %15972 = vst [vmem:[#allocation115_spill] sm:$0xff] %v12536_v3  ;;  %v2443_v46 = vmul.f32 %v2335_v50, %v15965_v29  ;;  %15975 = vst [vmem:[#allocation118_spill] sm:$0xff] %v12545_v9  ;;  %v2341_v7 = vsel %vm466_vm0, %v15977_v24, %v2313_v22  ;;  %v15979_v50 = vld [vmem:[#allocation107_spill] sm:$0xff]  ;;  %v15980_v61 = vrot.slane %v12062_v16, 7  ;;  %v9312_v22 = vld [vmem:[#allocation7] ss:$16 sps:$4 sm:$0xff]  }
 0x2cb   : > { %4009 = vmatmul.mubr.bf16.gmra.mxu1 %v15979_v50  ;;  %v2441_v12 = vmul.f32 %v2341_v7, %v15967_v14  ;;  %v9315_v24 = vld [vmem:[#allocation7 + $0x200] ss:$16 sps:$4 sm:$0xff]   ;;  %v15982_v48 = vrot.slane %v11985_v25, 7  ;;  %v15983_v7 = vld [vmem:[#allocation43_spill] sm:$0xff]  ;;  %v15984_v50 = vld [vmem:[#allocation149_spill] sm:$0xff]  ;;  %4714 = vmatpush1.bf16.msra.mxu0 %v9312_v22  ;;  %v15998_v41 = vrot.slane %v11389_v2, 1 }
 0x2cc   : > { %v2328_v19 = vsel %vm466_vm0, %v2320_v54, %v15980_v61  ;;  %v12566_v9 = vpack.c.bf16 %v2443_v46, %v2439_v8  ;;  %3905 = vmatprep.mubr.bf16.mxu0 %v15984_v50  ;;  %v15985_v61 = vld [vmem:[#allocation150_spill] sm:$0xff]  ;;  %v15988_v8 = vrot.slane %v12065_v5, 7  ;;  %4827 = vmatpush1.bf16.msra.mxu1 %v9315_v24 }
 0x2cd   : > { %v2332_v14 = vsel %vm466_vm0, %v15982_v48, %v2320_v54  ;;  %v2452_v29 = vmul.f32 %v2328_v19, %v15983_v7  ;;  %4018 = vmatprep.mubr.bf16.mxu1 %v15985_v61  ;;  %v9320_v3 = vld [vmem:[#allocation7 + $0x1e4] ss:$16 sps:$4 sm:$0xff]   ;;  %v12576_v28 = vpack.c.bf16 %v2445_v39, %v2441_v12  ;;  %v15989_v19 = vrot.slane %v11988_v11, 7  ;;  %4828 = vmatprep.subr.bf16.mxu1 %v9323_v63 }
 0x2ce   : > { %15981 = vst [vmem:[#allocation62_spill] sm:$0xff] %v12566_v9  ;;  %v2448_v46 = vmul.f32 %v2332_v14, %v15987_v26  ;;  %v2330_v9 = vsel %vm466_vm0, %v2322_v60, %v15988_v8  ;;  %v15990_v12 = vrot.slane %v12056_v45, 7  ;;  %v15992_v8 = vrot.slane %v12001_v10, 7  ;;  %4715 = vmatprep.subr.bf16.mxu0 %v9320_v3  ;;  %v16000_v63 = vld [vmem:[#allocation112_spill] sm:$0xff]  ;;  %v16009_v2 = vld [vmem:[#allocation46_spill] sm:$0xff] }
 0x2cf   : > { %15986 = vst [vmem:[#allocation33_spill] sm:$0xff] %v12576_v28  ;;  %v2334_v48 = vsel %vm466_vm0, %v15989_v19, %v2322_v60  ;;  %v2454_v50 = vmul.f32 %v2330_v9, %v15983_v7  ;;  %v9318_v9 = vld [vmem:[#allocation7 + $0x1e0] ss:$16 sps:$4 sm:$0xff]   ;;  %v15999_v3 = vmov %v15998_v41  ;;  %v9335_v28 = vld [vmem:[#allocation7 + $0x3a4] ss:$16 sps:$4 sm:$0xff]  }
 0x2d0   : > { %v2327_v39 = vsel %vm466_vm0, %v2319_v34, %v15990_v12  ;;  %v12593_v14 = vpack.c.bf16 %v2452_v29, %v2448_v46  ;;  %v2450_v61 = vmul.f32 %v2334_v48, %v15987_v26  ;;  %v2331_v44 = vsel %vm466_vm0, %v15992_v8, %v2319_v34  ;;  %v9321_v19 = vld [vmem:[#allocation7 + $0x3e0] ss:$16 sps:$4 sm:$0xff]   ;;  %v9326_v8 = vld [vmem:[#allocation7 + $0x1c4] ss:$16 sps:$4 sm:$0xff]   ;;  %4716 = vmatpush2.bf16.msra.mxu0 %v9318_v9 }
 0x2d1   : > { %v2451_v40 = vmul.f32 %v2327_v39, %v15983_v7  ;;  %v2447_v54 = vmul.f32 %v2331_v44, %v15987_v26  ;;  %v15993_v29 = vrot.slane %v12059_v58, 7  ;;  %v15994_v48 = vrot.slane %v12004_v51, 7  ;;  %v9329_v44 = vld [vmem:[#allocation7 + $0x3c4] ss:$16 sps:$4 sm:$0xff]   ;;  %4829 = vmatpush2.bf16.msra.mxu1 %v9321_v19  ;;  %v16018_v19 = vld [vmem:[#allocation101_spill] sm:$0xff]  ;;  %4717 = vmatprep.subr.bf16.mxu0 %v9326_v8 }
 0x2d2   : > { %15991 = vst [vmem:[#allocation34_spill] sm:$0xff] %v12593_v14  ;;  %v12612_v22 = vpack.c.bf16 %v2454_v50, %v2450_v61  ;;  %v16001_v50 = vrot.slane %v16000_v63, 1  ;;  %v16002_v61 = vld [vmem:[#allocation125_spill] sm:$0xff]  ;;  %v16007_v12 = vld [vmem:[#allocation106_spill] sm:$0xff]  ;;  %4830 = vmatprep.subr.bf16.mxu1 %v9329_v44  ;;  %v16025_v63 = vld [vmem:[#allocation132_spill] sm:$0xff] }
 0x2d3   : > { %v2329_v46 = vsel %vm466_vm0, %v2321_v55, %v15993_v29  ;;  %v2333_v34 = vsel %vm466_vm0, %v15994_v48, %v2321_v55  ;;  %v12616_v60 = vpack.c.bf16 %v2451_v40, %v2447_v54  ;;  %v15997_v29 = vrot.slane %v11556_v35, 1  ;;  %4019 = vmatmul.mubr.bf16.gmra.mxu1 %v16007_v12  ;;  %v9327_v14 = vld [vmem:[#allocation7 + $0x3c0] ss:$16 sps:$4 sm:$0xff]  }
 0x2d4   : > { %15995 = vst [vmem:[#allocation93_spill] sm:$0xff] %v12612_v22  ;;  %v2449_v24 = vmul.f32 %v2333_v34, %v15987_v26  ;;  %v2453_v39 = vmul.f32 %v2329_v46, %v15983_v7  ;;  %v2576_v26 = vsel %vm595_vm1, %v16001_v50, %v15999_v3  ;;  %v16003_v7 = vrot.slane %v16002_v61, 1  ;;  %v16004_v46 = vld [vmem:[#allocation113_spill] sm:$0xff]  ;;  %v9324_v50 = vld [vmem:[#allocation7 + $0x1c0] ss:$16 sps:$4 sm:$0xff]   ;;  %v16019_v3 = vld [vmem:[#allocation63_spill] sm:$0xff] }
 0x2d5   : > { %15996 = vst [vmem:[#allocation136_spill] sm:$0xff] %v12616_v60  ;;  %v2572_v55 = vsel %vm595_vm1, %v15998_v41, %v15997_v29  ;;  %v16005_v48 = vrot.slane %v16004_v46, 1  ;;  %v16006_v34 = vld [vmem:[#allocation65_spill] sm:$0xff]  ;;  %v2584_v29 = vmul.f32 %v2576_v26, %v16009_v2  ;;  %v16016_v26 = vld [vmem:[#allocation124_spill] sm:$0xff]  ;;  %4028 = vmatprep.mubr.bf16.mxu1 %v16019_v3  ;;  %4718 = vmatpush2.bf16.msra.mxu0 %v9324_v50  ;;  %v16179_v21 = vld [vmem:[#allocation102_spill] sm:$0xff] }
 0x2d6   : > { %3906 = vmatmul.mubr.bf16.gmra.mxu0 %v16006_v34  ;;  %v12639_v41 = vpack.c.bf16 %v2453_v39, %v2449_v24  ;;  %v16010_v60 = vld [vmem:[#allocation45_spill] sm:$0xff]  ;;  %v16014_v24 = vld [vmem:[#allocation91_spill] sm:$0xff]  ;;  %v9332_v46 = vld [vmem:[#allocation7 + $0x1a4] ss:$16 sps:$4 sm:$0xff]   ;;  %4831 = vmatpush2.bf16.msra.mxu1 %v9327_v14 }
 0x2d7   : > { %v2574_v54 = vsel %vm595_vm1, %v16005_v48, %v16003_v7  ;;  %v2588_v22 = vmul.f32 %v2572_v55, %v16010_v60  ;;  %v16011_v7 = vmov %v16005_v48  ;;  %v16012_v48 = vld [vmem:[#allocation116_spill] sm:$0xff]  ;;  %v16015_v39 = vrot.slane %v16014_v24, 1  ;;  %3915 = vmatprep.mubr.bf16.mxu0 %v16018_v19  ;;  %4719 = vmatprep.subr.bf16.mxu0 %v9332_v46 }
 0x2d8   : > { %16008 = vst [vmem:[#allocation103_spill] sm:$0xff] %v12639_v41  ;;  %v16013_v40 = vrot.slane %v16012_v48, 1  ;;  %v2590_v12 = vmul.f32 %v2574_v54, %v16010_v60  ;;  %v16017_v41 = vrot.slane %v16016_v26, 1  ;;  %v16022_v54 = vrot.slane %v11556_v35, 1  ;;  %v16024_v3 = vld [vmem:[#allocation48_spill] sm:$0xff]  ;;  %4832 = vmatprep.subr.bf16.mxu1 %v9335_v28 }
 0x2d9   : > { %v12660_v48 = vpack.c.bf16 %v2588_v22, %v2584_v29  ;;  %v16026_v22 = vrot.slane %v16025_v63, 1  ;;  %v16027_v29 = vld [vmem:[#allocation84_spill] sm:$0xff]  ;;  %v16031_v26 = vrot.slane %v16002_v61, 1 }
 0x2da   : > { %v2578_v34 = vsel %vm595_vm1, %v16013_v40, %v16011_v7  ;;  %v2564_v55 = vsel %vm595_vm1, %v16017_v41, %v16015_v39  ;;  %v16021_v60 = vmov %v16017_v41  ;;  %v16023_v39 = vld [vmem:[#allocation47_spill] sm:$0xff] }
 0x2db   : > { %16020 = vst [vmem:[#allocation148_spill] sm:$0xff] %v12660_v48  ;;  %v2586_v40 = vmul.f32 %v2578_v34, %v16009_v2  ;;  %v2568_v7 = vsel %vm595_vm1, %v16022_v54, %v16021_v60  ;;  %v2596_v9 = vmul.f32 %v2564_v55, %v16024_v3  ;;  %v16028_v48 = vrot.slane %v16027_v29, 1  ;;  %v16032_v60 = vld [vmem:[#allocation130_spill] sm:$0xff]  ;;  %v16034_v54 = vld [vmem:[#allocation85_spill] sm:$0xff] }
 0x2dc   : > { %v2592_v19 = vmul.f32 %v2568_v7, %v16023_v39  ;;  %v16033_v55 = vrot.slane %v16032_v60, 1  ;;  %v16035_v7 = vrot.slane %v16034_v54, 1  ;;  %v9338_v54 = vld [vmem:[#allocation7 + $0x184] ss:$16 sps:$4 sm:$0xff]  }
 0x2dd   : > { %v2566_v2 = vsel %vm595_vm1, %v16028_v48, %v16026_v22  ;;  %v12678_v34 = vpack.c.bf16 %v2590_v12, %v2586_v40  ;;  %v16030_v35 = vmov %v16028_v48  ;;  %v9330_v12 = vld [vmem:[#allocation7 + $0x1a0] ss:$16 sps:$4 sm:$0xff]  }
 0x2de   : > { %v2570_v8 = vsel %vm595_vm1, %v16031_v26, %v16030_v35  ;;  %v2598_v44 = vmul.f32 %v2566_v2, %v16024_v3  ;;  %v2563_v41 = vsel %vm595_vm1, %v16035_v7, %v16033_v55  ;;  %v9333_v40 = vld [vmem:[#allocation7 + $0x3a0] ss:$16 sps:$4 sm:$0xff]   ;;  %v12694_v22 = vpack.c.bf16 %v2596_v9, %v2592_v19  ;;  %4720 = vmatpush2.bf16.msra.mxu0 %v9330_v12  ;;  %v9344_v12 = vld [vmem:[#allocation7 + $0x164] ss:$16 sps:$4 sm:$0xff]  }
 0x2df   : > { %16029 = vst [vmem:[#allocation36_spill] sm:$0xff] %v12678_v34  ;;  %v2594_v61 = vmul.f32 %v2570_v8, %v16023_v39  ;;  %v16037_v29 = vmov %v16035_v7  ;;  %v16038_v2 = vld [vmem:[#allocation66_spill] sm:$0xff]  ;;  %v2595_v14 = vmul.f32 %v2563_v41, %v16024_v3  ;;  %4833 = vmatpush2.bf16.msra.mxu1 %v9333_v40  ;;  %4721 = vmatprep.subr.bf16.mxu0 %v9338_v54 }
 0x2e0   : > { %16036 = vst [vmem:[#allocation35_spill] sm:$0xff] %v12694_v22  ;;  %v16039_v35 = vrot.slane %v16038_v2, 1  ;;  %v16040_v55 = vld [vmem:[#allocation94_spill] sm:$0xff] }
 0x2e1   : > { %v16041_v9 = vrot.slane %v16040_v55, 1  ;;  %v16042_v19 = vld [vmem:[#allocation86_spill] sm:$0xff]  ;;  %v12712_v48 = vpack.c.bf16 %v2598_v44, %v2594_v61  ;;  %v16052_v44 = vld [vmem:[#allocation64_spill] sm:$0xff]  ;;  %v16053_v61 = vld [vmem:[#allocation105_spill] sm:$0xff] }
 0x2e2   : > { %v2567_v26 = vsel %vm595_vm1, %v16039_v35, %v16037_v29  ;;  %v16043_v7 = vrot.slane %v16042_v19, 1  ;;  %v9341_v2 = vld [vmem:[#allocation7 + $0x384] ss:$16 sps:$4 sm:$0xff]   ;;  %v16046_v35 = vld [vmem:[#allocation109_spill] sm:$0xff]  ;;  %3916 = vmatmul.mubr.bf16.gmra.mxu0 %v16052_v44  ;;  %4029 = vmatmul.mubr.bf16.gmra.mxu1 %v16053_v61 }
 0x2e3   : > { %v2591_v50 = vmul.f32 %v2567_v26, %v16023_v39  ;;  %16044 = vst [vmem:[#allocation96_spill] sm:$0xff] %v12712_v48  ;;  %v16047_v46 = vrot.slane %v16046_v35, 1  ;;  %v16048_v26 = vld [vmem:[#allocation137_spill] sm:$0xff]  ;;  %v16050_v22 = vld [vmem:[#allocation90_spill] sm:$0xff]  ;;  %4834 = vmatprep.subr.bf16.mxu1 %v9341_v2  ;;  %v16072_v2 = vrot.slane %v15905_v53, 1 }
 0x2e4   : > { %v2565_v8 = vsel %vm595_vm1, %v16043_v7, %v16041_v9  ;;  %v16045_v29 = vmov %v16043_v7  ;;  %v16049_v34 = vrot.slane %v16048_v26, 1  ;;  %v16051_v58 = vrot.slane %v16050_v22, 1  ;;  %v16057_v44 = vld [vmem:[#allocation49_spill] sm:$0xff]  ;;  %v16058_v61 = vld [vmem:[#allocation50_spill] sm:$0xff] }
 0x2e5   : > { %v2569_v28 = vsel %vm595_vm1, %v16047_v46, %v16045_v29  ;;  %v2597_v41 = vmul.f32 %v2565_v8, %v16024_v3  ;;  %v12730_v19 = vpack.c.bf16 %v2595_v14, %v2591_v50  ;;  %v16056_v3 = vrot.slane %v16014_v24, 1  ;;  %v9347_v40 = vld [vmem:[#allocation7 + $0x364] ss:$16 sps:$4 sm:$0xff]  }
 0x2e6   : > { %v2556_v9 = vsel %vm595_vm1, %v16051_v58, %v16049_v34  ;;  %v2593_v35 = vmul.f32 %v2569_v28, %v16023_v39  ;;  %v16055_v29 = vmov %v16051_v58  ;;  %v9336_v58 = vld [vmem:[#allocation7 + $0x180] ss:$16 sps:$4 sm:$0xff]   ;;  %v16059_v14 = vrot.slane %v15889_v62, 1  ;;  %v16060_v39 = vld [vmem:[#allocation131_spill] sm:$0xff] }
 0x2e7   : > { %16054 = vst [vmem:[#allocation97_spill] sm:$0xff] %v12730_v19  ;;  %v2560_v8 = vsel %vm595_vm1, %v16056_v3, %v16055_v29  ;;  %v9339_v34 = vld [vmem:[#allocation7 + $0x380] ss:$16 sps:$4 sm:$0xff]   ;;  %v2604_v50 = vmul.f32 %v2556_v9, %v16058_v61  ;;  %v16061_v28 = vrot.slane %v16060_v39, 1  ;;  %v16062_v29 = vld [vmem:[#allocation111_spill] sm:$0xff]  ;;  %v16065_v9 = vrot.slane %v16025_v63, 1  ;;  %4722 = vmatpush2.bf16.msra.mxu0 %v9336_v58 }
 0x2e8   : > { %v2600_v7 = vmul.f32 %v2560_v8, %v16057_v44  ;;  %3925 = vmatprep.mubr.bf16.mxu0 %v16062_v29  ;;  %v16063_v3 = vld [vmem:[#allocation68_spill] sm:$0xff]  ;;  %v12751_v46 = vpack.c.bf16 %v2597_v41, %v2593_v35  ;;  %4835 = vmatpush2.bf16.msra.mxu1 %v9339_v34  ;;  %v16079_v34 = vrot.slane %v16048_v26, 1  ;;  %v2500_v26 = vrot.slane %v11933_v4, 1 }
 0x2e9   : > { %v2558_v24 = vsel %vm595_vm1, %v16061_v28, %v16059_v14  ;;  %4038 = vmatprep.mubr.bf16.mxu1 %v16063_v3  ;;  %v16064_v8 = vmov %v16061_v28  ;;  %v2498_v14 = vrot.slane %v11942_v59, 1  ;;  %v16066_v3 = vld [vmem:[#allocation138_spill] sm:$0xff]  ;;  %v16068_v35 = vld [vmem:[#allocation92_spill] sm:$0xff]  ;;  %4723 = vmatprep.subr.bf16.mxu0 %v9344_v12  ;;  %v2514_v59 = vrot.slane %v12075_v37, 1 }
 0x2ea   : > { %v2562_v19 = vsel %vm595_vm1, %v16065_v9, %v16064_v8  ;;  %v2606_v48 = vmul.f32 %v2558_v24, %v16058_v61  ;;  %v12761_v28 = vpack.c.bf16 %v2604_v50, %v2600_v7  ;;  %v16067_v41 = vrot.slane %v16066_v3, 1  ;;  %4836 = vmatprep.subr.bf16.mxu1 %v9347_v40  ;;  %v16080_v40 = vld [vmem:[#allocation51_spill] sm:$0xff] }
 0x2eb   : > { %v2602_v29 = vmul.f32 %v2562_v19, %v16057_v44  ;;  %v16069_v22 = vrot.slane %v16068_v35, 1  ;;  %v16071_v8 = vrot.slane %v16032_v60, 1  ;;  %v16073_v7 = vrot.slane %v15869_v47, 1  ;;  %v9345_v35 = vld [vmem:[#allocation7 + $0x360] ss:$16 sps:$4 sm:$0xff]  }
 0x2ec   : > { %4837 = vmatpush2.bf16.msra.mxu1 %v9345_v35  ;;  %v9359_v35 = vld [vmem:[#allocation7 + $0x324] ss:$16 sps:$4 sm:$0xff]   ;;  %v16095_v60 = vrot.slane %v11872_v38, 1 }
 0x2ed   : > { %v2555_v63 = vsel %vm595_vm1, %v16069_v22, %v16067_v41  ;;  %v16070_v39 = vmov %v16069_v22  ;;  %v2557_v19 = vsel %vm595_vm1, %v16073_v7, %v16072_v2  ;;  %v16074_v50 = vmov %v16073_v7  ;;  %v9342_v41 = vld [vmem:[#allocation7 + $0x160] ss:$16 sps:$4 sm:$0xff]  }
 0x2ee   : > { %v2559_v24 = vsel %vm595_vm1, %v16071_v8, %v16070_v39  ;;  %v2603_v54 = vmul.f32 %v2555_v63, %v16058_v61  ;;  %v16075_v22 = vrot.slane %v16040_v55, 1  ;;  %v12790_v63 = vpack.c.bf16 %v2606_v48, %v2602_v29  ;;  %v9350_v29 = vld [vmem:[#allocation7 + $0x144] ss:$16 sps:$4 sm:$0xff]   ;;  %4724 = vmatpush2.bf16.msra.mxu0 %v9342_v41 }
 0x2ef   : > { %v2599_v39 = vmul.f32 %v2559_v24, %v16057_v44  ;;  %v2605_v47 = vmul.f32 %v2557_v19, %v16058_v61  ;;  %v16076_v55 = vrot.slane %v11861_v30, 1  ;;  %v16077_v7 = vrot.slane %v15876_v33, 1  ;;  %v9353_v24 = vld [vmem:[#allocation7 + $0x344] ss:$16 sps:$4 sm:$0xff]   ;;  %4725 = vmatprep.subr.bf16.mxu0 %v9350_v29 }
 0x2f0   : > { %v2561_v9 = vsel %vm595_vm1, %v16075_v22, %v16074_v50  ;;  %v16081_v19 = vld [vmem:[#allocation52_spill] sm:$0xff]  ;;  %v16082_v22 = vrot.slane %v11864_v18, 1  ;;  %4838 = vmatprep.subr.bf16.mxu1 %v9353_v24  ;;  %v16100_v29 = vrot.slane %v11843_v32, 1 }
 0x2f1   : > { %v2601_v8 = vmul.f32 %v2561_v9, %v16057_v44  ;;  %v2548_v58 = vsel %vm595_vm1, %v16077_v7, %v16076_v55  ;;  %v16078_v48 = vmov %v16077_v7  ;;  %v12808_v12 = vpack.c.bf16 %v2603_v54, %v2599_v39  ;;  %v16084_v55 = vld [vmem:[#allocation69_spill] sm:$0xff]  ;;  %v16085_v7 = vld [vmem:[#allocation67_spill] sm:$0xff]  ;;  %v9356_v41 = vld [vmem:[#allocation7 + $0x124] ss:$16 sps:$4 sm:$0xff]  }
 0x2f2   : > { %v2552_v44 = vsel %vm595_vm1, %v16079_v34, %v16078_v48  ;;  %v2612_v50 = vmul.f32 %v2548_v58, %v16081_v19  ;;  %v16083_v9 = vrot.slane %v15887_v27, 1  ;;  %3926 = vmatmul.mubr.bf16.gmra.mxu0 %v16084_v55  ;;  %4039 = vmatmul.mubr.bf16.gmra.mxu1 %v16085_v7  ;;  %v16087_v39 = vrot.slane %v15889_v62, 1  ;;  %v16089_v27 = vld [vmem:[#allocation139_spill] sm:$0xff] }
 0x2f3   : > { %v2608_v61 = vmul.f32 %v2552_v44, %v16080_v40  ;;  %v12821_v48 = vpack.c.bf16 %v2605_v47, %v2601_v8  ;;  %v2502_v44 = vrot.slane %v11936_v17, 1  ;;  %v16088_v47 = vrot.slane %v11869_v20, 1 }
 0x2f4   : > { %v2550_v33 = vsel %vm595_vm1, %v16083_v9, %v16082_v22  ;;  %v16086_v54 = vmov %v16083_v9  ;;  %v9348_v22 = vld [vmem:[#allocation7 + $0x140] ss:$16 sps:$4 sm:$0xff]   ;;  %v16090_v7 = vrot.slane %v16089_v27, 1 }
 0x2f5   : > { %v2554_v58 = vsel %vm595_vm1, %v16087_v39, %v16086_v54  ;;  %v2614_v34 = vmul.f32 %v2550_v33, %v16081_v19  ;;  %v9351_v9 = vld [vmem:[#allocation7 + $0x340] ss:$16 sps:$4 sm:$0xff]   ;;  %v12831_v55 = vpack.c.bf16 %v2612_v50, %v2608_v61  ;;  %v16094_v50 = vrot.slane %v16066_v3, 1  ;;  %4726 = vmatpush2.bf16.msra.mxu0 %v9348_v22 }
 0x2f6   : > { %v2610_v8 = vmul.f32 %v2554_v58, %v16080_v40  ;;  %v2547_v62 = vsel %vm595_vm1, %v16090_v7, %v16088_v47  ;;  %v16091_v33 = vld [vmem:[#allocation110_spill] sm:$0xff]  ;;  %v16093_v61 = vmov %v16090_v7  ;;  %v16096_v47 = vrot.slane %v15903_v42, 1  ;;  %4839 = vmatpush2.bf16.msra.mxu1 %v9351_v9  ;;  %4727 = vmatprep.subr.bf16.mxu0 %v9356_v41 }
 0x2f7   : > { %3935 = vmatprep.mubr.bf16.mxu0 %v16091_v33  ;;  %v16092_v39 = vld [vmem:[#allocation70_spill] sm:$0xff]  ;;  %v2551_v58 = vsel %vm595_vm1, %v16094_v50, %v16093_v61  ;;  %v2611_v2 = vmul.f32 %v2547_v62, %v16081_v19  ;;  %v2505_v33 = vrot.slane %v11982_v31, 1  ;;  %v16098_v61 = vrot.slane %v15905_v53, 1  ;;  %4840 = vmatprep.subr.bf16.mxu1 %v9359_v35 }
 0x2f8   : > { %4048 = vmatprep.mubr.bf16.mxu1 %v16092_v39  ;;  %v2549_v7 = vsel %vm595_vm1, %v16096_v47, %v16095_v60  ;;  %v12857_v39 = vpack.c.bf16 %v2614_v34, %v2610_v8  ;;  %v2607_v3 = vmul.f32 %v2551_v58, %v16080_v40  ;;  %v16097_v27 = vmov %v16096_v47  ;;  %v16103_v8 = vld [vmem:[#allocation104_spill] sm:$0xff] }
 0x2f9   : > { %v2553_v62 = vsel %vm595_vm1, %v16098_v61, %v16097_v27  ;;  %v2613_v54 = vmul.f32 %v2549_v7, %v16081_v19  ;;  %v16099_v60 = vrot.slane %v11939_v15, 1  ;;  %v16101_v34 = vmov %v16100_v29  ;;  %v9357_v19 = vld [vmem:[#allocation7 + $0x320] ss:$16 sps:$4 sm:$0xff]   ;;  %v16104_v7 = vld [vmem:[#allocation53_spill] sm:$0xff] }
 0x2fa   : > { %v2609_v50 = vmul.f32 %v2553_v62, %v16080_v40  ;;  %v16102_v42 = vrot.slane %v11861_v30, 1  ;;  %v2504_v58 = vrot.slane %v16103_v8, 1  ;;  %v9354_v40 = vld [vmem:[#allocation7 + $0x120] ss:$16 sps:$4 sm:$0xff]   ;;  %v12881_v47 = vpack.c.bf16 %v2611_v2, %v2607_v3  ;;  %4841 = vmatpush2.bf16.msra.mxu1 %v9357_v19  ;;  %v9371_v19 = vld [vmem:[#allocation7 + $0x2ec] ss:$16 sps:$4 sm:$0xff]  }
 0x2fb   : > { %v2540_v24 = vsel %vm595_vm1, %v16100_v29, %v16099_v60  ;;  %v16105_v61 = vld [vmem:[#allocation54_spill] sm:$0xff]  ;;  %v16106_v60 = vld [vmem:[#allocation61_spill] sm:$0xff]  ;;  %v16107_v30 = vrot.slane %v15835_v1, 1  ;;  %v16109_v9 = vrot.slane %v11864_v18, 1  ;;  %4728 = vmatpush2.bf16.msra.mxu0 %v9354_v40  ;;  %v2510_v18 = vrot.slane %v11988_v11, 1 }
 0x2fc   : > { %v2544_v53 = vsel %vm595_vm1, %v16102_v42, %v16101_v34  ;;  %v2620_v62 = vmul.f32 %v2540_v24, %v16105_v61  ;;  %v2506_v29 = vrot.slane %v16106_v60, 1  ;;  %v12886_v32 = vpack.c.bf16 %v2613_v54, %v2609_v50  ;;  %v9362_v24 = vld [vmem:[#allocation7 + $0x104] ss:$16 sps:$4 sm:$0xff]   ;;  %v9368_v40 = vld [vmem:[#allocation7 + $0xec] ss:$16 sps:$4 sm:$0xff]  }
 0x2fd   : > { %v2616_v27 = vmul.f32 %v2544_v53, %v16104_v7  ;;  %v2542_v22 = vsel %vm595_vm1, %v16107_v30, %v2498_v14  ;;  %v16108_v2 = vmov %v16107_v30  ;;  %v9365_v34 = vld [vmem:[#allocation7 + $0x304] ss:$16 sps:$4 sm:$0xff]   ;;  %v16110_v50 = vrot.slane %v11973_v13, 1  ;;  %v16113_v30 = vld [vmem:[#allocation75_spill] sm:$0xff]  ;;  %4729 = vmatprep.subr.bf16.mxu0 %v9362_v24 }
 0x2fe   : > { %v2546_v3 = vsel %vm595_vm1, %v16109_v9, %v16108_v2  ;;  %v2622_v35 = vmul.f32 %v2542_v22, %v16105_v61  ;;  %v16111_v42 = vrot.slane %v11875_v36, 1  ;;  %v16112_v53 = vld [vmem:[#allocation114_spill] sm:$0xff]  ;;  %4049 = vmatmul.mubr.bf16.gmra.mxu1 %v16113_v30  ;;  %v16116_v9 = vrot.slane %v11976_v52, 1  ;;  %4842 = vmatprep.subr.bf16.mxu1 %v9365_v34  ;;  %v9369_v34 = vld [vmem:[#allocation7 + $0x2e8] ss:$16 sps:$4 sm:$0xff]  }
 0x2ff   : > { %v12900_v41 = vpack.c.bf16 %v2620_v62, %v2616_v27  ;;  %v2618_v54 = vmul.f32 %v2546_v3, %v16104_v7  ;;  %3936 = vmatmul.mubr.bf16.gmra.mxu0 %v16112_v53  ;;  %v16115_v62 = vrot.slane %v11869_v20, 1  ;;  %v16117_v3 = vrot.slane %v11878_v43, 1  ;;  %v9360_v53 = vld [vmem:[#allocation7 + $0x100] ss:$16 sps:$4 sm:$0xff]  }
 0x300   : > { %v2539_v1 = vsel %vm595_vm1, %v16111_v42, %v16110_v50  ;;  %v16114_v27 = vmov %v16111_v42  ;;  %v2508_v42 = vrot.slane %v11985_v25, 1  ;;  %v9363_v36 = vld [vmem:[#allocation7 + $0x300] ss:$16 sps:$4 sm:$0xff]   ;;  %v16121_v25 = vld [vmem:[#allocation73_spill] sm:$0xff]  ;;  %v2512_v43 = vrot.slane %v12072_v49, 1  ;;  %4730 = vmatpush2.bf16.msra.mxu0 %v9360_v53  ;;  %v16152_v49 = vld [vmem:[#allocation59_spill] sm:$0xff] }
 0x301   : > { %v2543_v22 = vsel %vm595_vm1, %v16115_v62, %v16114_v27  ;;  %v2619_v2 = vmul.f32 %v2539_v1, %v16105_v61  ;;  %v2541_v50 = vsel %vm595_vm1, %v16117_v3, %v16116_v9  ;;  %v12927_v30 = vpack.c.bf16 %v2622_v35, %v2618_v54  ;;  %v16120_v9 = vld [vmem:[#allocation71_spill] sm:$0xff]  ;;  %4844 = vmatprep.mubr.bf16.mxu1 %v16121_v25 }
 0x302   : > { %v2615_v20 = vmul.f32 %v2543_v22, %v16104_v7  ;;  %v16118_v27 = vmov %v16117_v3  ;;  %v16119_v1 = vrot.slane %v11872_v38, 1  ;;  %4731 = vmatprep.mubr.bf16.mxu0 %v16120_v9  ;;  %v2621_v35 = vmul.f32 %v2541_v50, %v16105_v61  ;;  %v16123_v61 = vld [vmem:[#allocation56_spill] sm:$0xff]  ;;  %4843 = vmatpush2.bf16.msra.mxu1 %v9363_v36 }
 0x303   : > { %v2532_v38 = vsel %vm595_vm1, %v2500_v26, %v2504_v58  ;;  %v16122_v3 = vrot.slane %v11939_v15, 1  ;;  %v2534_v24 = vsel %vm595_vm1, %v2502_v44, %v2506_v29  ;;  %v2538_v4 = vsel %vm595_vm1, %v2498_v14, %v2502_v44  ;;  %4925 = vmatprep.subr.bf16.mxu0 %v9368_v40  ;;  %5038 = vmatprep.subr.bf16.mxu1 %v9371_v19 }
 0x304   : > { %v2545_v62 = vsel %vm595_vm1, %v16119_v1, %v16118_v27  ;;  %v12948_v22 = vpack.c.bf16 %v2619_v2, %v2615_v20  ;;  %v2628_v50 = vmul.f32 %v2532_v38, %v16123_v61  ;;  %v16124_v1 = vld [vmem:[#allocation55_spill] sm:$0xff]  ;;  %v2511_v15 = vrot.slane %v12080_v23, 1 }
 0x305   : > { %v2617_v54 = vmul.f32 %v2545_v62, %v16104_v7  ;;  %v2536_v7 = vsel %vm595_vm1, %v16122_v3, %v2500_v26  ;;  %v9366_v26 = vld [vmem:[#allocation7 + $0xe8] ss:$16 sps:$4 sm:$0xff]   ;;  %v2626_v2 = vmul.f32 %v2538_v4, %v16124_v1  ;;  %v2630_v20 = vmul.f32 %v2534_v24, %v16123_v61  ;;  %v9374_v3 = vld [vmem:[#allocation7 + $0xcc] ss:$16 sps:$4 sm:$0xff]  }
 0x306   : > { %v2624_v62 = vmul.f32 %v2536_v7, %v16124_v1  ;;  %v16128_v53 = vrot.slane %v11973_v13, 1  ;;  %v9377_v7 = vld [vmem:[#allocation7 + $0x2cc] ss:$16 sps:$4 sm:$0xff]   ;;  %v16129_v40 = vrot.slane %v11962_v6, 1  ;;  %v16131_v19 = vrot.slane %v11976_v52, 1 }
 0x307   : > { %v12957_v27 = vpack.c.bf16 %v2621_v35, %v2617_v54  ;;  %v16125_v54 = vrot.slane %v11979_v57, 1  ;;  %v16126_v35 = vrot.slane %v11959_v0, 1  ;;  %v12991_v24 = vpack.c.bf16 %v2630_v20, %v2626_v2  ;;  %v16132_v2 = vld [vmem:[#allocation77_spill] sm:$0xff]  ;;  %v16133_v20 = vld [vmem:[#allocation78_spill] sm:$0xff] }
 0x308   : > { %v12982_v14 = vpack.c.bf16 %v2628_v50, %v2624_v62  ;;  %v2533_v0 = vsel %vm595_vm1, %v16129_v40, %v2505_v33  ;;  %v16130_v13 = vmov %v16129_v40  ;;  %v2509_v62 = vrot.slane %v12004_v51, 1  ;;  %4732 = vmatmul.mubr.bf16.vlgmr.msra.gmra.mxu0 %v16132_v2  ;;  %4845 = vmatmul.mubr.bf16.vlgmr.msra.gmra.mxu1 %v16133_v20  ;;  %v16136_v40 = vld [vmem:[#allocation76_spill] sm:$0xff] }
 0x309   : > { %v2531_v17 = vsel %vm595_vm1, %v16126_v35, %v16125_v54  ;;  %v16127_v44 = vmov %v16126_v35  ;;  %v2537_v50 = vsel %vm595_vm1, %v16131_v19, %v16130_v13  ;;  %v2629_v35 = vmul.f32 %v2533_v0, %v16123_v61  ;;  %4926 = vmatpush1.bf16.msra.mxu0 %v9366_v26  ;;  %5039 = vmatpush1.bf16.msra.mxu1 %v9369_v34  ;;  %v16137_v0 = vld [vmem:[#allocation117_spill] sm:$0xff] }
 0x30a   : > { %v2535_v36 = vsel %vm595_vm1, %v16128_v53, %v16127_v44  ;;  %v2627_v38 = vmul.f32 %v2531_v17, %v16123_v61  ;;  %v2625_v54 = vmul.f32 %v2537_v50, %v16124_v1  ;;  %v2524_v6 = vsel %vm595_vm1, %v2508_v42, %v2512_v43  ;;  %v9372_v17 = vld [vmem:[#allocation7 + $0xc8] ss:$16 sps:$4 sm:$0xff]   ;;  %v16135_v53 = vld [vmem:[#allocation58_spill] sm:$0xff]  ;;  %4741 = vmatprep.mubr.bf16.mxu0 %v16136_v40  ;;  %v9380_v13 = vld [vmem:[#allocation7 + $0xac] ss:$16 sps:$4 sm:$0xff]  }
 0x30b   : > { %v2623_v4 = vmul.f32 %v2535_v36, %v16124_v1  ;;  %v2513_v52 = vrot.slane %v12083_v56, 1  ;;  %v9375_v44 = vld [vmem:[#allocation7 + $0x2c8] ss:$16 sps:$4 sm:$0xff]   ;;  %v2528_v1 = vsel %vm595_vm1, %v2504_v58, %v2508_v42  ;;  %v2636_v61 = vmul.f32 %v2524_v6, %v16135_v53  ;;  %4854 = vmatprep.mubr.bf16.mxu1 %v16137_v0  ;;  %v9383_v26 = vld [vmem:[#allocation7 + $0x2ac] ss:$16 sps:$4 sm:$0xff]   ;;  %4927 = vmatprep.subr.bf16.mxu0 %v9374_v3 }
 0x30c   : > { %v2516_v36 = vrot.slane %v12062_v16, 1  ;;  %v13026_v34 = vpack.c.bf16 %v2629_v35, %v2625_v54  ;;  %v16139_v19 = vld [vmem:[#allocation57_spill] sm:$0xff]  ;;  %v2526_v8 = vsel %vm595_vm1, %v2510_v18, %v2514_v59  ;;  %v2518_v58 = vrot.slane %v12065_v5, 1  ;;  %5040 = vmatprep.subr.bf16.mxu1 %v9377_v7 }
 0x30d   : > { %v13016_v51 = vpack.c.bf16 %v2627_v38, %v2623_v4  ;;  %v2632_v38 = vmul.f32 %v2528_v1, %v16139_v19  ;;  %v2530_v16 = vsel %vm595_vm1, %v2506_v29, %v2510_v18  ;;  %v2638_v42 = vmul.f32 %v2526_v8, %v16135_v53  ;;  %4928 = vmatpush1.bf16.msra.mxu0 %v9372_v17  ;;  %v9378_v7 = vld [vmem:[#allocation7 + $0xa8] ss:$16 sps:$4 sm:$0xff]   ;;  %v16144_v1 = vld [vmem:[#allocation108_spill] sm:$0xff]  ;;  %v9389_v8 = vld [vmem:[#allocation7 + $0x28c] ss:$16 sps:$4 sm:$0xff]  }
 0x30e   : > { %16138 = vst [vmem:[#allocation87_spill] sm:$0xff] %v13026_v34  ;;  %v16140_v4 = vrot.slane %v12001_v10, 1  ;;  %v2634_v5 = vmul.f32 %v2530_v16, %v16139_v19  ;;  %v16143_v60 = vrot.slane %v11979_v57, 1  ;;  %v2515_v3 = vrot.slane %v12056_v45, 1  ;;  %5041 = vmatpush1.bf16.msra.mxu1 %v9375_v44  ;;  %v9381_v35 = vld [vmem:[#allocation7 + $0x2a8] ss:$16 sps:$4 sm:$0xff]   ;;  %4929 = vmatprep.subr.bf16.mxu0 %v9380_v13 }
 0x30f   : > { %16134 = vst [vmem:[#allocation127_spill] sm:$0xff] %v13016_v51  ;;  %v13049_v54 = vpack.c.bf16 %v2636_v61, %v2632_v38  ;;  %v2525_v10 = vsel %vm595_vm1, %v2509_v62, %v2513_v52  ;;  %v2529_v57 = vsel %vm595_vm1, %v2505_v33, %v2509_v62  ;;  %v2517_v61 = vrot.slane %v16144_v1, 1  ;;  %5042 = vmatprep.subr.bf16.mxu1 %v9383_v26  ;;  %v9386_v38 = vld [vmem:[#allocation7 + $0x8c] ss:$16 sps:$4 sm:$0xff]   ;;  %v16147_v33 = vld [vmem:[#allocation112_spill] sm:$0xff]  ;;  %v16159_v1 = vld [vmem:[#allocation146_spill] sm:$0xff] }
 0x310   : > { %v2523_v50 = vsel %vm595_vm1, %v16140_v4, %v2511_v15  ;;  %v16142_v11 = vmov %v16140_v4  ;;  %v13070_v45 = vpack.c.bf16 %v2638_v42, %v2634_v5  ;;  %v2633_v17 = vmul.f32 %v2529_v57, %v16139_v19  ;;  %v9384_v5 = vld [vmem:[#allocation7 + $0x88] ss:$16 sps:$4 sm:$0xff]   ;;  %v9461_v34 = vld [vmem:[#allocation7 + $0x30c] ss:$16 sps:$4 sm:$0xff]  }
 0x311   : > { %16141 = vst [vmem:[#allocation99_spill] sm:$0xff] %v13049_v54  ;;  %v2527_v29 = vsel %vm595_vm1, %v16143_v60, %v16142_v11  ;;  %v2635_v18 = vmul.f32 %v2523_v50, %v16135_v53  ;;  %v2637_v44 = vmul.f32 %v2525_v10, %v16135_v53  ;;  %v2520_v31 = vsel %vm595_vm1, %v2512_v43, %v2516_v36  ;;  %v16149_v53 = vld [vmem:[#allocation119_spill] sm:$0xff]  ;;  %v16153_v50 = vld [vmem:[#allocation60_spill] sm:$0xff] }
 0x312   : > { %v2631_v6 = vmul.f32 %v2527_v29, %v16139_v19  ;;  %16145 = vst [vmem:[#allocation98_spill] sm:$0xff] %v13070_v45  ;;  %v16148_v62 = vrot.slane %v16147_v33, 1  ;;  %v2522_v26 = vsel %vm595_vm1, %v2514_v59, %v2518_v58  ;;  %4742 = vmatmul.mubr.bf16.gmra.mxu0 %v16149_v53  ;;  %v16150_v19 = vld [vmem:[#allocation79_spill] sm:$0xff]  ;;  %v2640_v4 = vmul.f32 %v2520_v31, %v16152_v49 }
 0x313   : > { %4855 = vmatmul.mubr.bf16.gmra.mxu1 %v16150_v19  ;;  %v13090_v42 = vpack.c.bf16 %v2637_v44, %v2633_v17  ;;  %4930 = vmatpush1.bf16.msra.mxu0 %v9378_v7  ;;  %v9387_v11 = vld [vmem:[#allocation7 + $0x288] ss:$16 sps:$4 sm:$0xff]   ;;  %v2642_v59 = vmul.f32 %v2522_v26, %v16152_v49  ;;  %v2519_v29 = vsel %vm595_vm1, %v2511_v15, %v2515_v3  ;;  %v9392_v7 = vld [vmem:[#allocation7 + $0x6c] ss:$16 sps:$4 sm:$0xff]   ;;  %v16160_v17 = vrot.slane %v16159_v1, 1 }
 0x314   : > { %v13074_v16 = vpack.c.bf16 %v2635_v18, %v2631_v6  ;;  %v2580_v13 = vsel %vm595_vm1, %v2516_v36, %v16148_v62  ;;  %5043 = vmatpush1.bf16.msra.mxu1 %v9381_v35  ;;  %v16154_v36 = vld [vmem:[#allocation116_spill] sm:$0xff]  ;;  %v9395_v35 = vld [vmem:[#allocation7 + $0x26c] ss:$16 sps:$4 sm:$0xff]   ;;  %4931 = vmatprep.subr.bf16.mxu0 %v9386_v38  ;;  %v2639_v23 = vmul.f32 %v2519_v29, %v16152_v49  ;;  %v9390_v38 = vld [vmem:[#allocation7 + $0x68] ss:$16 sps:$4 sm:$0xff]  }
 0x315   : > { %16151 = vst [vmem:[#allocation37_spill] sm:$0xff] %v13090_v42  ;;  %v2644_v43 = vmul.f32 %v2580_v13, %v16153_v50  ;;  %v16155_v60 = vrot.slane %v16154_v36, 1  ;;  %v16156_v18 = vld [vmem:[#allocation120_spill] sm:$0xff]  ;;  %5044 = vmatprep.subr.bf16.mxu1 %v9389_v8  ;;  %v2521_v44 = vsel %vm595_vm1, %v2513_v52, %v2517_v61  ;;  %v16162_v33 = vld [vmem:[#allocation147_spill] sm:$0xff]  ;;  %v16166_v36 = vld [vmem:[#allocation121_spill] sm:$0xff] }
 0x316   : > { %16146 = vst [vmem:[#allocation38_spill] sm:$0xff] %v13074_v16  ;;  %4751 = vmatprep.mubr.bf16.mxu0 %v16156_v18  ;;  %v16157_v6 = vld [vmem:[#allocation80_spill] sm:$0xff]  ;;  %v16163_v62 = vrot.slane %v16162_v33, 1  ;;  %v9393_v8 = vld [vmem:[#allocation7 + $0x268] ss:$16 sps:$4 sm:$0xff]  }
 0x317   : > { %v2582_v37 = vsel %vm595_vm1, %v2518_v58, %v16155_v60  ;;  %4864 = vmatprep.mubr.bf16.mxu1 %v16157_v6  ;;  %v13105_v10 = vpack.c.bf16 %v2644_v43, %v2640_v4  ;;  %v2579_v58 = vsel %vm595_vm1, %v2515_v3, %v16160_v17  ;;  %v2641_v3 = vmul.f32 %v2521_v44, %v16152_v49  ;;  %v9398_v52 = vld [vmem:[#allocation7 + $0x4c] ss:$16 sps:$4 sm:$0xff]   ;;  %v9399_v49 = vld [vmem:[#allocation7 + $0x248] ss:$16 sps:$4 sm:$0xff]  }
 0x318   : > { %v2646_v57 = vmul.f32 %v2582_v37, %v16153_v50  ;;  %v2643_v15 = vmul.f32 %v2579_v58, %v16153_v50  ;;  %v2581_v13 = vsel %vm595_vm1, %v2517_v61, %v16163_v62  ;;  %4932 = vmatpush1.bf16.msra.mxu0 %v9384_v5  ;;  %5045 = vmatpush1.bf16.msra.mxu1 %v9387_v11  ;;  %v9401_v4 = vld [vmem:[#allocation7 + $0x24c] ss:$16 sps:$4 sm:$0xff]   ;;  %v9396_v61 = vld [vmem:[#allocation7 + $0x48] ss:$16 sps:$4 sm:$0xff]   ;;  %v16168_v5 = vld [vmem:[#allocation122_spill] sm:$0xff] }
 0x319   : > { %16158 = vst [vmem:[#allocation128_spill] sm:$0xff] %v13105_v10  ;;  %v2645_v56 = vmul.f32 %v2581_v13, %v16153_v50  ;;  %4933 = vmatprep.subr.bf16.mxu0 %v9392_v7  ;;  %5046 = vmatprep.subr.bf16.mxu1 %v9395_v35  ;;  %v16167_v60 = vld [vmem:[#allocation81_spill] sm:$0xff]  ;;  %v16169_v11 = vld [vmem:[#allocation82_spill] sm:$0xff]  ;;  %v16171_v1 = vld [vmem:[#allocation83_spill] sm:$0xff] }
 0x31a   : > { %v13118_v31 = vpack.c.bf16 %v2646_v57, %v2642_v59  ;;  %v13125_v26 = vpack.c.bf16 %v2643_v15, %v2639_v23  ;;  %4752 = vmatmul.mubr.bf16.gmra.mxu0 %v16166_v36  ;;  %v9404_v37 = vld [vmem:[#allocation7 + $0x2c] ss:$16 sps:$4 sm:$0xff]   ;;  %v9402_v59 = vld [vmem:[#allocation7 + $0x28] ss:$16 sps:$4 sm:$0xff]   ;;  %v16172_v23 = vld [vmem:[#allocation126_spill] sm:$0xff] }
 0x31b   : > { %v13128_v43 = vpack.c.bf16 %v2645_v56, %v2641_v3  ;;  %4865 = vmatmul.mubr.bf16.gmra.mxu1 %v16167_v60  ;;  %4761 = vmatprep.mubr.bf16.mxu0 %v16168_v5  ;;  %v9407_v50 = vld [vmem:[#allocation7 + $0x22c] ss:$16 sps:$4 sm:$0xff]   ;;  %v9405_v29 = vld [vmem:[#allocation7 + $0x228] ss:$16 sps:$4 sm:$0xff]   ;;  %v16173_v15 = vld [vmem:[#allocation30_spill] sm:$0xff] }
 0x31c   : > { %16161 = vst [vmem:[#allocation89_spill] sm:$0xff] %v13118_v31  ;;  %16164 = vst [vmem:[#allocation133_spill] sm:$0xff] %v13125_v26  ;;  %4934 = vmatpush1.bf16.msra.mxu0 %v9390_v38  ;;  %5047 = vmatpush1.bf16.msra.mxu1 %v9393_v8  ;;  %v9410_v7 = vld [vmem:[#allocation7 + $0xc] ss:$16 sps:$4 sm:$0xff]   ;;  %v9408_v17 = vld [vmem:[#allocation7 + $0x8] ss:$16 sps:$4 sm:$0xff]  }
 0x31d   : > { %16165 = vst [vmem:[#allocation134_spill] sm:$0xff] %v13128_v43  ;;  %4874 = vmatprep.mubr.bf16.mxu1 %v16169_v11  ;;  %4935 = vmatprep.subr.bf16.mxu0 %v9398_v52  ;;  %v9413_v35 = vld [vmem:[#allocation7 + $0x20c] ss:$16 sps:$4 sm:$0xff]   ;;  %v9411_v58 = vld [vmem:[#allocation7 + $0x208] ss:$16 sps:$4 sm:$0xff]   ;;  %v16174_v8 = vld [vmem:[#allocation88_spill] sm:$0xff] }
 0x31e   : > { %5048 = vmatprep.subr.bf16.mxu1 %v9401_v4  ;;  %v16170_v57 = vld [vmem:[#allocation123_spill] sm:$0xff]  ;;  %v16175_v56 = vld [vmem:[#allocation129_spill] sm:$0xff]  ;;  %v16180_v43 = vld [vmem:[#allocation32_spill] sm:$0xff] }
 0x31f   : > { %v9416_v44 = vld [vmem:[#allocation7 + $0x1ec] ss:$16 sps:$4 sm:$0xff]   ;;  %v9414_v62 = vld [vmem:[#allocation7 + $0x1e8] ss:$16 sps:$4 sm:$0xff]  }
 0x320   : > { %4936 = vmatpush1.bf16.msra.mxu0 %v9396_v61  ;;  %5049 = vmatpush1.bf16.msra.mxu1 %v9399_v49  ;;  %v9419_v33 = vld [vmem:[#allocation7 + $0x3ec] ss:$16 sps:$4 sm:$0xff]   ;;  %v9417_v13 = vld [vmem:[#allocation7 + $0x3e8] ss:$16 sps:$4 sm:$0xff]  }
 0x321   : > { %4937 = vmatprep.subr.bf16.mxu0 %v9404_v37  ;;  %5050 = vmatprep.subr.bf16.mxu1 %v9407_v50  ;;  %v9422_v3 = vld [vmem:[#allocation7 + $0x1cc] ss:$16 sps:$4 sm:$0xff]   ;;  %v9420_v52 = vld [vmem:[#allocation7 + $0x1c8] ss:$16 sps:$4 sm:$0xff]  }
 0x322   : > { %4762 = vmatmul.mubr.bf16.gmra.mxu0 %v16170_v57  ;;  %v9425_v38 = vld [vmem:[#allocation7 + $0x3cc] ss:$16 sps:$4 sm:$0xff]   ;;  %v9423_v4 = vld [vmem:[#allocation7 + $0x3c8] ss:$16 sps:$4 sm:$0xff]  }
 0x323   : > { %4875 = vmatmul.mubr.bf16.gmra.mxu1 %v16171_v1  ;;  %4771 = vmatprep.mubr.bf16.mxu0 %v16172_v23  ;;  %v16176_v61 = vld [vmem:[#allocation29_spill] sm:$0xff]  ;;  %v16177_v49 = vld [vmem:[#allocation31_spill] sm:$0xff] }
 0x324   : > { %4938 = vmatpush1.bf16.msra.mxu0 %v9402_v59  ;;  %5051 = vmatpush1.bf16.msra.mxu1 %v9405_v29  ;;  %v9428_v37 = vld [vmem:[#allocation7 + $0x1ac] ss:$16 sps:$4 sm:$0xff]   ;;  %v3641_v59 = vpop.f32.mrf.mxu0 }
 0x325   : > { %4884 = vmatprep.mubr.bf16.mxu1 %v16173_v15  ;;  %4939 = vmatprep.subr.bf16.mxu0 %v9410_v7  ;;  %v9431_v50 = vld [vmem:[#allocation7 + $0x3ac] ss:$16 sps:$4 sm:$0xff]   ;;  %v9426_v7 = vld [vmem:[#allocation7 + $0x1a8] ss:$16 sps:$4 sm:$0xff]  }
 0x326   : > { %5052 = vmatprep.subr.bf16.mxu1 %v9413_v35  ;;  %v3643_v29 = vpop.f32.mrf.mxu0  ;;  %v9429_v35 = vld [vmem:[#allocation7 + $0x3a8] ss:$16 sps:$4 sm:$0xff]   ;;  %v9458_v54 = vld [vmem:[#allocation7 + $0x10c] ss:$16 sps:$4 sm:$0xff]  }
 0x327   : > { %v16187_v42 = vld [vmem:[#allocation33_spill] sm:$0xff] }
 0x328   : > { %4940 = vmatpush1.bf16.msra.mxu0 %v9408_v17  ;;  %5053 = vmatpush1.bf16.msra.mxu1 %v9411_v58  ;;  %v3754_v17 = vpop.f32.mrf.mxu1 }
 0x329   : > { %4941 = vmatprep.subr.bf16.mxu0 %v9416_v44  ;;  %5054 = vmatprep.subr.bf16.mxu1 %v9419_v33  ;;  %v13142_v58 = vadd.f32 %v3754_v17, %v3641_v59  ;;  %v3645_v44 = vpop.f32.mrf.mxu0  ;;  %v9434_v33 = vld [vmem:[#allocation7 + $0x18c] ss:$16 sps:$4 sm:$0xff]  }
 0x32a   : > { %4772 = vmatmul.mubr.bf16.gmra.mxu0 %v16174_v8  ;;  %v9440_v59 = vld [vmem:[#allocation7 + $0x16c] ss:$16 sps:$4 sm:$0xff]  }
 0x32b   : > { %4885 = vmatmul.mubr.bf16.gmra.mxu1 %v16175_v56  ;;  %4781 = vmatprep.mubr.bf16.mxu0 %v16176_v61  ;;  %16178 = vst [vmem:[#allocation40_spill] sm:$0xff] %v13142_v58  ;;  %v3647_v26 = vpop.f32.mrf.mxu0  ;;  %v9443_v17 = vld [vmem:[#allocation7 + $0x36c] ss:$16 sps:$4 sm:$0xff]  }
 0x32c   : > { %4942 = vmatpush2.bf16.msra.mxu0 %v9414_v62  ;;  %5055 = vmatpush2.bf16.msra.mxu1 %v9417_v13  ;;  %v9437_v62 = vld [vmem:[#allocation7 + $0x38c] ss:$16 sps:$4 sm:$0xff]   ;;  %v3756_v13 = vpop.f32.mrf.mxu1 }
 0x32d   : > { %4894 = vmatprep.mubr.bf16.mxu1 %v16177_v49  ;;  %4943 = vmatprep.subr.bf16.mxu0 %v9422_v3  ;;  %v13146_v3 = vadd.f32 %v3756_v13, %v3643_v29  ;;  %v9438_v29 = vld [vmem:[#allocation7 + $0x168] ss:$16 sps:$4 sm:$0xff]   ;;  %v9449_v13 = vld [vmem:[#allocation7 + $0x34c] ss:$16 sps:$4 sm:$0xff]  }
 0x32e   : > { %5056 = vmatprep.subr.bf16.mxu1 %v9425_v38  ;;  %v9432_v38 = vld [vmem:[#allocation7 + $0x188] ss:$16 sps:$4 sm:$0xff]  }
 0x32f   : > { %16181 = vst [vmem:[#allocation39_spill] sm:$0xff] %v13146_v3  ;;  %v16186_v3 = vld [vmem:[#allocation62_spill] sm:$0xff] }
 0x330   : > { %4944 = vmatpush2.bf16.msra.mxu0 %v9420_v52  ;;  %5057 = vmatpush2.bf16.msra.mxu1 %v9423_v4  ;;  %v9435_v52 = vld [vmem:[#allocation7 + $0x388] ss:$16 sps:$4 sm:$0xff]   ;;  %v3758_v4 = vpop.f32.mrf.mxu1 }
 0x331   : > { %4945 = vmatprep.subr.bf16.mxu0 %v9428_v37  ;;  %5058 = vmatprep.subr.bf16.mxu1 %v9431_v50  ;;  %v16182_v37 = vld [vmem:[#allocation115_spill] sm:$0xff]  ;;  %v16183_v50 = vld [vmem:[#allocation118_spill] sm:$0xff]  ;;  %v13150_v58 = vadd.f32 %v3758_v4, %v3645_v44 }
 0x332   : > { %4782 = vmatmul.mubr.bf16.gmra.mxu0 %v16179_v21  ;;  %v3760_v31 = vpop.f32.mrf.mxu1  ;;  %v9444_v44 = vld [vmem:[#allocation7 + $0x148] ss:$16 sps:$4 sm:$0xff]   ;;  %v16188_v4 = vld [vmem:[#allocation34_spill] sm:$0xff] }
 0x333   : > { %4895 = vmatmul.mubr.bf16.gmra.mxu1 %v16180_v43  ;;  %4791 = vmatprep.mubr.bf16.mxu0 %v16182_v37  ;;  %16184 = vst [vmem:[#allocation135_spill] sm:$0xff] %v13150_v58  ;;  %v13152_v10 = vadd.f32 %v3760_v31, %v3647_v26  ;;  %v16189_v31 = vld [vmem:[#allocation93_spill] sm:$0xff] }
 0x334   : > { %4946 = vmatpush2.bf16.msra.mxu0 %v9426_v7  ;;  %5059 = vmatpush2.bf16.msra.mxu1 %v9429_v35  ;;  %v9441_v7 = vld [vmem:[#allocation7 + $0x368] ss:$16 sps:$4 sm:$0xff]   ;;  %v9446_v35 = vld [vmem:[#allocation7 + $0x14c] ss:$16 sps:$4 sm:$0xff]  }
 0x335   : > { %4904 = vmatprep.mubr.bf16.mxu1 %v16183_v50  ;;  %4947 = vmatprep.subr.bf16.mxu0 %v9434_v33  ;;  %16185 = vst [vmem:[#allocation95_spill] sm:$0xff] %v13152_v10  ;;  %v9447_v33 = vld [vmem:[#allocation7 + $0x348] ss:$16 sps:$4 sm:$0xff]   ;;  %v9452_v26 = vld [vmem:[#allocation7 + $0x12c] ss:$16 sps:$4 sm:$0xff]  }
 0x336   : > { %5060 = vmatprep.subr.bf16.mxu1 %v9437_v62  ;;  %v3651_v62 = vpop.f32.mrf.mxu0 }
 0x338   : > { %4948 = vmatpush2.bf16.msra.mxu0 %v9432_v38  ;;  %5061 = vmatpush2.bf16.msra.mxu1 %v9435_v52  ;;  %v9455_v38 = vld [vmem:[#allocation7 + $0x32c] ss:$16 sps:$4 sm:$0xff]   ;;  %v3764_v52 = vpop.f32.mrf.mxu1 }
 0x339   : > { %4949 = vmatprep.subr.bf16.mxu0 %v9440_v59  ;;  %5062 = vmatprep.subr.bf16.mxu1 %v9443_v17  ;;  %v13158_v59 = vadd.f32 %v3764_v52, %v3651_v62  ;;  %v3653_v17 = vpop.f32.mrf.mxu0  ;;  %v16191_v62 = vld [vmem:[#allocation103_spill] sm:$0xff] }
 0x33a   : > { %4792 = vmatmul.mubr.bf16.gmra.mxu0 %v16186_v3  ;;  %v3766_v10 = vpop.f32.mrf.mxu1 }
 0x33b   : > { %4905 = vmatmul.mubr.bf16.gmra.mxu1 %v16187_v42  ;;  %4801 = vmatprep.mubr.bf16.mxu0 %v16188_v4  ;;  %v13160_v58 = vadd.f32 %v3766_v10, %v3653_v17  ;;  %v3655_v16 = vpop.f32.mrf.mxu0 }
 0x33c   : > { %4950 = vmatpush2.bf16.msra.mxu0 %v9438_v29  ;;  %5063 = vmatpush2.bf16.msra.mxu1 %v9441_v7  ;;  %v9450_v29 = vld [vmem:[#allocation7 + $0x128] ss:$16 sps:$4 sm:$0xff]   ;;  %v3768_v45 = vpop.f32.mrf.mxu1 }
 0x33d   : > { %4914 = vmatprep.mubr.bf16.mxu1 %v16189_v31  ;;  %4951 = vmatprep.subr.bf16.mxu0 %v9446_v35  ;;  %v9453_v7 = vld [vmem:[#allocation7 + $0x328] ss:$16 sps:$4 sm:$0xff]   ;;  %v13162_v51 = vadd.f32 %v3768_v45, %v3655_v16  ;;  %v3657_v35 = vpop.f32.mrf.mxu0  ;;  %v9462_v45 = vld [vmem:[#allocation7 + $0x8e0] ss:$16 sps:$4 sm:$0xff]  }
 0x33e   : > { %5064 = vmatprep.subr.bf16.mxu1 %v9449_v13  ;;  %v16190_v13 = vld [vmem:[#allocation136_spill] sm:$0xff]  ;;  %v3770_v52 = vpop.f32.mrf.mxu1 }
 0x33f   : > { %v13166_v10 = vadd.f32 %v3770_v52, %v3657_v35  ;;  %v9465_v16 = vld [vmem:[#allocation7 + $0xae0] ss:$16 sps:$4 sm:$0xff]   ;;  %v3661_v17 = vpop.f32.mrf.mxu0  ;;  %v9476_v52 = vld [vmem:[#allocation7 + $0x8a4] ss:$16 sps:$4 sm:$0xff]  }
 0x340   : > { %4952 = vmatpush2.bf16.msra.mxu0 %v9444_v44  ;;  %5065 = vmatpush2.bf16.msra.mxu1 %v9447_v33  ;;  %v9456_v44 = vld [vmem:[#allocation7 + $0x108] ss:$16 sps:$4 sm:$0xff]  }
 0x341   : > { %4953 = vmatprep.subr.bf16.mxu0 %v9452_v26  ;;  %5066 = vmatprep.subr.bf16.mxu1 %v9455_v38  ;;  %v9459_v33 = vld [vmem:[#allocation7 + $0x308] ss:$16 sps:$4 sm:$0xff]   ;;  %v9464_v26 = vld [vmem:[#allocation7 + $0x8e4] ss:$16 sps:$4 sm:$0xff]   ;;  %v3663_v35 = vpop.f32.mrf.mxu0 }
 0x342   : > { %4802 = vmatmul.mubr.bf16.gmra.mxu0 %v16190_v13  ;;  %v9467_v38 = vld [vmem:[#allocation7 + $0xae4] ss:$16 sps:$4 sm:$0xff]  }
 0x343   : > { %4915 = vmatmul.mubr.bf16.gmra.mxu1 %v16191_v62  ;;  %4957 = vmatprep.mubr.bf16.mxu0 %v16120_v9  ;;  %v3774_v9 = vpop.f32.mrf.mxu1 }
 0x344   : > { %4954 = vmatpush2.bf16.msra.mxu0 %v9450_v29  ;;  %5067 = vmatpush2.bf16.msra.mxu1 %v9453_v7  ;;  %v9470_v29 = vld [vmem:[#allocation7 + $0x8c4] ss:$16 sps:$4 sm:$0xff]  }
 0x345   : > { %5070 = vmatprep.mubr.bf16.mxu1 %v16121_v25  ;;  %4955 = vmatprep.subr.bf16.mxu0 %v9458_v54  ;;  %v9473_v7 = vld [vmem:[#allocation7 + $0xac4] ss:$16 sps:$4 sm:$0xff]   ;;  %v9468_v25 = vld [vmem:[#allocation7 + $0x8c0] ss:$16 sps:$4 sm:$0xff]  }
 0x346   : > { %5068 = vmatprep.subr.bf16.mxu1 %v9461_v34  ;;  %v9471_v54 = vld [vmem:[#allocation7 + $0xac0] ss:$16 sps:$4 sm:$0xff]   ;;  %v13172_v34 = vadd.f32 %v3774_v9, %v3661_v17  ;;  %v9485_v9 = vld [vmem:[#allocation7 + $0xa84] ss:$16 sps:$4 sm:$0xff]  }
 0x348   : > { %4956 = vmatpush2.bf16.msra.mxu0 %v9456_v44  ;;  %5069 = vmatpush2.bf16.msra.mxu1 %v9459_v33  ;;  %16192 = vst [vmem:[#allocation142_spill] sm:$0xff] %v13172_v34  ;;  %v9479_v44 = vld [vmem:[#allocation7 + $0xaa4] ss:$16 sps:$4 sm:$0xff]   ;;  %v3776_v33 = vpop.f32.mrf.mxu1 }
 0x349   : > { %5951 = vmatprep.subr.bf16.mxu0 %v9464_v26  ;;  %6064 = vmatprep.subr.bf16.mxu1 %v9467_v38  ;;  %v3665_v26 = vpop.f32.mrf.mxu0 }
 0x34b   : > { %4958 = vmatmul.mubr.bf16.vlgmr.msra.gmra.mxu0 %v16132_v2  ;;  %5071 = vmatmul.mubr.bf16.vlgmr.msra.gmra.mxu1 %v16133_v20  ;;  %v13176_v2 = vadd.f32 %v3776_v33, %v3663_v35  ;;  %v3778_v20 = vpop.f32.mrf.mxu1  ;;  %v3667_v38 = vpop.f32.mrf.mxu0  ;;  %v9488_v35 = vld [vmem:[#allocation7 + $0x864] ss:$16 sps:$4 sm:$0xff]  }
 0x34c   : > { %5952 = vmatpush1.bf16.msra.mxu0 %v9462_v45  ;;  %6065 = vmatpush1.bf16.msra.mxu1 %v9465_v16  ;;  %v9474_v45 = vld [vmem:[#allocation7 + $0x8a0] ss:$16 sps:$4 sm:$0xff]   ;;  %v13178_v17 = vadd.f32 %v3778_v20, %v3665_v26 }
 0x34d   : > { %4967 = vmatprep.mubr.bf16.mxu0 %v16136_v40  ;;  %5080 = vmatprep.mubr.bf16.mxu1 %v16137_v0  ;;  %v9477_v16 = vld [vmem:[#allocation7 + $0xaa0] ss:$16 sps:$4 sm:$0xff]   ;;  %v3780_v40 = vpop.f32.mrf.mxu1  ;;  %v9482_v0 = vld [vmem:[#allocation7 + $0x884] ss:$16 sps:$4 sm:$0xff]  }
 0x34e   : > { %5953 = vmatprep.subr.bf16.mxu0 %v9470_v29  ;;  %6066 = vmatprep.subr.bf16.mxu1 %v9473_v7  ;;  %v13180_v34 = vadd.f32 %v3780_v40, %v3667_v38  ;;  %v9480_v29 = vld [vmem:[#allocation7 + $0x880] ss:$16 sps:$4 sm:$0xff]  }
 0x34f   : > { %v9483_v7 = vld [vmem:[#allocation7 + $0xa80] ss:$16 sps:$4 sm:$0xff]  }
 0x350   : > { %5954 = vmatpush1.bf16.msra.mxu0 %v9468_v25  ;;  %6067 = vmatpush1.bf16.msra.mxu1 %v9471_v54  ;;  %v9491_v25 = vld [vmem:[#allocation7 + $0xa64] ss:$16 sps:$4 sm:$0xff]   ;;  %v3671_v54 = vpop.f32.mrf.mxu0  ;;  %v9492_v40 = vld [vmem:[#allocation7 + $0x840] ss:$16 sps:$4 sm:$0xff]  }
 0x351   : > { %5955 = vmatprep.subr.bf16.mxu0 %v9476_v52  ;;  %6068 = vmatprep.subr.bf16.mxu1 %v9479_v44  ;;  %v3784_v52 = vpop.f32.mrf.mxu1 }
 0x352   : > { %v13186_v44 = vadd.f32 %v3784_v52, %v3671_v54  ;;  %v3673_v33 = vpop.f32.mrf.mxu0  ;;  %v9506_v54 = vld [vmem:[#allocation7 + $0x804] ss:$16 sps:$4 sm:$0xff]  }
 0x353   : > { %4968 = vmatmul.mubr.bf16.gmra.mxu0 %v16149_v53  ;;  %5081 = vmatmul.mubr.bf16.gmra.mxu1 %v16150_v19  ;;  %v9486_v53 = vld [vmem:[#allocation7 + $0x860] ss:$16 sps:$4 sm:$0xff]   ;;  %v3786_v26 = vpop.f32.mrf.mxu1  ;;  %v9509_v52 = vld [vmem:[#allocation7 + $0xa04] ss:$16 sps:$4 sm:$0xff]  }
 0x354   : > { %5956 = vmatpush1.bf16.msra.mxu0 %v9474_v45  ;;  %6069 = vmatpush1.bf16.msra.mxu1 %v9477_v16  ;;  %v9489_v19 = vld [vmem:[#allocation7 + $0xa60] ss:$16 sps:$4 sm:$0xff]   ;;  %v13188_v20 = vadd.f32 %v3786_v26, %v3673_v33  ;;  %v3675_v38 = vpop.f32.mrf.mxu0  ;;  %v9512_v33 = vld [vmem:[#allocation7 + $0x9e4] ss:$16 sps:$4 sm:$0xff]  }
 0x355   : > { %4977 = vmatprep.mubr.bf16.mxu0 %v16156_v18  ;;  %5090 = vmatprep.mubr.bf16.mxu1 %v16157_v6  ;;  %v9494_v18 = vld [vmem:[#allocation7 + $0x844] ss:$16 sps:$4 sm:$0xff]   ;;  %v3788_v45 = vpop.f32.mrf.mxu1 }
 0x356   : > { %5957 = vmatprep.subr.bf16.mxu0 %v9482_v0  ;;  %6070 = vmatprep.subr.bf16.mxu1 %v9485_v9  ;;  %v9497_v6 = vld [vmem:[#allocation7 + $0xa44] ss:$16 sps:$4 sm:$0xff]   ;;  %v13192_v16 = vadd.f32 %v3788_v45, %v3675_v38  ;;  %v9495_v0 = vld [vmem:[#allocation7 + $0xa40] ss:$16 sps:$4 sm:$0xff]   ;;  %v3677_v9 = vpop.f32.mrf.mxu0 }
 0x357   : > { %v9515_v26 = vld [vmem:[#allocation7 + $0xbe4] ss:$16 sps:$4 sm:$0xff]   ;;  %v9513_v45 = vld [vmem:[#allocation7 + $0xbe0] ss:$16 sps:$4 sm:$0xff]  }
 0x358   : > { %5958 = vmatpush1.bf16.msra.mxu0 %v9480_v29  ;;  %6071 = vmatpush1.bf16.msra.mxu1 %v9483_v7  ;;  %v3790_v29 = vpop.f32.mrf.mxu1  ;;  %v9500_v7 = vld [vmem:[#allocation7 + $0x824] ss:$16 sps:$4 sm:$0xff]  }
 0x359   : > { %5959 = vmatprep.subr.bf16.mxu0 %v9488_v35  ;;  %6072 = vmatprep.subr.bf16.mxu1 %v9491_v25  ;;  %v9503_v35 = vld [vmem:[#allocation7 + $0xa24] ss:$16 sps:$4 sm:$0xff]   ;;  %v13196_v25 = vadd.f32 %v3790_v29, %v3677_v9 }
 0x35a   : > { %v9521_v9 = vld [vmem:[#allocation7 + $0xbc4] ss:$16 sps:$4 sm:$0xff]  }
 0x35b   : > { %4978 = vmatmul.mubr.bf16.gmra.mxu0 %v16166_v36  ;;  %5091 = vmatmul.mubr.bf16.gmra.mxu1 %v16167_v60  ;;  %v9498_v36 = vld [vmem:[#allocation7 + $0x820] ss:$16 sps:$4 sm:$0xff]  }
 0x35c   : > { %5960 = vmatpush1.bf16.msra.mxu0 %v9486_v53  ;;  %6073 = vmatpush1.bf16.msra.mxu1 %v9489_v19  ;;  %v9501_v60 = vld [vmem:[#allocation7 + $0xa20] ss:$16 sps:$4 sm:$0xff]   ;;  %v3681_v53 = vpop.f32.mrf.mxu0  ;;  %v3794_v19 = vpop.f32.mrf.mxu1 }
 0x35d   : > { %4987 = vmatprep.mubr.bf16.mxu0 %v16168_v5  ;;  %5100 = vmatprep.mubr.bf16.mxu1 %v16169_v11  ;;  %v9504_v5 = vld [vmem:[#allocation7 + $0x800] ss:$16 sps:$4 sm:$0xff]  }
 0x35e   : > { %5961 = vmatprep.subr.bf16.mxu0 %v9494_v18  ;;  %6074 = vmatprep.subr.bf16.mxu1 %v9497_v6  ;;  %v9507_v11 = vld [vmem:[#allocation7 + $0xa00] ss:$16 sps:$4 sm:$0xff]   ;;  %v13202_v18 = vadd.f32 %v3794_v19, %v3681_v53  ;;  %v3683_v6 = vpop.f32.mrf.mxu0 }
 0x360   : > { %5962 = vmatpush1.bf16.msra.mxu0 %v9492_v40  ;;  %6075 = vmatpush1.bf16.msra.mxu1 %v9495_v0  ;;  %v3685_v40 = vpop.f32.mrf.mxu0 }
 0x361   : > { %5963 = vmatprep.subr.bf16.mxu0 %v9500_v7  ;;  %6076 = vmatprep.subr.bf16.mxu1 %v9503_v35 }
 0x362   : > { %v3687_v29 = vpop.f32.mrf.mxu0 }
 0x363   : > { %4988 = vmatmul.mubr.bf16.gmra.mxu0 %v16170_v57  ;;  %5101 = vmatmul.mubr.bf16.gmra.mxu1 %v16171_v1  ;;  %v3796_v57 = vpop.f32.mrf.mxu1  ;;  %v9510_v1 = vld [vmem:[#allocation7 + $0x9e0] ss:$16 sps:$4 sm:$0xff]  }
 0x364   : > { %5964 = vmatpush1.bf16.msra.mxu0 %v9498_v36  ;;  %6077 = vmatpush1.bf16.msra.mxu1 %v9501_v60  ;;  %v13204_v38 = vadd.f32 %v3796_v57, %v3683_v6  ;;  %v9516_v36 = vld [vmem:[#allocation7 + $0x9c0] ss:$16 sps:$4 sm:$0xff]   ;;  %v3691_v53 = vpop.f32.mrf.mxu0  ;;  %v9536_v57 = vld [vmem:[#allocation7 + $0x964] ss:$16 sps:$4 sm:$0xff]  }
 0x365   : > { %4997 = vmatprep.mubr.bf16.mxu0 %v16172_v23  ;;  %5110 = vmatprep.mubr.bf16.mxu1 %v16173_v15  ;;  %v3798_v0 = vpop.f32.mrf.mxu1  ;;  %v9518_v15 = vld [vmem:[#allocation7 + $0x9c4] ss:$16 sps:$4 sm:$0xff]   ;;  %v9519_v60 = vld [vmem:[#allocation7 + $0xbc0] ss:$16 sps:$4 sm:$0xff]  }
 0x366   : > { %5965 = vmatprep.subr.bf16.mxu0 %v9506_v54  ;;  %6078 = vmatprep.subr.bf16.mxu1 %v9509_v52  ;;  %v13206_v23 = vadd.f32 %v3798_v0, %v3685_v40  ;;  %v9524_v54 = vld [vmem:[#allocation7 + $0x9a4] ss:$16 sps:$4 sm:$0xff]   ;;  %v9534_v0 = vld [vmem:[#allocation7 + $0x960] ss:$16 sps:$4 sm:$0xff]  }
 0x367   : > { %v3800_v7 = vpop.f32.mrf.mxu1  ;;  %v9527_v52 = vld [vmem:[#allocation7 + $0xba4] ss:$16 sps:$4 sm:$0xff]  }
 0x368   : > { %5966 = vmatpush1.bf16.msra.mxu0 %v9504_v5  ;;  %6079 = vmatpush1.bf16.msra.mxu1 %v9507_v11  ;;  %v13210_v35 = vadd.f32 %v3800_v7, %v3687_v29  ;;  %v9522_v5 = vld [vmem:[#allocation7 + $0x9a0] ss:$16 sps:$4 sm:$0xff]   ;;  %v9533_v11 = vld [vmem:[#allocation7 + $0xb84] ss:$16 sps:$4 sm:$0xff]  }
 0x369   : > { %5967 = vmatprep.subr.bf16.mxu0 %v9512_v33  ;;  %6080 = vmatprep.subr.bf16.mxu1 %v9515_v26  ;;  %v3804_v19 = vpop.f32.mrf.mxu1  ;;  %v9531_v33 = vld [vmem:[#allocation7 + $0xb80] ss:$16 sps:$4 sm:$0xff]   ;;  %v3693_v26 = vpop.f32.mrf.mxu0  ;;  %v9542_v29 = vld [vmem:[#allocation7 + $0x944] ss:$16 sps:$4 sm:$0xff]  }
 0x36a   : > { %16193 = vst [vmem:[#allocation100_spill] sm:$0xff] %v13210_v35  ;;  %v9545_v7 = vld [vmem:[#allocation7 + $0xb44] ss:$16 sps:$4 sm:$0xff]   ;;  %v9581_v35 = vld [vmem:[#allocation7 + $0xa8c] ss:$16 sps:$4 sm:$0xff]  }
 0x36b   : > { %4998 = vmatmul.mubr.bf16.gmra.mxu0 %v16174_v8  ;;  %5111 = vmatmul.mubr.bf16.gmra.mxu1 %v16175_v56  ;;  %v9525_v8 = vld [vmem:[#allocation7 + $0xba0] ss:$16 sps:$4 sm:$0xff]   ;;  %v9530_v56 = vld [vmem:[#allocation7 + $0x984] ss:$16 sps:$4 sm:$0xff]   ;;  %v3806_v6 = vpop.f32.mrf.mxu1 }
 0x36c   : > { %5968 = vmatpush2.bf16.msra.mxu0 %v9510_v1  ;;  %6081 = vmatpush2.bf16.msra.mxu1 %v9513_v45  ;;  %v9539_v1 = vld [vmem:[#allocation7 + $0xb64] ss:$16 sps:$4 sm:$0xff]   ;;  %v13220_v45 = vadd.f32 %v3806_v6, %v3693_v26  ;;  %v9549_v26 = vld [vmem:[#allocation7 + $0xb20] ss:$16 sps:$4 sm:$0xff]  }
 0x36d   : > { %5007 = vmatprep.mubr.bf16.mxu0 %v16176_v61  ;;  %5120 = vmatprep.mubr.bf16.mxu1 %v16177_v49  ;;  %v13216_v61 = vadd.f32 %v3804_v19, %v3691_v53  ;;  %v9528_v49 = vld [vmem:[#allocation7 + $0x980] ss:$16 sps:$4 sm:$0xff]   ;;  %v9551_v53 = vld [vmem:[#allocation7 + $0xb24] ss:$16 sps:$4 sm:$0xff]  }
 0x36e   : > { %5969 = vmatprep.subr.bf16.mxu0 %v9518_v15  ;;  %6082 = vmatprep.subr.bf16.mxu1 %v9521_v9  ;;  %v9537_v15 = vld [vmem:[#allocation7 + $0xb60] ss:$16 sps:$4 sm:$0xff]  }
 0x370   : > { %5970 = vmatpush2.bf16.msra.mxu0 %v9516_v36  ;;  %6083 = vmatpush2.bf16.msra.mxu1 %v9519_v60 }
 0x371   : > { %5971 = vmatprep.subr.bf16.mxu0 %v9524_v54  ;;  %6084 = vmatprep.subr.bf16.mxu1 %v9527_v52  ;;  %v9540_v52 = vld [vmem:[#allocation7 + $0x940] ss:$16 sps:$4 sm:$0xff]  }
 0x373   : > { %5008 = vmatmul.mubr.bf16.gmra.mxu0 %v16179_v21  ;;  %5121 = vmatmul.mubr.bf16.gmra.mxu1 %v16180_v43  ;;  %v3695_v21 = vpop.f32.mrf.mxu0  ;;  %v3808_v43 = vpop.f32.mrf.mxu1 }
 0x374   : > { %5972 = vmatpush2.bf16.msra.mxu0 %v9522_v5  ;;  %6085 = vmatpush2.bf16.msra.mxu1 %v9525_v8  ;;  %v13222_v40 = vadd.f32 %v3808_v43, %v3695_v21  ;;  %v9543_v5 = vld [vmem:[#allocation7 + $0xb40] ss:$16 sps:$4 sm:$0xff]  }
 0x375   : > { %5017 = vmatprep.mubr.bf16.mxu0 %v16182_v37  ;;  %5130 = vmatprep.mubr.bf16.mxu1 %v16183_v50  ;;  %v3697_v9 = vpop.f32.mrf.mxu0  ;;  %v3810_v37 = vpop.f32.mrf.mxu1 }
 0x376   : > { %5973 = vmatprep.subr.bf16.mxu0 %v9530_v56  ;;  %6086 = vmatprep.subr.bf16.mxu1 %v9533_v11  ;;  %v13224_v50 = vadd.f32 %v3810_v37, %v3697_v9  ;;  %v9548_v11 = vld [vmem:[#allocation7 + $0x924] ss:$16 sps:$4 sm:$0xff]   ;;  %v9555_v9 = vld [vmem:[#allocation7 + $0xb00] ss:$16 sps:$4 sm:$0xff]  }
 0x377   : > { %v3701_v36 = vpop.f32.mrf.mxu0  ;;  %v3814_v60 = vpop.f32.mrf.mxu1  ;;  %v16200_v37 = vld [vmem:[#allocation148_spill] sm:$0xff] }
 0x378   : > { %5974 = vmatpush2.bf16.msra.mxu0 %v9528_v49  ;;  %6087 = vmatpush2.bf16.msra.mxu1 %v9531_v33  ;;  %16194 = vst [vmem:[#allocation41_spill] sm:$0xff] %v13224_v50  ;;  %v13228_v54 = vadd.f32 %v3814_v60, %v3701_v36  ;;  %v9546_v33 = vld [vmem:[#allocation7 + $0x920] ss:$16 sps:$4 sm:$0xff]   ;;  %v9560_v60 = vld [vmem:[#allocation7 + $0x8ec] ss:$16 sps:$4 sm:$0xff]  }
 0x379   : > { %5975 = vmatprep.subr.bf16.mxu0 %v9536_v57  ;;  %6088 = vmatprep.subr.bf16.mxu1 %v9539_v1  ;;  %v3703_v8 = vpop.f32.mrf.mxu0  ;;  %v3816_v56 = vpop.f32.mrf.mxu1  ;;  %v9554_v57 = vld [vmem:[#allocation7 + $0x904] ss:$16 sps:$4 sm:$0xff]   ;;  %v9578_v50 = vld [vmem:[#allocation7 + $0x88c] ss:$16 sps:$4 sm:$0xff]  }
 0x37a   : > { %16195 = vst [vmem:[#allocation42_spill] sm:$0xff] %v13228_v54  ;;  %v13232_v19 = vadd.f32 %v3816_v56, %v3703_v8  ;;  %v9557_v1 = vld [vmem:[#allocation7 + $0xb04] ss:$16 sps:$4 sm:$0xff]   ;;  %v9558_v56 = vld [vmem:[#allocation7 + $0x8e8] ss:$16 sps:$4 sm:$0xff]  }
 0x37b   : > { %5018 = vmatmul.mubr.bf16.gmra.mxu0 %v16186_v3  ;;  %5131 = vmatmul.mubr.bf16.gmra.mxu1 %v16187_v42  ;;  %v3705_v3 = vpop.f32.mrf.mxu0  ;;  %v3818_v42 = vpop.f32.mrf.mxu1  ;;  %v9653_v54 = vld [vmem:[#allocation7 + $0xb0c] ss:$16 sps:$4 sm:$0xff]  }
 0x37c   : > { %5976 = vmatpush2.bf16.msra.mxu0 %v9534_v0  ;;  %6089 = vmatpush2.bf16.msra.mxu1 %v9537_v15  ;;  %16196 = vst [vmem:[#allocation143_spill] sm:$0xff] %v13232_v19  ;;  %v13234_v49 = vadd.f32 %v3818_v42, %v3705_v3  ;;  %v9552_v15 = vld [vmem:[#allocation7 + $0x900] ss:$16 sps:$4 sm:$0xff]  }
 0x37d   : > { %5027 = vmatprep.mubr.bf16.mxu0 %v16188_v4  ;;  %5140 = vmatprep.mubr.bf16.mxu1 %v16189_v31  ;;  %v3707_v6 = vpop.f32.mrf.mxu0  ;;  %v3820_v4 = vpop.f32.mrf.mxu1 }
 0x37e   : > { %5977 = vmatprep.subr.bf16.mxu0 %v9542_v29  ;;  %6090 = vmatprep.subr.bf16.mxu1 %v9545_v7  ;;  %16197 = vst [vmem:[#allocation107_spill] sm:$0xff] %v13234_v49  ;;  %v13236_v31 = vadd.f32 %v3820_v4, %v3707_v6  ;;  %v16201_v29 = vld [vmem:[#allocation36_spill] sm:$0xff]  ;;  %v9641_v49 = vld [vmem:[#allocation7 + $0xb4c] ss:$16 sps:$4 sm:$0xff]  }
 0x37f   : > { %v3711_v21 = vpop.f32.mrf.mxu0  ;;  %v3824_v43 = vpop.f32.mrf.mxu1 }
 0x380   : > { %5978 = vmatpush2.bf16.msra.mxu0 %v9540_v52  ;;  %6091 = vmatpush2.bf16.msra.mxu1 %v9543_v5  ;;  %16198 = vst [vmem:[#allocation43_spill] sm:$0xff] %v13236_v31  ;;  %v13240_v0 = vadd.f32 %v3824_v43, %v3711_v21  ;;  %v9563_v52 = vld [vmem:[#allocation7 + $0xaec] ss:$16 sps:$4 sm:$0xff]   ;;  %v9564_v43 = vld [vmem:[#allocation7 + $0x8c8] ss:$16 sps:$4 sm:$0xff]  }
 0x381   : > { %5979 = vmatprep.subr.bf16.mxu0 %v9548_v11  ;;  %6092 = vmatprep.subr.bf16.mxu1 %v9551_v53  ;;  %v3713_v7 = vpop.f32.mrf.mxu0  ;;  %v3826_v36 = vpop.f32.mrf.mxu1  ;;  %v9561_v11 = vld [vmem:[#allocation7 + $0xae8] ss:$16 sps:$4 sm:$0xff]  }
 0x382   : > { %16199 = vst [vmem:[#allocation149_spill] sm:$0xff] %v13240_v0  ;;  %v13244_v5 = vadd.f32 %v3826_v36, %v3713_v7  ;;  %v16209_v7 = vld [vmem:[#allocation96_spill] sm:$0xff]  ;;  %v9638_v0 = vld [vmem:[#allocation7 + $0x94c] ss:$16 sps:$4 sm:$0xff]  }
 0x383   : > { %5028 = vmatmul.mubr.bf16.gmra.mxu0 %v16190_v13  ;;  %5141 = vmatmul.mubr.bf16.gmra.mxu1 %v16191_v62  ;;  %v3715_v13 = vpop.f32.mrf.mxu0  ;;  %v3828_v62 = vpop.f32.mrf.mxu1 }
 0x384   : > { %5980 = vmatpush2.bf16.msra.mxu0 %v9546_v33  ;;  %6093 = vmatpush2.bf16.msra.mxu1 %v9549_v26  ;;  %16202 = vst [vmem:[#allocation150_spill] sm:$0xff] %v13244_v5  ;;  %v13246_v8 = vadd.f32 %v3828_v62, %v3715_v13  ;;  %v9566_v33 = vld [vmem:[#allocation7 + $0x8cc] ss:$16 sps:$4 sm:$0xff]  }
 0x385   : > { %5983 = vmatprep.mubr.bf16.mxu0 %v16200_v37  ;;  %6096 = vmatprep.mubr.bf16.mxu1 %v16201_v29  ;;  %v3717_v53 = vpop.f32.mrf.mxu0  ;;  %v3830_v3 = vpop.f32.mrf.mxu1  ;;  %v9569_v26 = vld [vmem:[#allocation7 + $0xacc] ss:$16 sps:$4 sm:$0xff]  }
 0x386   : > { %5981 = vmatprep.subr.bf16.mxu0 %v9554_v57  ;;  %6094 = vmatprep.subr.bf16.mxu1 %v9557_v1  ;;  %16203 = vst [vmem:[#allocation44_spill] sm:$0xff] %v13246_v8  ;;  %v13248_v42 = vadd.f32 %v3830_v3, %v3717_v53  ;;  %v16205_v57 = vld [vmem:[#allocation72_spill] sm:$0xff]  ;;  %v16206_v1 = vld [vmem:[#allocation74_spill] sm:$0xff]  ;;  %v9575_v13 = vld [vmem:[#allocation7 + $0xaac] ss:$16 sps:$4 sm:$0xff]  }
 0x387   : > { %v3867_v6 = vpop.f32.mrf.mxu0  ;;  %v3980_v4 = vpop.f32.mrf.mxu1 }
 0x388   : > { %5982 = vmatpush2.bf16.msra.mxu0 %v9552_v15  ;;  %6095 = vmatpush2.bf16.msra.mxu1 %v9555_v9  ;;  %16204 = vst [vmem:[#allocation125_spill] sm:$0xff] %v13248_v42  ;;  %v13252_v21 = vadd.f32 %v3980_v4, %v3867_v6  ;;  %v9567_v15 = vld [vmem:[#allocation7 + $0xac8] ss:$16 sps:$4 sm:$0xff]  }
 0x389   : > { %6177 = vmatprep.subr.bf16.mxu0 %v9560_v60  ;;  %6290 = vmatprep.subr.bf16.mxu1 %v9563_v52  ;;  %v16208_v9 = vld [vmem:[#allocation35_spill] sm:$0xff]  ;;  %v3869_v36 = vpop.f32.mrf.mxu0  ;;  %v3982_v60 = vpop.f32.mrf.mxu1 }
 0x38a   : > { %16207 = vst [vmem:[#allocation113_spill] sm:$0xff] %v13252_v21  ;;  %v9572_v52 = vld [vmem:[#allocation7 + $0x8ac] ss:$16 sps:$4 sm:$0xff]   ;;  %v13256_v62 = vadd.f32 %v3982_v60, %v3869_v36 }
 0x38b   : > { %5984 = vmatmul.mubr.bf16.vlgmr.msra.gmra.mxu0 %v16205_v57  ;;  %6097 = vmatmul.mubr.bf16.vlgmr.msra.gmra.mxu1 %v16206_v1  ;;  %v3871_v53 = vpop.f32.mrf.mxu0  ;;  %v3984_v3 = vpop.f32.mrf.mxu1  ;;  %v9593_v21 = vld [vmem:[#allocation7 + $0xa4c] ss:$16 sps:$4 sm:$0xff]  }
 0x38c   : > { %6178 = vmatpush1.bf16.msra.mxu0 %v9558_v56  ;;  %6291 = vmatpush1.bf16.msra.mxu1 %v9561_v11  ;;  %16210 = vst [vmem:[#allocation65_spill] sm:$0xff] %v13256_v62  ;;  %v13258_v6 = vadd.f32 %v3984_v3, %v3871_v53  ;;  %v9570_v56 = vld [vmem:[#allocation7 + $0x8a8] ss:$16 sps:$4 sm:$0xff]   ;;  %v9587_v53 = vld [vmem:[#allocation7 + $0xa6c] ss:$16 sps:$4 sm:$0xff]  }
 0x38d   : > { %5993 = vmatprep.mubr.bf16.mxu0 %v16208_v9  ;;  %6106 = vmatprep.mubr.bf16.mxu1 %v16209_v7  ;;  %v9573_v11 = vld [vmem:[#allocation7 + $0xaa8] ss:$16 sps:$4 sm:$0xff]   ;;  %v3873_v4 = vpop.f32.mrf.mxu0  ;;  %v3986_v42 = vpop.f32.mrf.mxu1  ;;  %v9590_v62 = vld [vmem:[#allocation7 + $0x84c] ss:$16 sps:$4 sm:$0xff]  }
 0x38e   : > { %6179 = vmatprep.subr.bf16.mxu0 %v9566_v33  ;;  %6292 = vmatprep.subr.bf16.mxu1 %v9569_v26  ;;  %16211 = vst [vmem:[#allocation106_spill] sm:$0xff] %v13258_v6  ;;  %v13260_v31 = vadd.f32 %v3986_v42, %v3873_v4  ;;  %v16213_v33 = vld [vmem:[#allocation97_spill] sm:$0xff] }
 0x38f   : > { %v3877_v36 = vpop.f32.mrf.mxu0  ;;  %v3990_v60 = vpop.f32.mrf.mxu1 }
 0x390   : > { %6180 = vmatpush1.bf16.msra.mxu0 %v9564_v43  ;;  %6293 = vmatpush1.bf16.msra.mxu1 %v9567_v15  ;;  %16212 = vst [vmem:[#allocation46_spill] sm:$0xff] %v13260_v31  ;;  %v13264_v26 = vadd.f32 %v3990_v60, %v3877_v36  ;;  %v9576_v43 = vld [vmem:[#allocation7 + $0x888] ss:$16 sps:$4 sm:$0xff]  }
 0x391   : > { %6181 = vmatprep.subr.bf16.mxu0 %v9572_v52  ;;  %6294 = vmatprep.subr.bf16.mxu1 %v9575_v13  ;;  %v9579_v15 = vld [vmem:[#allocation7 + $0xa88] ss:$16 sps:$4 sm:$0xff]   ;;  %v3879_v42 = vpop.f32.mrf.mxu0  ;;  %v3992_v52 = vpop.f32.mrf.mxu1  ;;  %v9584_v13 = vld [vmem:[#allocation7 + $0x86c] ss:$16 sps:$4 sm:$0xff]  }
 0x392   : > { %16214 = vst [vmem:[#allocation45_spill] sm:$0xff] %v13264_v26  ;;  %v13268_v3 = vadd.f32 %v3992_v52, %v3879_v42 }
 0x393   : > { %5994 = vmatmul.mubr.bf16.gmra.mxu0 %v16213_v33  ;;  %6107 = vmatmul.mubr.bf16.gmra.mxu1 %v12751_v46  ;;  %v3881_v4 = vpop.f32.mrf.mxu0  ;;  %v3994_v31 = vpop.f32.mrf.mxu1 }
 0x394   : > { %6182 = vmatpush1.bf16.msra.mxu0 %v9570_v56  ;;  %6295 = vmatpush1.bf16.msra.mxu1 %v9573_v11  ;;  %16215 = vst [vmem:[#allocation91_spill] sm:$0xff] %v13268_v3  ;;  %v13270_v36 = vadd.f32 %v3994_v31, %v3881_v4  ;;  %v9582_v56 = vld [vmem:[#allocation7 + $0x868] ss:$16 sps:$4 sm:$0xff]   ;;  %v9605_v3 = vld [vmem:[#allocation7 + $0xa0c] ss:$16 sps:$4 sm:$0xff]  }
 0x395   : > { %6003 = vmatprep.mubr.bf16.mxu0 %v12761_v28  ;;  %6116 = vmatprep.mubr.bf16.mxu1 %v12790_v63  ;;  %v9585_v11 = vld [vmem:[#allocation7 + $0xa68] ss:$16 sps:$4 sm:$0xff]   ;;  %v3883_v60 = vpop.f32.mrf.mxu0  ;;  %v3996_v26 = vpop.f32.mrf.mxu1 }
 0x396   : > { %6183 = vmatprep.subr.bf16.mxu0 %v9578_v50  ;;  %6296 = vmatprep.subr.bf16.mxu1 %v9581_v35  ;;  %16216 = vst [vmem:[#allocation124_spill] sm:$0xff] %v13270_v36  ;;  %v13272_v6 = vadd.f32 %v3996_v26, %v3883_v60  ;;  %v9588_v50 = vld [vmem:[#allocation7 + $0x848] ss:$16 sps:$4 sm:$0xff]   ;;  %v9602_v36 = vld [vmem:[#allocation7 + $0x80c] ss:$16 sps:$4 sm:$0xff]  }
 0x397   : > { %v3887_v42 = vpop.f32.mrf.mxu0  ;;  %v4000_v52 = vpop.f32.mrf.mxu1  ;;  %v9591_v31 = vld [vmem:[#allocation7 + $0xa48] ss:$16 sps:$4 sm:$0xff]  }
 0x398   : > { %6184 = vmatpush1.bf16.msra.mxu0 %v9576_v43  ;;  %6297 = vmatpush1.bf16.msra.mxu1 %v9579_v15  ;;  %16217 = vst [vmem:[#allocation101_spill] sm:$0xff] %v13272_v6  ;;  %v13276_v35 = vadd.f32 %v4000_v52, %v3887_v42  ;;  %v9596_v15 = vld [vmem:[#allocation7 + $0x82c] ss:$16 sps:$4 sm:$0xff]  }
 0x399   : > { %6185 = vmatprep.subr.bf16.mxu0 %v9584_v13  ;;  %6298 = vmatprep.subr.bf16.mxu1 %v9587_v53  ;;  %v3889_v26 = vpop.f32.mrf.mxu0  ;;  %v4002_v43 = vpop.f32.mrf.mxu1  ;;  %v9599_v13 = vld [vmem:[#allocation7 + $0xa2c] ss:$16 sps:$4 sm:$0xff]  }
 0x39a   : > { %16218 = vst [vmem:[#allocation63_spill] sm:$0xff] %v13276_v35  ;;  %v13280_v53 = vadd.f32 %v4002_v43, %v3889_v26 }
 0x39b   : > { %6004 = vmatmul.mubr.bf16.gmra.mxu0 %v12808_v12  ;;  %6117 = vmatmul.mubr.bf16.gmra.mxu1 %v12821_v48  ;;  %v3891_v4 = vpop.f32.mrf.mxu0  ;;  %v4004_v60 = vpop.f32.mrf.mxu1 }
 0x39c   : > { %6186 = vmatpush1.bf16.msra.mxu0 %v9582_v56  ;;  %6299 = vmatpush1.bf16.msra.mxu1 %v9585_v11  ;;  %16219 = vst [vmem:[#allocation47_spill] sm:$0xff] %v13280_v53  ;;  %v13282_v42 = vadd.f32 %v4004_v60, %v3891_v4  ;;  %v9594_v56 = vld [vmem:[#allocation7 + $0x828] ss:$16 sps:$4 sm:$0xff]   ;;  %v9617_v53 = vld [vmem:[#allocation7 + $0xbcc] ss:$16 sps:$4 sm:$0xff]  }
 0x39d   : > { %6013 = vmatprep.mubr.bf16.mxu0 %v12831_v55  ;;  %6126 = vmatprep.mubr.bf16.mxu1 %v12857_v39  ;;  %v9597_v11 = vld [vmem:[#allocation7 + $0xa28] ss:$16 sps:$4 sm:$0xff]   ;;  %v3893_v52 = vpop.f32.mrf.mxu0  ;;  %v4006_v6 = vpop.f32.mrf.mxu1 }
 0x39e   : > { %6187 = vmatprep.subr.bf16.mxu0 %v9590_v62  ;;  %6300 = vmatprep.subr.bf16.mxu1 %v9593_v21  ;;  %16220 = vst [vmem:[#allocation48_spill] sm:$0xff] %v13282_v42  ;;  %v13284_v35 = vadd.f32 %v4006_v6, %v3893_v52  ;;  %v9600_v62 = vld [vmem:[#allocation7 + $0x808] ss:$16 sps:$4 sm:$0xff]   ;;  %v9614_v42 = vld [vmem:[#allocation7 + $0x9cc] ss:$16 sps:$4 sm:$0xff]  }
 0x39f   : > { %v3897_v26 = vpop.f32.mrf.mxu0  ;;  %v4010_v43 = vpop.f32.mrf.mxu1 }
 0x3a0   : > { %6188 = vmatpush1.bf16.msra.mxu0 %v9588_v50  ;;  %6301 = vmatpush1.bf16.msra.mxu1 %v9591_v31  ;;  %16221 = vst [vmem:[#allocation132_spill] sm:$0xff] %v13284_v35  ;;  %v13288_v21 = vadd.f32 %v4010_v43, %v3897_v26  ;;  %v9603_v50 = vld [vmem:[#allocation7 + $0xa08] ss:$16 sps:$4 sm:$0xff]  }
 0x3a1   : > { %6189 = vmatprep.subr.bf16.mxu0 %v9596_v15  ;;  %6302 = vmatprep.subr.bf16.mxu1 %v9599_v13  ;;  %v3899_v6 = vpop.f32.mrf.mxu0  ;;  %v4012_v31 = vpop.f32.mrf.mxu1  ;;  %v9608_v15 = vld [vmem:[#allocation7 + $0x9ec] ss:$16 sps:$4 sm:$0xff]  }
 0x3a2   : > { %16222 = vst [vmem:[#allocation84_spill] sm:$0xff] %v13288_v21  ;;  %v9611_v13 = vld [vmem:[#allocation7 + $0xbec] ss:$16 sps:$4 sm:$0xff]   ;;  %v13292_v4 = vadd.f32 %v4012_v31, %v3899_v6 }
 0x3a3   : > { %6014 = vmatmul.mubr.bf16.gmra.mxu0 %v12881_v47  ;;  %6127 = vmatmul.mubr.bf16.gmra.mxu1 %v12886_v32  ;;  %v3901_v60 = vpop.f32.mrf.mxu0  ;;  %v4014_v52 = vpop.f32.mrf.mxu1 }
 0x3a4   : > { %6190 = vmatpush1.bf16.msra.mxu0 %v9594_v56  ;;  %6303 = vmatpush1.bf16.msra.mxu1 %v9597_v11  ;;  %16223 = vst [vmem:[#allocation130_spill] sm:$0xff] %v13292_v4  ;;  %v13294_v26 = vadd.f32 %v4014_v52, %v3901_v60  ;;  %v9606_v56 = vld [vmem:[#allocation7 + $0x9e8] ss:$16 sps:$4 sm:$0xff]   ;;  %v9629_v4 = vld [vmem:[#allocation7 + $0xb8c] ss:$16 sps:$4 sm:$0xff]  }
 0x3a5   : > { %6023 = vmatprep.mubr.bf16.mxu0 %v12900_v41  ;;  %6136 = vmatprep.mubr.bf16.mxu1 %v12927_v30  ;;  %v9609_v11 = vld [vmem:[#allocation7 + $0xbe8] ss:$16 sps:$4 sm:$0xff]   ;;  %v3903_v43 = vpop.f32.mrf.mxu0  ;;  %v4016_v35 = vpop.f32.mrf.mxu1 }
 0x3a6   : > { %6191 = vmatprep.subr.bf16.mxu0 %v9602_v36  ;;  %6304 = vmatprep.subr.bf16.mxu1 %v9605_v3  ;;  %16224 = vst [vmem:[#allocation85_spill] sm:$0xff] %v13294_v26  ;;  %v13296_v21 = vadd.f32 %v4016_v35, %v3903_v43  ;;  %v9612_v36 = vld [vmem:[#allocation7 + $0x9c8] ss:$16 sps:$4 sm:$0xff]   ;;  %v9626_v26 = vld [vmem:[#allocation7 + $0x98c] ss:$16 sps:$4 sm:$0xff]  }
 0x3a7   : > { %v3907_v6 = vpop.f32.mrf.mxu0  ;;  %v4020_v31 = vpop.f32.mrf.mxu1 }
 0x3a8   : > { %6192 = vmatpush1.bf16.msra.mxu0 %v9600_v62  ;;  %6305 = vmatpush1.bf16.msra.mxu1 %v9603_v50  ;;  %16225 = vst [vmem:[#allocation66_spill] sm:$0xff] %v13296_v21  ;;  %v13300_v3 = vadd.f32 %v4020_v31, %v3907_v6  ;;  %v9615_v62 = vld [vmem:[#allocation7 + $0xbc8] ss:$16 sps:$4 sm:$0xff]  }
 0x3a9   : > { %6193 = vmatprep.subr.bf16.mxu0 %v9608_v15  ;;  %6306 = vmatprep.subr.bf16.mxu1 %v9611_v13  ;;  %v3909_v35 = vpop.f32.mrf.mxu0  ;;  %v4022_v50 = vpop.f32.mrf.mxu1  ;;  %v9620_v15 = vld [vmem:[#allocation7 + $0x9ac] ss:$16 sps:$4 sm:$0xff]  }
 0x3aa   : > { %16226 = vst [vmem:[#allocation94_spill] sm:$0xff] %v13300_v3  ;;  %v9623_v13 = vld [vmem:[#allocation7 + $0xbac] ss:$16 sps:$4 sm:$0xff]   ;;  %v13304_v60 = vadd.f32 %v4022_v50, %v3909_v35 }
 0x3ab   : > { %6024 = vmatmul.mubr.bf16.gmra.mxu0 %v12948_v22  ;;  %6137 = vmatmul.mubr.bf16.gmra.mxu1 %v12957_v27  ;;  %v3911_v52 = vpop.f32.mrf.mxu0  ;;  %v4024_v43 = vpop.f32.mrf.mxu1 }
 0x3ac   : > { %6194 = vmatpush2.bf16.msra.mxu0 %v9606_v56  ;;  %6307 = vmatpush2.bf16.msra.mxu1 %v9609_v11  ;;  %16227 = vst [vmem:[#allocation86_spill] sm:$0xff] %v13304_v60  ;;  %v13306_v6 = vadd.f32 %v4024_v43, %v3911_v52  ;;  %v9618_v56 = vld [vmem:[#allocation7 + $0x9a8] ss:$16 sps:$4 sm:$0xff]  }
 0x3ad   : > { %6033 = vmatprep.mubr.bf16.mxu0 %v12982_v14  ;;  %6146 = vmatprep.mubr.bf16.mxu1 %v12991_v24  ;;  %v9621_v11 = vld [vmem:[#allocation7 + $0xba8] ss:$16 sps:$4 sm:$0xff]   ;;  %v3913_v31 = vpop.f32.mrf.mxu0  ;;  %v4026_v21 = vpop.f32.mrf.mxu1 }
 0x3ae   : > { %6195 = vmatprep.subr.bf16.mxu0 %v9614_v42  ;;  %6308 = vmatprep.subr.bf16.mxu1 %v9617_v53  ;;  %16228 = vst [vmem:[#allocation109_spill] sm:$0xff] %v13306_v6  ;;  %v13308_v3 = vadd.f32 %v4026_v21, %v3913_v31  ;;  %v16230_v42 = vld [vmem:[#allocation127_spill] sm:$0xff] }
 0x3af   : > { %v3917_v35 = vpop.f32.mrf.mxu0  ;;  %v4030_v50 = vpop.f32.mrf.mxu1  ;;  %v16231_v53 = vld [vmem:[#allocation87_spill] sm:$0xff] }
 0x3b0   : > { %6196 = vmatpush2.bf16.msra.mxu0 %v9612_v36  ;;  %6309 = vmatpush2.bf16.msra.mxu1 %v9615_v62  ;;  %16229 = vst [vmem:[#allocation137_spill] sm:$0xff] %v13308_v3  ;;  %v13312_v52 = vadd.f32 %v4030_v50, %v3917_v35  ;;  %v9624_v36 = vld [vmem:[#allocation7 + $0x988] ss:$16 sps:$4 sm:$0xff]   ;;  %v9632_v31 = vld [vmem:[#allocation7 + $0x96c] ss:$16 sps:$4 sm:$0xff]  }
 0x3b1   : > { %6197 = vmatprep.subr.bf16.mxu0 %v9620_v15  ;;  %6310 = vmatprep.subr.bf16.mxu1 %v9623_v13  ;;  %v9627_v62 = vld [vmem:[#allocation7 + $0xb88] ss:$16 sps:$4 sm:$0xff]   ;;  %v16234_v15 = vld [vmem:[#allocation98_spill] sm:$0xff]  ;;  %v3919_v21 = vpop.f32.mrf.mxu0  ;;  %v4032_v13 = vpop.f32.mrf.mxu1  ;;  %v9635_v3 = vld [vmem:[#allocation7 + $0xb6c] ss:$16 sps:$4 sm:$0xff]  }
 0x3b2   : > { %16232 = vst [vmem:[#allocation90_spill] sm:$0xff] %v13312_v52  ;;  %v16233_v43 = vld [vmem:[#allocation99_spill] sm:$0xff]  ;;  %v13316_v6 = vadd.f32 %v4032_v13, %v3919_v21 }
 0x3b3   : > { %6034 = vmatmul.mubr.bf16.gmra.mxu0 %v16230_v42  ;;  %6147 = vmatmul.mubr.bf16.gmra.mxu1 %v16231_v53  ;;  %v3921_v60 = vpop.f32.mrf.mxu0  ;;  %v4034_v8 = vpop.f32.mrf.mxu1 }
 0x3b4   : > { %6198 = vmatpush2.bf16.msra.mxu0 %v9618_v56  ;;  %6311 = vmatpush2.bf16.msra.mxu1 %v9621_v11  ;;  %16235 = vst [vmem:[#allocation64_spill] sm:$0xff] %v13316_v6  ;;  %v13318_v35 = vadd.f32 %v4034_v8, %v3921_v60  ;;  %v9630_v56 = vld [vmem:[#allocation7 + $0x968] ss:$16 sps:$4 sm:$0xff]  }
 0x3b5   : > { %6043 = vmatprep.mubr.bf16.mxu0 %v16233_v43  ;;  %6156 = vmatprep.mubr.bf16.mxu1 %v16234_v15  ;;  %v9633_v11 = vld [vmem:[#allocation7 + $0xb68] ss:$16 sps:$4 sm:$0xff]   ;;  %v3923_v50 = vpop.f32.mrf.mxu0  ;;  %v4036_v52 = vpop.f32.mrf.mxu1 }
 0x3b6   : > { %6199 = vmatprep.subr.bf16.mxu0 %v9626_v26  ;;  %6312 = vmatprep.subr.bf16.mxu1 %v9629_v4  ;;  %16236 = vst [vmem:[#allocation105_spill] sm:$0xff] %v13318_v35  ;;  %v13320_v5 = vadd.f32 %v4036_v52, %v3923_v50  ;;  %v16238_v26 = vld [vmem:[#allocation38_spill] sm:$0xff]  ;;  %v16239_v4 = vld [vmem:[#allocation37_spill] sm:$0xff] }
 0x3b7   : > { %v3927_v21 = vpop.f32.mrf.mxu0  ;;  %v4040_v13 = vpop.f32.mrf.mxu1  ;;  %v9636_v60 = vld [vmem:[#allocation7 + $0x948] ss:$16 sps:$4 sm:$0xff]   ;;  %v9644_v50 = vld [vmem:[#allocation7 + $0x92c] ss:$16 sps:$4 sm:$0xff]  }
 0x3b8   : > { %6200 = vmatpush2.bf16.msra.mxu0 %v9624_v36  ;;  %6313 = vmatpush2.bf16.msra.mxu1 %v9627_v62  ;;  %16237 = vst [vmem:[#allocation49_spill] sm:$0xff] %v13320_v5  ;;  %v13324_v8 = vadd.f32 %v4040_v13, %v3927_v21  ;;  %v9639_v36 = vld [vmem:[#allocation7 + $0xb48] ss:$16 sps:$4 sm:$0xff]   ;;  %v16241_v62 = vld [vmem:[#allocation128_spill] sm:$0xff]  ;;  %v9647_v5 = vld [vmem:[#allocation7 + $0xb2c] ss:$16 sps:$4 sm:$0xff]  }
 0x3b9   : > { %6201 = vmatprep.subr.bf16.mxu0 %v9632_v31  ;;  %6314 = vmatprep.subr.bf16.mxu1 %v9635_v3  ;;  %v16242_v31 = vld [vmem:[#allocation89_spill] sm:$0xff]  ;;  %v3929_v3 = vpop.f32.mrf.mxu0  ;;  %v4042_v52 = vpop.f32.mrf.mxu1 }
 0x3ba   : > { %16240 = vst [vmem:[#allocation50_spill] sm:$0xff] %v13324_v8  ;;  %v13328_v35 = vadd.f32 %v4042_v52, %v3929_v3 }
 0x3bb   : > { %6044 = vmatmul.mubr.bf16.gmra.mxu0 %v16238_v26  ;;  %6157 = vmatmul.mubr.bf16.gmra.mxu1 %v16239_v4  ;;  %v3931_v6 = vpop.f32.mrf.mxu0  ;;  %v4044_v19 = vpop.f32.mrf.mxu1 }
 0x3bc   : > { %6202 = vmatpush2.bf16.msra.mxu0 %v9630_v56  ;;  %6315 = vmatpush2.bf16.msra.mxu1 %v9633_v11  ;;  %v13330_v21 = vadd.f32 %v4044_v19, %v3931_v6  ;;  %v9642_v56 = vld [vmem:[#allocation7 + $0x928] ss:$16 sps:$4 sm:$0xff]  }
 0x3bd   : > { %6053 = vmatprep.mubr.bf16.mxu0 %v16241_v62  ;;  %6166 = vmatprep.mubr.bf16.mxu1 %v16242_v31  ;;  %v9645_v11 = vld [vmem:[#allocation7 + $0xb28] ss:$16 sps:$4 sm:$0xff]   ;;  %v3933_v13 = vpop.f32.mrf.mxu0  ;;  %v4046_v8 = vpop.f32.mrf.mxu1  ;;  %v9650_v62 = vld [vmem:[#allocation7 + $0x90c] ss:$16 sps:$4 sm:$0xff]  }
 0x3be   : > { %6203 = vmatprep.subr.bf16.mxu0 %v9638_v0  ;;  %6316 = vmatprep.subr.bf16.mxu1 %v9641_v49  ;;  %v13332_v31 = vadd.f32 %v4046_v8, %v3933_v13  ;;  %v16244_v0 = vld [vmem:[#allocation133_spill] sm:$0xff]  ;;  %v16245_v49 = vld [vmem:[#allocation134_spill] sm:$0xff] }
 0x3bf   : > { %v3937_v3 = vpop.f32.mrf.mxu0  ;;  %v4050_v52 = vpop.f32.mrf.mxu1  ;;  %v9648_v6 = vld [vmem:[#allocation7 + $0x908] ss:$16 sps:$4 sm:$0xff]  }
 0x3c0   : > { %6204 = vmatpush2.bf16.msra.mxu0 %v9636_v60  ;;  %6317 = vmatpush2.bf16.msra.mxu1 %v9639_v36  ;;  %16243 = vst [vmem:[#allocation131_spill] sm:$0xff] %v13332_v31  ;;  %v13336_v19 = vadd.f32 %v4050_v52, %v3937_v3  ;;  %v9651_v60 = vld [vmem:[#allocation7 + $0xb08] ss:$16 sps:$4 sm:$0xff]  }
 0x3c1   : > { %6205 = vmatprep.subr.bf16.mxu0 %v9644_v50  ;;  %6318 = vmatprep.subr.bf16.mxu1 %v9647_v5  ;;  %v3939_v5 = vpop.f32.mrf.mxu0  ;;  %v4052_v8 = vpop.f32.mrf.mxu1 }
 0x3c2   : > { %v13340_v36 = vadd.f32 %v4052_v8, %v3939_v5 }
 0x3c3   : > { %6054 = vmatmul.mubr.bf16.gmra.mxu0 %v16244_v0  ;;  %6167 = vmatmul.mubr.bf16.gmra.mxu1 %v16245_v49  ;;  %v3941_v50 = vpop.f32.mrf.mxu0  ;;  %v4054_v13 = vpop.f32.mrf.mxu1 }
 0x3c4   : > { %6206 = vmatpush2.bf16.msra.mxu0 %v9642_v56  ;;  %6319 = vmatpush2.bf16.msra.mxu1 %v9645_v11  ;;  %v13342_v31 = vadd.f32 %v4054_v13, %v3941_v50 }
 0x3c5   : > { %6209 = vmatprep.mubr.bf16.mxu0 %v16200_v37  ;;  %6322 = vmatprep.mubr.bf16.mxu1 %v16201_v29  ;;  %v3943_v56 = vpop.f32.mrf.mxu0  ;;  %v4056_v11 = vpop.f32.mrf.mxu1  ;;  %v16248_v29 = vld [vmem:[#allocation40_spill] sm:$0xff] }
 0x3c6   : > { %6207 = vmatprep.subr.bf16.mxu0 %v9650_v62  ;;  %6320 = vmatprep.subr.bf16.mxu1 %v9653_v54  ;;  %16246 = vst [vmem:[#allocation111_spill] sm:$0xff] %v13342_v31  ;;  %v13344_v3 = vadd.f32 %v4056_v11, %v3943_v56  ;;  %v16250_v11 = vld [vmem:[#allocation135_spill] sm:$0xff] }
 0x3c8   : > { %6208 = vmatpush2.bf16.msra.mxu0 %v9648_v6  ;;  %6321 = vmatpush2.bf16.msra.mxu1 %v9651_v60  ;;  %16247 = vst [vmem:[#allocation68_spill] sm:$0xff] %v13344_v3  ;;  %v4733_v52 = vpop.f32.mrf.mxu0  ;;  %v4846_v37 = vpop.f32.mrf.mxu1  ;;  %v16249_v60 = vld [vmem:[#allocation39_spill] sm:$0xff] }
 0x3c9   : > { %v4734_v5 = vadd.f32 %v4733_v52, %v16248_v29  ;;  %v16251_v52 = vld [vmem:[#allocation95_spill] sm:$0xff] }
 0x3ca   : > { %v4735_v54 = vpop.f32.mrf.mxu0  ;;  %v4848_v62 = vpop.f32.mrf.mxu1 }
 0x3cb   : > { %6210 = vmatmul.mubr.bf16.vlgmr.msra.gmra.mxu0 %v16205_v57  ;;  %6323 = vmatmul.mubr.bf16.vlgmr.msra.gmra.mxu1 %v16206_v1  ;;  %v13351_v6 = vadd.f32 %v4846_v37, %v4734_v5  ;;  %v4736_v8 = vadd.f32 %v4735_v54, %v16249_v60 }
 0x3cc   : > { %6219 = vmatprep.mubr.bf16.mxu0 %v16208_v9  ;;  %6332 = vmatprep.mubr.bf16.mxu1 %v16209_v7  ;;  %v4737_v50 = vpop.f32.mrf.mxu0  ;;  %v4850_v13 = vpop.f32.mrf.mxu1 }
 0x3cd   : > { %v13354_v56 = vadd.f32 %v4848_v62, %v4736_v8  ;;  %v4738_v57 = vadd.f32 %v4737_v50, %v16250_v11 }
 0x3ce   : > { %v4739_v3 = vpop.f32.mrf.mxu0  ;;  %v4852_v1 = vpop.f32.mrf.mxu1 }
 0x3cf   : > { %v13357_v31 = vadd.f32 %v4850_v13, %v4738_v57  ;;  %v4740_v9 = vadd.f32 %v4739_v3, %v16251_v52 }
 0x3d1   : > { %v13362_v37 = vadd.f32 %v4852_v1, %v4740_v9 }
 0x3d2   : > { %v4743_v29 = vpop.f32.mrf.mxu0 }
 0x3d3   : > { %v4856_v7 = vpop.f32.mrf.mxu1  ;;  %6220 = vmatmul.mubr.bf16.gmra.mxu0 %v16213_v33  ;;  %6333 = vmatmul.mubr.bf16.gmra.mxu1 %v12751_v46  ;;  %v4744_v5 = vadd.f32 %v4743_v29, %v13158_v59 }
 0x3d4   : > { %6229 = vmatprep.mubr.bf16.mxu0 %v12761_v28  ;;  %6342 = vmatprep.mubr.bf16.mxu1 %v12790_v63  ;;  %v4745_v54 = vpop.f32.mrf.mxu0 }
 0x3d5   : > { %v4858_v62 = vpop.f32.mrf.mxu1  ;;  %v13367_v60 = vadd.f32 %v4856_v7, %v4744_v5  ;;  %v4746_v3 = vadd.f32 %v4745_v54, %v13160_v58  ;;  %v16252_v58 = vld [vmem:[#allocation142_spill] sm:$0xff] }
 0x3d6   : > { %v4747_v8 = vpop.f32.mrf.mxu0 }
 0x3d7   : > { %v4860_v50 = vpop.f32.mrf.mxu1  ;;  %v13370_v13 = vadd.f32 %v4858_v62, %v4746_v3  ;;  %v4748_v46 = vadd.f32 %v4747_v8, %v13162_v51 }
 0x3d8   : > { %v4749_v33 = vpop.f32.mrf.mxu0 }
 0x3d9   : > { %v4862_v11 = vpop.f32.mrf.mxu1  ;;  %v13373_v57 = vadd.f32 %v4860_v50, %v4748_v46  ;;  %v4750_v28 = vadd.f32 %v4749_v33, %v13166_v10 }
 0x3da   : > { %v4753_v59 = vpop.f32.mrf.mxu0 }
 0x3db   : > { %v4866_v63 = vpop.f32.mrf.mxu1  ;;  %6230 = vmatmul.mubr.bf16.gmra.mxu0 %v12808_v12  ;;  %6343 = vmatmul.mubr.bf16.gmra.mxu1 %v12821_v48  ;;  %v13378_v1 = vadd.f32 %v4862_v11, %v4750_v28  ;;  %v4754_v52 = vadd.f32 %v4753_v59, %v16252_v58 }
 0x3dc   : > { %6239 = vmatprep.mubr.bf16.mxu0 %v12831_v55  ;;  %6352 = vmatprep.mubr.bf16.mxu1 %v12857_v39  ;;  %v4755_v51 = vpop.f32.mrf.mxu0 }
 0x3dd   : > { %v4868_v9 = vpop.f32.mrf.mxu1  ;;  %v13383_v29 = vadd.f32 %v4866_v63, %v4754_v52  ;;  %v4756_v10 = vadd.f32 %v4755_v51, %v13176_v2 }
 0x3de   : > { %v4757_v7 = vpop.f32.mrf.mxu0 }
 0x3df   : > { %v4870_v5 = vpop.f32.mrf.mxu1  ;;  %v13386_v54 = vadd.f32 %v4868_v9, %v4756_v10  ;;  %v4758_v12 = vadd.f32 %v4757_v7, %v13178_v17 }
 0x3e0   : > { %v4759_v48 = vpop.f32.mrf.mxu0 }
 0x3e1   : > { %v4872_v62 = vpop.f32.mrf.mxu1  ;;  %v13389_v3 = vadd.f32 %v4870_v5, %v4758_v12  ;;  %v4760_v55 = vadd.f32 %v4759_v48, %v13180_v34 }
 0x3e2   : > { %v4763_v8 = vpop.f32.mrf.mxu0 }
 0x3e3   : > { %v4876_v39 = vpop.f32.mrf.mxu1  ;;  %6240 = vmatmul.mubr.bf16.gmra.mxu0 %v12881_v47  ;;  %6353 = vmatmul.mubr.bf16.gmra.mxu1 %v12886_v32  ;;  %v13394_v50 = vadd.f32 %v4872_v62, %v4760_v55  ;;  %v4764_v2 = vadd.f32 %v4763_v8, %v13186_v44 }
 0x3e4   : > { %6249 = vmatprep.mubr.bf16.mxu0 %v12900_v41  ;;  %6362 = vmatprep.mubr.bf16.mxu1 %v12927_v30  ;;  %v4765_v17 = vpop.f32.mrf.mxu0 }
 0x3e5   : > { %v4878_v46 = vpop.f32.mrf.mxu1  ;;  %v13399_v33 = vadd.f32 %v4876_v39, %v4764_v2  ;;  %v4766_v34 = vadd.f32 %v4765_v17, %v13188_v20 }
 0x3e6   : > { %v4767_v11 = vpop.f32.mrf.mxu0 }
 0x3e7   : > { %v4880_v28 = vpop.f32.mrf.mxu1  ;;  %v13402_v59 = vadd.f32 %v4878_v46, %v4766_v34  ;;  %v4768_v47 = vadd.f32 %v4767_v11, %v13192_v16  ;;  %v16253_v46 = vld [vmem:[#allocation42_spill] sm:$0xff]  ;;  %v16254_v34 = vld [vmem:[#allocation128_spill] sm:$0xff]  ;;  %v16255_v11 = vld [vmem:[#allocation89_spill] sm:$0xff] }
 0x3e8   : > { %v4769_v32 = vpop.f32.mrf.mxu0 }
 0x3e9   : > { %v4882_v63 = vpop.f32.mrf.mxu1  ;;  %v13405_v58 = vadd.f32 %v4880_v28, %v4768_v47  ;;  %v4770_v41 = vadd.f32 %v4769_v32, %v13196_v25  ;;  %v16256_v32 = vld [vmem:[#allocation143_spill] sm:$0xff] }
 0x3ea   : > { %v4773_v44 = vpop.f32.mrf.mxu0 }
 0x3eb   : > { %v4886_v30 = vpop.f32.mrf.mxu1  ;;  %6250 = vmatmul.mubr.bf16.gmra.mxu0 %v12948_v22  ;;  %6363 = vmatmul.mubr.bf16.gmra.mxu1 %v12957_v27  ;;  %v13410_v52 = vadd.f32 %v4882_v63, %v4770_v41  ;;  %v4774_v20 = vadd.f32 %v4773_v44, %v13202_v18 }
 0x3ec   : > { %6259 = vmatprep.mubr.bf16.mxu0 %v12982_v14  ;;  %6372 = vmatprep.mubr.bf16.mxu1 %v12991_v24  ;;  %v4775_v16 = vpop.f32.mrf.mxu0 }
 0x3ed   : > { %v4888_v51 = vpop.f32.mrf.mxu1  ;;  %v13415_v9 = vadd.f32 %v4886_v30, %v4774_v20  ;;  %v4776_v25 = vadd.f32 %v4775_v16, %v13204_v38  ;;  %v16257_v20 = vld [vmem:[#allocation107_spill] sm:$0xff] }
 0x3ee   : > { %v4777_v10 = vpop.f32.mrf.mxu0 }
 0x3ef   : > { %v4890_v7 = vpop.f32.mrf.mxu1  ;;  %v13418_v5 = vadd.f32 %v4888_v51, %v4776_v25  ;;  %v4778_v22 = vadd.f32 %v4777_v10, %v13206_v23 }
 0x3f0   : > { %v13421_v27 = vpop.f32.mrf.mxu0 }
 0x3f1   : > { %v13423_v12 = vpop.f32.mrf.mxu1  ;;  %v13425_v18 = vadd.f32 %v4890_v7, %v4778_v22  ;;  %v16259_v7 = vld [vmem:[#allocation149_spill] sm:$0xff] }
 0x3f2   : > { %v4783_v14 = vpop.f32.mrf.mxu0 }
 0x3f3   : > { %v4896_v24 = vpop.f32.mrf.mxu1  ;;  %6260 = vmatmul.mubr.bf16.gmra.mxu0 %v16230_v42  ;;  %6373 = vmatmul.mubr.bf16.gmra.mxu1 %v16231_v53  ;;  %v4784_v38 = vadd.f32 %v4783_v14, %v13216_v61  ;;  %v16260_v14 = vmov 0  }
 0x3f4   : > { %6269 = vmatprep.mubr.bf16.mxu0 %v16233_v43  ;;  %6382 = vmatprep.mubr.bf16.mxu1 %v16234_v15  ;;  %v4785_v48 = vpop.f32.mrf.mxu0 }
 0x3f5   : > { %v4898_v23 = vpop.f32.mrf.mxu1  ;;  %v13432_v62 = vadd.f32 %v4896_v24, %v4784_v38  ;;  %v4786_v55 = vadd.f32 %v4785_v48, %v13220_v45 }
 0x3f6   : > { %v4787_v8 = vpop.f32.mrf.mxu0 }
 0x3f7   : > { %v4900_v39 = vpop.f32.mrf.mxu1  ;;  %v13435_v2 = vadd.f32 %v4898_v23, %v4786_v55  ;;  %v4788_v42 = vadd.f32 %v4787_v8, %v13222_v40  ;;  %v16262_v23 = vld [vmem:[#allocation150_spill] sm:$0xff] }
 0x3f8   : > { %v13438_v17 = vpop.f32.mrf.mxu0 }
 0x3f9   : > { %v13440_v53 = vpop.f32.mrf.mxu1  ;;  %v13442_v61 = vadd.f32 %v4900_v39, %v4788_v42 }
 0x3fa   : > { %v4793_v43 = vpop.f32.mrf.mxu0 }
 0x3fb   : > { %v4906_v15 = vpop.f32.mrf.mxu1  ;;  %6270 = vmatmul.mubr.bf16.gmra.mxu0 %v16238_v26  ;;  %6383 = vmatmul.mubr.bf16.gmra.mxu1 %v16239_v4  ;;  %v4794_v45 = vadd.f32 %v4793_v43, %v16253_v46  ;;  %v16264_v43 = vld [vmem:[#allocation44_spill] sm:$0xff] }
 0x3fc   : > { %6279 = vmatprep.mubr.bf16.mxu0 %v16254_v34  ;;  %6392 = vmatprep.mubr.bf16.mxu1 %v16255_v11  ;;  %v4795_v28 = vpop.f32.mrf.mxu0  ;;  %v16266_v11 = vld [vmem:[#allocation113_spill] sm:$0xff] }
 0x3fd   : > { %v4908_v40 = vpop.f32.mrf.mxu1  ;;  %v13449_v47 = vadd.f32 %v4906_v15, %v4794_v45  ;;  %v4796_v63 = vadd.f32 %v4795_v28, %v16256_v32 }
 0x3fe   : > { %v4797_v41 = vpop.f32.mrf.mxu0 }
 0x3ff   : > { %v4910_v44 = vpop.f32.mrf.mxu1  ;;  %v13452_v30 = vadd.f32 %v4908_v40, %v4796_v63  ;;  %v4798_v26 = vadd.f32 %v4797_v41, %v16257_v20  ;;  %v16268_v41 = vld [vmem:[#allocation65_spill] sm:$0xff] }
 0x400   : > { %v13455_v16 = vpop.f32.mrf.mxu0 }
 0x401   : > { %v13457_v4 = vpop.f32.mrf.mxu1  ;;  %v13459_v51 = vadd.f32 %v4910_v44, %v4798_v26 }
 0x402   : > { %v4803_v25 = vpop.f32.mrf.mxu0 }
 0x403   : > { %16258 = vst [vmem:[#allocation138_spill] sm:$0xff] %v13459_v51  ;;  %v4916_v10 = vpop.f32.mrf.mxu1  ;;  %6280 = vmatmul.mubr.bf16.gmra.mxu0 %v16244_v0  ;;  %6393 = vmatmul.mubr.bf16.gmra.mxu1 %v16245_v49  ;;  %v4804_v22 = vadd.f32 %v4803_v25, %v16259_v7 }
 0x404   : > { %7735 = vmatprep.mubr.bf16.mxu0 %v16260_v14  ;;  %7848 = vmatprep.mubr.bf16.mxu1 %v16260_v14  ;;  %v4805_v24 = vpop.f32.mrf.mxu0 }
 0x405   : > { %v4918_v38 = vpop.f32.mrf.mxu1  ;;  %v13466_v48 = vadd.f32 %v4916_v10, %v4804_v22  ;;  %v4806_v55 = vadd.f32 %v4805_v24, %v16262_v23  ;;  %v16270_v10 = vld [vmem:[#allocation106_spill] sm:$0xff] }
 0x406   : > { %v4807_v8 = vpop.f32.mrf.mxu0 }
 0x407   : > { %16261 = vst [vmem:[#allocation92_spill] sm:$0xff] %v13466_v48  ;;  %v4920_v39 = vpop.f32.mrf.mxu1  ;;  %v13469_v42 = vadd.f32 %v4918_v38, %v4806_v55  ;;  %v4808_v0 = vadd.f32 %v4807_v8, %v16264_v43  ;;  %v16272_v8 = vld [vmem:[#allocation45_spill] sm:$0xff] }
 0x408   : > { %v13472_v15 = vpop.f32.mrf.mxu0 }
 0x409   : > { %16263 = vst [vmem:[#allocation51_spill] sm:$0xff] %v13469_v42  ;;  %v13474_v49 = vpop.f32.mrf.mxu1  ;;  %v13476_v46 = vadd.f32 %v4920_v39, %v4808_v0 }
 0x40b   : > { %16265 = vst [vmem:[#allocation52_spill] sm:$0xff] %v13476_v46  ;;  %v4959_v45 = vpop.f32.mrf.mxu0  ;;  %v5072_v34 = vpop.f32.mrf.mxu1 }
 0x40c   : > { %v4960_v28 = vadd.f32 %v4959_v45, %v16266_v11 }
 0x40d   : > { %v4961_v40 = vpop.f32.mrf.mxu0  ;;  %v5074_v32 = vpop.f32.mrf.mxu1 }
 0x40e   : > { %v13479_v63 = vadd.f32 %v5072_v34, %v4960_v28  ;;  %v4962_v44 = vadd.f32 %v4961_v40, %v16268_v41  ;;  %v16274_v34 = vld [vmem:[#allocation91_spill] sm:$0xff]  ;;  %v16276_v41 = vld [vmem:[#allocation124_spill] sm:$0xff] }
 0x40f   : > { %v4963_v20 = vpop.f32.mrf.mxu0  ;;  %v5076_v26 = vpop.f32.mrf.mxu1 }
 0x410   : > { %16267 = vst [vmem:[#allocation69_spill] sm:$0xff] %v13479_v63  ;;  %v13482_v25 = vadd.f32 %v5074_v32, %v4962_v44  ;;  %v4964_v7 = vadd.f32 %v4963_v20, %v16270_v10 }
 0x411   : > { %v13485_v22 = vpop.f32.mrf.mxu0  ;;  %v13487_v24 = vpop.f32.mrf.mxu1 }
 0x412   : > { %16269 = vst [vmem:[#allocation67_spill] sm:$0xff] %v13482_v25  ;;  %v13489_v38 = vadd.f32 %v5076_v26, %v4964_v7 }
 0x413   : > { %v4969_v23 = vpop.f32.mrf.mxu0  ;;  %v5082_v55 = vpop.f32.mrf.mxu1 }
 0x414   : > { %16271 = vst [vmem:[#allocation139_spill] sm:$0xff] %v13489_v38  ;;  %v4970_v39 = vadd.f32 %v4969_v23, %v16272_v8  ;;  %v16278_v8 = vld [vmem:[#allocation63_spill] sm:$0xff] }
 0x415   : > { %v4971_v43 = vpop.f32.mrf.mxu0  ;;  %v5084_v0 = vpop.f32.mrf.mxu1 }
 0x416   : > { %v13492_v45 = vadd.f32 %v5082_v55, %v4970_v39  ;;  %v4972_v11 = vadd.f32 %v4971_v43, %v16274_v34  ;;  %v16280_v43 = vld [vmem:[#allocation47_spill] sm:$0xff] }
 0x417   : > { %v4973_v28 = vpop.f32.mrf.mxu0  ;;  %v5086_v40 = vpop.f32.mrf.mxu1 }
 0x418   : > { %16273 = vst [vmem:[#allocation110_spill] sm:$0xff] %v13492_v45  ;;  %v13495_v32 = vadd.f32 %v5084_v0, %v4972_v11  ;;  %v4974_v44 = vadd.f32 %v4973_v28, %v16276_v41  ;;  %v16282_v28 = vld [vmem:[#allocation48_spill] sm:$0xff] }
 0x419   : > { %v13498_v20 = vpop.f32.mrf.mxu0  ;;  %v13500_v26 = vpop.f32.mrf.mxu1 }
 0x41a   : > { %16275 = vst [vmem:[#allocation70_spill] sm:$0xff] %v13495_v32  ;;  %v13502_v10 = vadd.f32 %v5086_v40, %v4974_v44 }
 0x41b   : > { %v4979_v7 = vpop.f32.mrf.mxu0  ;;  %v5092_v23 = vpop.f32.mrf.mxu1 }
 0x41c   : > { %16277 = vst [vmem:[#allocation104_spill] sm:$0xff] %v13502_v10  ;;  %v4980_v38 = vadd.f32 %v4979_v7, %v16278_v8  ;;  %v16284_v8 = vld [vmem:[#allocation84_spill] sm:$0xff] }
 0x41d   : > { %v4981_v55 = vpop.f32.mrf.mxu0  ;;  %v5094_v39 = vpop.f32.mrf.mxu1 }
 0x41e   : > { %v13505_v45 = vadd.f32 %v5092_v23, %v4980_v38  ;;  %v4982_v34 = vadd.f32 %v4981_v55, %v16280_v43  ;;  %v16286_v55 = vld [vmem:[#allocation130_spill] sm:$0xff] }
 0x41f   : > { %v4983_v0 = vpop.f32.mrf.mxu0  ;;  %v5096_v11 = vpop.f32.mrf.mxu1 }
 0x420   : > { %16279 = vst [vmem:[#allocation53_spill] sm:$0xff] %v13505_v45  ;;  %v13508_v32 = vadd.f32 %v5094_v39, %v4982_v34  ;;  %v4984_v41 = vadd.f32 %v4983_v0, %v16282_v28  ;;  %v16288_v0 = vld [vmem:[#allocation85_spill] sm:$0xff] }
 0x421   : > { %v13511_v25 = vpop.f32.mrf.mxu0  ;;  %v13513_v40 = vpop.f32.mrf.mxu1 }
 0x422   : > { %16281 = vst [vmem:[#allocation54_spill] sm:$0xff] %v13508_v32  ;;  %v13515_v44 = vadd.f32 %v5096_v11, %v4984_v41 }
 0x423   : > { %v4989_v10 = vpop.f32.mrf.mxu0  ;;  %v5102_v7 = vpop.f32.mrf.mxu1 }
 0x424   : > { %16283 = vst [vmem:[#allocation61_spill] sm:$0xff] %v13515_v44  ;;  %v4990_v14 = vadd.f32 %v4989_v10, %v16284_v8  ;;  %v16290_v8 = vld [vmem:[#allocation94_spill] sm:$0xff] }
 0x425   : > { %v4991_v38 = vpop.f32.mrf.mxu0  ;;  %v5104_v23 = vpop.f32.mrf.mxu1 }
 0x426   : > { %v13518_v45 = vadd.f32 %v5102_v7, %v4990_v14  ;;  %v4992_v43 = vadd.f32 %v4991_v38, %v16286_v55  ;;  %v16292_v38 = vld [vmem:[#allocation86_spill] sm:$0xff] }
 0x427   : > { %v4993_v39 = vpop.f32.mrf.mxu0  ;;  %v5106_v34 = vpop.f32.mrf.mxu1 }
 0x428   : > { %16285 = vst [vmem:[#allocation114_spill] sm:$0xff] %v13518_v45  ;;  %v13521_v32 = vadd.f32 %v5104_v23, %v4992_v43  ;;  %v4994_v28 = vadd.f32 %v4993_v39, %v16288_v0  ;;  %v16294_v39 = vld [vmem:[#allocation109_spill] sm:$0xff] }
 0x429   : > { %v13524_v63 = vpop.f32.mrf.mxu0  ;;  %v13526_v11 = vpop.f32.mrf.mxu1 }
 0x42a   : > { %16287 = vst [vmem:[#allocation75_spill] sm:$0xff] %v13521_v32  ;;  %v13528_v41 = vadd.f32 %v5106_v34, %v4994_v28  ;;  %v16296_v28 = vld [vmem:[#allocation137_spill] sm:$0xff] }
 0x42b   : > { %v4999_v44 = vpop.f32.mrf.mxu0  ;;  %v5112_v10 = vpop.f32.mrf.mxu1 }
 0x42c   : > { %16289 = vst [vmem:[#allocation71_spill] sm:$0xff] %v13528_v41  ;;  %v5000_v46 = vadd.f32 %v4999_v44, %v16290_v8 }
 0x42d   : > { %v5001_v14 = vpop.f32.mrf.mxu0  ;;  %v5114_v7 = vpop.f32.mrf.mxu1 }
 0x42e   : > { %v13531_v45 = vadd.f32 %v5112_v10, %v5000_v46  ;;  %v5002_v55 = vadd.f32 %v5001_v14, %v16292_v38  ;;  %v16298_v46 = vld [vmem:[#allocation90_spill] sm:$0xff] }
 0x42f   : > { %v5003_v23 = vpop.f32.mrf.mxu0  ;;  %v5116_v43 = vpop.f32.mrf.mxu1 }
 0x430   : > { %16291 = vst [vmem:[#allocation73_spill] sm:$0xff] %v13531_v45  ;;  %v13534_v32 = vadd.f32 %v5114_v7, %v5002_v55  ;;  %v5004_v0 = vadd.f32 %v5003_v23, %v16294_v39  ;;  %v16300_v7 = vld [vmem:[#allocation64_spill] sm:$0xff] }
 0x431   : > { %v5005_v42 = vpop.f32.mrf.mxu0  ;;  %v5118_v48 = vpop.f32.mrf.mxu1 }
 0x432   : > { %16293 = vst [vmem:[#allocation56_spill] sm:$0xff] %v13534_v32  ;;  %v13537_v34 = vadd.f32 %v5116_v43, %v5004_v0  ;;  %v5006_v41 = vadd.f32 %v5005_v42, %v16296_v28  ;;  %v16301_v43 = vld [vmem:[#allocation105_spill] sm:$0xff] }
 0x433   : > { %v5009_v51 = vpop.f32.mrf.mxu0  ;;  %v5122_v44 = vpop.f32.mrf.mxu1 }
 0x434   : > { %16295 = vst [vmem:[#allocation55_spill] sm:$0xff] %v13537_v34  ;;  %v13540_v8 = vadd.f32 %v5118_v48, %v5006_v41  ;;  %v5010_v10 = vadd.f32 %v5009_v51, %v16298_v46  ;;  %v16303_v48 = vld [vmem:[#allocation49_spill] sm:$0xff] }
 0x435   : > { %v5011_v45 = vpop.f32.mrf.mxu0  ;;  %v5124_v14 = vpop.f32.mrf.mxu1 }
 0x436   : > { %16297 = vst [vmem:[#allocation77_spill] sm:$0xff] %v13540_v8  ;;  %v13543_v38 = vadd.f32 %v5122_v44, %v5010_v10  ;;  %v5012_v55 = vadd.f32 %v5011_v45, %v16300_v7  ;;  %v16305_v44 = vld [vmem:[#allocation50_spill] sm:$0xff] }
 0x437   : > { %v5013_v32 = vpop.f32.mrf.mxu0  ;;  %v5126_v23 = vpop.f32.mrf.mxu1 }
 0x438   : > { %16299 = vst [vmem:[#allocation78_spill] sm:$0xff] %v13543_v38  ;;  %v13546_v39 = vadd.f32 %v5124_v14, %v5012_v55  ;;  %v5014_v0 = vadd.f32 %v5013_v32, %v16301_v43 }
 0x439   : > { %v5015_v34 = vpop.f32.mrf.mxu0  ;;  %v5128_v42 = vpop.f32.mrf.mxu1 }
 0x43a   : > { %v13549_v28 = vadd.f32 %v5126_v23, %v5014_v0  ;;  %v5016_v41 = vadd.f32 %v5015_v34, %v16303_v48 }
 0x43b   : > { %v5019_v8 = vpop.f32.mrf.mxu0  ;;  %v5132_v51 = vpop.f32.mrf.mxu1 }
 0x43c   : > { %16302 = vst [vmem:[#allocation58_spill] sm:$0xff] %v13549_v28  ;;  %v13552_v46 = vadd.f32 %v5128_v42, %v5016_v41  ;;  %v5020_v10 = vadd.f32 %v5019_v8, %v16305_v44  ;;  %v16309_v42 = vld [vmem:[#allocation131_spill] sm:$0xff] }
 0x43d   : > { %v5021_v38 = vpop.f32.mrf.mxu0  ;;  %v5134_v45 = vpop.f32.mrf.mxu1 }
 0x43e   : > { %16304 = vst [vmem:[#allocation76_spill] sm:$0xff] %v13552_v46  ;;  %v13555_v7 = vadd.f32 %v5132_v51, %v5020_v10  ;;  %v5022_v14 = vadd.f32 %v5021_v38, %v13328_v35 }
 0x43f   : > { %v5023_v55 = vpop.f32.mrf.mxu0  ;;  %v5136_v32 = vpop.f32.mrf.mxu1 }
 0x440   : > { %16306 = vst [vmem:[#allocation117_spill] sm:$0xff] %v13555_v7  ;;  %v13558_v43 = vadd.f32 %v5134_v45, %v5022_v14  ;;  %v5024_v23 = vadd.f32 %v5023_v55, %v13330_v21 }
 0x441   : > { %v5025_v0 = vpop.f32.mrf.mxu0  ;;  %v5138_v34 = vpop.f32.mrf.mxu1 }
 0x442   : > { %16307 = vst [vmem:[#allocation57_spill] sm:$0xff] %v13558_v43  ;;  %v13561_v48 = vadd.f32 %v5136_v32, %v5024_v23  ;;  %v5026_v41 = vadd.f32 %v5025_v0, %v16309_v42  ;;  %v16313_v32 = vld [vmem:[#allocation111_spill] sm:$0xff] }
 0x443   : > { %v5029_v46 = vpop.f32.mrf.mxu0  ;;  %v5142_v8 = vpop.f32.mrf.mxu1 }
 0x444   : > { %16308 = vst [vmem:[#allocation108_spill] sm:$0xff] %v13561_v48  ;;  %v13564_v44 = vadd.f32 %v5138_v34, %v5026_v41  ;;  %v5030_v51 = vadd.f32 %v5029_v46, %v13336_v19  ;;  %v16315_v34 = vld [vmem:[#allocation68_spill] sm:$0xff] }
 0x445   : > { %v5031_v10 = vpop.f32.mrf.mxu0  ;;  %v5144_v35 = vpop.f32.mrf.mxu1 }
 0x446   : > { %16310 = vst [vmem:[#allocation112_spill] sm:$0xff] %v13564_v44  ;;  %v13567_v38 = vadd.f32 %v5142_v8, %v5030_v51  ;;  %v5032_v45 = vadd.f32 %v5031_v10, %v13340_v36  ;;  %v13578_v51 = vld [vmem:[#allocation11] ss:$2 sm:$0xf] }
 0x447   : > { %v5033_v14 = vpop.f32.mrf.mxu0  ;;  %v5146_v21 = vpop.f32.mrf.mxu1 }
 0x448   : > { %16311 = vst [vmem:[#allocation119_spill] sm:$0xff] %v13567_v38  ;;  %v13570_v55 = vadd.f32 %v5144_v35, %v5032_v45  ;;  %v5034_v23 = vadd.f32 %v5033_v14, %v16313_v32  ;;  %v16317_v32 = vld [vmem:[#allocation140_spill] sm:$0xff] }
 0x449   : > { %v5035_v48 = vpop.f32.mrf.mxu0  ;;  %v5148_v0 = vpop.f32.mrf.mxu1 }
 0x44a   : > { %16312 = vst [vmem:[#allocation79_spill] sm:$0xff] %v13570_v55  ;;  %v13573_v42 = vadd.f32 %v5146_v21, %v5034_v23  ;;  %v5036_v41 = vadd.f32 %v5035_v48, %v16315_v34  ;;  %v13583_v21 = vrot.slane %v13578_v51, %v16317_v32  ;;  %v6559_v34 = vld [vmem:[#allocation13] sm:$0x18] }
 0x44b   : > { %v5985_v44 = vpop.f32.mrf.mxu0  ;;  %v6098_v19 = vpop.f32.mrf.mxu1 }
 0x44c   : > { %16314 = vst [vmem:[#allocation59_spill] sm:$0xff] %v13573_v42  ;;  %v13576_v46 = vadd.f32 %v5148_v0, %v5036_v41  ;;  %v6099_v8 = vadd.f32 %v6098_v19, %v5985_v44  ;;  %v16318_v0 = vld [vmem:[#allocation144_spill] sm:$0xff]  ;;  %v16321_v42 = vld [vmem:[#allocation145_spill] sm:$0xff] }
 0x44d   : > { %v5987_v36 = vpop.f32.mrf.mxu0  ;;  %v6100_v10 = vpop.f32.mrf.mxu1  ;;  %v13588_v44 = vrot.slane %v13578_v51, %v16318_v0  ;;  %v13596_v38 = vrot.slane %v6559_v34, %v16321_v42 }
 0x44e   : > { %16316 = vst [vmem:[#allocation60_spill] sm:$0xff] %v13576_v46  ;;  %v6403_v35 = vadd.f32 %v6099_v8, %v13351_v6  ;;  %v6101_v45 = vadd.f32 %v6100_v10, %v5987_v36  ;;  %v16319_v8 = vld [vmem:[#allocation100_spill] sm:$0xff]  ;;  %v16320_v10 = vld [vmem:[#allocation41_spill] sm:$0xff] }
 0x44f   : > { %v5989_v55 = vpop.f32.mrf.mxu0  ;;  %v6102_v14 = vpop.f32.mrf.mxu1  ;;  %v4780_v36 = vadd.f32 %v13421_v27, %v16319_v8  ;;  %v4790_v32 = vadd.f32 %v13438_v17, %v16320_v10  ;;  %v6560_v27 = vld [vmem:[#allocation13 + $0x8] sm:$0x18] }
 0x450   : > { %v6404_v48 = vadd.f32 %v6101_v45, %v13354_v56  ;;  %v6103_v23 = vadd.f32 %v6102_v14, %v5989_v55  ;;  %v16322_v56 = vld [vmem:[#allocation20_spill] sm:$0xff]  ;;  %v13602_v0 = vadd.f32 %v13583_v21, %v6403_v35  ;;  %v16326_v8 = vld [vmem:[#allocation125_spill] sm:$0xff] }
 0x451   : > { %v5991_v41 = vpop.f32.mrf.mxu0  ;;  %v6104_v19 = vpop.f32.mrf.mxu1  ;;  %v13599_v55 = vsub.s32 4, %v16322_v56  ;;  %v4810_v10 = vadd.f32 %v13472_v15, %v16326_v8  ;;  %v16327_v56 = vld [vmem:[#allocation46_spill] sm:$0xff] }
 0x452   : > { %v6407_v46 = vadd.f32 %v6103_v23, %v13357_v31  ;;  %v6105_v6 = vadd.f32 %v6104_v19, %v5991_v41  ;;  %16323 = vst [vmem:[#allocation116_spill] sm:$0xff] %v13602_v0  ;;  %v16325_v19 = vld [vmem:[#allocation43_spill] sm:$0xff]  ;;  %v4966_v43 = vadd.f32 %v13485_v22, %v16327_v56  ;;  %v13615_v7 = vadd.f32 %v13588_v44, %v6404_v48 }
 0x453   : > { %v5995_v45 = vpop.f32.mrf.mxu0  ;;  %v6108_v14 = vpop.f32.mrf.mxu1  ;;  %v4800_v17 = vadd.f32 %v13455_v16, %v16325_v19  ;;  %v13629_v22 = vrot.slane %v6560_v27, %v16321_v42  ;;  %v13632_v48 = vrot.slane %v6560_v27, %v13599_v55  ;;  %v13647_v27 = vadd.f32 %v13474_v49, %v4810_v10  ;;  %v16333_v10 = vld [vmem:[#allocation141_spill] sm:$0xff] }
 0x454   : > { %v13605_v31 = vadd.f32 %v13583_v21, %v6407_v46  ;;  %v6408_v23 = vadd.f32 %v6105_v6, %v13362_v37  ;;  %v6109_v41 = vadd.f32 %v6108_v14, %v5995_v45  ;;  %16328 = vst [vmem:[#allocation80_spill] sm:$0xff] %v13615_v7  ;;  %v16330_v45 = vld [vmem:[#allocation101_spill] sm:$0xff]  ;;  %v13626_v14 = vrot.slane %v6559_v34, %v13599_v55 }
 0x455   : > { %v5997_v35 = vpop.f32.mrf.mxu0  ;;  %v6110_v28 = vpop.f32.mrf.mxu1  ;;  %v4976_v15 = vadd.f32 %v13498_v20, %v16330_v45  ;;  %16331 = vst [vmem:[#allocation147_spill] sm:$0xff] %v13629_v22  ;;  %v13644_v34 = vadd.f32 %v13457_v4, %v4800_v17 }
 0x456   : > { %16324 = vst [vmem:[#allocation120_spill] sm:$0xff] %v13605_v31  ;;  %v6564_v46 = vadd.f32 %v13605_v31, %v13602_v0  ;;  %v13620_v37 = vadd.f32 %v13588_v44, %v6408_v23  ;;  %v6411_v6 = vadd.f32 %v6109_v41, %v13367_v60  ;;  %v6111_v16 = vadd.f32 %v6110_v28, %v5997_v35 }
 0x457   : > { %v5999_v56 = vpop.f32.mrf.mxu0  ;;  %v6112_v19 = vpop.f32.mrf.mxu1  ;;  %v13635_v23 = vadd.f32 %v13423_v12, %v4780_v36  ;;  %v13641_v28 = vadd.f32 %v13440_v53, %v4790_v32  ;;  %v13650_v12 = vadd.f32 %v13487_v24, %v4966_v43  ;;  %v16332_v53 = vld [vmem:[#allocation132_spill] sm:$0xff]  ;;  %v9657_v43 = vld [vmem:[#allocation8 + $0xe8] ss:$16 sps:$4 sm:$0xff]  }
 0x458   : > { %16329 = vst [vmem:[#allocation146_spill] sm:$0xff] %v13620_v37  ;;  %v6565_v8 = vrot.slane %v6564_v46, 4  ;;  %v6571_v60 = vadd.f32 %v13620_v37, %v13615_v7  ;;  %v6412_v20 = vadd.f32 %v6111_v16, %v13370_v13  ;;  %v6113_v41 = vadd.f32 %v6112_v19, %v5999_v56  ;;  %v9654_v56 = vld [vmem:[#allocation8 + $0xe0] ss:$16 sps:$4 sm:$0xff]   ;;  %v9656_v24 = vld [vmem:[#allocation8 + $0xe4] ss:$16 sps:$4 sm:$0xff]  }
 0x459   : > { %v6001_v35 = vpop.f32.mrf.mxu0  ;;  %v6114_v45 = vpop.f32.mrf.mxu1  ;;  %v13653_v13 = vadd.f32 %v13500_v26, %v4976_v15  ;;  %v4986_v32 = vadd.f32 %v13511_v25, %v16332_v53  ;;  %v13660_v16 = vrot.slane %v13578_v51, %v16333_v10  ;;  %v6561_v15 = vld [vmem:[#allocation13 + $0x10] sm:$0x18]  ;;  %v13664_v25 = vadd.f32 %v13583_v21, %v6411_v6  ;;  %7703 = vmatprep.subr.bf16.mxu0 %v9656_v24 }
 0x45a   : > { %v6566_v36 = vadd.f32 %v6565_v8, %v6564_v46  ;;  %v6572_v31 = vrot.slane %v6571_v60, 4  ;;  %v6115_v37 = vadd.f32 %v6114_v45, %v6001_v35  ;;  %v6415_v4 = vadd.f32 %v6113_v41, %v13373_v57  ;;  %v9659_v35 = vld [vmem:[#allocation8 + $0xec] ss:$16 sps:$4 sm:$0xff]   ;;  %7704 = vmatpush1.bf16.msra.mxu0 %v9654_v56 }
 0x45b   : > { %v6005_v17 = vpop.f32.mrf.mxu0  ;;  %v6118_v49 = vpop.f32.mrf.mxu1  ;;  %16334 = vst [vmem:[#allocation121_spill] sm:$0xff] %v13664_v25  ;;  %v13667_v57 = vadd.f32 %v13588_v44, %v6412_v20  ;;  %v13674_v7 = vrot.slane %v13578_v51, %v16321_v42  ;;  %7816 = vmatprep.subr.bf16.mxu1 %v9659_v35 }
 0x45c   : > { %v6567_v46 = vrot.slane %v6566_v36, 2  ;;  %v6573_v19 = vadd.f32 %v6572_v31, %v6571_v60  ;;  %v6416_v8 = vadd.f32 %v6115_v37, %v13378_v1  ;;  %v6119_v26 = vadd.f32 %v6118_v49, %v6005_v17  ;;  %7817 = vmatpush1.bf16.msra.mxu1 %v9657_v43 }
 0x45d   : > { %16335 = vst [vmem:[#allocation81_spill] sm:$0xff] %v13667_v57  ;;  %v13670_v41 = vadd.f32 %v13583_v21, %v6415_v4  ;;  %v6007_v45 = vpop.f32.mrf.mxu0  ;;  %v6120_v53 = vpop.f32.mrf.mxu1  ;;  %v13681_v60 = vadd.f32 %v13513_v40, %v4986_v32  ;;  %v13686_v49 = vrot.slane %v6561_v15, %v16321_v42  ;;  %v6562_v40 = vld [vmem:[#allocation13 + $0x18] sm:$0x18] }
 0x45e   : > { %v6568_v1 = vadd.f32 %v6567_v46, %v6566_v36  ;;  %v6574_v31 = vrot.slane %v6573_v19, 2  ;;  %v13677_v37 = vadd.f32 %v13588_v44, %v6416_v8  ;;  %v6419_v6 = vadd.f32 %v6119_v26, %v13383_v29  ;;  %v16338_v36 = vld [vmem:[#allocation66_spill] sm:$0xff] }
 0x45f   : > { %16336 = vst [vmem:[#allocation122_spill] sm:$0xff] %v13670_v41  ;;  %v6592_v20 = vadd.f32 %v13670_v41, %v13664_v25  ;;  %v6121_v4 = vadd.f32 %v6120_v53, %v6007_v45  ;;  %v6009_v17 = vpop.f32.mrf.mxu0  ;;  %v6122_v51 = vpop.f32.mrf.mxu1  ;;  %v4996_v24 = vadd.f32 %v13524_v63, %v16338_v36  ;;  %v13694_v53 = vrot.slane %v6561_v15, %v13599_v55 }
 0x460   : > { %16337 = vst [vmem:[#allocation82_spill] sm:$0xff] %v13677_v37  ;;  %v6569_v46 = vrot.slane %v6568_v1, 1  ;;  %v6575_v29 = vadd.f32 %v6574_v31, %v6573_v19  ;;  %v6599_v56 = vadd.f32 %v13677_v37, %v13667_v57  ;;  %v6123_v26 = vadd.f32 %v6122_v51, %v6009_v17 }
 0x461   : > { %v6593_v32 = vrot.slane %v6592_v20, 4  ;;  %v6420_v8 = vadd.f32 %v6121_v4, %v13386_v54  ;;  %v6011_v35 = vpop.f32.mrf.mxu0  ;;  %v6124_v45 = vpop.f32.mrf.mxu1  ;;  %v13698_v37 = vrot.slane %v6562_v40, %v16321_v42  ;;  %v13701_v54 = vrot.slane %v6562_v40, %v13599_v55 }
 0x462   : > { %v6570_v41 = vadd.f32 %v6569_v46, %v6568_v1  ;;  %v6576_v43 = vrot.slane %v6575_v29, 1  ;;  %v6600_v25 = vrot.slane %v6599_v56, 4  ;;  %v6125_v0 = vadd.f32 %v6124_v45, %v6011_v35 }
 0x463   : > { %v6594_v63 = vadd.f32 %v6593_v32, %v6592_v20  ;;  %v6423_v19 = vadd.f32 %v6123_v26, %v13389_v3  ;;  %v6015_v31 = vpop.f32.mrf.mxu0  ;;  %v6128_v36 = vpop.f32.mrf.mxu1  ;;  %v13704_v4 = vadd.f32 %v13526_v11, %v4996_v24  ;;  %v13707_v1 = vadd.f32 %v13583_v21, %v6419_v6 }
 0x464   : > { %v6577_v15 = vadd.f32 %v6576_v43, %v6575_v29  ;;  %v6601_v17 = vadd.f32 %v6600_v25, %v6599_v56  ;;  %v6424_v3 = vadd.f32 %v6125_v0, %v13394_v50  ;;  %v6129_v46 = vadd.f32 %v6128_v36, %v6015_v31 }
 0x465   : > { %16339 = vst [vmem:[#allocation123_spill] sm:$0xff] %v13707_v1  ;;  %v6595_v51 = vrot.slane %v6594_v63, 2  ;;  %v13710_v20 = vadd.f32 %v13583_v21, %v6423_v19  ;;  %v6017_v32 = vpop.f32.mrf.mxu0  ;;  %v6130_v26 = vpop.f32.mrf.mxu1  ;;  %v6825_v55 = vmul.f32 %v13596_v38, %v6570_v41  ;;  %v13715_v11 = vadd.f32 %v13588_v44, %v6420_v8 }
 0x466   : > { %v6602_v40 = vrot.slane %v6601_v17, 2  ;;  %v6131_v25 = vadd.f32 %v6130_v26, %v6017_v32  ;;  %v13720_v29 = vadd.f32 %v13588_v44, %v6424_v3  ;;  %v6427_v50 = vadd.f32 %v6129_v46, %v13399_v33 }
 0x467   : > { %16340 = vst [vmem:[#allocation83_spill] sm:$0xff] %v13710_v20  ;;  %16341 = vst [vmem:[#allocation126_spill] sm:$0xff] %v13715_v11  ;;  %v6596_v24 = vadd.f32 %v6595_v51, %v6594_v63  ;;  %v6620_v6 = vadd.f32 %v13710_v20, %v13707_v1  ;;  %v6019_v0 = vpop.f32.mrf.mxu0  ;;  %v6132_v56 = vpop.f32.mrf.mxu1  ;;  %v7008_v35 = vmul.f32 %v13626_v14, %v6570_v41  ;;  %v9662_v1 = vld [vmem:[#allocation8 + $0xc4] ss:$16 sps:$4 sm:$0xff]  }
 0x468   : > { %16342 = vst [vmem:[#allocation30_spill] sm:$0xff] %v13720_v29  ;;  %v6603_v45 = vadd.f32 %v6602_v40, %v6601_v17  ;;  %v6428_v43 = vadd.f32 %v6131_v25, %v13402_v59  ;;  %v6133_v19 = vadd.f32 %v6132_v56, %v6019_v0  ;;  %v6826_v8 = vmul.f32 %v13629_v22, %v6577_v15 }
 0x469   : > { %v6597_v31 = vrot.slane %v6596_v24, 1  ;;  %v6621_v63 = vrot.slane %v6620_v6, 4  ;;  %v6627_v36 = vadd.f32 %v13720_v29, %v13715_v11  ;;  %v6021_v51 = vpop.f32.mrf.mxu0  ;;  %v6134_v3 = vpop.f32.mrf.mxu1  ;;  %v13729_v33 = vadd.f32 %v13583_v21, %v6427_v50  ;;  %7705 = vmatprep.subr.bf16.mxu0 %v9662_v1 }
 0x46a   : > { %v6604_v32 = vrot.slane %v6603_v45, 1  ;;  %v6431_v46 = vadd.f32 %v6133_v19, %v13405_v58  ;;  %v6135_v41 = vadd.f32 %v6134_v3, %v6021_v51  ;;  %v13733_v40 = vadd.f32 %v13588_v44, %v6428_v43 }
 0x46b   : > { %16343 = vst [vmem:[#allocation88_spill] sm:$0xff] %v13729_v33  ;;  %v6598_v17 = vadd.f32 %v6597_v31, %v6596_v24  ;;  %v6622_v26 = vadd.f32 %v6621_v63, %v6620_v6  ;;  %v6628_v59 = vrot.slane %v6627_v36, 4  ;;  %v6025_v25 = vpop.f32.mrf.mxu0  ;;  %v6138_v0 = vpop.f32.mrf.mxu1 }
 0x46c   : > { %16344 = vst [vmem:[#allocation129_spill] sm:$0xff] %v13733_v40  ;;  %v6605_v56 = vadd.f32 %v6604_v32, %v6603_v45  ;;  %v13736_v57 = vadd.f32 %v13583_v21, %v6431_v46  ;;  %v6432_v29 = vadd.f32 %v6135_v41, %v13410_v52  ;;  %v6139_v11 = vadd.f32 %v6138_v0, %v6025_v25 }
 0x46d   : > { %v6829_v50 = vmul.f32 %v13596_v38, %v6598_v17  ;;  %v7012_v58 = vmul.f32 %v13626_v14, %v6598_v17  ;;  %v6623_v19 = vrot.slane %v6622_v26, 2  ;;  %v6629_v24 = vadd.f32 %v6628_v59, %v6627_v36  ;;  %v6027_v6 = vpop.f32.mrf.mxu0  ;;  %v6140_v31 = vpop.f32.mrf.mxu1 }
 0x46e   : > { %16345 = vst [vmem:[#allocation29_spill] sm:$0xff] %v13736_v57  ;;  %v6830_v43 = vmul.f32 %v13629_v22, %v6605_v56  ;;  %v7013_v63 = vmul.f32 %v13632_v48, %v6605_v56  ;;  %v6648_v45 = vadd.f32 %v13736_v57, %v13729_v33  ;;  %v13746_v51 = vadd.f32 %v13588_v44, %v6432_v29 }
 0x46f   : > { %v6889_v52 = vrot.slane %v6829_v50, 7  ;;  %v7072_v3 = vrot.slane %v7012_v58, 7  ;;  %v6624_v32 = vadd.f32 %v6623_v19, %v6622_v26  ;;  %v6630_v46 = vrot.slane %v6629_v24, 2  ;;  %v6029_v41 = vpop.f32.mrf.mxu0  ;;  %v6142_v17 = vpop.f32.mrf.mxu1 }
 0x470   : > { %16346 = vst [vmem:[#allocation31_spill] sm:$0xff] %v13746_v51  ;;  %v7009_v36 = vmul.f32 %v13632_v48, %v6577_v15  ;;  %v6910_v59 = vrot.slane %v6830_v43, 7  ;;  %v6649_v25 = vrot.slane %v6648_v45, 4  ;;  %v6655_v0 = vadd.f32 %v13746_v51, %v13733_v40  ;;  %v9660_v43 = vld [vmem:[#allocation8 + $0xc0] ss:$16 sps:$4 sm:$0xff]  }
 0x471   : > { %v13752_v56 = vsel %vm6890_vm2, %v6889_v52, %v6825_v55  ;;  %v7086_v57 = vrot.slane %v7013_v63, 7  ;;  %v6625_v33 = vrot.slane %v6624_v32, 1  ;;  %v6631_v29 = vadd.f32 %v6630_v46, %v6629_v24  ;;  %v6031_v20 = vpop.f32.mrf.mxu0  ;;  %v6144_v50 = vpop.f32.mrf.mxu1  ;;  %v9663_v24 = vld [vmem:[#allocation8 + $0xc8] ss:$16 sps:$4 sm:$0xff]   ;;  %v9665_v46 = vld [vmem:[#allocation8 + $0xcc] ss:$16 sps:$4 sm:$0xff]   ;;  %7706 = vmatpush1.bf16.msra.mxu0 %v9660_v43 }
 0x472   : > { %16347 = vst [vmem:[#allocation102_spill] sm:$0xff] %v13752_v56  ;;  %v13755_v26 = vsel %vm6890_vm2, %v7072_v3, %v7008_v35  ;;  %v13758_v58 = vsel %vm6890_vm2, %v6910_v59, %v6826_v8  ;;  %v6650_v15 = vadd.f32 %v6649_v25, %v6648_v45  ;;  %v6656_v19 = vrot.slane %v6655_v0, 4  ;;  %v9668_v8 = vld [vmem:[#allocation8 + $0xa4] ss:$16 sps:$4 sm:$0xff]   ;;  %7818 = vmatprep.subr.bf16.mxu1 %v9665_v46 }
 0x473   : > { %16348 = vst [vmem:[#allocation32_spill] sm:$0xff] %v13758_v58  ;;  %v6626_v42 = vadd.f32 %v6625_v33, %v6624_v32  ;;  %v6632_v51 = vrot.slane %v6631_v29, 1  ;;  %v6435_v55 = vadd.f32 %v6139_v11, %v13415_v9  ;;  %v6141_v52 = vadd.f32 %v6140_v31, %v6027_v6  ;;  %v6035_v63 = vpop.f32.mrf.mxu0  ;;  %v6148_v40 = vpop.f32.mrf.mxu1  ;;  %v9671_v31 = vld [vmem:[#allocation8 + $0xac] ss:$16 sps:$4 sm:$0xff]   ;;  %7819 = vmatpush1.bf16.msra.mxu1 %v9663_v24 }
 0x474   : > { %v6651_v10 = vrot.slane %v6650_v15, 2  ;;  %v6657_v56 = vadd.f32 %v6656_v19, %v6655_v0  ;;  %v6143_v35 = vadd.f32 %v6142_v17, %v6029_v41  ;;  %v6145_v3 = vadd.f32 %v6144_v50, %v6031_v20  ;;  %v9669_v41 = vld [vmem:[#allocation8 + $0xa8] ss:$16 sps:$4 sm:$0xff]   ;;  %7707 = vmatprep.subr.bf16.mxu0 %v9668_v8  ;;  %7820 = vmatprep.subr.bf16.mxu1 %v9671_v31  ;;  %v9677_v19 = vld [vmem:[#allocation8 + $0x8c] ss:$16 sps:$4 sm:$0xff]  }
 0x475   : > { %v13762_v45 = vsel %vm6890_vm2, %v7086_v57, %v7009_v36  ;;  %v13765_v59 = vmul.f32 %v13596_v38, %v6626_v42  ;;  %v13768_v33 = vmul.f32 %v13626_v14, %v6626_v42  ;;  %v6633_v9 = vadd.f32 %v6632_v51, %v6631_v29  ;;  %v6037_v11 = vpop.f32.mrf.mxu0  ;;  %v6150_v6 = vpop.f32.mrf.mxu1  ;;  %v9666_v57 = vld [vmem:[#allocation8 + $0xa0] ss:$16 sps:$4 sm:$0xff]   ;;  %v16433_v58 = vld [vmem:[#allocation117_spill] sm:$0xff] }
 0x476   : > { %v6652_v32 = vadd.f32 %v6651_v10, %v6650_v15  ;;  %v6658_v25 = vrot.slane %v6657_v56, 2  ;;  %v6436_v20 = vadd.f32 %v6141_v52, %v13418_v5  ;;  %v6439_v1 = vadd.f32 %v6143_v35, %v13425_v18  ;;  %v9674_v5 = vld [vmem:[#allocation8 + $0x84] ss:$16 sps:$4 sm:$0xff]   ;;  %7708 = vmatpush1.bf16.msra.mxu0 %v9666_v57 }
 0x477   : > { %16349 = vst [vmem:[#allocation115_spill] sm:$0xff] %v13765_v59  ;;  %v13775_v51 = vmul.f32 %v13629_v22, %v6633_v9  ;;  %v13778_v36 = vadd.f32 %v13583_v21, %v6435_v55  ;;  %v6039_v10 = vpop.f32.mrf.mxu0  ;;  %v6152_v0 = vpop.f32.mrf.mxu1  ;;  %v13781_v18 = vmul.f32 %v13632_v48, %v6633_v9  ;;  %v6440_v55 = vadd.f32 %v6145_v3, %v13635_v23  ;;  %v9680_v3 = vld [vmem:[#allocation8 + $0x64] ss:$16 sps:$4 sm:$0xff]  }
 0x478   : > { %v6653_v29 = vrot.slane %v6652_v32, 1  ;;  %v6659_v50 = vadd.f32 %v6658_v25, %v6657_v56  ;;  %v13784_v15 = vadd.f32 %v13583_v21, %v6439_v1  ;;  %v13788_v52 = vadd.f32 %v13588_v44, %v6436_v20  ;;  %7821 = vmatpush1.bf16.msra.mxu1 %v9669_v41  ;;  %v9672_v25 = vld [vmem:[#allocation8 + $0x80] ss:$16 sps:$4 sm:$0xff]   ;;  %v9675_v1 = vld [vmem:[#allocation8 + $0x88] ss:$16 sps:$4 sm:$0xff]   ;;  %7709 = vmatprep.subr.bf16.mxu0 %v9674_v5 }
 0x479   : > { %16350 = vst [vmem:[#allocation118_spill] sm:$0xff] %v13775_v51  ;;  %16351 = vst [vmem:[#allocation62_spill] sm:$0xff] %v13778_v36  ;;  %v6149_v24 = vadd.f32 %v6148_v40, %v6035_v63  ;;  %v6041_v46 = vpop.f32.mrf.mxu0  ;;  %v6154_v35 = vpop.f32.mrf.mxu1  ;;  %v6151_v56 = vadd.f32 %v6150_v6, %v6037_v11  ;;  %v13794_v43 = vadd.f32 %v13588_v44, %v6440_v55  ;;  %7822 = vmatprep.subr.bf16.mxu1 %v9677_v19  ;;  %v9678_v19 = vld [vmem:[#allocation8 + $0x60] ss:$16 sps:$4 sm:$0xff]   ;;  %v9686_v41 = vld [vmem:[#allocation8 + $0x44] ss:$16 sps:$4 sm:$0xff]  }
 0x47a   : > { %16352 = vst [vmem:[#allocation33_spill] sm:$0xff] %v13784_v15  ;;  %16353 = vst [vmem:[#allocation34_spill] sm:$0xff] %v13788_v52  ;;  %v6654_v8 = vadd.f32 %v6653_v29, %v6652_v32  ;;  %v6660_v31 = vrot.slane %v6659_v50, 1  ;;  %v6676_v9 = vadd.f32 %v13784_v15, %v13778_v36  ;;  %v6153_v17 = vadd.f32 %v6152_v0, %v6039_v10  ;;  %v9683_v32 = vld [vmem:[#allocation8 + $0x6c] ss:$16 sps:$4 sm:$0xff]  }
 0x47b   : > { %16354 = vst [vmem:[#allocation93_spill] sm:$0xff] %v13794_v43  ;;  %v6443_v20 = vadd.f32 %v6149_v24, %v13432_v62  ;;  %v6155_v23 = vadd.f32 %v6154_v35, %v6041_v46  ;;  %v6045_v40 = vpop.f32.mrf.mxu0  ;;  %v6158_v63 = vpop.f32.mrf.mxu1  ;;  %v6683_v62 = vadd.f32 %v13794_v43, %v13788_v52  ;;  %v6444_v10 = vadd.f32 %v6151_v56, %v13435_v2  ;;  %v9681_v24 = vld [vmem:[#allocation8 + $0x68] ss:$16 sps:$4 sm:$0xff]   ;;  %v9689_v46 = vld [vmem:[#allocation8 + $0x4c] ss:$16 sps:$4 sm:$0xff]  }
 0x47c   : > { %v13798_v29 = vmul.f32 %v13596_v38, %v6654_v8  ;;  %v13801_v11 = vmul.f32 %v13626_v14, %v6654_v8  ;;  %v6661_v6 = vadd.f32 %v6660_v31, %v6659_v50  ;;  %v6677_v57 = vrot.slane %v6676_v9, 4  ;;  %7710 = vmatpush1.bf16.msra.mxu0 %v9672_v25  ;;  %7823 = vmatpush1.bf16.msra.mxu1 %v9675_v1  ;;  %v9684_v15 = vld [vmem:[#allocation8 + $0x40] ss:$16 sps:$4 sm:$0xff]  }
 0x47d   : > { %v6447_v0 = vadd.f32 %v6153_v17, %v13442_v61  ;;  %v6047_v5 = vpop.f32.mrf.mxu0  ;;  %v6160_v55 = vpop.f32.mrf.mxu1  ;;  %v13814_v50 = vadd.f32 %v13583_v21, %v6443_v20  ;;  %v6684_v61 = vrot.slane %v6683_v62, 4  ;;  %7711 = vmatprep.subr.bf16.mxu0 %v9680_v3  ;;  %7824 = vmatprep.subr.bf16.mxu1 %v9683_v32  ;;  %v13824_v25 = vadd.f32 %v13588_v44, %v6444_v10 }
 0x47e   : > { %16355 = vst [vmem:[#allocation136_spill] sm:$0xff] %v13798_v29  ;;  %v13811_v35 = vmul.f32 %v13629_v22, %v6661_v6  ;;  %v13817_v8 = vmul.f32 %v13632_v48, %v6661_v6  ;;  %v6678_v2 = vadd.f32 %v6677_v57, %v6676_v9  ;;  %v6448_v1 = vadd.f32 %v6155_v23, %v13641_v28 }
 0x47f   : > { %16357 = vst [vmem:[#allocation148_spill] sm:$0xff] %v13814_v50  ;;  %v13820_v17 = vadd.f32 %v13583_v21, %v6447_v0  ;;  %v6049_v31 = vpop.f32.mrf.mxu0  ;;  %v6162_v56 = vpop.f32.mrf.mxu1  ;;  %16359 = vst [vmem:[#allocation72_spill] sm:$0xff] %v13824_v25  ;;  %v6159_v6 = vadd.f32 %v6158_v63, %v6045_v40  ;;  %v6685_v57 = vadd.f32 %v6684_v61, %v6683_v62 }
 0x480   : > { %16356 = vst [vmem:[#allocation103_spill] sm:$0xff] %v13811_v35  ;;  %v6679_v9 = vrot.slane %v6678_v2, 2  ;;  %v6161_v42 = vadd.f32 %v6160_v55, %v6047_v5  ;;  %v13830_v32 = vadd.f32 %v13588_v44, %v6448_v1  ;;  %v6163_v52 = vadd.f32 %v6162_v56, %v6049_v31  ;;  %7712 = vmatpush1.bf16.msra.mxu0 %v9678_v19  ;;  %v9687_v5 = vld [vmem:[#allocation8 + $0x48] ss:$16 sps:$4 sm:$0xff]   ;;  %v9692_v55 = vld [vmem:[#allocation8 + $0x24] ss:$16 sps:$4 sm:$0xff]  }
 0x481   : > { %16358 = vst [vmem:[#allocation36_spill] sm:$0xff] %v13820_v17  ;;  %v6704_v0 = vadd.f32 %v13820_v17, %v13814_v50  ;;  %v6051_v43 = vpop.f32.mrf.mxu0  ;;  %v6164_v3 = vpop.f32.mrf.mxu1  ;;  %v6451_v20 = vadd.f32 %v6159_v6, %v13449_v47  ;;  %v6686_v23 = vrot.slane %v6685_v57, 2  ;;  %7825 = vmatpush1.bf16.msra.mxu1 %v9681_v24  ;;  %7713 = vmatprep.subr.bf16.mxu0 %v9686_v41  ;;  %v9695_v31 = vld [vmem:[#allocation8 + $0x2c] ss:$16 sps:$4 sm:$0xff]  }
 0x482   : > { %16360 = vst [vmem:[#allocation74_spill] sm:$0xff] %v13830_v32  ;;  %v6165_v10 = vadd.f32 %v6164_v3, %v6051_v43  ;;  %v6680_v28 = vadd.f32 %v6679_v9, %v6678_v2  ;;  %v6452_v63 = vadd.f32 %v6161_v42, %v13452_v30  ;;  %v6711_v1 = vadd.f32 %v13830_v32, %v13824_v25  ;;  %v16362_v43 = vld [vmem:[#allocation138_spill] sm:$0xff]  ;;  %v16370_v25 = vld [vmem:[#allocation51_spill] sm:$0xff] }
 0x483   : > { %v6705_v40 = vrot.slane %v6704_v0, 4  ;;  %v6055_v62 = vpop.f32.mrf.mxu0  ;;  %v6168_v61 = vpop.f32.mrf.mxu1  ;;  %v13837_v47 = vadd.f32 %v13583_v21, %v6451_v20  ;;  %v6455_v19 = vadd.f32 %v6163_v52, %v16362_v43  ;;  %7826 = vmatprep.subr.bf16.mxu1 %v9689_v46  ;;  %v6687_v30 = vadd.f32 %v6686_v23, %v6685_v57 }
 0x484   : > { %v6456_v2 = vadd.f32 %v6165_v10, %v13644_v34  ;;  %v6681_v56 = vrot.slane %v6680_v28, 1  ;;  %v13842_v24 = vadd.f32 %v13588_v44, %v6452_v63  ;;  %v6712_v9 = vrot.slane %v6711_v1, 4  ;;  %7714 = vmatpush1.bf16.msra.mxu0 %v9684_v15  ;;  %v9690_v34 = vld [vmem:[#allocation8 + $0x20] ss:$16 sps:$4 sm:$0xff]   ;;  %v9698_v63 = vld [vmem:[#allocation8 + $0x4] ss:$16 sps:$4 sm:$0xff]  }
 0x485   : > { %16361 = vst [vmem:[#allocation35_spill] sm:$0xff] %v13837_v47  ;;  %v6706_v42 = vadd.f32 %v6705_v40, %v6704_v0  ;;  %v6057_v41 = vpop.f32.mrf.mxu0  ;;  %v6170_v6 = vpop.f32.mrf.mxu1  ;;  %v13845_v3 = vadd.f32 %v13583_v21, %v6455_v19  ;;  %v6169_v52 = vadd.f32 %v6168_v61, %v6055_v62  ;;  %v6688_v10 = vrot.slane %v6687_v30, 1  ;;  %7827 = vmatpush1.bf16.msra.mxu1 %v9687_v5  ;;  %v9693_v40 = vld [vmem:[#allocation8 + $0x28] ss:$16 sps:$4 sm:$0xff]   ;;  %v16366_v62 = vld [vmem:[#allocation92_spill] sm:$0xff] }
 0x486   : > { %16363 = vst [vmem:[#allocation96_spill] sm:$0xff] %v13842_v24  ;;  %v13848_v20 = vadd.f32 %v13588_v44, %v6456_v2  ;;  %v6682_v46 = vadd.f32 %v6681_v56, %v6680_v28  ;;  %v6171_v57 = vadd.f32 %v6170_v6, %v6057_v41  ;;  %7715 = vmatprep.subr.bf16.mxu0 %v9692_v55  ;;  %v9701_v28 = vld [vmem:[#allocation8 + $0xc] ss:$16 sps:$4 sm:$0xff]  }
 0x487   : > { %16364 = vst [vmem:[#allocation97_spill] sm:$0xff] %v13845_v3  ;;  %v6707_v43 = vrot.slane %v6706_v42, 2  ;;  %v6059_v0 = vpop.f32.mrf.mxu0  ;;  %v6172_v23 = vpop.f32.mrf.mxu1  ;;  %v6713_v32 = vadd.f32 %v6712_v9, %v6711_v1  ;;  %v6732_v19 = vadd.f32 %v13845_v3, %v13837_v47  ;;  %v6459_v15 = vadd.f32 %v6169_v52, %v16366_v62  ;;  %7828 = vmatprep.subr.bf16.mxu1 %v9695_v31 }
 0x488   : > { %16365 = vst [vmem:[#allocation127_spill] sm:$0xff] %v13848_v20  ;;  %v6739_v2 = vadd.f32 %v13848_v20, %v13842_v24  ;;  %v13856_v61 = vmul.f32 %v13596_v38, %v6682_v46  ;;  %v13859_v56 = vmul.f32 %v13626_v14, %v6682_v46  ;;  %v6689_v5 = vadd.f32 %v6688_v10, %v6687_v30  ;;  %v9696_v20 = vld [vmem:[#allocation8] ss:$16 sps:$4 sm:$0xff]   ;;  %v9699_v10 = vld [vmem:[#allocation8 + $0x8] ss:$16 sps:$4 sm:$0xff]  }
 0x489   : > { %v6708_v55 = vadd.f32 %v6707_v43, %v6706_v42  ;;  %v6061_v41 = vpop.f32.mrf.mxu0  ;;  %v6174_v1 = vpop.f32.mrf.mxu1  ;;  %v6714_v9 = vrot.slane %v6713_v32, 2  ;;  %v6733_v3 = vrot.slane %v6732_v19, 4  ;;  %7716 = vmatpush1.bf16.msra.mxu0 %v9690_v34  ;;  %v13870_v30 = vadd.f32 %v13583_v21, %v6459_v15  ;;  %7829 = vmatpush1.bf16.msra.mxu1 %v9693_v40 }
 0x48a   : > { %16367 = vst [vmem:[#allocation87_spill] sm:$0xff] %v13856_v61  ;;  %v6740_v47 = vrot.slane %v6739_v2, 4  ;;  %v13864_v52 = vmul.f32 %v13629_v22, %v6689_v5  ;;  %v13867_v62 = vmul.f32 %v13632_v48, %v6689_v5  ;;  %7717 = vmatprep.subr.bf16.mxu0 %v9698_v63  ;;  %7830 = vmatprep.subr.bf16.mxu1 %v9701_v28 }
 0x48b   : > { %16369 = vst [vmem:[#allocation98_spill] sm:$0xff] %v13870_v30  ;;  %v6211_v42 = vpop.f32.mrf.mxu0  ;;  %v6324_v46 = vpop.f32.mrf.mxu1  ;;  %v6709_v43 = vrot.slane %v6708_v55, 1  ;;  %v6715_v6 = vadd.f32 %v6714_v9, %v6713_v32  ;;  %v6734_v34 = vadd.f32 %v6733_v3, %v6732_v19  ;;  %v6460_v5 = vadd.f32 %v6171_v57, %v16370_v25  ;;  %v16371_v32 = vld [vmem:[#allocation52_spill] sm:$0xff] }
 0x48c   : > { %16368 = vst [vmem:[#allocation99_spill] sm:$0xff] %v13864_v52  ;;  %v6741_v24 = vadd.f32 %v6740_v47, %v6739_v2  ;;  %v6173_v50 = vadd.f32 %v6172_v23, %v6059_v0  ;;  %v6175_v47 = vadd.f32 %v6174_v1, %v6061_v41  ;;  %v6325_v19 = vadd.f32 %v6324_v46, %v6211_v42  ;;  %v16375_v46 = vld [vmem:[#allocation21_spill] sm:$0xff] }
 0x48d   : > { %v6213_v36 = vpop.f32.mrf.mxu0  ;;  %v6326_v15 = vpop.f32.mrf.mxu1  ;;  %v6710_v61 = vadd.f32 %v6709_v43, %v6708_v55  ;;  %v6716_v35 = vrot.slane %v6715_v6, 1  ;;  %v6735_v29 = vrot.slane %v6734_v34, 2  ;;  %7718 = vmatpush1.bf16.msra.mxu0 %v9696_v20  ;;  %7831 = vmatpush1.bf16.msra.mxu1 %v9699_v10  ;;  %v16381_v10 = vld [vmem:[#allocation67_spill] sm:$0xff] }
 0x48e   : > { %v6742_v40 = vrot.slane %v6741_v24, 2  ;;  %v6463_v3 = vadd.f32 %v6173_v50, %v16371_v32  ;;  %v6464_v55 = vadd.f32 %v6175_v47, %v13647_v27  ;;  %v16374_v50 = vld [vmem:[#allocation69_spill] sm:$0xff]  ;;  %v6327_v47 = vadd.f32 %v6326_v15, %v6213_v36 }
 0x48f   : > { %v6215_v2 = vpop.f32.mrf.mxu0  ;;  %v6328_v28 = vpop.f32.mrf.mxu1  ;;  %v13878_v9 = vmul.f32 %v13596_v38, %v6710_v61  ;;  %v13881_v25 = vmul.f32 %v13626_v14, %v6710_v61  ;;  %v6717_v57 = vadd.f32 %v6716_v35, %v6715_v6  ;;  %v6736_v0 = vadd.f32 %v6735_v29, %v6734_v34 }
 0x490   : > { %v6743_v23 = vadd.f32 %v6742_v40, %v6741_v24  ;;  %v13884_v20 = vadd.f32 %v13583_v21, %v6463_v3  ;;  %v6405_v41 = vadd.f32 %v6325_v19, %v16374_v50  ;;  %7736 = vmatmul.mubr.bf16.vlgmr.msra.gmra.mxu0 %v16375_v46  ;;  %v13897_v29 = vadd.f32 %v13588_v44, %v6460_v5 }
 0x491   : > { %16372 = vst [vmem:[#allocation38_spill] sm:$0xff] %v13878_v9  ;;  %v6217_v1 = vpop.f32.mrf.mxu0  ;;  %v6330_v42 = vpop.f32.mrf.mxu1  ;;  %v13891_v43 = vmul.f32 %v13629_v22, %v6717_v57  ;;  %v13894_v35 = vmul.f32 %v13632_v48, %v6717_v57  ;;  %7849 = vmatmul.mubr.bf16.vlgmr.msra.gmra.mxu1 %v16375_v46  ;;  %v16378_v21 = vmov 0   ;;  %v6737_v27 = vrot.slane %v6736_v0, 1 }
 0x492   : > { %16373 = vst [vmem:[#allocation37_spill] sm:$0xff] %v13884_v20  ;;  %16377 = vst [vmem:[#allocation134_spill] sm:$0xff] %v13897_v29  ;;  %7745 = vmatprep.mubr.bf16.mxu0 %v16378_v21  ;;  %v6744_v24 = vrot.slane %v6743_v23, 1  ;;  %v6760_v61 = vadd.f32 %v13884_v20, %v13870_v30  ;;  %v13904_v6 = vadd.f32 %v13588_v44, %v6464_v55  ;;  %7858 = vmatprep.mubr.bf16.mxu1 %v16378_v21  ;;  %v16382_v20 = vld [vmem:[#allocation139_spill] sm:$0xff] }
 0x493   : > { %16376 = vst [vmem:[#allocation133_spill] sm:$0xff] %v13891_v43  ;;  %v6221_v34 = vpop.f32.mrf.mxu0  ;;  %v6334_v40 = vpop.f32.mrf.mxu1  ;;  %v13910_v19 = vadd.f32 %v6737_v27, %v6736_v0  ;;  %v13915_v44 = vadd.f32 %v13660_v16, %v6405_v41  ;;  %v6406_v17 = vadd.f32 %v6327_v47, %v16381_v10  ;;  %v6329_v63 = vadd.f32 %v6328_v28, %v6215_v2  ;;  %v16383_v41 = vld [vmem:[#allocation110_spill] sm:$0xff]  ;;  %v16390_v47 = vld [vmem:[#allocation104_spill] sm:$0xff] }
 0x494   : > { %16379 = vst [vmem:[#allocation40_spill] sm:$0xff] %v13904_v6  ;;  %v6761_v57 = vrot.slane %v6760_v61, 4  ;;  %v6767_v50 = vadd.f32 %v13904_v6, %v13897_v29  ;;  %v6331_v32 = vadd.f32 %v6330_v42, %v6217_v1  ;;  %v6335_v31 = vadd.f32 %v6334_v40, %v6221_v34  ;;  %v16384_v1 = vld [vmem:[#allocation70_spill] sm:$0xff] }
 0x495   : > { %16380 = vst [vmem:[#allocation39_spill] sm:$0xff] %v13915_v44  ;;  %v6223_v55 = vpop.f32.mrf.mxu0  ;;  %v6336_v46 = vpop.f32.mrf.mxu1  ;;  %v13918_v5 = vadd.f32 %v6744_v24, %v6743_v23  ;;  %v6409_v30 = vadd.f32 %v6329_v63, %v16382_v20  ;;  %v13925_v43 = vmul.f32 %v13626_v14, %v13910_v19  ;;  %v13930_v34 = vadd.f32 %v13674_v7, %v6406_v17 }
 0x496   : > { %v6762_v3 = vadd.f32 %v6761_v57, %v6760_v61  ;;  %v6768_v36 = vrot.slane %v6767_v50, 4  ;;  %v6337_v15 = vadd.f32 %v6336_v46, %v6223_v55  ;;  %v6410_v6 = vadd.f32 %v6331_v32, %v13650_v12  ;;  %v16385_v61 = vld [vmem:[#allocation22_spill] sm:$0xff] }
 0x497   : > { %v6225_v0 = vpop.f32.mrf.mxu0  ;;  %v6338_v27 = vpop.f32.mrf.mxu1  ;;  %v6413_v29 = vadd.f32 %v6335_v31, %v16383_v41  ;;  %16386 = vst [vmem:[#allocation135_spill] sm:$0xff] %v13930_v34  ;;  %v13933_v12 = vadd.f32 %v13660_v16, %v6409_v30 }
 0x498   : > { %v6763_v2 = vrot.slane %v6762_v3, 2  ;;  %v6769_v28 = vadd.f32 %v6768_v36, %v6767_v50  ;;  %v6414_v23 = vadd.f32 %v6337_v15, %v16384_v1  ;;  %v6339_v42 = vadd.f32 %v6338_v27, %v6225_v0  ;;  %7746 = vmatmul.mubr.bf16.gmra.mxu0 %v16385_v61 }
 0x499   : > { %v6227_v10 = vpop.f32.mrf.mxu0  ;;  %v6340_v24 = vpop.f32.mrf.mxu1  ;;  %16387 = vst [vmem:[#allocation95_spill] sm:$0xff] %v13933_v12  ;;  %v13936_v31 = vadd.f32 %v13674_v7, %v6410_v6  ;;  %7859 = vmatmul.mubr.bf16.gmra.mxu1 %v16385_v61  ;;  %v13940_v32 = vadd.f32 %v13660_v16, %v6413_v29  ;;  %7755 = vmatprep.mubr.bf16.mxu0 %v16378_v21 }
 0x49a   : > { %v6341_v63 = vadd.f32 %v6340_v24, %v6227_v10  ;;  %v6764_v20 = vadd.f32 %v6763_v2, %v6762_v3  ;;  %v6770_v40 = vrot.slane %v6769_v28, 2  ;;  %v6417_v57 = vadd.f32 %v6339_v42, %v16390_v47  ;;  %7868 = vmatprep.mubr.bf16.mxu1 %v16378_v21  ;;  %v16394_v42 = vld [vmem:[#allocation53_spill] sm:$0xff] }
 0x49b   : > { %16388 = vst [vmem:[#allocation142_spill] sm:$0xff] %v13936_v31  ;;  %16389 = vst [vmem:[#allocation42_spill] sm:$0xff] %v13940_v32  ;;  %v6231_v50 = vpop.f32.mrf.mxu0  ;;  %v6344_v55 = vpop.f32.mrf.mxu1  ;;  %v6578_v17 = vadd.f32 %v13933_v12, %v13915_v44  ;;  %v6585_v30 = vadd.f32 %v13936_v31, %v13930_v34  ;;  %v13951_v36 = vadd.f32 %v13674_v7, %v6414_v23 }
 0x49c   : > { %v6418_v6 = vadd.f32 %v6341_v63, %v13653_v13  ;;  %v6345_v3 = vadd.f32 %v6344_v55, %v6231_v50  ;;  %v6765_v46 = vrot.slane %v6764_v20, 1  ;;  %v6771_v29 = vadd.f32 %v6770_v40, %v6769_v28 }
 0x49d   : > { %16391 = vst [vmem:[#allocation128_spill] sm:$0xff] %v13951_v36  ;;  %v13954_v15 = vadd.f32 %v13660_v16, %v6417_v57  ;;  %v6233_v0 = vpop.f32.mrf.mxu0  ;;  %v6346_v27 = vpop.f32.mrf.mxu1  ;;  %v6579_v41 = vrot.slane %v6578_v17, 4  ;;  %v6586_v2 = vrot.slane %v6585_v30, 4  ;;  %v13964_v63 = vmul.f32 %v13632_v48, %v13918_v5 }
 0x49e   : > { %v13957_v1 = vadd.f32 %v13674_v7, %v6418_v6  ;;  %v6421_v10 = vadd.f32 %v6345_v3, %v16394_v42  ;;  %v6772_v24 = vrot.slane %v6771_v29, 1  ;;  %v6347_v28 = vadd.f32 %v6346_v27, %v6233_v0  ;;  %v16397_v3 = vld [vmem:[#allocation54_spill] sm:$0xff] }
 0x49f   : > { %16392 = vst [vmem:[#allocation89_spill] sm:$0xff] %v13954_v15  ;;  %v6606_v13 = vadd.f32 %v13954_v15, %v13940_v32  ;;  %v6235_v61 = vpop.f32.mrf.mxu0  ;;  %v6348_v23 = vpop.f32.mrf.mxu1  ;;  %v13966_v40 = vadd.f32 %v6765_v46, %v6764_v20  ;;  %v6580_v47 = vadd.f32 %v6579_v41, %v6578_v17  ;;  %v6587_v57 = vadd.f32 %v6586_v2, %v6585_v30  ;;  %v16398_v32 = vld [vmem:[#allocation23_spill] sm:$0xff]  ;;  %v16401_v2 = vld [vmem:[#allocation61_spill] sm:$0xff] }
 0x4a0   : > { %16393 = vst [vmem:[#allocation143_spill] sm:$0xff] %v13957_v1  ;;  %v6613_v50 = vadd.f32 %v13957_v1, %v13951_v36  ;;  %v13971_v6 = vadd.f32 %v13660_v16, %v6421_v10  ;;  %v6422_v42 = vadd.f32 %v6347_v28, %v16397_v3  ;;  %v6349_v0 = vadd.f32 %v6348_v23, %v6235_v61 }
 0x4a1   : > { %16395 = vst [vmem:[#allocation107_spill] sm:$0xff] %v13966_v40  ;;  %v6607_v55 = vrot.slane %v6606_v13, 4  ;;  %v6237_v27 = vpop.f32.mrf.mxu0  ;;  %v6350_v15 = vpop.f32.mrf.mxu1  ;;  %7756 = vmatmul.mubr.bf16.gmra.mxu0 %v16398_v32  ;;  %v6581_v31 = vrot.slane %v6580_v47, 2  ;;  %v6588_v12 = vrot.slane %v6587_v57, 2  ;;  %7869 = vmatmul.mubr.bf16.gmra.mxu1 %v16398_v32  ;;  %v13977_v17 = vadd.f32 %v6772_v24, %v6771_v29 }
 0x4a2   : > { %16396 = vst [vmem:[#allocation149_spill] sm:$0xff] %v13971_v6  ;;  %v6614_v20 = vrot.slane %v6613_v50, 4  ;;  %v6351_v46 = vadd.f32 %v6350_v15, %v6237_v27  ;;  %7765 = vmatprep.mubr.bf16.mxu0 %v16378_v21  ;;  %v13980_v41 = vadd.f32 %v13674_v7, %v6422_v42  ;;  %v6425_v10 = vadd.f32 %v6349_v0, %v16401_v2 }
 0x4a3   : > { %16399 = vst [vmem:[#allocation150_spill] sm:$0xff] %v13977_v17  ;;  %v6608_v30 = vadd.f32 %v6607_v55, %v6606_v13  ;;  %v6241_v28 = vpop.f32.mrf.mxu0  ;;  %v6354_v61 = vpop.f32.mrf.mxu1  ;;  %7878 = vmatprep.mubr.bf16.mxu1 %v16378_v21  ;;  %v6582_v23 = vadd.f32 %v6581_v31, %v6580_v47  ;;  %v6589_v3 = vadd.f32 %v6588_v12, %v6587_v57  ;;  %v16404_v47 = vld [vmem:[#allocation114_spill] sm:$0xff] }
 0x4a4   : > { %16400 = vst [vmem:[#allocation44_spill] sm:$0xff] %v13980_v41  ;;  %v6615_v1 = vadd.f32 %v6614_v20, %v6613_v50  ;;  %v6426_v15 = vadd.f32 %v6351_v46, %v13681_v60  ;;  %v13986_v27 = vadd.f32 %v13660_v16, %v6425_v10  ;;  %v6355_v29 = vadd.f32 %v6354_v61, %v6241_v28 }
 0x4a5   : > { %v6609_v32 = vrot.slane %v6608_v30, 2  ;;  %v6243_v24 = vpop.f32.mrf.mxu0  ;;  %v6356_v13 = vpop.f32.mrf.mxu1  ;;  %v13990_v55 = vmul.f32 %v13626_v14, %v13966_v40  ;;  %v6583_v42 = vrot.slane %v6582_v23, 1  ;;  %v6590_v0 = vrot.slane %v6589_v3, 1  ;;  %v16444_v40 = vld [vmem:[#allocation119_spill] sm:$0xff] }
 0x4a6   : > { %16402 = vst [vmem:[#allocation113_spill] sm:$0xff] %v13986_v27  ;;  %v6616_v2 = vrot.slane %v6615_v1, 2  ;;  %v13993_v31 = vadd.f32 %v13674_v7, %v6426_v15  ;;  %v6634_v60 = vadd.f32 %v13986_v27, %v13971_v6  ;;  %v6429_v57 = vadd.f32 %v6355_v29, %v16404_v47  ;;  %v16406_v29 = vld [vmem:[#allocation24_spill] sm:$0xff] }
 0x4a7   : > { %v6610_v12 = vadd.f32 %v6609_v32, %v6608_v30  ;;  %v6357_v50 = vadd.f32 %v6356_v13, %v6243_v24  ;;  %v6245_v20 = vpop.f32.mrf.mxu0  ;;  %v6358_v46 = vpop.f32.mrf.mxu1  ;;  %v6584_v10 = vadd.f32 %v6583_v42, %v6582_v23  ;;  %v6591_v28 = vadd.f32 %v6590_v0, %v6589_v3  ;;  %v16409_v24 = vld [vmem:[#allocation75_spill] sm:$0xff] }
 0x4a8   : > { %16403 = vst [vmem:[#allocation65_spill] sm:$0xff] %v13993_v31  ;;  %v6617_v61 = vadd.f32 %v6616_v2, %v6615_v1  ;;  %v6641_v14 = vadd.f32 %v13993_v31, %v13980_v41  ;;  %v6635_v34 = vrot.slane %v6634_v60, 4  ;;  %v14001_v15 = vadd.f32 %v13660_v16, %v6429_v57 }
 0x4a9   : > { %v6611_v36 = vrot.slane %v6610_v12, 1  ;;  %v6247_v30 = vpop.f32.mrf.mxu0  ;;  %v6360_v32 = vpop.f32.mrf.mxu1  ;;  %v14005_v27 = vmul.f32 %v13632_v48, %v13977_v17  ;;  %7766 = vmatmul.mubr.bf16.gmra.mxu0 %v16406_v29  ;;  %v14009_v23 = vmul.f32 %v13686_v49, %v6584_v10  ;;  %v14012_v1 = vmul.f32 %v13694_v53, %v6584_v10  ;;  %7879 = vmatmul.mubr.bf16.gmra.mxu1 %v16406_v29 }
 0x4aa   : > { %16405 = vst [vmem:[#allocation106_spill] sm:$0xff] %v14001_v15  ;;  %v14015_v3 = vmul.f32 %v13698_v37, %v6591_v28  ;;  %v6430_v13 = vadd.f32 %v6357_v50, %v16409_v24  ;;  %v6618_v0 = vrot.slane %v6617_v61, 1  ;;  %v6636_v48 = vadd.f32 %v6635_v34, %v6634_v60  ;;  %7775 = vmatprep.mubr.bf16.mxu0 %v16378_v21 }
 0x4ab   : > { %16407 = vst [vmem:[#allocation45_spill] sm:$0xff] %v14009_v23  ;;  %v6612_v42 = vadd.f32 %v6611_v36, %v6610_v12  ;;  %v6642_v2 = vrot.slane %v6641_v14, 4  ;;  %v6251_v47 = vpop.f32.mrf.mxu0  ;;  %v6364_v57 = vpop.f32.mrf.mxu1  ;;  %7888 = vmatprep.mubr.bf16.mxu1 %v16378_v21  ;;  %v14022_v10 = vmul.f32 %v13701_v54, %v6591_v28  ;;  %v6359_v31 = vadd.f32 %v6358_v46, %v6245_v20 }
 0x4ac   : > { %16408 = vst [vmem:[#allocation91_spill] sm:$0xff] %v14015_v3  ;;  %v6361_v41 = vadd.f32 %v6360_v32, %v6247_v30  ;;  %v6365_v6 = vadd.f32 %v6364_v57, %v6251_v47  ;;  %v6619_v34 = vadd.f32 %v6618_v0, %v6617_v61  ;;  %v6637_v12 = vrot.slane %v6636_v48, 2  ;;  %v16412_v3 = vld [vmem:[#allocation71_spill] sm:$0xff]  ;;  %v16414_v61 = vld [vmem:[#allocation73_spill] sm:$0xff] }
 0x4ad   : > { %v14025_v50 = vmul.f32 %v13686_v49, %v6612_v42  ;;  %v14028_v36 = vmul.f32 %v13694_v53, %v6612_v42  ;;  %v6253_v60 = vpop.f32.mrf.mxu0  ;;  %v6366_v29 = vpop.f32.mrf.mxu1  ;;  %v6643_v24 = vadd.f32 %v6642_v2, %v6641_v14  ;;  %v14031_v44 = vadd.f32 %v13674_v7, %v6430_v13 }
 0x4ae   : > { %v6433_v28 = vadd.f32 %v6359_v31, %v16412_v3  ;;  %v6434_v20 = vadd.f32 %v6361_v41, %v13704_v4  ;;  %v14037_v30 = vmul.f32 %v13698_v37, %v6619_v34  ;;  %v14040_v32 = vmul.f32 %v13701_v54, %v6619_v34 }
 0x4af   : > { %16410 = vst [vmem:[#allocation124_spill] sm:$0xff] %v14025_v50  ;;  %16411 = vst [vmem:[#allocation63_spill] sm:$0xff] %v14031_v44  ;;  %v6437_v42 = vadd.f32 %v6365_v6, %v16414_v61  ;;  %v6255_v0 = vpop.f32.mrf.mxu0  ;;  %v6368_v47 = vpop.f32.mrf.mxu1  ;;  %v6638_v14 = vadd.f32 %v6637_v12, %v6636_v48  ;;  %v6644_v2 = vrot.slane %v6643_v24, 2  ;;  %v6367_v57 = vadd.f32 %v6366_v29, %v6253_v60  ;;  %v16417_v6 = vld [vmem:[#allocation25_spill] sm:$0xff]  ;;  %v16419_v60 = vld [vmem:[#allocation56_spill] sm:$0xff] }
 0x4b0   : > { %16413 = vst [vmem:[#allocation47_spill] sm:$0xff] %v14037_v30  ;;  %v14044_v13 = vadd.f32 %v13660_v16, %v6433_v28  ;;  %v14047_v31 = vadd.f32 %v13674_v7, %v6434_v20  ;;  %v6369_v41 = vadd.f32 %v6368_v47, %v6255_v0 }
 0x4b1   : > { %v6257_v34 = vpop.f32.mrf.mxu0  ;;  %v6370_v46 = vpop.f32.mrf.mxu1  ;;  %7776 = vmatmul.mubr.bf16.gmra.mxu0 %v16417_v6  ;;  %v6639_v61 = vrot.slane %v6638_v14, 1  ;;  %v6645_v48 = vadd.f32 %v6644_v2, %v6643_v24  ;;  %7889 = vmatmul.mubr.bf16.gmra.mxu1 %v16417_v6  ;;  %v14060_v20 = vadd.f32 %v13660_v16, %v6437_v42  ;;  %v6438_v29 = vadd.f32 %v6367_v57, %v16419_v60  ;;  %v16421_v6 = vld [vmem:[#allocation77_spill] sm:$0xff] }
 0x4b2   : > { %16415 = vst [vmem:[#allocation48_spill] sm:$0xff] %v14044_v13  ;;  %16416 = vst [vmem:[#allocation84_spill] sm:$0xff] %v14047_v31  ;;  %v6662_v12 = vadd.f32 %v14044_v13, %v14001_v15  ;;  %v6669_v28 = vadd.f32 %v14047_v31, %v14031_v44  ;;  %7785 = vmatprep.mubr.bf16.mxu0 %v16378_v21  ;;  %v6371_v3 = vadd.f32 %v6370_v46, %v6257_v34  ;;  %v16420_v31 = vld [vmem:[#allocation55_spill] sm:$0xff] }
 0x4b3   : > { %16418 = vst [vmem:[#allocation130_spill] sm:$0xff] %v14060_v20  ;;  %v6261_v4 = vpop.f32.mrf.mxu0  ;;  %v6374_v30 = vpop.f32.mrf.mxu1  ;;  %7898 = vmatprep.mubr.bf16.mxu1 %v16378_v21  ;;  %v6640_v24 = vadd.f32 %v6639_v61, %v6638_v14  ;;  %v6646_v2 = vrot.slane %v6645_v48, 1  ;;  %v6441_v44 = vadd.f32 %v6369_v41, %v16420_v31  ;;  %v16422_v57 = vrot.slane %v13768_v33, 6 }
 0x4b4   : > { %v6663_v13 = vrot.slane %v6662_v12, 4  ;;  %v6670_v15 = vrot.slane %v6669_v28, 4  ;;  %v6442_v9 = vadd.f32 %v6371_v3, %v16421_v6  ;;  %v6375_v50 = vadd.f32 %v6374_v30, %v6261_v4 }
 0x4b5   : > { %v6263_v23 = vpop.f32.mrf.mxu0  ;;  %v6376_v42 = vpop.f32.mrf.mxu1  ;;  %v14070_v46 = vsel %vm6893_vm3, %v16422_v57, %v13755_v26  ;;  %v14073_v0 = vmul.f32 %v13686_v49, %v6640_v24  ;;  %v14076_v47 = vmul.f32 %v13694_v53, %v6640_v24  ;;  %v6647_v14 = vadd.f32 %v6646_v2, %v6645_v48  ;;  %v16429_v24 = vld [vmem:[#allocation26_spill] sm:$0xff] }
 0x4b6   : > { %v6664_v34 = vadd.f32 %v6663_v13, %v6662_v12  ;;  %v6671_v31 = vadd.f32 %v6670_v15, %v6669_v28  ;;  %v14079_v41 = vadd.f32 %v13674_v7, %v6438_v29  ;;  %v14082_v30 = vadd.f32 %v13660_v16, %v6441_v44  ;;  %v16428_v15 = vld [vmem:[#allocation78_spill] sm:$0xff] }
 0x4b7   : > { %16423 = vst [vmem:[#allocation85_spill] sm:$0xff] %v14073_v0  ;;  %v14085_v33 = vadd.f32 %v13674_v7, %v6442_v9  ;;  %v6265_v26 = vpop.f32.mrf.mxu0  ;;  %v6378_v4 = vpop.f32.mrf.mxu1  ;;  %v14089_v61 = vmul.f32 %v13698_v37, %v6647_v14  ;;  %v14092_v48 = vmul.f32 %v13701_v54, %v6647_v14  ;;  %v6445_v13 = vadd.f32 %v6375_v50, %v16428_v15 }
 0x4b8   : > { %16424 = vst [vmem:[#allocation94_spill] sm:$0xff] %v14079_v41  ;;  %16425 = vst [vmem:[#allocation86_spill] sm:$0xff] %v14082_v30  ;;  %v6665_v12 = vrot.slane %v6664_v34, 2  ;;  %v6672_v28 = vrot.slane %v6671_v31, 2  ;;  %v6690_v44 = vadd.f32 %v14082_v30, %v14060_v20  ;;  %v6377_v14 = vadd.f32 %v6376_v42, %v6263_v23 }
 0x4b9   : > { %16426 = vst [vmem:[#allocation109_spill] sm:$0xff] %v14085_v33  ;;  %16427 = vst [vmem:[#allocation137_spill] sm:$0xff] %v14089_v61  ;;  %v6697_v9 = vadd.f32 %v14085_v33, %v14079_v41  ;;  %v6267_v60 = vpop.f32.mrf.mxu0  ;;  %v6380_v29 = vpop.f32.mrf.mxu1  ;;  %7786 = vmatmul.mubr.bf16.gmra.mxu0 %v16429_v24  ;;  %7899 = vmatmul.mubr.bf16.gmra.mxu1 %v16429_v24  ;;  %v6379_v2 = vadd.f32 %v6378_v4, %v6265_v26 }
 0x4ba   : > { %7795 = vmatprep.mubr.bf16.mxu0 %v16378_v21  ;;  %v6666_v50 = vadd.f32 %v6665_v12, %v6664_v34  ;;  %v6673_v15 = vadd.f32 %v6672_v28, %v6671_v31  ;;  %v6691_v3 = vrot.slane %v6690_v44, 4  ;;  %7908 = vmatprep.mubr.bf16.mxu1 %v16378_v21  ;;  %v6446_v20 = vadd.f32 %v6377_v14, %v13546_v39  ;;  %v16431_v31 = vld [vmem:[#allocation58_spill] sm:$0xff]  ;;  %v16432_v28 = vld [vmem:[#allocation76_spill] sm:$0xff] }
 0x4bb   : > { %v6698_v30 = vrot.slane %v6697_v9, 4  ;;  %v6271_v33 = vpop.f32.mrf.mxu0  ;;  %v6384_v41 = vpop.f32.mrf.mxu1  ;;  %v6381_v0 = vadd.f32 %v6380_v29, %v6267_v60  ;;  %v14108_v34 = vadd.f32 %v13660_v16, %v6445_v13  ;;  %v6449_v12 = vadd.f32 %v6379_v2, %v16431_v31  ;;  %v16439_v29 = vld [vmem:[#allocation27_spill] sm:$0xff] }
 0x4bc   : > { %v6385_v6 = vadd.f32 %v6384_v41, %v6271_v33  ;;  %v6667_v61 = vrot.slane %v6666_v50, 1  ;;  %v6674_v57 = vrot.slane %v6673_v15, 1  ;;  %v6692_v23 = vadd.f32 %v6691_v3, %v6690_v44 }
 0x4bd   : > { %v6699_v42 = vadd.f32 %v6698_v30, %v6697_v9  ;;  %v6273_v24 = vpop.f32.mrf.mxu0  ;;  %v6386_v52 = vpop.f32.mrf.mxu1  ;;  %16430 = vst [vmem:[#allocation90_spill] sm:$0xff] %v14108_v34  ;;  %v6450_v51 = vadd.f32 %v6381_v0, %v16432_v28  ;;  %v14114_v3 = vadd.f32 %v13674_v7, %v6446_v20  ;;  %v14117_v30 = vadd.f32 %v13660_v16, %v6449_v12  ;;  %v16441_v28 = vld [vmem:[#allocation57_spill] sm:$0xff] }
 0x4be   : > { %v6453_v59 = vadd.f32 %v6385_v6, %v16433_v58  ;;  %v6668_v17 = vadd.f32 %v6667_v61, %v6666_v50  ;;  %v6675_v39 = vadd.f32 %v6674_v57, %v6673_v15  ;;  %v6693_v26 = vrot.slane %v6692_v23, 2 }
 0x4bf   : > { %v6700_v4 = vrot.slane %v6699_v42, 2  ;;  %v6275_v41 = vpop.f32.mrf.mxu0  ;;  %v6388_v33 = vpop.f32.mrf.mxu1  ;;  %16434 = vst [vmem:[#allocation64_spill] sm:$0xff] %v14114_v3  ;;  %16435 = vst [vmem:[#allocation105_spill] sm:$0xff] %v14117_v30  ;;  %v14120_v13 = vadd.f32 %v13674_v7, %v6450_v51  ;;  %v6387_v44 = vadd.f32 %v6386_v52, %v6273_v24  ;;  %v6718_v52 = vadd.f32 %v14117_v30, %v14108_v34 }
 0x4c0   : > { %v14123_v0 = vmul.f32 %v13686_v49, %v6668_v17  ;;  %v14126_v58 = vmul.f32 %v13694_v53, %v6668_v17  ;;  %v14129_v61 = vmul.f32 %v13698_v37, %v6675_v39  ;;  %v14132_v9 = vmul.f32 %v13701_v54, %v6675_v39 }
 0x4c1   : > { %16436 = vst [vmem:[#allocation49_spill] sm:$0xff] %v14120_v13  ;;  %v6277_v20 = vpop.f32.mrf.mxu0  ;;  %v6390_v60 = vpop.f32.mrf.mxu1  ;;  %7796 = vmatmul.mubr.bf16.gmra.mxu0 %v16439_v29  ;;  %v6694_v2 = vadd.f32 %v6693_v26, %v6692_v23  ;;  %v6701_v51 = vadd.f32 %v6700_v4, %v6699_v42  ;;  %v6725_v6 = vadd.f32 %v14120_v13, %v14114_v3  ;;  %v6719_v31 = vrot.slane %v6718_v52, 4 }
 0x4c2   : > { %16437 = vst [vmem:[#allocation50_spill] sm:$0xff] %v14123_v0  ;;  %16438 = vst [vmem:[#allocation131_spill] sm:$0xff] %v14129_v61  ;;  %7909 = vmatmul.mubr.bf16.gmra.mxu1 %v16439_v29  ;;  %v14144_v50 = vadd.f32 %v13660_v16, %v6453_v59  ;;  %7805 = vmatprep.mubr.bf16.mxu0 %v16378_v21  ;;  %v6454_v39 = vadd.f32 %v6387_v44, %v16441_v28  ;;  %v7118_v59 = vrot.slane %v14132_v9, 5  ;;  %v16443_v61 = vld [vmem:[#allocation112_spill] sm:$0xff] }
 0x4c3   : > { %v6281_v15 = vpop.f32.mrf.mxu0  ;;  %v6394_v23 = vpop.f32.mrf.mxu1  ;;  %7918 = vmatprep.mubr.bf16.mxu1 %v16378_v21  ;;  %v6695_v42 = vrot.slane %v6694_v2, 1  ;;  %v6702_v24 = vrot.slane %v6701_v51, 1  ;;  %v6726_v12 = vrot.slane %v6725_v6, 4  ;;  %v6389_v26 = vadd.f32 %v6388_v33, %v6275_v41  ;;  %v16442_v21 = vld [vmem:[#allocation108_spill] sm:$0xff] }
 0x4c4   : > { %16440 = vst [vmem:[#allocation111_spill] sm:$0xff] %v14144_v50  ;;  %v6391_v4 = vadd.f32 %v6390_v60, %v6277_v20  ;;  %v6395_v29 = vadd.f32 %v6394_v23, %v6281_v15  ;;  %v6720_v13 = vadd.f32 %v6719_v31, %v6718_v52  ;;  %v16448_v23 = vld [vmem:[#allocation28_spill] sm:$0xff] }
 0x4c5   : > { %v6283_v14 = vpop.f32.mrf.mxu0  ;;  %v6396_v17 = vpop.f32.mrf.mxu1  ;;  %v6696_v57 = vadd.f32 %v6695_v42, %v6694_v2  ;;  %v6727_v30 = vadd.f32 %v6726_v12, %v6725_v6  ;;  %v14150_v3 = vadd.f32 %v6702_v24, %v6701_v51  ;;  %v6457_v34 = vadd.f32 %v6389_v26, %v16442_v21 }
 0x4c6   : > { %v6458_v0 = vadd.f32 %v6391_v4, %v16443_v61  ;;  %v6461_v22 = vadd.f32 %v6395_v29, %v16444_v40  ;;  %v6721_v60 = vrot.slane %v6720_v13, 2  ;;  %v14162_v51 = vadd.f32 %v13674_v7, %v6454_v39 }
 0x4c7   : > { %v6285_v44 = vpop.f32.mrf.mxu0  ;;  %v6398_v41 = vpop.f32.mrf.mxu1  ;;  %v14156_v33 = vmul.f32 %v13686_v49, %v6696_v57  ;;  %v14159_v20 = vmul.f32 %v13694_v53, %v6696_v57  ;;  %v6728_v2 = vrot.slane %v6727_v30, 2  ;;  %v14165_v52 = vadd.f32 %v13660_v16, %v6457_v34 }
 0x4c8   : > { %16445 = vst [vmem:[#allocation68_spill] sm:$0xff] %v14162_v51  ;;  %v14168_v61 = vadd.f32 %v13674_v7, %v6458_v0  ;;  %v6397_v40 = vadd.f32 %v6396_v17, %v6283_v14  ;;  %v6722_v42 = vadd.f32 %v6721_v60, %v6720_v13  ;;  %v14173_v31 = vadd.f32 %v13660_v16, %v6461_v22  ;;  %v16450_v17 = vld [vmem:[#allocation79_spill] sm:$0xff] }
 0x4c9   : > { %16446 = vst [vmem:[#allocation100_spill] sm:$0xff] %v14165_v52  ;;  %v6287_v6 = vpop.f32.mrf.mxu0  ;;  %v6400_v15 = vpop.f32.mrf.mxu1  ;;  %7806 = vmatmul.mubr.bf16.gmra.mxu0 %v16448_v23  ;;  %v6930_v57 = vrot.slane %v14156_v33, 4  ;;  %v6729_v24 = vadd.f32 %v6728_v2, %v6727_v30  ;;  %v6746_v34 = vadd.f32 %v14165_v52, %v14144_v50  ;;  %v6399_v12 = vadd.f32 %v6398_v41, %v6285_v44  ;;  %v16451_v22 = vld [vmem:[#allocation59_spill] sm:$0xff]  ;;  %v16453_v41 = vld [vmem:[#allocation60_spill] sm:$0xff] }
 0x4ca   : > { %16447 = vst [vmem:[#allocation41_spill] sm:$0xff] %v14168_v61  ;;  %16449 = vst [vmem:[#allocation43_spill] sm:$0xff] %v14173_v31  ;;  %7919 = vmatmul.mubr.bf16.gmra.mxu1 %v16448_v23  ;;  %v6753_v0 = vadd.f32 %v14168_v61, %v14162_v51  ;;  %v6462_v14 = vadd.f32 %v6397_v40, %v16450_v17  ;;  %v7106_v28 = vrot.slane %v14159_v20, 4  ;;  %v6723_v39 = vrot.slane %v6722_v42, 1 }
 0x4cb   : > { %v6730_v26 = vrot.slane %v6729_v24, 1  ;;  %v6401_v13 = vadd.f32 %v6400_v15, %v6287_v6  ;;  %v6747_v30 = vrot.slane %v6746_v34, 4  ;;  %v6465_v29 = vadd.f32 %v6399_v12, %v16451_v22 }
 0x4cc   : > { %v6754_v4 = vrot.slane %v6753_v0, 4  ;;  %v14185_v21 = vmul.f32 %v13701_v54, %v14150_v3  ;;  %v14187_v60 = vadd.f32 %v6723_v39, %v6722_v42  ;;  %v14192_v44 = vadd.f32 %v13674_v7, %v6462_v14 }
 0x4cd   : > { %v14189_v2 = vadd.f32 %v6730_v26, %v6729_v24  ;;  %v6466_v20 = vadd.f32 %v6401_v13, %v16453_v41  ;;  %v6748_v40 = vadd.f32 %v6747_v30, %v6746_v34  ;;  %v14196_v15 = vadd.f32 %v13660_v16, %v6465_v29 }
 0x4ce   : > { %16452 = vst [vmem:[#allocation125_spill] sm:$0xff] %v14192_v44  ;;  %v6755_v6 = vadd.f32 %v6754_v4, %v6753_v0  ;;  %v16455_v23 = vrot.slane %v13801_v11, 5  ;;  %v7030_v24 = vmul.f32 %v13694_v53, %v14187_v60  ;;  %v16457_v34 = vrot.slane %v13859_v56, 4 }
 0x4cf   : > { %16454 = vst [vmem:[#allocation46_spill] sm:$0xff] %v14196_v15  ;;  %v14203_v42 = vadd.f32 %v13674_v7, %v6466_v20  ;;  %v7031_v14 = vmul.f32 %v13701_v54, %v14189_v2  ;;  %v6749_v16 = vrot.slane %v6748_v40, 2  ;;  %v6774_v11 = vadd.f32 %v14196_v15, %v14173_v31  ;;  %v16517_v15 = vld [vmem:[#allocation145_spill] sm:$0xff] }
 0x4d0   : > { %v7077_v17 = vsel %vm6896_vm4, %v16455_v23, %v14070_v46  ;;  %v6756_v12 = vrot.slane %v6755_v6, 2  ;;  %v7082_v46 = vrot.slane %v13925_v43, 2  ;;  %v16458_v39 = vrot.slane %v13881_v25, 3 }
 0x4d1   : > { %16456 = vst [vmem:[#allocation101_spill] sm:$0xff] %v14203_v42  ;;  %v7079_v0 = vsel %vm6899_vm5, %v16457_v34, %v7077_v17  ;;  %v6781_v7 = vadd.f32 %v14203_v42, %v14192_v44  ;;  %v7084_v13 = vrot.slane %v13990_v55, 1  ;;  %v16459_v56 = vrot.slane %v13781_v18, 6 }
 0x4d2   : > { %v7081_v26 = vsel %vm6902_vm6, %v16458_v39, %v7079_v0  ;;  %v6750_v4 = vadd.f32 %v6749_v16, %v6748_v40  ;;  %v6757_v22 = vadd.f32 %v6756_v12, %v6755_v6  ;;  %v6775_v29 = vrot.slane %v6774_v11, 4 }
 0x4d3   : > { %v7089_v30 = vsel %vm6893_vm3, %v16459_v56, %v13762_v45  ;;  %v7096_v41 = vrot.slane %v13964_v63, 2  ;;  %v6782_v43 = vrot.slane %v6781_v7, 4  ;;  %v7083_v20 = vsel %vm6905_vm7, %v7082_v46, %v7081_v26 }
 0x4d4   : > { %v16460_v23 = vrot.slane %v13817_v8, 5  ;;  %v7098_v17 = vrot.slane %v14005_v27, 1  ;;  %v6751_v55 = vrot.slane %v6750_v4, 1  ;;  %v6758_v34 = vrot.slane %v6757_v22, 1 }
 0x4d5   : > { %v6776_v0 = vadd.f32 %v6775_v29, %v6774_v11  ;;  %v16461_v18 = vrot.slane %v13867_v62, 4  ;;  %v6783_v40 = vadd.f32 %v6782_v43, %v6781_v7  ;;  %v16462_v6 = vrot.slane %v13894_v35, 3 }
 0x4d6   : > { %v7091_v25 = vsel %vm6896_vm4, %v16460_v23, %v7089_v30  ;;  %v16463_v16 = vrot.slane %v14028_v36, 7  ;;  %v7108_v12 = vrot.slane %v7030_v24, 3  ;;  %v6752_v46 = vadd.f32 %v6751_v55, %v6750_v4 }
 0x4d7   : > { %v7093_v45 = vsel %vm6899_vm5, %v16461_v18, %v7091_v25  ;;  %v6777_v27 = vrot.slane %v6776_v0, 2  ;;  %v6759_v39 = vadd.f32 %v6758_v34, %v6757_v22  ;;  %v6784_v26 = vrot.slane %v6783_v40, 2 }
 0x4d8   : > { %v7095_v63 = vsel %vm6902_vm6, %v16462_v6, %v7093_v45  ;;  %v7101_v8 = vsel %vm6890_vm2, %v16463_v16, %v14012_v1  ;;  %v7085_v62 = vsel %vm6908_vm8, %v7084_v13, %v7083_v20  ;;  %v16464_v35 = vrot.slane %v14076_v47, 6  ;;  %v16468_v6 = vld [vmem:[#allocation147_spill] sm:$0xff] }
 0x4d9   : > { %v7097_v11 = vsel %vm6905_vm7, %v7096_v41, %v7095_v63  ;;  %v6778_v30 = vadd.f32 %v6777_v27, %v6776_v0  ;;  %v7034_v36 = vmul.f32 %v13694_v53, %v6752_v46  ;;  %v7035_v1 = vmul.f32 %v13701_v54, %v6759_v39 }
 0x4da   : > { %v7099_v7 = vsel %vm6908_vm8, %v7098_v17, %v7097_v11  ;;  %v7103_v56 = vsel %vm6893_vm3, %v16464_v35, %v7101_v8  ;;  %v16465_v24 = vrot.slane %v14126_v58, 5  ;;  %v6785_v22 = vadd.f32 %v6784_v26, %v6783_v40  ;;  %v16470_v11 = vld [vmem:[#allocation150_spill] sm:$0xff] }
 0x4db   : > { %v16466_v13 = vrot.slane %v14040_v32, 7  ;;  %v7120_v47 = vrot.slane %v14185_v21, 4  ;;  %v6779_v43 = vrot.slane %v6778_v30, 1  ;;  %v7110_v23 = vrot.slane %v7034_v36, 2  ;;  %v16475_v36 = vld [vmem:[#allocation118_spill] sm:$0xff] }
 0x4dc   : > { %v7105_v4 = vsel %vm6896_vm4, %v16465_v24, %v7103_v56  ;;  %v16467_v25 = vrot.slane %v14092_v48, 6  ;;  %v6786_v17 = vrot.slane %v6785_v22, 1  ;;  %v7122_v55 = vrot.slane %v7031_v14, 3 }
 0x4dd   : > { %v7107_v29 = vsel %vm6899_vm5, %v7106_v28, %v7105_v4  ;;  %v7115_v41 = vsel %vm6890_vm2, %v16466_v13, %v14022_v10  ;;  %v7124_v34 = vrot.slane %v7035_v1, 2  ;;  %v6780_v32 = vadd.f32 %v6779_v43, %v6778_v30  ;;  %v16474_v30 = vld [vmem:[#allocation32_spill] sm:$0xff]  ;;  %v16479_v13 = vld [vmem:[#allocation103_spill] sm:$0xff] }
 0x4de   : > { %v7109_v20 = vsel %vm6902_vm6, %v7108_v12, %v7107_v29  ;;  %v7117_v58 = vsel %vm6893_vm3, %v16467_v25, %v7115_v41  ;;  %v7132_v0 = vadd.f32 %v7099_v7, %v7085_v62  ;;  %v6787_v18 = vadd.f32 %v6786_v17, %v6785_v22  ;;  %v16469_v12 = vld [vmem:[#allocation107_spill] sm:$0xff]  ;;  %v16471_v62 = vld [vmem:[#allocation102_spill] sm:$0xff]  ;;  %v16477_v22 = vld [vmem:[#allocation136_spill] sm:$0xff] }
 0x4df   : > { %v7119_v28 = vsel %vm6896_vm4, %v7118_v59, %v7117_v58  ;;  %v7111_v10 = vsel %vm6905_vm7, %v7110_v23, %v7109_v20  ;;  %v6844_v48 = vmul.f32 %v13698_v37, %v14150_v3  ;;  %v6847_v40 = vmul.f32 %v13686_v49, %v14187_v60  ;;  %v16481_v43 = vld [vmem:[#allocation87_spill] sm:$0xff] }
 0x4e0   : > { %v7121_v21 = vsel %vm6899_vm5, %v7120_v47, %v7119_v28  ;;  %v7038_v9 = vmul.f32 %v13694_v53, %v6780_v32  ;;  %v6848_v59 = vmul.f32 %v13698_v37, %v14189_v2  ;;  %v6849_v14 = vmul.f32 %v13596_v38, %v13910_v19  ;;  %v16483_v25 = vld [vmem:[#allocation99_spill] sm:$0xff] }
 0x4e1   : > { %v7123_v45 = vsel %vm6902_vm6, %v7122_v55, %v7121_v21  ;;  %v6850_v63 = vmul.f32 %v16468_v6, %v13918_v5  ;;  %v7039_v16 = vmul.f32 %v13701_v54, %v6787_v18  ;;  %v6851_v3 = vmul.f32 %v13686_v49, %v6752_v46  ;;  %v16472_v54 = vld [vmem:[#allocation115_spill] sm:$0xff]  ;;  %v16485_v55 = vld [vmem:[#allocation45_spill] sm:$0xff] }
 0x4e2   : > { %v7125_v8 = vsel %vm6905_vm7, %v7124_v34, %v7123_v45  ;;  %v6853_v60 = vmul.f32 %v13596_v38, %v16469_v12  ;;  %v7112_v27 = vrot.slane %v7038_v9, 1  ;;  %v6852_v53 = vmul.f32 %v13698_v37, %v6759_v39  ;;  %v16486_v34 = vld [vmem:[#allocation124_spill] sm:$0xff]  ;;  %v16490_v9 = vld [vmem:[#allocation133_spill] sm:$0xff] }
 0x4e3   : > { %v6854_v2 = vmul.f32 %v16468_v6, %v16470_v11  ;;  %v6855_v19 = vmul.f32 %v13686_v49, %v6780_v32  ;;  %v7126_v26 = vrot.slane %v7039_v16, 1  ;;  %v6856_v5 = vmul.f32 %v13698_v37, %v6787_v18 }
 0x4e4   : > { %v16473_v7 = vrot.slane %v16472_v54, 6  ;;  %v6904_v46 = vrot.slane %v6849_v14, 2  ;;  %v7113_v56 = vsel %vm6908_vm8, %v7112_v27, %v7111_v10  ;;  %v6907_v38 = vrot.slane %v6853_v60, 1  ;;  %v16494_v27 = vld [vmem:[#allocation50_spill] sm:$0xff] }
 0x4e5   : > { %v16476_v39 = vrot.slane %v16475_v36, 6  ;;  %v6920_v24 = vrot.slane %v6850_v63, 2  ;;  %v7127_v49 = vsel %vm6908_vm8, %v7126_v26, %v7125_v8  ;;  %v7133_v4 = vadd.f32 %v7132_v0, %v7113_v56  ;;  %v16488_v0 = vld [vmem:[#allocation38_spill] sm:$0xff]  ;;  %v16492_v63 = vld [vmem:[#allocation85_spill] sm:$0xff] }
 0x4e6   : > { %v6894_v35 = vsel %vm6893_vm3, %v16473_v7, %v16471_v62  ;;  %v16478_v37 = vrot.slane %v16477_v22, 5  ;;  %v16480_v41 = vrot.slane %v16479_v13, 5  ;;  %v16482_v20 = vrot.slane %v16481_v43, 4 }
 0x4e7   : > { %v6913_v1 = vsel %vm6893_vm3, %v16476_v39, %v16474_v30  ;;  %v16484_v58 = vrot.slane %v16483_v25, 4  ;;  %v6922_v28 = vrot.slane %v6854_v2, 1  ;;  %v16487_v32 = vrot.slane %v16486_v34, 7  ;;  %v16496_v30 = vld [vmem:[#allocation91_spill] sm:$0xff] }
 0x4e8   : > { %v6897_v29 = vsel %vm6896_vm4, %v16478_v37, %v6894_v35  ;;  %v6915_v47 = vsel %vm6896_vm4, %v16480_v41, %v6913_v1  ;;  %v7134_v21 = vadd.f32 %v7133_v4, %v7127_v49  ;;  %v16489_v18 = vrot.slane %v16488_v0, 3  ;;  %v16499_v4 = vld [vmem:[#allocation137_spill] sm:$0xff] }
 0x4e9   : > { %v6900_v23 = vsel %vm6899_vm5, %v16482_v20, %v6897_v29  ;;  %v6917_v17 = vsel %vm6899_vm5, %v16484_v58, %v6915_v47  ;;  %v6925_v10 = vsel %vm6890_vm2, %v16487_v32, %v16485_v55  ;;  %v16491_v14 = vrot.slane %v16490_v9, 3 }
 0x4ea   : > { %v6903_v45 = vsel %vm6902_vm6, %v16489_v18, %v6900_v23  ;;  %v16493_v16 = vrot.slane %v16492_v63, 6  ;;  %v16495_v11 = vrot.slane %v16494_v27, 5  ;;  %v6932_v26 = vrot.slane %v6847_v40, 3  ;;  %7135 = vadd.xlane.f32.xlu0 %v7134_v21 }
 0x4eb   : > { %v6919_v6 = vsel %vm6902_vm6, %v16491_v14, %v6917_v17  ;;  %v6906_v12 = vsel %vm6905_vm7, %v6904_v46, %v6903_v45  ;;  %v6934_v7 = vrot.slane %v6851_v3, 2  ;;  %v6936_v35 = vrot.slane %v6855_v19, 1  ;;  %v16497_v46 = vld [vmem:[#allocation47_spill] sm:$0xff] }
 0x4ec   : > { %v6927_v8 = vsel %vm6893_vm3, %v16493_v16, %v6925_v10  ;;  %v6921_v60 = vsel %vm6905_vm7, %v6920_v24, %v6919_v6  ;;  %v16498_v36 = vrot.slane %v16497_v46, 7  ;;  %v6944_v1 = vrot.slane %v6844_v48, 4  ;;  %v16501_v19 = vld [vmem:[#allocation131_spill] sm:$0xff] }
 0x4ed   : > { %v6929_v2 = vsel %vm6896_vm4, %v16495_v11, %v6927_v8  ;;  %v6923_v62 = vsel %vm6908_vm8, %v6922_v28, %v6921_v60  ;;  %v6946_v24 = vrot.slane %v6848_v59, 3  ;;  %v6909_v40 = vsel %vm6908_vm8, %v6907_v38, %v6906_v12 }
 0x4ee   : > { %v6931_v54 = vsel %vm6899_vm5, %v6930_v57, %v6929_v2  ;;  %v6939_v39 = vsel %vm6890_vm2, %v16498_v36, %v16496_v30  ;;  %v16500_v22 = vrot.slane %v16499_v4, 6  ;;  %v6948_v57 = vrot.slane %v6852_v53, 2  ;;  %v6563_v53 = vld [vmem:[#allocation13 + $0x5] ss:$0 sm:$0xff] }
 0x4ef   : > { %v6933_v56 = vsel %vm6902_vm6, %v6932_v26, %v6931_v54  ;;  %v16502_v37 = vrot.slane %v16501_v19, 5  ;;  %v6950_v13 = vrot.slane %v6856_v5, 1  ;;  %v6956_v41 = vadd.f32 %v6923_v62, %v6909_v40  ;;  %v6555_v19 = vld [vmem:[#allocation13 + $0x10] sm:$0x3] }
 0x4f0   : > { %v6935_v49 = vsel %vm6905_vm7, %v6934_v7, %v6933_v56  ;;  %v6941_v33 = vsel %vm6893_vm3, %v16500_v22, %v6939_v39  ;;  %v16503_v55 = vmov 1  }
 0x4f1   : > { %v6937_v3 = vsel %vm6908_vm8, %v6936_v35, %v6935_v49  ;;  %v6943_v29 = vsel %vm6896_vm4, %v16502_v37, %v6941_v33  ;;  %v6556_v37 = vld [vmem:[#allocation13 + $0x18] sm:$0x3] }
 0x4f2   : > { %v6945_v48 = vsel %vm6899_vm5, %v6944_v1, %v6943_v29  ;;  %v6957_v38 = vadd.f32 %v6956_v41, %v6937_v3  ;;  %v6554_v3 = vld [vmem:[#allocation13 + $0x8] sm:$0x3] }
 0x4f3   : > { %v6947_v59 = vsel %vm6902_vm6, %v6946_v24, %v6945_v48  ;;  %v16513_v48 = vld [vmem:[#allocation140_spill] sm:$0xff] }
 0x4f4   : > { %v6949_v47 = vsel %vm6905_vm7, %v6948_v57, %v6947_v59  ;;  %v6553_v57 = vld [vmem:[#allocation13] sm:$0x3] }
 0x4f5   : > { %v6951_v43 = vsel %vm6908_vm8, %v6950_v13, %v6949_v47  ;;  %v6558_v13 = vld [vmem:[#allocation13 + $0x2] ss:$8 sm:$0xf]  ;;  %v6971_v59 = vrot.slane %v6553_v57, %v16513_v48  ;;  %v6979_v47 = vrot.slane %v6555_v19, %v16513_v48 }
 0x4f6   : > { %v6958_v20 = vadd.f32 %v6957_v38, %v6951_v43  ;;  %v6975_v38 = vrot.slane %v6554_v3, %v16513_v48  ;;  %v6983_v43 = vrot.slane %v6556_v37, %v16513_v48  ;;  %v6804_v44 = vrot.slane %v6558_v13, %v16517_v15 }
 0x4f8   : > { %6959 = vadd.xlane.f32.xlu1 %v6958_v20  ;;  %v16514_v20 = vld [vmem:[#allocation144_spill] sm:$0xff] }
 0x550   : > { %v14352_v34 = vpop.f32.mrf.mxu0 }
 0x551   : > { %v14356_v10 = vpop.f32.mrf.mxu1 }
 0x552   : > { %v14354_v32 = vpop.f32.mrf.mxu0 }
 0x553   : > { %v14360_v0 = vpop.f32.mrf.mxu1 }
 0x554   : > { %v14358_v21 = vpop.f32.mrf.mxu0 }
 0x555   : > { %v14364_v45 = vpop.f32.mrf.mxu1 }
 0x556   : > { %v14362_v18 = vpop.f32.mrf.mxu0 }
 0x557   : > { %v14368_v14 = vpop.f32.mrf.mxu1 }
 0x558   : > { %v14366_v9 = vpop.f32.mrf.mxu0 }
 0x559   : > { %v14372_v63 = vpop.f32.mrf.mxu1 }
 0x55a   : > { %v14370_v6 = vpop.f32.mrf.mxu0 }
 0x55b   : > { %v14376_v8 = vpop.f32.mrf.mxu1 }
 0x55c   : > { %v14374_v16 = vpop.f32.mrf.mxu0 }
 0x55d   : > { %v14380_v60 = vpop.f32.mrf.mxu1 }
 0x55e   : > { %v14378_v12 = vpop.f32.mrf.mxu0 }
 0x55f   : > { %v14384_v11 = vpop.f32.mrf.mxu1 }
 0x561   : > { %v14382_v27 = vpop.f32.mrf.mxu0  ;;  %v14388_v26 = vpop.f32.mrf.mxu1 }
 0x563   : > { %v14386_v2 = vpop.f32.mrf.mxu0  ;;  %v14392_v54 = vpop.f32.mrf.mxu1 }
 0x565   : > { %v14390_v62 = vpop.f32.mrf.mxu0  ;;  %v14396_v35 = vpop.f32.mrf.mxu1 }
 0x567   : > { %v14394_v7 = vpop.f32.mrf.mxu0  ;;  %v14400_v30 = vpop.f32.mrf.mxu1 }
 0x569   : > { %v14398_v56 = vpop.f32.mrf.mxu0  ;;  %v14404_v36 = vpop.f32.mrf.mxu1 }
 0x56b   : > { %v14402_v46 = vpop.f32.mrf.mxu0  ;;  %v14408_v1 = vpop.f32.mrf.mxu1 }
 0x56d   : > { %v14406_v39 = vpop.f32.mrf.mxu0  ;;  %v14412_v40 = vpop.f32.mrf.mxu1 }
 0x56e   : > { %16504 = vst [vmem:[#allocation132_spill] sm:$0xff] %v14406_v39  ;;  %16506 = vst [vmem:[#allocation138_spill] sm:$0xff] %v14412_v40 }
 0x56f   : > { %v14410_v24 = vpop.f32.mrf.mxu0  ;;  %v14416_v4 = vpop.f32.mrf.mxu1 }
 0x570   : > { %16505 = vst [vmem:[#allocation66_spill] sm:$0xff] %v14410_v24  ;;  %16508 = vst [vmem:[#allocation51_spill] sm:$0xff] %v14416_v4 }
 0x571   : > { %v14414_v49 = vpop.f32.mrf.mxu0  ;;  %v14420_v33 = vpop.f32.mrf.mxu1 }
 0x572   : > { %16507 = vst [vmem:[#allocation92_spill] sm:$0xff] %v14414_v49  ;;  %16510 = vst [vmem:[#allocation69_spill] sm:$0xff] %v14420_v33 }
 0x573   : > { %v7136_v23 = vpop.xlane.xlu0 %7135  ;;  %v14418_v22 = vpop.f32.mrf.mxu0 }
 0x574   : > { %v7137_v25 = vadd.f32 %v7136_v23, %v6563_v53  ;;  %16509 = vst [vmem:[#allocation52_spill] sm:$0xff] %v14418_v22  ;;  %v14424_v41 = vpop.f32.mrf.mxu1  ;;  %v7151_v23 = vrot.slane %v6554_v3, %v16514_v20 }
 0x575   : > { %v14422_v29 = vpop.f32.mrf.mxu0  ;;  %16512 = vst [vmem:[#allocation67_spill] sm:$0xff] %v14424_v41 }
 0x576   : > { %v7138_v58 = vmax.f32 %v7137_v25, 0.0  ;;  %16511 = vst [vmem:[#allocation21_spill] sm:$0xff] %v14422_v29  ;;  %v7155_v25 = vrot.slane %v6555_v19, %v16514_v20  ;;  %v14440_v51 = vpop.f32.mrf.mxu1 }
 0x577   : > { %16518 = vst [vmem:[#allocation110_spill] sm:$0xff] %v14440_v51 }
 0x578   : > { %7141 = vperm.xlu1 %8931, %v7138_v58   ;;  %v7159_v58 = vrot.slane %v6556_v37, %v16514_v20  ;;  %v14444_v24 = vpop.f32.mrf.mxu1 }
 0x581   : > { %v6960_v17 = vpop.xlane.xlu1 %6959 }
 0x582   : > { %v6961_v28 = vadd.f32 %v6960_v17, %v6563_v53  ;;  %v7147_v53 = vrot.slane %v6553_v57, %v16514_v20  ;;  %v14434_v17 = vpop.f32.mrf.mxu0 }
 0x583   : > { %16515 = vst [vmem:[#allocation139_spill] sm:$0xff] %v14434_v17 }
 0x584   : > { %v6962_v5 = vmax.f32 %v6961_v28, 0.0  ;;  %v6792_v28 = vrot.slane %v6558_v13, %v16513_v48  ;;  %v14442_v41 = vpop.f32.mrf.mxu0 }
 0x586   : > { %6965 = vperm.xlu0 %8932, %v6962_v5   ;;  %v6796_v5 = vrot.slane %v6558_v13, %v16514_v20 }
 0x58a   : > { %8933 = vset.pattern.permute.xlu0 %v16503_v55  ;;  %v16516_v55 = vld [vmem:[#allocation141_spill] sm:$0xff] }
 0x58b   : > { %v6800_v42 = vrot.slane %v6558_v13, %v16516_v55 }
 0x5f3   : > { %v7142_v31 = vpop.permute.xlu1 %7141 }
 0x5f4   : > { %v7160_v50 = vmul.f32 %v7147_v53, %v7142_v31  ;;  %v7161_v37 = vmul.f32 %v7151_v23, %v7142_v31  ;;  %v7162_v29 = vmul.f32 %v7155_v25, %v7142_v31  ;;  %v7163_v17 = vmul.f32 %v7159_v58, %v7142_v31  ;;  %v14448_v53 = vpop.f32.mrf.mxu1 }
 0x601   : > { %v6966_v61 = vpop.permute.xlu0 %6965 }
 0x602   : > { %v6984_v57 = vmul.f32 %v6971_v59, %v6966_v61  ;;  %v6985_v3 = vmul.f32 %v6975_v38, %v6966_v61  ;;  %v6986_v52 = vmul.f32 %v6979_v47, %v6966_v61  ;;  %v6987_v19 = vmul.f32 %v6983_v43, %v6966_v61  ;;  %v14446_v59 = vpop.f32.mrf.mxu0 }
 0x604   : > { %v6988_v22 = vadd.f32 %v6984_v57, %v6792_v28  ;;  %v6989_v33 = vadd.f32 %v6985_v3, %v6796_v5  ;;  %v6990_v49 = vadd.f32 %v6986_v52, %v6800_v42  ;;  %v6991_v4 = vadd.f32 %v6987_v19, %v6804_v44  ;;  %v14450_v31 = vpop.f32.mrf.mxu0  ;;  %v14452_v52 = vpop.f32.mrf.mxu1 }
 0x606   : > { %v7164_v13 = vadd.f32 %v7160_v50, %v6988_v22  ;;  %v7165_v40 = vadd.f32 %v7161_v37, %v6989_v33  ;;  %v7166_v39 = vadd.f32 %v7162_v29, %v6990_v49  ;;  %v7167_v51 = vadd.f32 %v7163_v17, %v6991_v4  ;;  %v14454_v50 = vpop.f32.mrf.mxu0  ;;  %v14456_v44 = vpop.f32.mrf.mxu1 }
 0x607   : > { %v9993_v37 = vmov 1966171168  }
 0x608   : > { %v8767_v38 = vmul.f32 -1.442695, %v7164_v13  ;;  %v8768_v61 = vmul.f32 -1.442695, %v7165_v40  ;;  %v8769_v47 = vmul.f32 -1.442695, %v7166_v39  ;;  %v14458_v42 = vpop.f32.mrf.mxu0  ;;  %v14460_v49 = vpop.f32.mrf.mxu1  ;;  %v7201_v13 = vunpack.c.l.s4 %v9993_v37 }
 0x609   : > { %v8770_v43 = vmul.f32 -1.442695, %v7167_v51  ;;  %v7521_v51 = vld [vmem:[#allocation11 + $0x1] ss:$2 sm:$0xf] }
 0x60a   : > { %9702 = vpow2.f32 %v8767_v38  ;;  %v14462_v40 = vpop.f32.mrf.mxu0  ;;  %v14464_v23 = vpop.f32.mrf.mxu1  ;;  %v14467_v58 = vrot.slane %v7521_v51, %v16513_v48  ;;  %v14470_v17 = vrot.slane %v7521_v51, %v16516_v55  ;;  %v14473_v5 = vrot.slane %v7521_v51, %v16514_v20 }
 0x60b   : > { %9704 = vpow2.f32 %v8768_v61  ;;  %v14476_v57 = vrot.slane %v7521_v51, %v16517_v15 }
 0x60c   : > { %9706 = vpow2.f32 %v8769_v47  ;;  %v14478_v19 = vpop.f32.mrf.mxu0  ;;  %v14480_v38 = vpop.f32.mrf.mxu1  ;;  %v14484_v61 = vadd.f32 %v14352_v34, %v14467_v58  ;;  %v14488_v47 = vadd.f32 %v14356_v10, %v14470_v17  ;;  %v14500_v51 = vadd.f32 %v14358_v21, %v14467_v58 }
 0x60d   : > { %9708 = vpow2.f32 %v8770_v43  ;;  %16519 = vst [vmem:[#allocation70_spill] sm:$0xff] %v14476_v57  ;;  %v14492_v43 = vadd.f32 %v14354_v32, %v14473_v5  ;;  %v14506_v34 = vadd.f32 %v14364_v45, %v14470_v17  ;;  %v14510_v10 = vadd.f32 %v14362_v18, %v14473_v5 }
 0x60e   : > { %v14514_v32 = vadd.f32 %v14368_v14, %v14476_v57  ;;  %v14522_v21 = vadd.f32 %v14372_v63, %v14470_v17  ;;  %v14526_v45 = vadd.f32 %v14370_v6, %v14473_v5  ;;  %v14530_v18 = vadd.f32 %v14376_v8, %v14476_v57 }
 0x60f   : > { %v14534_v14 = vadd.f32 %v14374_v16, %v14467_v58  ;;  %v14542_v63 = vadd.f32 %v14378_v12, %v14473_v5  ;;  %v14546_v6 = vadd.f32 %v14384_v11, %v14476_v57  ;;  %v14550_v8 = vadd.f32 %v14382_v27, %v14467_v58 }
 0x610   : > { %v14554_v16 = vadd.f32 %v14388_v26, %v14470_v17  ;;  %v14562_v12 = vadd.f32 %v14392_v54, %v14476_v57  ;;  %v14569_v27 = vadd.f32 %v14390_v62, %v14467_v58  ;;  %v14573_v26 = vadd.f32 %v14396_v35, %v14470_v17 }
 0x611   : > { %16521 = vst [vmem:[#allocation104_spill] sm:$0xff] %v14546_v6  ;;  %v14581_v54 = vadd.f32 %v14400_v30, %v14476_v57  ;;  %v14589_v62 = vadd.f32 %v14404_v36, %v14470_v17  ;;  %v14593_v35 = vadd.f32 %v14402_v46, %v14473_v5  ;;  %v16527_v30 = vld [vmem:[#allocation132_spill] sm:$0xff]  ;;  %v16531_v36 = vld [vmem:[#allocation66_spill] sm:$0xff]  ;;  %v16533_v46 = vld [vmem:[#allocation51_spill] sm:$0xff] }
 0x612   : > { %v14601_v37 = vadd.f32 %v16527_v30, %v14467_v58  ;;  %v16537_v30 = vld [vmem:[#allocation69_spill] sm:$0xff] }
 0x613   : > { %16524 = vst [vmem:[#allocation54_spill] sm:$0xff] %v14589_v62  ;;  %16525 = vst [vmem:[#allocation23_spill] sm:$0xff] %v14593_v35  ;;  %v14613_v35 = vadd.f32 %v16533_v46, %v14476_v57  ;;  %v14621_v62 = vadd.f32 %v16537_v30, %v14470_v17  ;;  %v16543_v46 = vld [vmem:[#allocation21_spill] sm:$0xff]  ;;  %v16545_v30 = vld [vmem:[#allocation139_spill] sm:$0xff] }
 0x614   : > { %16528 = vst [vmem:[#allocation114_spill] sm:$0xff] %v14601_v37 }
 0x615   : > { %16534 = vst [vmem:[#allocation71_spill] sm:$0xff] %v14613_v35  ;;  %16538 = vst [vmem:[#allocation25_spill] sm:$0xff] %v14621_v62  ;;  %v14633_v35 = vadd.f32 %v16543_v46, %v14467_v58  ;;  %v14641_v62 = vadd.f32 %v16545_v30, %v14473_v5  ;;  %v14657_v30 = vadd.f32 %v14446_v59, %v14473_v5 }
 0x616   : > { %v14675_v59 = vadd.f32 %v14454_v50, %v14473_v5  ;;  %v14693_v50 = vadd.f32 %v14462_v40, %v14473_v5 }
 0x617   : > { %v9703_v39 = vpop.eup %9702 }
 0x618   : > { %v9705_v4 = vpop.eup %9704  ;;  %v7180_v22 = vadd.f32 1.0, %v9703_v39  ;;  %v14496_v39 = vadd.f32 %v14360_v0, %v14476_v57  ;;  %v7202_v0 = vunpack.c.0.s8 %v7201_v13  ;;  %16550 = vst [vmem:[#allocation76_spill] sm:$0xff] %v14675_v59  ;;  %16554 = vst [vmem:[#allocation108_spill] sm:$0xff] %v14693_v50  ;;  %v16576_v59 = vld [vmem:[#allocation83_spill] sm:$0xff] }
 0x619   : > { %v9707_v33 = vpop.eup %9706  ;;  %v7181_v29 = vadd.f32 1.0, %v9705_v4  ;;  %v14502_v4 = vpop.f32.mrf.mxu0 }
 0x61a   : > { %v9709_v25 = vpop.eup %9708  ;;  %v7182_v28 = vadd.f32 1.0, %v9707_v33  ;;  %9710 = vrcp.f32 %v7180_v22  ;;  %v14518_v22 = vadd.f32 %v14366_v9, %v14467_v58  ;;  %v7914_v33 = vpop.f32.mrf.mxu1  ;;  %v14538_v9 = vadd.f32 %v14380_v60, %v14470_v17 }
 0x61b   : > { %v7183_v3 = vadd.f32 1.0, %v9709_v25  ;;  %9712 = vrcp.f32 %v7181_v29  ;;  %v14558_v60 = vadd.f32 %v14386_v2, %v14473_v5  ;;  %v7807_v29 = vpop.f32.mrf.mxu0  ;;  %v16522_v25 = vld [vmem:[#allocation20_spill] sm:$0xff]  ;;  %v14577_v2 = vadd.f32 %v14394_v7, %v14473_v5 }
 0x61c   : > { %9714 = vrcp.f32 %v7182_v28  ;;  %16520 = vst [vmem:[#allocation22_spill] sm:$0xff] %v14538_v9  ;;  %v14565_v11 = vsub.s32 %v7202_v0, %v16522_v25  ;;  %v14585_v28 = vadd.f32 %v14398_v56, %v14467_v58  ;;  %v14597_v7 = vadd.f32 %v14408_v1, %v14476_v57  ;;  %v16529_v56 = vld [vmem:[#allocation138_spill] sm:$0xff]  ;;  %v16535_v1 = vld [vmem:[#allocation92_spill] sm:$0xff] }
 0x61d   : > { %9716 = vrcp.f32 %v7183_v3  ;;  %v7916_v3 = vpop.f32.mrf.mxu1  ;;  %v14605_v13 = vadd.f32 %v16529_v56, %v14470_v17  ;;  %v14609_v0 = vadd.f32 %v16531_v36, %v14473_v5  ;;  %v16539_v56 = vld [vmem:[#allocation52_spill] sm:$0xff]  ;;  %v7809_v37 = vpop.f32.mrf.mxu0  ;;  %v14645_v9 = vadd.f32 %v14444_v24, %v14476_v57 }
 0x61e   : > { %16523 = vst [vmem:[#allocation53_spill] sm:$0xff] %v14585_v28  ;;  %16526 = vst [vmem:[#allocation61_spill] sm:$0xff] %v14597_v7  ;;  %v14617_v7 = vadd.f32 %v16535_v1, %v14467_v58  ;;  %v16544_v1 = vld [vmem:[#allocation110_spill] sm:$0xff]  ;;  %v14665_v24 = vadd.f32 %v14450_v31, %v14467_v58  ;;  %v14683_v31 = vadd.f32 %v14458_v42, %v14467_v58 }
 0x61f   : > { %16530 = vst [vmem:[#allocation24_spill] sm:$0xff] %v14605_v13  ;;  %16532 = vst [vmem:[#allocation75_spill] sm:$0xff] %v14609_v0  ;;  %v14625_v13 = vadd.f32 %v16539_v56, %v14473_v5  ;;  %v16541_v0 = vld [vmem:[#allocation67_spill] sm:$0xff]  ;;  %v7920_v46 = vpop.f32.mrf.mxu1  ;;  %v14701_v42 = vadd.f32 %v14478_v19, %v14467_v58 }
 0x620   : > { %16536 = vst [vmem:[#allocation73_spill] sm:$0xff] %v14617_v7  ;;  %v14629_v28 = vadd.f32 %v16541_v0, %v14476_v57  ;;  %v14637_v7 = vadd.f32 %v16544_v1, %v14470_v17  ;;  %16546 = vst [vmem:[#allocation77_spill] sm:$0xff] %v14645_v9  ;;  %v14649_v0 = vadd.f32 %v14442_v41, %v14467_v58 }
 0x621   : > { %16540 = vst [vmem:[#allocation56_spill] sm:$0xff] %v14625_v13  ;;  %v14653_v1 = vadd.f32 %v14448_v53, %v14470_v17  ;;  %v7811_v53 = vpop.f32.mrf.mxu0  ;;  %16552 = vst [vmem:[#allocation27_spill] sm:$0xff] %v14683_v31  ;;  %v14711_v31 = vadd.f32 %v7916_v3, %v14476_v57  ;;  %v14717_v19 = vadd.f32 %v7920_v46, %v14470_v17 }
 0x622   : > { %16542 = vst [vmem:[#allocation55_spill] sm:$0xff] %v14629_v28  ;;  %16547 = vst [vmem:[#allocation78_spill] sm:$0xff] %v14649_v0 }
 0x623   : > { %16548 = vst [vmem:[#allocation26_spill] sm:$0xff] %v14653_v1  ;;  %v14671_v1 = vadd.f32 %v14456_v44, %v14470_v17  ;;  %v14689_v44 = vadd.f32 %v14464_v23, %v14470_v17  ;;  %16556 = vst [vmem:[#allocation119_spill] sm:$0xff] %v14701_v42  ;;  %v14708_v23 = vadd.f32 %v14502_v4, %v14473_v5  ;;  %v16575_v42 = vld [vmem:[#allocation123_spill] sm:$0xff] }
 0x624   : > { %16559 = vst [vmem:[#allocation59_spill] sm:$0xff] %v14711_v31  ;;  %16561 = vst [vmem:[#allocation147_spill] sm:$0xff] %v14717_v19  ;;  %v16572_v19 = vld [vmem:[#allocation146_spill] sm:$0xff] }
 0x625   : > { %16549 = vst [vmem:[#allocation58_spill] sm:$0xff] %v14671_v1  ;;  %16553 = vst [vmem:[#allocation57_spill] sm:$0xff] %v14689_v44  ;;  %v7813_v44 = vpop.f32.mrf.mxu0 }
 0x626   : > { %16558 = vst [vmem:[#allocation79_spill] sm:$0xff] %v14708_v23  ;;  %v16574_v23 = vld [vmem:[#allocation142_spill] sm:$0xff] }
 0x627   : > { %v9711_v25 = vpop.eup %9710 }
 0x628   : > { %v9713_v36 = vpop.eup %9712 }
 0x629   : > { %v9715_v56 = vpop.eup %9714  ;;  %v7196_v13 = vcombine.low %v9711_v25, %v9713_v36  ;;  %v7197_v6 = vcombine.high %v9711_v25, %v9713_v36  ;;  %v14661_v25 = vadd.f32 %v14452_v52, %v14476_v57  ;;  %v14679_v52 = vadd.f32 %v14460_v49, %v14476_v57 }
 0x62a   : > { %v9717_v28 = vpop.eup %9716  ;;  %v14697_v49 = vadd.f32 %v14480_v38, %v14476_v57  ;;  %v14714_v38 = vadd.f32 %v7807_v29, %v14467_v58 }
 0x62b   : > { %v7198_v41 = vcombine.low %v9715_v56, %v9717_v28  ;;  %v7199_v36 = vcombine.high %v9715_v56, %v9717_v28  ;;  %v7206_v0 = vrot.slane %v7196_v13, %v14565_v11  ;;  %v7213_v9 = vrot.slane %v7197_v6, %v14565_v11  ;;  %16551 = vst [vmem:[#allocation117_spill] sm:$0xff] %v14679_v52  ;;  %v7922_v13 = vpop.f32.mrf.mxu1 }
 0x62c   : > { %16555 = vst [vmem:[#allocation112_spill] sm:$0xff] %v14697_v49  ;;  %v14704_v56 = vadd.f32 %v7914_v33, %v14470_v17  ;;  %16560 = vst [vmem:[#allocation60_spill] sm:$0xff] %v14714_v38  ;;  %v14720_v33 = vadd.f32 %v7809_v37, %v14473_v5 }
 0x62d   : > { %v7220_v28 = vrot.slane %v7198_v41, %v14565_v11  ;;  %v7227_v6 = vrot.slane %v7199_v36, %v14565_v11  ;;  %v7924_v3 = vpop.f32.mrf.mxu1 }
 0x62e   : > { %16557 = vst [vmem:[#allocation28_spill] sm:$0xff] %v14704_v56  ;;  %16562 = vst [vmem:[#allocation107_spill] sm:$0xff] %v14720_v33  ;;  %v14737_v37 = vadd.f32 %v7924_v3, %v14470_v17 }
 0x62f   : > { %v7228_v41 = vcombine.low %v7206_v0, %v7220_v28  ;;  %v7229_v36 = vcombine.high %v7206_v0, %v7220_v28  ;;  %v7230_v40 = vcombine.low %v7213_v9, %v7227_v6  ;;  %v7231_v50 = vcombine.high %v7213_v9, %v7227_v6 }
 0x630   : > { %v14725_v0 = vadd.f32 %v7922_v13, %v14476_v57  ;;  %v14728_v9 = vadd.f32 %v7811_v53, %v14467_v58  ;;  %16565 = vst [vmem:[#allocation115_spill] sm:$0xff] %v14737_v37  ;;  %v14740_v28 = vadd.f32 %v7813_v44, %v14473_v5  ;;  %v16567_v44 = vld [vmem:[#allocation116_spill] sm:$0xff]  ;;  %v16573_v57 = vld [vmem:[#allocation95_spill] sm:$0xff] }
 0x631   : > { %v7238_v4 = vrot.slane %v7228_v41, %v14565_v11  ;;  %v7252_v49 = vrot.slane %v7229_v36, %v14565_v11  ;;  %v14731_v29 = vrot.slane %v7230_v40, %v14565_v11  ;;  %v14734_v46 = vrot.slane %v7231_v50, %v14565_v11  ;;  %v16568_v40 = vld [vmem:[#allocation80_spill] sm:$0xff] }
 0x632   : > { %16563 = vst [vmem:[#allocation150_spill] sm:$0xff] %v14725_v0  ;;  %16564 = vst [vmem:[#allocation102_spill] sm:$0xff] %v14728_v9  ;;  %v16570_v0 = vld [vmem:[#allocation135_spill] sm:$0xff] }
 0x633   : > { %16566 = vst [vmem:[#allocation32_spill] sm:$0xff] %v14740_v28  ;;  %v7260_v6 = vcombine.high %v7238_v4, %v7238_v4  ;;  %v7267_v13 = vrot.slane %v7238_v4, %v16513_v48  ;;  %v7271_v58 = vrot.slane %v7238_v4, %v16514_v20  ;;  %v7275_v53 = vrot.slane %v7238_v4, %v16516_v55  ;;  %v16569_v28 = vld [vmem:[#allocation39_spill] sm:$0xff] }
 0x634   : > { %v7279_v41 = vrot.slane %v7238_v4, %v16517_v15  ;;  %v14746_v36 = vcombine.high %v7252_v49, %v7252_v49  ;;  %v14749_v11 = vrot.slane %v7252_v49, %v16513_v48  ;;  %v14752_v17 = vrot.slane %v7252_v49, %v16514_v20  ;;  %v16571_v4 = vld [vmem:[#allocation120_spill] sm:$0xff] }
 0x635   : > { %v7299_v5 = vrot.slane %v7260_v6, %v16513_v48  ;;  %v7424_v50 = vmul.f32 %v7267_v13, %v16567_v44  ;;  %v7425_v3 = vmul.f32 %v7271_v58, %v16568_v40  ;;  %v7426_v37 = vmul.f32 %v7275_v53, %v16569_v28 }
 0x636   : > { %v7427_v33 = vmul.f32 %v7279_v41, %v16570_v0  ;;  %v7428_v9 = vmul.f32 %v7267_v13, %v16571_v4  ;;  %v7429_v38 = vmul.f32 %v7271_v58, %v16572_v19  ;;  %v7430_v31 = vmul.f32 %v7275_v53, %v16573_v57 }
 0x637   : > { %v7431_v56 = vmul.f32 %v7279_v41, %v16574_v23  ;;  %v7440_v52 = vmul.f32 %v7299_v5, %v16575_v42  ;;  %v7444_v1 = vmul.f32 %v7299_v5, %v16576_v59  ;;  %v7929_v44 = vadd.f32 %v14484_v61, %v7424_v50  ;;  %v16580_v50 = vld [vmem:[#allocation126_spill] sm:$0xff] }
 0x638   : > { %v7930_v40 = vadd.f32 %v14492_v43, %v7425_v3  ;;  %v7931_v28 = vadd.f32 %v14488_v47, %v7426_v37  ;;  %v7932_v0 = vadd.f32 %v14496_v39, %v7427_v33  ;;  %v7933_v13 = vadd.f32 %v14500_v51, %v7428_v9  ;;  %v16579_v9 = vld [vmem:[#allocation121_spill] sm:$0xff] }
 0x639   : > { %v7934_v19 = vadd.f32 %v14510_v10, %v7429_v38  ;;  %v7935_v57 = vadd.f32 %v14506_v34, %v7430_v31  ;;  %v7936_v23 = vadd.f32 %v14514_v32, %v7431_v56  ;;  %v7945_v42 = vadd.f32 %v14550_v8, %v7440_v52  ;;  %v16578_v31 = vld [vmem:[#allocation113_spill] sm:$0xff] }
 0x63a   : > { %v7949_v59 = vadd.f32 %v14569_v27, %v7444_v1  ;;  %v7993_v58 = vmax.f32 %v7929_v44, 0.0  ;;  %v7994_v61 = vmax.f32 %v7930_v40, 0.0  ;;  %v7995_v53 = vmax.f32 %v7931_v28, 0.0  ;;  %v16577_v1 = vld [vmem:[#allocation149_spill] sm:$0xff]  ;;  %v16582_v44 = vld [vmem:[#allocation44_spill] sm:$0xff] }
 0x63b   : > { %v7996_v43 = vmax.f32 %v7932_v0, 0.0  ;;  %v7997_v41 = vmax.f32 %v7933_v13, 0.0  ;;  %v7998_v47 = vmax.f32 %v7934_v19, 0.0  ;;  %v7999_v37 = vmax.f32 %v7935_v57, 0.0  ;;  %v16584_v19 = vld [vmem:[#allocation81_spill] sm:$0xff] }
 0x63c   : > { %v8000_v39 = vmax.f32 %v7936_v23, 0.0  ;;  %v8009_v33 = vmax.f32 %v7945_v42, 0.0  ;;  %v8013_v51 = vmax.f32 %v7949_v59, 0.0  ;;  %8057 = vst [vmem:[%s14776_s23] sm:$0xff] %v7993_v58  ;;  %8058 = vst [vmem:[%s14776_s23 + $0x8] sm:$0xff] %v7994_v61  ;;  %v7307_v34 = vrot.slane %v7260_v6, %v16516_v55  ;;  %v16585_v23 = vld [vmem:[#allocation42_spill] sm:$0xff] }
 0x63d   : > { %8059 = vst [vmem:[%s14776_s23 + $0x10] sm:$0xff] %v7995_v53  ;;  %8060 = vst [vmem:[%s14776_s23 + $0x18] sm:$0xff] %v7996_v43  ;;  %v7303_v10 = vrot.slane %v7260_v6, %v16514_v20  ;;  %v7311_v32 = vrot.slane %v7260_v6, %v16517_v15  ;;  %v7291_v8 = vrot.slane %v7252_v49, %v16516_v55  ;;  %v16581_v6 = vld [vmem:[#allocation30_spill] sm:$0xff] }
 0x63e   : > { %8061 = vst [vmem:[%s14776_s23 + $0x20] sm:$0xff] %v7997_v41  ;;  %8062 = vst [vmem:[%s14776_s23 + $0x28] sm:$0xff] %v7998_v47  ;;  %v7295_v27 = vrot.slane %v7252_v49, %v16517_v15  ;;  %v7442_v52 = vmul.f32 %v7307_v34, %v16577_v1  ;;  %v7446_v56 = vmul.f32 %v7307_v34, %v16578_v31  ;;  %v16583_v49 = vld [vmem:[#allocation65_spill] sm:$0xff]  ;;  %v16587_v47 = vld [vmem:[#allocation122_spill] sm:$0xff] }
 0x63f   : > { %8063 = vst [vmem:[%s14776_s23 + $0x30] sm:$0xff] %v7999_v37  ;;  %8064 = vst [vmem:[%s14776_s23 + $0x38] sm:$0xff] %v8000_v39  ;;  %v7315_v38 = vrot.slane %v14746_v36, %v16513_v48  ;;  %v7432_v5 = vmul.f32 %v14749_v11, %v16579_v9  ;;  %v7441_v3 = vmul.f32 %v7303_v10, %v16580_v50  ;;  %v16591_v1 = vld [vmem:[#allocation88_spill] sm:$0xff] }
 0x640   : > { %8073 = vst [vmem:[%s14776_s23 + $0x80] sm:$0xff] %v8009_v33  ;;  %8077 = vst [vmem:[%s14776_s23 + $0xa0] sm:$0xff] %v8013_v51  ;;  %v7445_v4 = vmul.f32 %v7303_v10, %v16581_v6  ;;  %v7443_v40 = vmul.f32 %v7311_v32, %v16582_v44  ;;  %v7447_v28 = vmul.f32 %v7311_v32, %v16583_v49  ;;  %v16590_v10 = vld [vmem:[#allocation143_spill] sm:$0xff] }
 0x641   : > { %v7947_v0 = vadd.f32 %v14554_v16, %v7442_v52  ;;  %v7951_v13 = vadd.f32 %v14573_v26, %v7446_v56  ;;  %v7433_v57 = vmul.f32 %v14752_v17, %v16584_v19  ;;  %v7434_v42 = vmul.f32 %v7291_v8, %v16585_v23  ;;  %v16586_v26 = vld [vmem:[#allocation128_spill] sm:$0xff]  ;;  %v16595_v19 = vld [vmem:[#allocation29_spill] sm:$0xff] }
 0x642   : > { %v7946_v59 = vadd.f32 %v14558_v60, %v7441_v3  ;;  %v7950_v58 = vadd.f32 %v14577_v2, %v7445_v4  ;;  %v7948_v61 = vadd.f32 %v14562_v12, %v7443_v40  ;;  %v7952_v53 = vadd.f32 %v14581_v54, %v7447_v28  ;;  %v16588_v12 = vld [vmem:[#allocation82_spill] sm:$0xff]  ;;  %v16589_v54 = vld [vmem:[#allocation89_spill] sm:$0xff]  ;;  %v16593_v3 = vld [vmem:[#allocation104_spill] sm:$0xff] }
 0x643   : > { %v8011_v16 = vmax.f32 %v7947_v0, 0.0  ;;  %v8015_v43 = vmax.f32 %v7951_v13, 0.0  ;;  %v7435_v41 = vmul.f32 %v7295_v27, %v16586_v26  ;;  %v7436_v37 = vmul.f32 %v14749_v11, %v16587_v47  ;;  %v16594_v4 = vld [vmem:[#allocation53_spill] sm:$0xff]  ;;  %v16599_v26 = vld [vmem:[#allocation31_spill] sm:$0xff] }
 0x644   : > { %v8010_v39 = vmax.f32 %v7946_v59, 0.0  ;;  %v8014_v33 = vmax.f32 %v7950_v58, 0.0  ;;  %v8012_v60 = vmax.f32 %v7948_v61, 0.0  ;;  %v8016_v51 = vmax.f32 %v7952_v53, 0.0  ;;  %v16596_v59 = vld [vmem:[#allocation106_spill] sm:$0xff]  ;;  %v16597_v61 = vld [vmem:[#allocation129_spill] sm:$0xff] }
 0x645   : > { %8075 = vst [vmem:[%s14776_s23 + $0x90] sm:$0xff] %v8011_v16  ;;  %8079 = vst [vmem:[%s14776_s23 + $0xb0] sm:$0xff] %v8015_v43  ;;  %v7437_v2 = vmul.f32 %v14752_v17, %v16588_v12  ;;  %v7438_v34 = vmul.f32 %v7291_v8, %v16589_v54  ;;  %v7439_v32 = vmul.f32 %v7295_v27, %v16590_v10  ;;  %v16592_v27 = vld [vmem:[#allocation22_spill] sm:$0xff]  ;;  %v16598_v16 = vld [vmem:[#allocation48_spill] sm:$0xff] }
 0x646   : > { %v7448_v52 = vmul.f32 %v7315_v38, %v16591_v1  ;;  %8074 = vst [vmem:[%s14776_s23 + $0x88] sm:$0xff] %v8010_v39  ;;  %8078 = vst [vmem:[%s14776_s23 + $0xa8] sm:$0xff] %v8014_v33  ;;  %v7937_v11 = vadd.f32 %v14518_v22, %v7432_v5  ;;  %v7938_v31 = vadd.f32 %v14526_v45, %v7433_v57  ;;  %v16600_v47 = vld [vmem:[#allocation63_spill] sm:$0xff]  ;;  %v16602_v39 = vld [vmem:[#allocation84_spill] sm:$0xff] }
 0x647   : > { %8076 = vst [vmem:[%s14776_s23 + $0x98] sm:$0xff] %v8012_v60  ;;  %8080 = vst [vmem:[%s14776_s23 + $0xb8] sm:$0xff] %v8016_v51  ;;  %v7939_v56 = vadd.f32 %v14522_v21, %v7434_v42  ;;  %v7940_v9 = vadd.f32 %v14530_v18, %v7435_v41  ;;  %v7941_v17 = vadd.f32 %v14534_v14, %v7436_v37  ;;  %v16601_v37 = vld [vmem:[#allocation114_spill] sm:$0xff]  ;;  %v16605_v54 = vld [vmem:[#allocation23_spill] sm:$0xff] }
 0x648   : > { %v7942_v8 = vadd.f32 %v14542_v63, %v7437_v2  ;;  %v7943_v50 = vadd.f32 %v16592_v27, %v7438_v34  ;;  %v7944_v6 = vadd.f32 %v16593_v3, %v7439_v32  ;;  %v7953_v22 = vadd.f32 %v16594_v4, %v7448_v52  ;;  %v16603_v60 = vld [vmem:[#allocation62_spill] sm:$0xff]  ;;  %v16606_v10 = vld [vmem:[#allocation24_spill] sm:$0xff]  ;;  %v16607_v1 = vld [vmem:[#allocation75_spill] sm:$0xff] }
 0x649   : > { %v8001_v45 = vmax.f32 %v7937_v11, 0.0  ;;  %v8002_v21 = vmax.f32 %v7938_v31, 0.0  ;;  %v8003_v5 = vmax.f32 %v7939_v56, 0.0  ;;  %v8004_v18 = vmax.f32 %v7940_v9, 0.0  ;;  %v16604_v12 = vld [vmem:[#allocation54_spill] sm:$0xff]  ;;  %v16608_v11 = vld [vmem:[#allocation61_spill] sm:$0xff] }
 0x64a   : > { %v8005_v44 = vmax.f32 %v7941_v17, 0.0  ;;  %v8006_v40 = vmax.f32 %v7942_v8, 0.0  ;;  %v8007_v14 = vmax.f32 %v7943_v50, 0.0  ;;  %v8008_v49 = vmax.f32 %v7944_v6, 0.0  ;;  %v16609_v9 = vld [vmem:[#allocation71_spill] sm:$0xff]  ;;  %v16610_v8 = vld [vmem:[#allocation73_spill] sm:$0xff] }
 0x64b   : > { %v8017_v63 = vmax.f32 %v7953_v22, 0.0  ;;  %8065 = vst [vmem:[%s14776_s23 + $0x40] sm:$0xff] %v8001_v45  ;;  %8066 = vst [vmem:[%s14776_s23 + $0x48] sm:$0xff] %v8002_v21  ;;  %v7323_v28 = vrot.slane %v14746_v36, %v16516_v55  ;;  %v7319_v0 = vrot.slane %v14746_v36, %v16514_v20  ;;  %v7327_v13 = vrot.slane %v14746_v36, %v16517_v15 }
 0x64c   : > { %8067 = vst [vmem:[%s14776_s23 + $0x50] sm:$0xff] %v8003_v5  ;;  %8068 = vst [vmem:[%s14776_s23 + $0x58] sm:$0xff] %v8004_v18  ;;  %v7452_v57 = vmul.f32 %v7315_v38, %v16595_v19  ;;  %v7331_v23 = vrot.slane %v14731_v29, %v16513_v48  ;;  %v7339_v42 = vrot.slane %v14731_v29, %v16516_v55  ;;  %v16611_v5 = vld [vmem:[#allocation130_spill] sm:$0xff] }
 0x64d   : > { %8069 = vst [vmem:[%s14776_s23 + $0x60] sm:$0xff] %v8005_v44  ;;  %8070 = vst [vmem:[%s14776_s23 + $0x68] sm:$0xff] %v8006_v40  ;;  %v7450_v58 = vmul.f32 %v7323_v28, %v16596_v59  ;;  %v7449_v53 = vmul.f32 %v7319_v0, %v16597_v61  ;;  %v7454_v43 = vmul.f32 %v7323_v28, %v16598_v16 }
 0x64e   : > { %8071 = vst [vmem:[%s14776_s23 + $0x70] sm:$0xff] %v8007_v14  ;;  %8072 = vst [vmem:[%s14776_s23 + $0x78] sm:$0xff] %v8008_v49  ;;  %v7453_v41 = vmul.f32 %v7319_v0, %v16599_v26  ;;  %v7451_v36 = vmul.f32 %v7327_v13, %v16600_v47  ;;  %v7957_v38 = vadd.f32 %v16601_v37, %v7452_v57  ;;  %v16612_v14 = vld [vmem:[#allocation33_spill] sm:$0xff]  ;;  %v16619_v37 = vld [vmem:[#allocation148_spill] sm:$0xff] }
 0x64f   : > { %8081 = vst [vmem:[%s14776_s23 + $0xc0] sm:$0xff] %v8017_v63  ;;  %v7455_v33 = vmul.f32 %v7327_v13, %v16602_v39  ;;  %v7456_v51 = vmul.f32 %v7331_v23, %v16603_v60  ;;  %v7955_v2 = vadd.f32 %v16604_v12, %v7450_v58  ;;  %v7954_v34 = vadd.f32 %v16605_v54, %v7449_v53  ;;  %v16613_v63 = vld [vmem:[#allocation86_spill] sm:$0xff]  ;;  %v16614_v0 = vld [vmem:[#allocation25_spill] sm:$0xff]  ;;  %v16620_v39 = vld [vmem:[#allocation56_spill] sm:$0xff] }
 0x650   : > { %v7959_v32 = vadd.f32 %v16606_v10, %v7454_v43  ;;  %v7958_v52 = vadd.f32 %v16607_v1, %v7453_v41  ;;  %v7956_v31 = vadd.f32 %v16608_v11, %v7451_v36  ;;  %v8021_v56 = vmax.f32 %v7957_v38, 0.0  ;;  %v16615_v58 = vld [vmem:[#allocation34_spill] sm:$0xff]  ;;  %v16617_v26 = vld [vmem:[#allocation93_spill] sm:$0xff]  ;;  %v16621_v60 = vld [vmem:[#allocation55_spill] sm:$0xff] }
 0x651   : > { %v7960_v17 = vadd.f32 %v16609_v9, %v7455_v33  ;;  %v7961_v27 = vadd.f32 %v16610_v8, %v7456_v51  ;;  %v8019_v50 = vmax.f32 %v7955_v2, 0.0  ;;  %v8018_v3 = vmax.f32 %v7954_v34, 0.0  ;;  %v16618_v47 = vld [vmem:[#allocation109_spill] sm:$0xff]  ;;  %v16623_v34 = vld [vmem:[#allocation78_spill] sm:$0xff] }
 0x652   : > { %v8023_v6 = vmax.f32 %v7959_v32, 0.0  ;;  %v8022_v4 = vmax.f32 %v7958_v52, 0.0  ;;  %v8020_v22 = vmax.f32 %v7956_v31, 0.0  ;;  %8085 = vst [vmem:[%s14776_s23 + $0xe0] sm:$0xff] %v8021_v56  ;;  %v7458_v18 = vmul.f32 %v7339_v42, %v16611_v5  ;;  %v16624_v32 = vld [vmem:[#allocation90_spill] sm:$0xff]  ;;  %v16625_v31 = vld [vmem:[#allocation72_spill] sm:$0xff] }
 0x653   : > { %v8024_v45 = vmax.f32 %v7960_v17, 0.0  ;;  %v8025_v21 = vmax.f32 %v7961_v27, 0.0  ;;  %8083 = vst [vmem:[%s14776_s23 + $0xd0] sm:$0xff] %v8019_v50  ;;  %8082 = vst [vmem:[%s14776_s23 + $0xc8] sm:$0xff] %v8018_v3  ;;  %v7335_v44 = vrot.slane %v14731_v29, %v16514_v20  ;;  %v7343_v40 = vrot.slane %v14731_v29, %v16517_v15  ;;  %v16626_v27 = vld [vmem:[#allocation26_spill] sm:$0xff] }
 0x654   : > { %8087 = vst [vmem:[%s14776_s23 + $0xf0] sm:$0xff] %v8023_v6  ;;  %8086 = vst [vmem:[%s14776_s23 + $0xe8] sm:$0xff] %v8022_v4  ;;  %v7460_v49 = vmul.f32 %v7331_v23, %v16612_v14  ;;  %v7462_v28 = vmul.f32 %v7339_v42, %v16613_v63  ;;  %v7963_v13 = vadd.f32 %v16614_v0, %v7458_v18  ;;  %v16616_v23 = vld [vmem:[#allocation94_spill] sm:$0xff]  ;;  %v16627_v6 = vld [vmem:[#allocation64_spill] sm:$0xff] }
 0x655   : > { %8084 = vst [vmem:[%s14776_s23 + $0xd8] sm:$0xff] %v8020_v22  ;;  %8088 = vst [vmem:[%s14776_s23 + $0xf8] sm:$0xff] %v8024_v45  ;;  %v7347_v19 = vrot.slane %v14734_v46, %v16513_v48  ;;  %v7355_v57 = vrot.slane %v14734_v46, %v16516_v55  ;;  %v7351_v59 = vrot.slane %v14734_v46, %v16514_v20  ;;  %v16628_v22 = vld [vmem:[#allocation36_spill] sm:$0xff]  ;;  %v16631_v14 = vld [vmem:[#allocation49_spill] sm:$0xff] }
 0x656   : > { %8089 = vst [vmem:[%s14776_s23 + $0x100] sm:$0xff] %v8025_v21  ;;  %v7457_v61 = vmul.f32 %v7335_v44, %v16615_v58  ;;  %v7459_v53 = vmul.f32 %v7343_v40, %v16616_v23  ;;  %v7965_v42 = vadd.f32 %v14633_v35, %v7460_v49  ;;  %v7967_v16 = vadd.f32 %v14637_v7, %v7462_v28  ;;  %v16622_v7 = vld [vmem:[#allocation77_spill] sm:$0xff] }
 0x657   : > { %v8027_v43 = vmax.f32 %v7963_v13, 0.0  ;;  %v7461_v41 = vmul.f32 %v7335_v44, %v16617_v26  ;;  %v7463_v36 = vmul.f32 %v7343_v40, %v16618_v47  ;;  %v7464_v38 = vmul.f32 %v7347_v19, %v16619_v37  ;;  %v16629_v21 = vld [vmem:[#allocation105_spill] sm:$0xff]  ;;  %v16630_v44 = vld [vmem:[#allocation74_spill] sm:$0xff]  ;;  %v16635_v26 = vld [vmem:[#allocation35_spill] sm:$0xff] }
 0x658   : > { %v7962_v33 = vadd.f32 %v16620_v39, %v7457_v61  ;;  %v7964_v51 = vadd.f32 %v16621_v60, %v7459_v53  ;;  %v8029_v12 = vmax.f32 %v7965_v42, 0.0  ;;  %v8031_v2 = vmax.f32 %v7967_v16, 0.0  ;;  %v16632_v13 = vld [vmem:[#allocation58_spill] sm:$0xff]  ;;  %v16634_v61 = vld [vmem:[#allocation117_spill] sm:$0xff]  ;;  %v16636_v47 = vld [vmem:[#allocation111_spill] sm:$0xff] }
 0x659   : > { %8091 = vst [vmem:[%s14776_s23 + $0x110] sm:$0xff] %v8027_v43  ;;  %v7966_v35 = vadd.f32 %v14641_v62, %v7461_v41  ;;  %v7968_v54 = vadd.f32 %v16622_v7, %v7463_v36  ;;  %v7969_v10 = vadd.f32 %v16623_v34, %v7464_v38  ;;  %v7466_v1 = vmul.f32 %v7355_v57, %v16624_v32  ;;  %v16637_v37 = vld [vmem:[#allocation96_spill] sm:$0xff]  ;;  %v16641_v7 = vld [vmem:[#allocation57_spill] sm:$0xff]  ;;  %v16642_v34 = vld [vmem:[#allocation127_spill] sm:$0xff] }
 0x65a   : > { %v8026_v52 = vmax.f32 %v7962_v33, 0.0  ;;  %v8028_v11 = vmax.f32 %v7964_v51, 0.0  ;;  %8093 = vst [vmem:[%s14776_s23 + $0x120] sm:$0xff] %v8029_v12  ;;  %8095 = vst [vmem:[%s14776_s23 + $0x130] sm:$0xff] %v8031_v2  ;;  %v7465_v56 = vmul.f32 %v7351_v59, %v16625_v31  ;;  %v7359_v9 = vrot.slane %v14734_v46, %v16517_v15  ;;  %v16638_v33 = vld [vmem:[#allocation97_spill] sm:$0xff]  ;;  %v16639_v51 = vld [vmem:[#allocation100_spill] sm:$0xff] }
 0x65b   : > { %v8030_v17 = vmax.f32 %v7966_v35, 0.0  ;;  %v8032_v62 = vmax.f32 %v7968_v54, 0.0  ;;  %v8033_v8 = vmax.f32 %v7969_v10, 0.0  ;;  %v7971_v50 = vadd.f32 %v16626_v27, %v7466_v1  ;;  %v16640_v2 = vld [vmem:[#allocation27_spill] sm:$0xff]  ;;  %v16643_v1 = vld [vmem:[#allocation108_spill] sm:$0xff] }
 0x65c   : > { %8090 = vst [vmem:[%s14776_s23 + $0x108] sm:$0xff] %v8026_v52  ;;  %8092 = vst [vmem:[%s14776_s23 + $0x118] sm:$0xff] %v8028_v11  ;;  %v7970_v3 = vadd.f32 %v14657_v30, %v7465_v56  ;;  %v7467_v4 = vmul.f32 %v7359_v9, %v16627_v6  ;;  %v7468_v45 = vmul.f32 %v7347_v19, %v16628_v22  ;;  %v16644_v11 = vld [vmem:[#allocation68_spill] sm:$0xff]  ;;  %v16645_v56 = vld [vmem:[#allocation119_spill] sm:$0xff]  ;;  %v7926_v22 = vpop.f32.mrf.mxu1 }
 0x65d   : > { %v7470_v5 = vmul.f32 %v7355_v57, %v16629_v21  ;;  %8094 = vst [vmem:[%s14776_s23 + $0x128] sm:$0xff] %v8030_v17  ;;  %8096 = vst [vmem:[%s14776_s23 + $0x138] sm:$0xff] %v8032_v62  ;;  %v8035_v18 = vmax.f32 %v7971_v50, 0.0  ;;  %v7469_v40 = vmul.f32 %v7351_v59, %v16630_v44  ;;  %v7471_v49 = vmul.f32 %v7359_v9, %v16631_v14  ;;  %v16633_v57 = vld [vmem:[#allocation76_spill] sm:$0xff]  ;;  %v16647_v50 = vld [vmem:[#allocation79_spill] sm:$0xff] }
 0x65e   : > { %8097 = vst [vmem:[%s14776_s23 + $0x140] sm:$0xff] %v8033_v8  ;;  %v7261_v63 = vcombine.high %v14731_v29, %v14731_v29  ;;  %v8034_v28 = vmax.f32 %v7970_v3, 0.0  ;;  %v7972_v30 = vadd.f32 %v14661_v25, %v7467_v4  ;;  %v7973_v0 = vadd.f32 %v14665_v24, %v7468_v45  ;;  %v16646_v17 = vld [vmem:[#allocation28_spill] sm:$0xff]  ;;  %v16648_v6 = vld [vmem:[#allocation41_spill] sm:$0xff] }
 0x65f   : > { %v7975_v19 = vadd.f32 %v16632_v13, %v7470_v5  ;;  %8099 = vst [vmem:[%s14776_s23 + $0x150] sm:$0xff] %v8035_v18  ;;  %v7974_v58 = vadd.f32 %v16633_v57, %v7469_v40  ;;  %v7976_v59 = vadd.f32 %v16634_v61, %v7471_v49  ;;  %v7263_v32 = vcombine.high %v14734_v46, %v14734_v46  ;;  %v16649_v46 = vld [vmem:[#allocation112_spill] sm:$0xff]  ;;  %v16650_v40 = vld [vmem:[#allocation59_spill] sm:$0xff]  ;;  %v16651_v13 = vld [vmem:[#allocation70_spill] sm:$0xff] }
 0x660   : > { %v7363_v23 = vrot.slane %v7261_v63, %v16513_v48  ;;  %v7371_v53 = vrot.slane %v7261_v63, %v16516_v55  ;;  %8098 = vst [vmem:[%s14776_s23 + $0x148] sm:$0xff] %v8034_v28  ;;  %v8036_v29 = vmax.f32 %v7972_v30, 0.0  ;;  %v8037_v25 = vmax.f32 %v7973_v0, 0.0 }
 0x661   : > { %v8039_v24 = vmax.f32 %v7975_v19, 0.0  ;;  %v7367_v42 = vrot.slane %v7261_v63, %v16514_v20  ;;  %v8038_v16 = vmax.f32 %v7974_v58, 0.0  ;;  %v8040_v43 = vmax.f32 %v7976_v59, 0.0  ;;  %v16652_v58 = vld [vmem:[#allocation98_spill] sm:$0xff] }
 0x662   : > { %v7472_v41 = vmul.f32 %v7363_v23, %v16635_v26  ;;  %v7474_v36 = vmul.f32 %v7371_v53, %v16636_v47  ;;  %8100 = vst [vmem:[%s14776_s23 + $0x158] sm:$0xff] %v8036_v29  ;;  %8101 = vst [vmem:[%s14776_s23 + $0x160] sm:$0xff] %v8037_v25  ;;  %v7375_v39 = vrot.slane %v7261_v63, %v16517_v15  ;;  %v16656_v25 = vld [vmem:[#allocation125_spill] sm:$0xff] }
 0x663   : > { %8103 = vst [vmem:[%s14776_s23 + $0x170] sm:$0xff] %v8039_v24  ;;  %v7473_v38 = vmul.f32 %v7367_v42, %v16637_v37  ;;  %v7476_v60 = vmul.f32 %v7363_v23, %v16638_v33  ;;  %v7478_v12 = vmul.f32 %v7371_v53, %v16639_v51  ;;  %8102 = vst [vmem:[%s14776_s23 + $0x168] sm:$0xff] %v8038_v16  ;;  %v16655_v53 = vld [vmem:[#allocation134_spill] sm:$0xff]  ;;  %v16663_v33 = vld [vmem:[#allocation107_spill] sm:$0xff] }
 0x664   : > { %8104 = vst [vmem:[%s14776_s23 + $0x178] sm:$0xff] %v8040_v43  ;;  %v7977_v35 = vadd.f32 %v16640_v2, %v7472_v41  ;;  %v7979_v54 = vadd.f32 %v16641_v7, %v7474_v36  ;;  %v7477_v10 = vmul.f32 %v7367_v42, %v16642_v34  ;;  %v7475_v31 = vmul.f32 %v7375_v39, %v16644_v11  ;;  %v16659_v43 = vld [vmem:[#allocation60_spill] sm:$0xff]  ;;  %v16660_v41 = vld [vmem:[#allocation147_spill] sm:$0xff]  ;;  %v16661_v36 = vld [vmem:[#allocation102_spill] sm:$0xff] }
 0x665   : > { %v7978_v52 = vadd.f32 %v16643_v1, %v7473_v38  ;;  %v7981_v9 = vadd.f32 %v16645_v56, %v7476_v60  ;;  %v7983_v62 = vadd.f32 %v16646_v17, %v7478_v12  ;;  %v7479_v4 = vmul.f32 %v7375_v39, %v16648_v6  ;;  %v16662_v38 = vld [vmem:[#allocation101_spill] sm:$0xff]  ;;  %v16664_v51 = vld [vmem:[#allocation150_spill] sm:$0xff]  ;;  %v16665_v2 = vld [vmem:[#allocation115_spill] sm:$0xff] }
 0x666   : > { %v8041_v8 = vmax.f32 %v7977_v35, 0.0  ;;  %v8043_v27 = vmax.f32 %v7979_v54, 0.0  ;;  %v7982_v3 = vadd.f32 %v16647_v50, %v7477_v10  ;;  %v7980_v21 = vadd.f32 %v16649_v46, %v7475_v31  ;;  %v16666_v7 = vld [vmem:[#allocation32_spill] sm:$0xff] }
 0x667   : > { %v8042_v45 = vmax.f32 %v7978_v52, 0.0  ;;  %v8045_v5 = vmax.f32 %v7981_v9, 0.0  ;;  %v8047_v18 = vmax.f32 %v7983_v62, 0.0  ;;  %v7984_v14 = vadd.f32 %v16650_v40, %v7479_v4 }
 0x668   : > { %8105 = vst [vmem:[%s14776_s23 + $0x180] sm:$0xff] %v8041_v8  ;;  %8107 = vst [vmem:[%s14776_s23 + $0x190] sm:$0xff] %v8043_v27  ;;  %v8046_v44 = vmax.f32 %v7982_v3, 0.0  ;;  %v7379_v49 = vrot.slane %v7263_v32, %v16513_v48  ;;  %v7387_v63 = vrot.slane %v7263_v32, %v16516_v55  ;;  %v8044_v28 = vmax.f32 %v7980_v21, 0.0  ;;  %v16653_v48 = vld [vmem:[#allocation43_spill] sm:$0xff]  ;;  %v16654_v55 = vld [vmem:[#allocation37_spill] sm:$0xff] }
 0x669   : > { %8106 = vst [vmem:[%s14776_s23 + $0x188] sm:$0xff] %v8042_v45  ;;  %8109 = vst [vmem:[%s14776_s23 + $0x1a0] sm:$0xff] %v8045_v5  ;;  %v7383_v30 = vrot.slane %v7263_v32, %v16514_v20  ;;  %v7391_v0 = vrot.slane %v7263_v32, %v16517_v15  ;;  %v7927_v19 = vadd.f32 %v7926_v22, %v16651_v13  ;;  %v8048_v57 = vmax.f32 %v7984_v14, 0.0  ;;  %v16657_v20 = vld [vmem:[#allocation46_spill] sm:$0xff]  ;;  %v16658_v15 = vld [vmem:[#allocation40_spill] sm:$0xff] }
 0x66a   : > { %8111 = vst [vmem:[%s14776_s23 + $0x1b0] sm:$0xff] %v8047_v18  ;;  %8110 = vst [vmem:[%s14776_s23 + $0x1a8] sm:$0xff] %v8046_v44  ;;  %v7480_v61 = vmul.f32 %v7379_v49, %v16652_v58  ;;  %v7482_v59 = vmul.f32 %v7387_v63, %v16653_v48  ;;  %v7484_v23 = vmul.f32 %v7379_v49, %v16654_v55 }
 0x66b   : > { %8108 = vst [vmem:[%s14776_s23 + $0x198] sm:$0xff] %v8044_v28  ;;  %v7481_v29 = vmul.f32 %v7383_v30, %v16655_v53  ;;  %v7483_v24 = vmul.f32 %v7391_v0, %v16656_v25  ;;  %v7486_v42 = vmul.f32 %v7387_v63, %v16657_v20  ;;  %v7485_v16 = vmul.f32 %v7383_v30, %v16658_v15 }
 0x66c   : > { %8112 = vst [vmem:[%s14776_s23 + $0x1b8] sm:$0xff] %v8048_v57  ;;  %v7985_v26 = vadd.f32 %v16659_v43, %v7480_v61  ;;  %v7987_v47 = vadd.f32 %v16660_v41, %v7482_v59  ;;  %v7989_v37 = vadd.f32 %v16661_v36, %v7484_v23  ;;  %v7487_v39 = vmul.f32 %v7391_v0, %v16662_v38 }
 0x66d   : > { %v7986_v60 = vadd.f32 %v16663_v33, %v7481_v29  ;;  %v7988_v12 = vadd.f32 %v16664_v51, %v7483_v24  ;;  %v7991_v35 = vadd.f32 %v16665_v2, %v7486_v42  ;;  %v7990_v54 = vadd.f32 %v16666_v7, %v7485_v16 }
 0x66e   : > { %v8049_v34 = vmax.f32 %v7985_v26, 0.0  ;;  %v8051_v10 = vmax.f32 %v7987_v47, 0.0  ;;  %v8053_v32 = vmax.f32 %v7989_v37, 0.0  ;;  %v7992_v1 = vadd.f32 %v7927_v19, %v7487_v39 }
 0x66f   : > { %v8050_v52 = vmax.f32 %v7986_v60, 0.0  ;;  %v8052_v11 = vmax.f32 %v7988_v12, 0.0  ;;  %v8055_v31 = vmax.f32 %v7991_v35, 0.0  ;;  %v8054_v56 = vmax.f32 %v7990_v54, 0.0 }
 0x670   : > { %8113 = vst [vmem:[%s14776_s23 + $0x1c0] sm:$0xff] %v8049_v34  ;;  %8115 = vst [vmem:[%s14776_s23 + $0x1d0] sm:$0xff] %v8051_v10  ;;  %v8056_v9 = vmax.f32 %v7992_v1, 0.0 }
 0x671   : > { %8117 = vst [vmem:[%s14776_s23 + $0x1e0] sm:$0xff] %v8053_v32  ;;  %8114 = vst [vmem:[%s14776_s23 + $0x1c8] sm:$0xff] %v8050_v52 }
 0x672   : > { %8116 = vst [vmem:[%s14776_s23 + $0x1d8] sm:$0xff] %v8052_v11  ;;  %8119 = vst [vmem:[%s14776_s23 + $0x1f0] sm:$0xff] %v8055_v31 }
 0x673   : > { %8118 = vst [vmem:[%s14776_s23 + $0x1e8] sm:$0xff] %v8054_v56  ;;  %8120 = vst [vmem:[%s14776_s23 + $0x1f8] sm:$0xff] %v8056_v9 }
 0x674   : > { %9915 = shalt.err (!%p9912_p3)
}
 0x675   : > { %s9916_s18 = scalar_lea.hbm %s14992_s20, 8192  ;;  %s9920_s14 = scalar_lea.hbm %s15053_s8, 16384 }
 0x676   : > { %p9917_p6 = scmp.ne.s32.totalorder %s14992_s20, %s9916_s18  ;;  %p9921_p11 = scmp.lt.s32.totalorder %s14992_s20, %s15053_s8 }
 0x677   : > { %p9922_p7 = scmp.lt.s32.totalorder %s9920_s14, %s9916_s18 }
 0x678   : > { %p9918_p10 = pnand %p9917_p6, %p16667_p5 }
 0x679   : > { %p9923_p13 = por %p9922_p7, %p9921_p11 }
 0x67a   : > { %p9919_p12 = pneg %p9918_p10 }
 0x67c   : > { %p9924_p2 = pnand %p9923_p13, %p9919_p12 }
 0x67e   : > { %9927 = shalt.err (!%p9924_p2)
}
 0x67f   : > { %s9995_s11 = smov 512   ;;  %s9996_s1 = smov 32  }
 0x680   : > { %8838 = dma.vmem_to_hbm [thread:$0]  (%p16667_p5), %s14994_s10, 8192, %s14992_s20, %s8122_s2, %s9995_s11, %s9995_s11, %s9996_s1  }
 0x681 PF: > { %s8151_s21 = sand.u32 1, %s9966_s27   ;;  %p16668_p8 = scmp.ne.s32.totalorder %s15426_s26, 0 }
 0x682   : > { %p16669_p9 = scmp.ge.s32.totalorder %s9978_s30, 2  ;;  %s8152_s12 = scalar_lea.sflag [#allocation4], %s8151_s21 }
 0x684   : > { %p8864_p4 = pnand %p16669_p9, %p16668_p8 }
 0x686   : > { %p8865_p0 = pneg %p8864_p4 }
 0x688   : > { %9961 = dma.done.wait (%p8865_p0), %s8152_s12, 8192  }
 0x689   : > { %9963 = vsyncadd (%p8865_p0), %s8152_s12, 4294959104  ;;  %p24_p1 = scmp.ge.s32.totalorder %s10154_s15, 4   ;;  %s16670_s27 = smov %s9970_s28 }
 0x68a   : > { %s16671_s28 = smov %s9974_s29  ;;  %s16672_s29 = smov %s10165_s22 }
 0x68b   : > { %s16673_s30 = smov %s10154_s15  ;;  %26 = sbr.rel (!%p24_p1) target bundleno = 11 (0xb), region = 124 }
 0x690   :  { %8157 = vsyncpa [#allocation3], 1 }
 0x691   :  { %8159 = vsyncpa [#allocation3 + $0x1], 1 }
 0x692   :  { %8160 = vsyncpa [#allocation6], 1 }
 0x693   :  { %8161 = vsyncpa [#allocation9], 1 }
 0x694   :  { %8162 = vsyncpa [#allocation12], 1 }
 0x695   :  { %8163 = vsyncpa [#allocation4], 1 }
 0x696   :  { %8165 = vsyncpa [#allocation4 + $0x1], 1 }

</bundles_post_ra>
